<compile_context>
chip_gen: v7x
topology: tpu7x:2x2x1
jax: 0.10.0
libtpu: 0.0.40
codegen_flags: <defaults>
</compile_context>

<pallas_src>
import math
import functools

import jax
import jax.numpy as jnp
from jax.experimental import pallas as pl
from jax.experimental.pallas import tpu as pltpu

_LN_EPS = 1e-5


# ----------------------------------------------------------------------------
# In-kernel helpers (operate on values already resident in vregs/VMEM)
# ----------------------------------------------------------------------------
def _mm(x, w, b):
    """x @ w + b with bf16 MXU inputs, f32 accumulation.  w:(K,N) bf16, b:(1,N) f32."""
    y = jnp.dot(x.astype(w.dtype), w, preferred_element_type=jnp.float32)
    return y + b


def _ln(x, gb, eps=_LN_EPS):
    """LayerNorm over last dim with f32 statistics.  gb:(2,D) = [gamma; beta]."""
    m = jnp.mean(x, axis=-1, keepdims=True)
    c = x - m
    v = jnp.mean(c * c, axis=-1, keepdims=True)
    return c * jax.lax.rsqrt(v + eps) * gb[0:1, :] + gb[1:2, :]


def _mha_core(q, k, v, wo, bo, nheads):
    """Per-head softmax attention with the output projection fused in.

    q:(Lq,D), k/v:(Lk,D) f32 (1/sqrt(Dh) already folded into the q projection),
    wo:(D,D) bf16, bo:(1,D) f32.  Returns (Lq,D) f32.
    Heads are contiguous D-slices, so instead of concatenating head outputs we
    accumulate  o_h @ wo[h*Dh:(h+1)*Dh, :]  (block-matmul identity).
    """
    Lq, D = q.shape
    Dh = D // nheads
    acc = None
    for h in range(nheads):
        sl = slice(h * Dh, (h + 1) * Dh)
        qh, kh, vh = q[:, sl], k[:, sl], v[:, sl]
        s = jax.lax.dot_general(qh, kh, (((1,), (1,)), ((), ())),
                                preferred_element_type=jnp.float32)      # (Lq,Lk)
        s = s - jnp.max(s, axis=-1, keepdims=True)
        p = jnp.exp(s)
        p = p * pl.reciprocal(jnp.sum(p, axis=-1, keepdims=True), approx=True)
        oh = jnp.dot(p, vh, preferred_element_type=jnp.float32)          # (Lq,Dh)
        proj = jnp.dot(oh.astype(wo.dtype), wo[sl, :],
                       preferred_element_type=jnp.float32)               # (Lq,D)
        acc = proj if acc is None else acc + proj
    return acc + bo


def _replicated_spec(arr):
    """BlockSpec selecting the whole array regardless of the grid index."""
    zeros = (0,) * arr.ndim
    return pl.BlockSpec(arr.shape, lambda *_: zeros)


# ----------------------------------------------------------------------------
# Fused kernels
# ----------------------------------------------------------------------------
def _linear_kernel(x_ref, w_ref, b_ref, o_ref):
    o_ref[...] = _mm(x_ref[...], w_ref[...], b_ref[...]).astype(o_ref.dtype)


def pallas_linear(x, w, b2d):
    """y = x @ w + b ;  x:(M,K) f32, w:(K,N) bf16, b2d:(1,N) f32."""
    M, K = x.shape
    N = w.shape[1]
    tm = 512 if (M > 512 and M % 512 == 0) else M
    return pl.pallas_call(
        _linear_kernel,
        out_shape=jax.ShapeDtypeStruct((M, N), jnp.float32),
        grid=(M // tm,),
        in_specs=[pl.BlockSpec((tm, K), lambda i: (i, 0)),
                  _replicated_spec(w),
                  _replicated_spec(b2d)],
        out_specs=pl.BlockSpec((tm, N), lambda i: (i, 0)),
        compiler_params=pltpu.CompilerParams(dimension_semantics=("parallel",)),
    )(x, w, b2d)


def _encoder_layer_kernel(src_ref, pos_ref,
                          wqk_r, bqk_r, wv_r, bv_r, wo_r, bo_r, n1_r,
                          w1_r, b1_r, w2_r, b2_r, n2_r,
                          out_ref, *, nheads):
    """Whole post-norm DETR encoder layer for one batch element."""
    src = src_ref[0].astype(jnp.float32)          # (L, D)
    pos = pos_ref[0].astype(jnp.float32)
    D = src.shape[-1]

    # fused Q|K projection from (src+pos); V from src (scale folded into Wq,bq)
    qk_in = src + pos
    qk = _mm(qk_in, wqk_r[...], bqk_r[...])       # (L, 2D)
    v = _mm(src, wv_r[...], bv_r[...])            # (L, D)
    attn = _mha_core(qk[:, :D], qk[:, D:], v, wo_r[...], bo_r[...], nheads)

    x = _ln(src + attn, n1_r[...])
    ff = jnp.maximum(_mm(x, w1_r[...], b1_r[...]), 0.0)
    ff = _mm(ff, w2_r[...], b2_r[...])
    y = _ln(x + ff, n2_r[...])
    out_ref[0] = y.astype(out_ref.dtype)


def encoder_layer_fwd(src, pos, p, nheads):
    B, L, D = src.shape
    weights = [p["wqk"], p["bqk"], p["wv"], p["bv"], p["wo"], p["bo"], p["n1"],
               p["w1"], p["b1"], p["w2"], p["b2"], p["n2"]]
    in_specs = ([pl.BlockSpec((1, L, D), lambda b: (b, 0, 0)),
                 pl.BlockSpec((1, L, D), lambda b: (b, 0, 0))]
                + [_replicated_spec(w) for w in weights])
    return pl.pallas_call(
        functools.partial(_encoder_layer_kernel, nheads=nheads),
        out_shape=jax.ShapeDtypeStruct((B, L, D), jnp.float32),
        grid=(B,),
        in_specs=in_specs,
        out_specs=pl.BlockSpec((1, L, D), lambda b: (b, 0, 0)),
        compiler_params=pltpu.CompilerParams(dimension_semantics=("parallel",)),
    )(src, pos, *weights)


def _decoder_layer_kernel(tgt_ref, mem_ref, pos_ref, qpos_ref,
                          sa_wqk_r, sa_bqk_r, sa_wv_r, sa_bv_r, sa_wo_r, sa_bo_r, n1_r,
                          ca_wq_r, ca_bq_r, ca_wk_r, ca_bk_r, ca_wv_r, ca_bv_r,
                          ca_wo_r, ca_bo_r, n2_r,
                          w1_r, b1_r, w2_r, b2_r, n3_r, dn_r,
                          out_ref, normed_ref, *, nheads):
    """Whole post-norm DETR decoder layer (self-attn, cross-attn, FFN) plus
    the shared `decoder_norm` applied to the intermediate output."""
    tgt = tgt_ref[0].astype(jnp.float32)          # (Q, D)
    mem = mem_ref[0].astype(jnp.float32)          # (L, D)
    pos = pos_ref[0].astype(jnp.float32)          # (L, D)
    qpos = qpos_ref[...].astype(jnp.float32)      # (Q, D)
    D = tgt.shape[-1]

    # --- self attention (q = k = tgt + qpos, v = tgt) ---
    qk = _mm(tgt + qpos, sa_wqk_r[...], sa_bqk_r[...])      # (Q, 2D)
    v = _mm(tgt, sa_wv_r[...], sa_bv_r[...])
    attn = _mha_core(qk[:, :D], qk[:, D:], v, sa_wo_r[...], sa_bo_r[...], nheads)
    x = _ln(tgt + attn, n1_r[...])

    # --- cross attention (q = x + qpos, k = mem + pos, v = mem) ---
    q = _mm(x + qpos, ca_wq_r[...], ca_bq_r[...])
    k = _mm(mem + pos, ca_wk_r[...], ca_bk_r[...])
    v = _mm(mem, ca_wv_r[...], ca_bv_r[...])
    attn = _mha_core(q, k, v, ca_wo_r[...], ca_bo_r[...], nheads)
    x = _ln(x + attn, n2_r[...])

    # --- FFN ---
    ff = jnp.maximum(_mm(x, w1_r[...], b1_r[...]), 0.0)
    ff = _mm(ff, w2_r[...], b2_r[...])
    y = _ln(x + ff, n3_r[...])

    out_ref[0] = y.astype(out_ref.dtype)
    normed_ref[0] = _ln(y, dn_r[...]).astype(normed_ref.dtype)


def decoder_layer_fwd(tgt, memory, pos, qpos, p, dec_norm, nheads):
    B, Q, D = tgt.shape
    L = memory.shape[1]
    weights = [p["sa_wqk"], p["sa_bqk"], p["sa_wv"], p["sa_bv"], p["sa_wo"], p["sa_bo"], p["n1"],
               p["ca_wq"], p["ca_bq"], p["ca_wk"], p["ca_bk"], p["ca_wv"], p["ca_bv"],
               p["ca_wo"], p["ca_bo"], p["n2"],
               p["w1"], p["b1"], p["w2"], p["b2"], p["n3"], dec_norm]
    in_specs = ([pl.BlockSpec((1, Q, D), lambda b: (b, 0, 0)),
                 pl.BlockSpec((1, L, D), lambda b: (b, 0, 0)),
                 pl.BlockSpec((1, L, D), lambda b: (b, 0, 0)),
                 _replicated_spec(qpos)]
                + [_replicated_spec(w) for w in weights])
    out, normed = pl.pallas_call(
        functools.partial(_decoder_layer_kernel, nheads=nheads),
        out_shape=(jax.ShapeDtypeStruct((B, Q, D), jnp.float32),
                   jax.ShapeDtypeStruct((B, Q, D), jnp.float32)),
        grid=(B,),
        in_specs=in_specs,
        out_specs=(pl.BlockSpec((1, Q, D), lambda b: (b, 0, 0)),
                   pl.BlockSpec((1, Q, D), lambda b: (b, 0, 0))),
        compiler_params=pltpu.CompilerParams(dimension_semantics=("parallel",)),
    )(tgt, memory, pos, qpos, *weights)
    return out, normed


def _heads_kernel(x_ref, wcat_r, bcat_r, w2_r, b2_r, w3_r, b3_r,
                  cls_ref, me_ref, *, ncls1):
    """class head + 3-layer mask-embed MLP, fused (one read of hs)."""
    x = x_ref[...].astype(jnp.float32)                        # (M, D)
    y = _mm(x, wcat_r[...], bcat_r[...])                      # (M, ncls1 + D)
    cls_ref[...] = y[:, :ncls1].astype(cls_ref.dtype)
    h = jnp.maximum(y[:, ncls1:], 0.0)                        # mask MLP layer 1 (ReLU)
    h = jnp.maximum(_mm(h, w2_r[...], b2_r[...]), 0.0)        # layer 2 (ReLU)
    me_ref[...] = _mm(h, w3_r[...], b3_r[...]).astype(me_ref.dtype)   # layer 3


def pallas_heads(x, hp, ncls1):
    M, D = x.shape
    mask_dim = hp["w3"].shape[1]
    weights = [hp["wcat"], hp["bcat"], hp["w2"], hp["b2"], hp["w3"], hp["b3"]]
    return pl.pallas_call(
        functools.partial(_heads_kernel, ncls1=ncls1),
        out_shape=(jax.ShapeDtypeStruct((M, ncls1), jnp.float32),
                   jax.ShapeDtypeStruct((M, mask_dim), jnp.float32)),
        grid=(1,),
        in_specs=[pl.BlockSpec((M, D), lambda i: (0, 0))]
                 + [_replicated_spec(w) for w in weights],
        out_specs=(pl.BlockSpec((M, ncls1), lambda i: (0, 0)),
                   pl.BlockSpec((M, mask_dim), lambda i: (0, 0))),
    )(x, *weights)


def _bmm_kernel(a_ref, b_ref, o_ref):
    o_ref[0] = jnp.dot(a_ref[0].astype(jnp.bfloat16), b_ref[0].astype(jnp.bfloat16),
                       preferred_element_type=jnp.float32).astype(o_ref.dtype)


def pallas_bmm(a, b):
    """batched matmul a:(B,M,K) @ b:(B,K,N) -> (B,M,N), lane-tiled over N."""
    B, M, K = a.shape
    N = b.shape[2]
    tn = 512 if (N > 512 and N % 512 == 0) else N
    return pl.pallas_call(
        _bmm_kernel,
        out_shape=jax.ShapeDtypeStruct((B, M, N), jnp.float32),
        grid=(B, N // tn),
        in_specs=[pl.BlockSpec((1, M, K), lambda i, j: (i, 0, 0)),
                  pl.BlockSpec((1, K, tn), lambda i, j: (i, 0, j))],
        out_specs=pl.BlockSpec((1, M, tn), lambda i, j: (i, 0, j)),
        compiler_params=pltpu.CompilerParams(
            dimension_semantics=("parallel", "parallel")),
    )(a, b)


# ----------------------------------------------------------------------------
# Position embedding (small elementwise/cumsum glue, plain JAX)
# ----------------------------------------------------------------------------
def position_embedding_sine(B, H, W, num_pos_feats, temperature=10000.0,
                            scale=2.0 * math.pi):
    """PositionEmbeddingSine(apply_normalize=True), mask=None.  Returns (B, 2*npf, H, W)."""
    ones = jnp.ones((B, H, W), jnp.float32)
    y_embed = jnp.cumsum(ones, axis=1)
    x_embed = jnp.cumsum(ones, axis=2)
    eps = 1e-6
    y_embed = y_embed / (y_embed[:, -1:, :] + eps) * scale
    x_embed = x_embed / (x_embed[:, :, -1:] + eps) * scale
    dim_t = jnp.arange(num_pos_feats, dtype=jnp.float32)
    dim_t = jnp.power(temperature, 2.0 * jnp.floor(dim_t / 2.0) / num_pos_feats)
    pos_x = x_embed[:, :, :, None] / dim_t
    pos_y = y_embed[:, :, :, None] / dim_t
    pos_x = jnp.stack([jnp.sin(pos_x[:, :, :, 0::2]),
                       jnp.cos(pos_x[:, :, :, 1::2])], axis=4).reshape(B, H, W, -1)
    pos_y = jnp.stack([jnp.sin(pos_y[:, :, :, 0::2]),
                       jnp.cos(pos_y[:, :, :, 1::2])], axis=4).reshape(B, H, W, -1)
    pos = jnp.concatenate([pos_y, pos_x], axis=3).transpose(0, 3, 1, 2)  # (B, D, H, W)
    return pos


# ----------------------------------------------------------------------------
# Parameter init (deterministic, synthetic) -- emitted directly in fused layout
# ----------------------------------------------------------------------------
def _init_linear(key, din, dout):
    k1, k2 = jax.random.split(key)
    lim = 1.0 / math.sqrt(din)
    w = jax.random.uniform(k1, (din, dout), jnp.float32, -lim, lim)
    b = jax.random.uniform(k2, (dout,), jnp.float32, -lim, lim)
    return w, b


def _init_ln(d):
    return jnp.stack([jnp.ones((d,), jnp.float32), jnp.zeros((d,), jnp.float32)])  # (2, D)


def _fused_self_attn(key, d, nheads):
    ks = jax.random.split(key, 4)
    wq, bq = _init_linear(ks[0], d, d)
    wk, bk = _init_linear(ks[1], d, d)
    wv, bv = _init_linear(ks[2], d, d)
    wo, bo = _init_linear(ks[3], d, d)
    scale = 1.0 / math.sqrt(d // nheads)           # fold 1/sqrt(Dh) into Wq, bq
    return dict(
        wqk=jnp.concatenate([wq * scale, wk], axis=1).astype(jnp.bfloat16),
        bqk=jnp.concatenate([bq * scale, bk]).reshape(1, -1),
        wv=wv.astype(jnp.bfloat16), bv=bv.reshape(1, -1),
        wo=wo.astype(jnp.bfloat16), bo=bo.reshape(1, -1))


def _fused_cross_attn(key, d, nheads):
    ks = jax.random.split(key, 4)
    wq, bq = _init_linear(ks[0], d, d)
    wk, bk = _init_linear(ks[1], d, d)
    wv, bv = _init_linear(ks[2], d, d)
    wo, bo = _init_linear(ks[3], d, d)
    scale = 1.0 / math.sqrt(d // nheads)
    return dict(
        wq=(wq * scale).astype(jnp.bfloat16), bq=(bq * scale).reshape(1, -1),
        wk=wk.astype(jnp.bfloat16), bk=bk.reshape(1, -1),
        wv=wv.astype(jnp.bfloat16), bv=bv.reshape(1, -1),
        wo=wo.astype(jnp.bfloat16), bo=bo.reshape(1, -1))


def _init_encoder_layer(key, d, ff, nheads):
    ks = jax.random.split(key, 3)
    p = _fused_self_attn(ks[0], d, nheads)
    w1, b1 = _init_linear(ks[1], d, ff)
    w2, b2 = _init_linear(ks[2], ff, d)
    p.update(n1=_init_ln(d), n2=_init_ln(d),
             w1=w1.astype(jnp.bfloat16), b1=b1.reshape(1, -1),
             w2=w2.astype(jnp.bfloat16), b2=b2.reshape(1, -1))
    return p


def _init_decoder_layer(key, d, ff, nheads):
    ks = jax.random.split(key, 4)
    sa = _fused_self_attn(ks[0], d, nheads)
    ca = _fused_cross_attn(ks[1], d, nheads)
    w1, b1 = _init_linear(ks[2], d, ff)
    w2, b2 = _init_linear(ks[3], ff, d)
    return dict(
        sa_wqk=sa["wqk"], sa_bqk=sa["bqk"], sa_wv=sa["wv"], sa_bv=sa["bv"],
        sa_wo=sa["wo"], sa_bo=sa["bo"], n1=_init_ln(d),
        ca_wq=ca["wq"], ca_bq=ca["bq"], ca_wk=ca["wk"], ca_bk=ca["bk"],
        ca_wv=ca["wv"], ca_bv=ca["bv"], ca_wo=ca["wo"], ca_bo=ca["bo"], n2=_init_ln(d),
        w1=w1.astype(jnp.bfloat16), b1=b1.reshape(1, -1),
        w2=w2.astype(jnp.bfloat16), b2=b2.reshape(1, -1), n3=_init_ln(d))


def _init_heads(key, d, num_classes, mask_dim):
    ks = jax.random.split(key, 4)
    wc, bc = _init_linear(ks[0], d, num_classes + 1)
    w1, b1 = _init_linear(ks[1], d, d)
    w2, b2 = _init_linear(ks[2], d, d)
    w3, b3 = _init_linear(ks[3], d, mask_dim)
    return dict(
        wcat=jnp.concatenate([wc, w1], axis=1).astype(jnp.bfloat16),
        bcat=jnp.concatenate([bc, b1]).reshape(1, -1),
        w2=w2.astype(jnp.bfloat16), b2=b2.reshape(1, -1),
        w3=w3.astype(jnp.bfloat16), b3=b3.reshape(1, -1))


def init_params(key, cfg):
    D = cfg["hidden_dim"]
    ff = cfg["dim_feedforward"]
    nh = cfg["nheads"]
    keys = jax.random.split(key, 8 + cfg["enc_layers"] + cfg["dec_layers"])
    ki = iter(keys)
    params = {}
    w_in, b_in = _init_linear(next(ki), cfg["in_channels"], D)
    params["input_proj_w"] = w_in.astype(jnp.bfloat16)
    params["input_proj_b"] = b_in.reshape(1, -1)
    params["query_embed"] = jax.random.normal(next(ki), (cfg["num_queries"], D), jnp.float32)
    params["encoder_layers"] = [_init_encoder_layer(next(ki), D, ff, nh)
                                for _ in range(cfg["enc_layers"])]
    params["decoder_layers"] = [_init_decoder_layer(next(ki), D, ff, nh)
                                for _ in range(cfg["dec_layers"])]
    params["decoder_norm"] = _init_ln(D)
    params["heads"] = _init_heads(next(ki), D, cfg["num_classes"], cfg["mask_dim"])
    return params


# ----------------------------------------------------------------------------
# Predictor forward (mask_classification=True, deep_supervision=True, post-norm)
# ----------------------------------------------------------------------------
def predictor_forward(params, x, mask_features, cfg):
    B, C_in, H, W = x.shape
    D = cfg["hidden_dim"]
    nheads = cfg["nheads"]
    nq = cfg["num_queries"]
    ncls1 = cfg["num_classes"] + 1

    # pe_layer(x)
    pos = position_embedding_sine(B, H, W, D // 2)                   # (B, D, H, W)
    pos_seq = pos.reshape(B, D, H * W).transpose(0, 2, 1)            # (B, HW, D)

    # input_proj: 1x1 conv == per-pixel linear
    x_flat = x.transpose(0, 2, 3, 1).reshape(B * H * W, C_in)
    src = pallas_linear(x_flat, params["input_proj_w"], params["input_proj_b"])
    src = src.reshape(B, H * W, D)                                   # (B, HW, D)

    # encoder (one fused pallas_call per layer)
    memory = src
    for p in params["encoder_layers"]:
        memory = encoder_layer_fwd(memory, pos_seq, p, nheads)

    # decoder with return_intermediate (decoder_norm fused into each layer call)
    query_pos = params["query_embed"]                                # (nq, D)
    out = jnp.zeros((B, nq, D), jnp.float32)
    intermediate = []
    for p in params["decoder_layers"]:
        out, normed = decoder_layer_fwd(out, memory, pos_seq, query_pos, p,
                                        params["decoder_norm"], nheads)
        intermediate.append(normed)                                  # (B, nq, D)
    hs = jnp.stack(intermediate, axis=0)                             # (Ld, B, nq, D)
    Ld = hs.shape[0]
    hs2d = hs.reshape(Ld * B * nq, D)

    outputs = {}

    # fused class head + 3-layer mask-embed MLP
    cls, me = pallas_heads(hs2d, params["heads"], ncls1)
    outputs_class = cls.reshape(Ld, B, nq, ncls1)
    mask_dim = me.shape[-1]
    mask_embed = me.reshape(Ld, B, nq, mask_dim)
    outputs["pred_logits"] = outputs_class[-1]

    # einsum 'lbqc,bchw->lbqhw' as batched matmul over B (lane-tiled over Hm*Wm)
    Bm, Cm, Hm, Wm = mask_features.shape
    a = mask_embed.transpose(1, 0, 2, 3).reshape(B, Ld * nq, mask_dim)   # (B, Ld*nq, C)
    mf = mask_features.reshape(B, Cm, Hm * Wm)                           # (B, C, Hm*Wm)
    seg = pallas_bmm(a, mf)                                              # (B, Ld*nq, Hm*Wm)
    seg = seg.reshape(B, Ld, nq, Hm, Wm).transpose(1, 0, 2, 3, 4)        # (Ld, B, nq, Hm, Wm)

    outputs["pred_masks"] = seg[-1]
    outputs["aux_outputs"] = [
        {"pred_logits": outputs_class[i], "pred_masks": seg[i]} for i in range(Ld - 1)
    ]
    return outputs


# ----------------------------------------------------------------------------
if __name__ == "__main__":
    cfg = dict(
        in_channels=16,        # != hidden_dim  =>  real 1x1 input_proj
        hidden_dim=32,
        num_classes=3,
        num_queries=8,
        nheads=4,
        dim_feedforward=64,
        enc_layers=1,
        dec_layers=2,
        mask_dim=16,
    )
    key = jax.random.PRNGKey(0)
    kx, kmf, kp = jax.random.split(key, 3)
    x = jax.random.normal(kx, (2, cfg["in_channels"], 8, 8), jnp.float32)
    mask_features = jax.random.normal(kmf, (2, cfg["mask_dim"], 16, 16), jnp.float32)
    params = init_params(kp, cfg)

    fwd = jax.jit(functools.partial(predictor_forward, cfg=cfg))
    outputs = fwd(params, x, mask_features)
    outputs = jax.tree_util.tree_map(jax.block_until_ready, outputs)

    assert outputs["pred_logits"].shape == (2, cfg["num_queries"], cfg["num_classes"] + 1)
    assert outputs["pred_masks"].shape == (2, cfg["num_queries"], 16, 16)
    assert len(outputs["aux_outputs"]) == cfg["dec_layers"] - 1
    print("KERNEL_OK")
</pallas_src>

<mosaic_0001>
module attributes {stable_mosaic.version = 11 : i64} {
  func.func @_linear_kernel(%arg0: i32, %arg1: memref<128x16xf32, #tpu.memory_space<vmem>>, %arg2: memref<16x32xbf16, #tpu.memory_space<vmem>>, %arg3: memref<1x32xf32, #tpu.memory_space<vmem>>, %arg4: memref<128x32xf32, #tpu.memory_space<vmem>>) attributes {dimension_semantics = [#tpu.dimension_semantics<parallel>], iteration_bounds = array<i64: 1>, scalar_prefetch = 0 : i64, scratch_operands = 0 : i64, tpu.core_type = #tpu.core_type<tc>, window_params = [{transform_indices = @transform_0, window_bounds = array<i64: 128, 16>}, {pipeline_mode = #tpu.pipeline_mode<synchronous>, transform_indices = @transform_1, window_bounds = array<i64: 16, 32>}, {pipeline_mode = #tpu.pipeline_mode<synchronous>, transform_indices = @transform_2, window_bounds = array<i64: 1, 32>}, {transform_indices = @transform_3, window_bounds = array<i64: 128, 32>}]} {
    %c0 = arith.constant 0 : index
    %c0_0 = arith.constant 0 : index
    %0 = vector.load %arg1[%c0, %c0_0] : memref<128x16xf32, #tpu.memory_space<vmem>>, vector<128x16xf32>
    %c0_1 = arith.constant 0 : index
    %c0_2 = arith.constant 0 : index
    %1 = vector.load %arg2[%c0_1, %c0_2] : memref<16x32xbf16, #tpu.memory_space<vmem>>, vector<16x32xbf16>
    %c0_3 = arith.constant 0 : index
    %c0_4 = arith.constant 0 : index
    %2 = vector.load %arg3[%c0_3, %c0_4] : memref<1x32xf32, #tpu.memory_space<vmem>>, vector<1x32xf32>
    %3 = arith.truncf %0 : vector<128x16xf32> to vector<128x16xbf16>
    %cst = arith.constant dense<0.000000e+00> : vector<128x32xf32>
    %4 = tpu.matmul %3, %1, %cst {dimension_numbers = #tpu.dot_dimension_numbers<[1], [0], [0], [1], [0, 0, 1, 1], [], []>} : vector<128x16xbf16>, vector<16x32xbf16>, vector<128x32xf32> -> vector<128x32xf32>
    %5 = vector.broadcast %2 : vector<1x32xf32> to vector<128x32xf32>
    %6 = arith.addf %4, %5 : vector<128x32xf32>
    %c0_5 = arith.constant 0 : index
    %c0_6 = arith.constant 0 : index
    %7 = vector.load %arg4[%c0_5, %c0_6] : memref<128x32xf32, #tpu.memory_space<vmem>>, vector<128x32xf32>
    tpu.vector_store %arg4[%c0_5, %c0_6], %6 {strides = array<i32>} : memref<128x32xf32, #tpu.memory_space<vmem>>, vector<128x32xf32>,
    return
  }
  func.func @transform_0(%arg0: i32) -> (i32, i32) {
    %c0_i32 = arith.constant 0 : i32
    %c0_i32_0 = arith.constant 0 : i32
    return %arg0, %c0_i32 : i32, i32
  }
  func.func @transform_1(%arg0: i32) -> (i32, i32) {
    %c0_i32 = arith.constant 0 : i32
    %c0_i32_0 = arith.constant 0 : i32
    %c0_i32_1 = arith.constant 0 : i32
    return %c0_i32, %c0_i32_0 : i32, i32
  }
  func.func @transform_2(%arg0: i32) -> (i32, i32) {
    %c0_i32 = arith.constant 0 : i32
    %c0_i32_0 = arith.constant 0 : i32
    %c0_i32_1 = arith.constant 0 : i32
    return %c0_i32, %c0_i32_0 : i32, i32
  }
  func.func @transform_3(%arg0: i32) -> (i32, i32) {
    %c0_i32 = arith.constant 0 : i32
    %c0_i32_0 = arith.constant 0 : i32
    return %arg0, %c0_i32 : i32, i32
  }
}

module attributes {stable_mosaic.version = 11 : i64} {
  func.func @_decoder_layer_kernel(%arg0: i32, %arg1: memref<1x8x32xf32, #tpu.memory_space<vmem>>, %arg2: memref<1x64x32xf32, #tpu.memory_space<vmem>>, %arg3: memref<1x64x32xf32, #tpu.memory_space<vmem>>, %arg4: memref<8x32xf32, #tpu.memory_space<vmem>>, %arg5: memref<32x64xbf16, #tpu.memory_space<vmem>>, %arg6: memref<1x64xf32, #tpu.memory_space<vmem>>, %arg7: memref<32x32xbf16, #tpu.memory_space<vmem>>, %arg8: memref<1x32xf32, #tpu.memory_space<vmem>>, %arg9: memref<32x32xbf16, #tpu.memory_space<vmem>>, %arg10: memref<1x32xf32, #tpu.memory_space<vmem>>, %arg11: memref<2x32xf32, #tpu.memory_space<vmem>>, %arg12: memref<32x32xbf16, #tpu.memory_space<vmem>>, %arg13: memref<1x32xf32, #tpu.memory_space<vmem>>, %arg14: memref<32x32xbf16, #tpu.memory_space<vmem>>, %arg15: memref<1x32xf32, #tpu.memory_space<vmem>>, %arg16: memref<32x32xbf16, #tpu.memory_space<vmem>>, %arg17: memref<1x32xf32, #tpu.memory_space<vmem>>, %arg18: memref<32x32xbf16, #tpu.memory_space<vmem>>, %arg19: memref<1x32xf32, #tpu.memory_space<vmem>>, %arg20: memref<2x32xf32, #tpu.memory_space<vmem>>, %arg21: memref<32x64xbf16, #tpu.memory_space<vmem>>, %arg22: memref<1x64xf32, #tpu.memory_space<vmem>>, %arg23: memref<64x32xbf16, #tpu.memory_space<vmem>>, %arg24: memref<1x32xf32, #tpu.memory_space<vmem>>, %arg25: memref<2x32xf32, #tpu.memory_space<vmem>>, %arg26: memref<2x32xf32, #tpu.memory_space<vmem>>, %arg27: memref<1x8x32xf32, #tpu.memory_space<vmem>>, %arg28: memref<1x8x32xf32, #tpu.memory_space<vmem>>) attributes {dimension_semantics = [#tpu.dimension_semantics<parallel>], iteration_bounds = array<i64: 2>, scalar_prefetch = 0 : i64, scratch_operands = 0 : i64, tpu.core_type = #tpu.core_type<tc>, window_params = [{transform_indices = @transform_0, window_bounds = array<i64: 1, 8, 32>}, {transform_indices = @transform_1, window_bounds = array<i64: 1, 64, 32>}, {transform_indices = @transform_2, window_bounds = array<i64: 1, 64, 32>}, {pipeline_mode = #tpu.pipeline_mode<synchronous>, transform_indices = @transform_3, window_bounds = array<i64: 8, 32>}, {pipeline_mode = #tpu.pipeline_mode<synchronous>, transform_indices = @transform_4, window_bounds = array<i64: 32, 64>}, {pipeline_mode = #tpu.pipeline_mode<synchronous>, transform_indices = @transform_5, window_bounds = array<i64: 1, 64>}, {pipeline_mode = #tpu.pipeline_mode<synchronous>, transform_indices = @transform_6, window_bounds = array<i64: 32, 32>}, {pipeline_mode = #tpu.pipeline_mode<synchronous>, transform_indices = @transform_7, window_bounds = array<i64: 1, 32>}, {pipeline_mode = #tpu.pipeline_mode<synchronous>, transform_indices = @transform_8, window_bounds = array<i64: 32, 32>}, {pipeline_mode = #tpu.pipeline_mode<synchronous>, transform_indices = @transform_9, window_bounds = array<i64: 1, 32>}, {pipeline_mode = #tpu.pipeline_mode<synchronous>, transform_indices = @transform_10, window_bounds = array<i64: 2, 32>}, {pipeline_mode = #tpu.pipeline_mode<synchronous>, transform_indices = @transform_11, window_bounds = array<i64: 32, 32>}, {pipeline_mode = #tpu.pipeline_mode<synchronous>, transform_indices = @transform_12, window_bounds = array<i64: 1, 32>}, {pipeline_mode = #tpu.pipeline_mode<synchronous>, transform_indices = @transform_13, window_bounds = array<i64: 32, 32>}, {pipeline_mode = #tpu.pipeline_mode<synchronous>, transform_indices = @transform_14, window_bounds = array<i64: 1, 32>}, {pipeline_mode = #tpu.pipeline_mode<synchronous>, transform_indices = @transform_15, window_bounds = array<i64: 32, 32>}, {pipeline_mode = #tpu.pipeline_mode<synchronous>, transform_indices = @transform_16, window_bounds = array<i64: 1, 32>}, {pipeline_mode = #tpu.pipeline_mode<synchronous>, transform_indices = @transform_17, window_bounds = array<i64: 32, 32>}, {pipeline_mode = #tpu.pipeline_mode<synchronous>, transform_indices = @transform_18, window_bounds = array<i64: 1, 32>}, {pipeline_mode = #tpu.pipeline_mode<synchronous>, transform_indices = @transform_19, window_bounds = array<i64: 2, 32>}, {pipeline_mode = #tpu.pipeline_mode<synchronous>, transform_indices = @transform_20, window_bounds = array<i64: 32, 64>}, {pipeline_mode = #tpu.pipeline_mode<synchronous>, transform_indices = @transform_21, window_bounds = array<i64: 1, 64>}, {pipeline_mode = #tpu.pipeline_mode<synchronous>, transform_indices = @transform_22, window_bounds = array<i64: 64, 32>}, {pipeline_mode = #tpu.pipeline_mode<synchronous>, transform_indices = @transform_23, window_bounds = array<i64: 1, 32>}, {pipeline_mode = #tpu.pipeline_mode<synchronous>, transform_indices = @transform_24, window_bounds = array<i64: 2, 32>}, {pipeline_mode = #tpu.pipeline_mode<synchronous>, transform_indices = @transform_25, window_bounds = array<i64: 2, 32>}, {transform_indices = @transform_26, window_bounds = array<i64: 1, 8, 32>}, {transform_indices = @transform_27, window_bounds = array<i64: 1, 8, 32>}]} {
    %c0 = arith.constant 0 : index
    %c0_0 = arith.constant 0 : index
    %c0_1 = arith.constant 0 : index
    %0 = vector.load %arg1[%c0, %c0_0, %c0_1] : memref<1x8x32xf32, #tpu.memory_space<vmem>>, vector<1x8x32xf32>
    %1 = vector.shape_cast %0 : vector<1x8x32xf32> to vector<8x32xf32>
    %c0_2 = arith.constant 0 : index
    %c0_3 = arith.constant 0 : index
    %c0_4 = arith.constant 0 : index
    %2 = vector.load %arg2[%c0_2, %c0_3, %c0_4] : memref<1x64x32xf32, #tpu.memory_space<vmem>>, vector<1x64x32xf32>
    %3 = vector.shape_cast %2 : vector<1x64x32xf32> to vector<64x32xf32>
    %c0_5 = arith.constant 0 : index
    %c0_6 = arith.constant 0 : index
    %c0_7 = arith.constant 0 : index
    %4 = vector.load %arg3[%c0_5, %c0_6, %c0_7] : memref<1x64x32xf32, #tpu.memory_space<vmem>>, vector<1x64x32xf32>
    %5 = vector.shape_cast %4 : vector<1x64x32xf32> to vector<64x32xf32>
    %c0_8 = arith.constant 0 : index
    %c0_9 = arith.constant 0 : index
    %6 = vector.load %arg4[%c0_8, %c0_9] : memref<8x32xf32, #tpu.memory_space<vmem>>, vector<8x32xf32>
    %7 = arith.addf %1, %6 : vector<8x32xf32>
    %c0_10 = arith.constant 0 : index
    %c0_11 = arith.constant 0 : index
    %8 = vector.load %arg5[%c0_10, %c0_11] : memref<32x64xbf16, #tpu.memory_space<vmem>>, vector<32x64xbf16>
    %c0_12 = arith.constant 0 : index
    %c0_13 = arith.constant 0 : index
    %9 = vector.load %arg6[%c0_12, %c0_13] : memref<1x64xf32, #tpu.memory_space<vmem>>, vector<1x64xf32>
    %10 = arith.truncf %7 : vector<8x32xf32> to vector<8x32xbf16>
    %cst = arith.constant dense<0.000000e+00> : vector<8x64xf32>
    %11 = tpu.matmul %10, %8, %cst {dimension_numbers = #tpu.dot_dimension_numbers<[1], [0], [0], [1], [0, 0, 1, 1], [], []>} : vector<8x32xbf16>, vector<32x64xbf16>, vector<8x64xf32> -> vector<8x64xf32>
    %12 = vector.broadcast %9 : vector<1x64xf32> to vector<8x64xf32>
    %13 = arith.addf %11, %12 : vector<8x64xf32>
    %c0_14 = arith.constant 0 : index
    %c0_15 = arith.constant 0 : index
    %14 = vector.load %arg7[%c0_14, %c0_15] : memref<32x32xbf16, #tpu.memory_space<vmem>>, vector<32x32xbf16>
    %c0_16 = arith.constant 0 : index
    %c0_17 = arith.constant 0 : index
    %15 = vector.load %arg8[%c0_16, %c0_17] : memref<1x32xf32, #tpu.memory_space<vmem>>, vector<1x32xf32>
    %16 = arith.truncf %1 : vector<8x32xf32> to vector<8x32xbf16>
    %cst_18 = arith.constant dense<0.000000e+00> : vector<8x32xf32>
    %17 = tpu.matmul %16, %14, %cst_18 {dimension_numbers = #tpu.dot_dimension_numbers<[1], [0], [0], [1], [0, 0, 1, 1], [], []>} : vector<8x32xbf16>, vector<32x32xbf16>, vector<8x32xf32> -> vector<8x32xf32>
    %18 = vector.broadcast %15 : vector<1x32xf32> to vector<8x32xf32>
    %19 = arith.addf %17, %18 : vector<8x32xf32>
    %20 = vector.extract_strided_slice %13 {offsets = [0, 0], sizes = [8, 32], strides = [1, 1]} : vector<8x64xf32> to vector<8x32xf32>
    %21 = vector.extract_strided_slice %13 {offsets = [0, 32], sizes = [8, 32], strides = [1, 1]} : vector<8x64xf32> to vector<8x32xf32>
    %c0_19 = arith.constant 0 : index
    %c0_20 = arith.constant 0 : index
    %22 = vector.load %arg9[%c0_19, %c0_20] : memref<32x32xbf16, #tpu.memory_space<vmem>>, vector<32x32xbf16>
    %c0_21 = arith.constant 0 : index
    %c0_22 = arith.constant 0 : index
    %23 = vector.load %arg10[%c0_21, %c0_22] : memref<1x32xf32, #tpu.memory_space<vmem>>, vector<1x32xf32>
    %24 = vector.extract_strided_slice %20 {offsets = [0, 0], sizes = [8, 8], strides = [1, 1]} : vector<8x32xf32> to vector<8x8xf32>
    %25 = vector.extract_strided_slice %21 {offsets = [0, 0], sizes = [8, 8], strides = [1, 1]} : vector<8x32xf32> to vector<8x8xf32>
    %26 = vector.extract_strided_slice %19 {offsets = [0, 0], sizes = [8, 8], strides = [1, 1]} : vector<8x32xf32> to vector<8x8xf32>
    %cst_23 = arith.constant dense<0.000000e+00> : vector<8x8xf32>
    %27 = tpu.matmul %24, %25, %cst_23 {dimension_numbers = #tpu.dot_dimension_numbers<[1], [1], [0], [0], [0, 0, 1, 0], [], []>} : vector<8x8xf32>, vector<8x8xf32>, vector<8x8xf32> -> vector<8x8xf32>
    %cst_24 = arith.constant dense<0xFF800000> : vector<8xf32>
    %28 = vector.multi_reduction <maximumf>, %27, %cst_24 [1] : vector<8x8xf32> to vector<8xf32>
    %29 = vector.shape_cast %28 : vector<8xf32> to vector<8x1xf32>
    %30 = vector.broadcast %29 : vector<8x1xf32> to vector<8x8xf32>
    %31 = arith.subf %27, %30 : vector<8x8xf32>
    %32 = math.exp %31 : vector<8x8xf32>
    %cst_25 = arith.constant dense<0.000000e+00> : vector<8xf32>
    %33 = vector.multi_reduction <add>, %32, %cst_25 [1] : vector<8x8xf32> to vector<8xf32>
    %34 = vector.shape_cast %33 : vector<8xf32> to vector<8x1xf32>
    %35 = tpu.reciprocal %34 {approx = true} : vector<8x1xf32> -> vector<8x1xf32>
    %36 = vector.broadcast %35 : vector<8x1xf32> to vector<8x8xf32>
    %37 = arith.mulf %32, %36 : vector<8x8xf32>
    %cst_26 = arith.constant dense<0.000000e+00> : vector<8x8xf32>
    %38 = tpu.matmul %37, %26, %cst_26 {dimension_numbers = #tpu.dot_dimension_numbers<[1], [0], [0], [1], [0, 0, 1, 1], [], []>} : vector<8x8xf32>, vector<8x8xf32>, vector<8x8xf32> -> vector<8x8xf32>
    %39 = arith.truncf %38 : vector<8x8xf32> to vector<8x8xbf16>
    %40 = vector.extract_strided_slice %22 {offsets = [0, 0], sizes = [8, 32], strides = [1, 1]} : vector<32x32xbf16> to vector<8x32xbf16>
    %cst_27 = arith.constant dense<0.000000e+00> : vector<8x32xf32>
    %41 = tpu.matmul %39, %40, %cst_27 {dimension_numbers = #tpu.dot_dimension_numbers<[1], [0], [0], [1], [0, 0, 1, 1], [], []>} : vector<8x8xbf16>, vector<8x32xbf16>, vector<8x32xf32> -> vector<8x32xf32>
    %42 = vector.extract_strided_slice %20 {offsets = [0, 8], sizes = [8, 8], strides = [1, 1]} : vector<8x32xf32> to vector<8x8xf32>
    %43 = vector.extract_strided_slice %21 {offsets = [0, 8], sizes = [8, 8], strides = [1, 1]} : vector<8x32xf32> to vector<8x8xf32>
    %44 = vector.extract_strided_slice %19 {offsets = [0, 8], sizes = [8, 8], strides = [1, 1]} : vector<8x32xf32> to vector<8x8xf32>
    %cst_28 = arith.constant dense<0.000000e+00> : vector<8x8xf32>
    %45 = tpu.matmul %42, %43, %cst_28 {dimension_numbers = #tpu.dot_dimension_numbers<[1], [1], [0], [0], [0, 0, 1, 0], [], []>} : vector<8x8xf32>, vector<8x8xf32>, vector<8x8xf32> -> vector<8x8xf32>
    %cst_29 = arith.constant dense<0xFF800000> : vector<8xf32>
    %46 = vector.multi_reduction <maximumf>, %45, %cst_29 [1] : vector<8x8xf32> to vector<8xf32>
    %47 = vector.shape_cast %46 : vector<8xf32> to vector<8x1xf32>
    %48 = vector.broadcast %47 : vector<8x1xf32> to vector<8x8xf32>
    %49 = arith.subf %45, %48 : vector<8x8xf32>
    %50 = math.exp %49 : vector<8x8xf32>
    %cst_30 = arith.constant dense<0.000000e+00> : vector<8xf32>
    %51 = vector.multi_reduction <add>, %50, %cst_30 [1] : vector<8x8xf32> to vector<8xf32>
    %52 = vector.shape_cast %51 : vector<8xf32> to vector<8x1xf32>
    %53 = tpu.reciprocal %52 {approx = true} : vector<8x1xf32> -> vector<8x1xf32>
    %54 = vector.broadcast %53 : vector<8x1xf32> to vector<8x8xf32>
    %55 = arith.mulf %50, %54 : vector<8x8xf32>
    %cst_31 = arith.constant dense<0.000000e+00> : vector<8x8xf32>
    %56 = tpu.matmul %55, %44, %cst_31 {dimension_numbers = #tpu.dot_dimension_numbers<[1], [0], [0], [1], [0, 0, 1, 1], [], []>} : vector<8x8xf32>, vector<8x8xf32>, vector<8x8xf32> -> vector<8x8xf32>
    %57 = arith.truncf %56 : vector<8x8xf32> to vector<8x8xbf16>
    %58 = vector.extract_strided_slice %22 {offsets = [8, 0], sizes = [8, 32], strides = [1, 1]} : vector<32x32xbf16> to vector<8x32xbf16>
    %cst_32 = arith.constant dense<0.000000e+00> : vector<8x32xf32>
    %59 = tpu.matmul %57, %58, %cst_32 {dimension_numbers = #tpu.dot_dimension_numbers<[1], [0], [0], [1], [0, 0, 1, 1], [], []>} : vector<8x8xbf16>, vector<8x32xbf16>, vector<8x32xf32> -> vector<8x32xf32>
    %60 = arith.addf %41, %59 : vector<8x32xf32>
    %61 = vector.extract_strided_slice %20 {offsets = [0, 16], sizes = [8, 8], strides = [1, 1]} : vector<8x32xf32> to vector<8x8xf32>
    %62 = vector.extract_strided_slice %21 {offsets = [0, 16], sizes = [8, 8], strides = [1, 1]} : vector<8x32xf32> to vector<8x8xf32>
    %63 = vector.extract_strided_slice %19 {offsets = [0, 16], sizes = [8, 8], strides = [1, 1]} : vector<8x32xf32> to vector<8x8xf32>
    %cst_33 = arith.constant dense<0.000000e+00> : vector<8x8xf32>
    %64 = tpu.matmul %61, %62, %cst_33 {dimension_numbers = #tpu.dot_dimension_numbers<[1], [1], [0], [0], [0, 0, 1, 0], [], []>} : vector<8x8xf32>, vector<8x8xf32>, vector<8x8xf32> -> vector<8x8xf32>
    %cst_34 = arith.constant dense<0xFF800000> : vector<8xf32>
    %65 = vector.multi_reduction <maximumf>, %64, %cst_34 [1] : vector<8x8xf32> to vector<8xf32>
    %66 = vector.shape_cast %65 : vector<8xf32> to vector<8x1xf32>
    %67 = vector.broadcast %66 : vector<8x1xf32> to vector<8x8xf32>
    %68 = arith.subf %64, %67 : vector<8x8xf32>
    %69 = math.exp %68 : vector<8x8xf32>
    %cst_35 = arith.constant dense<0.000000e+00> : vector<8xf32>
    %70 = vector.multi_reduction <add>, %69, %cst_35 [1] : vector<8x8xf32> to vector<8xf32>
    %71 = vector.shape_cast %70 : vector<8xf32> to vector<8x1xf32>
    %72 = tpu.reciprocal %71 {approx = true} : vector<8x1xf32> -> vector<8x1xf32>
    %73 = vector.broadcast %72 : vector<8x1xf32> to vector<8x8xf32>
    %74 = arith.mulf %69, %73 : vector<8x8xf32>
    %cst_36 = arith.constant dense<0.000000e+00> : vector<8x8xf32>
    %75 = tpu.matmul %74, %63, %cst_36 {dimension_numbers = #tpu.dot_dimension_numbers<[1], [0], [0], [1], [0, 0, 1, 1], [], []>} : vector<8x8xf32>, vector<8x8xf32>, vector<8x8xf32> -> vector<8x8xf32>
    %76 = arith.truncf %75 : vector<8x8xf32> to vector<8x8xbf16>
    %77 = vector.extract_strided_slice %22 {offsets = [16, 0], sizes = [8, 32], strides = [1, 1]} : vector<32x32xbf16> to vector<8x32xbf16>
    %cst_37 = arith.constant dense<0.000000e+00> : vector<8x32xf32>
    %78 = tpu.matmul %76, %77, %cst_37 {dimension_numbers = #tpu.dot_dimension_numbers<[1], [0], [0], [1], [0, 0, 1, 1], [], []>} : vector<8x8xbf16>, vector<8x32xbf16>, vector<8x32xf32> -> vector<8x32xf32>
    %79 = arith.addf %60, %78 : vector<8x32xf32>
    %80 = vector.extract_strided_slice %20 {offsets = [0, 24], sizes = [8, 8], strides = [1, 1]} : vector<8x32xf32> to vector<8x8xf32>
    %81 = vector.extract_strided_slice %21 {offsets = [0, 24], sizes = [8, 8], strides = [1, 1]} : vector<8x32xf32> to vector<8x8xf32>
    %82 = vector.extract_strided_slice %19 {offsets = [0, 24], sizes = [8, 8], strides = [1, 1]} : vector<8x32xf32> to vector<8x8xf32>
    %cst_38 = arith.constant dense<0.000000e+00> : vector<8x8xf32>
    %83 = tpu.matmul %80, %81, %cst_38 {dimension_numbers = #tpu.dot_dimension_numbers<[1], [1], [0], [0], [0, 0, 1, 0], [], []>} : vector<8x8xf32>, vector<8x8xf32>, vector<8x8xf32> -> vector<8x8xf32>
    %cst_39 = arith.constant dense<0xFF800000> : vector<8xf32>
    %84 = vector.multi_reduction <maximumf>, %83, %cst_39 [1] : vector<8x8xf32> to vector<8xf32>
    %85 = vector.shape_cast %84 : vector<8xf32> to vector<8x1xf32>
    %86 = vector.broadcast %85 : vector<8x1xf32> to vector<8x8xf32>
    %87 = arith.subf %83, %86 : vector<8x8xf32>
    %88 = math.exp %87 : vector<8x8xf32>
    %cst_40 = arith.constant dense<0.000000e+00> : vector<8xf32>
    %89 = vector.multi_reduction <add>, %88, %cst_40 [1] : vector<8x8xf32> to vector<8xf32>
    %90 = vector.shape_cast %89 : vector<8xf32> to vector<8x1xf32>
    %91 = tpu.reciprocal %90 {approx = true} : vector<8x1xf32> -> vector<8x1xf32>
    %92 = vector.broadcast %91 : vector<8x1xf32> to vector<8x8xf32>
    %93 = arith.mulf %88, %92 : vector<8x8xf32>
    %cst_41 = arith.constant dense<0.000000e+00> : vector<8x8xf32>
    %94 = tpu.matmul %93, %82, %cst_41 {dimension_numbers = #tpu.dot_dimension_numbers<[1], [0], [0], [1], [0, 0, 1, 1], [], []>} : vector<8x8xf32>, vector<8x8xf32>, vector<8x8xf32> -> vector<8x8xf32>
    %95 = arith.truncf %94 : vector<8x8xf32> to vector<8x8xbf16>
    %96 = vector.extract_strided_slice %22 {offsets = [24, 0], sizes = [8, 32], strides = [1, 1]} : vector<32x32xbf16> to vector<8x32xbf16>
    %cst_42 = arith.constant dense<0.000000e+00> : vector<8x32xf32>
    %97 = tpu.matmul %95, %96, %cst_42 {dimension_numbers = #tpu.dot_dimension_numbers<[1], [0], [0], [1], [0, 0, 1, 1], [], []>} : vector<8x8xbf16>, vector<8x32xbf16>, vector<8x32xf32> -> vector<8x32xf32>
    %98 = arith.addf %79, %97 : vector<8x32xf32>
    %99 = vector.broadcast %23 : vector<1x32xf32> to vector<8x32xf32>
    %100 = arith.addf %98, %99 : vector<8x32xf32>
    %101 = arith.addf %1, %100 : vector<8x32xf32>
    %c0_43 = arith.constant 0 : index
    %c0_44 = arith.constant 0 : index
    %102 = vector.load %arg11[%c0_43, %c0_44] : memref<2x32xf32, #tpu.memory_space<vmem>>, vector<2x32xf32>
    %cst_45 = arith.constant dense<0.000000e+00> : vector<8xf32>
    %103 = vector.multi_reduction <add>, %101, %cst_45 [1] : vector<8x32xf32> to vector<8xf32>
    %104 = vector.shape_cast %103 : vector<8xf32> to vector<8x1xf32>
    %cst_46 = arith.constant 3.200000e+01 : f32
    %105 = vector.broadcast %cst_46 : f32 to vector<8x1xf32>
    %106 = arith.divf %104, %105 : vector<8x1xf32>
    %107 = vector.broadcast %106 : vector<8x1xf32> to vector<8x32xf32>
    %108 = arith.subf %101, %107 : vector<8x32xf32>
    %109 = arith.mulf %108, %108 : vector<8x32xf32>
    %cst_47 = arith.constant dense<0.000000e+00> : vector<8xf32>
    %110 = vector.multi_reduction <add>, %109, %cst_47 [1] : vector<8x32xf32> to vector<8xf32>
    %111 = vector.shape_cast %110 : vector<8xf32> to vector<8x1xf32>
    %cst_48 = arith.constant 3.200000e+01 : f32
    %112 = vector.broadcast %cst_48 : f32 to vector<8x1xf32>
    %113 = arith.divf %111, %112 : vector<8x1xf32>
    %cst_49 = arith.constant 9.99999974E-6 : f32
    %114 = vector.broadcast %cst_49 : f32 to vector<8x1xf32>
    %115 = arith.addf %113, %114 : vector<8x1xf32>
    %116 = math.rsqrt %115 : vector<8x1xf32>
    %117 = vector.broadcast %116 : vector<8x1xf32> to vector<8x32xf32>
    %118 = arith.mulf %108, %117 : vector<8x32xf32>
    %119 = vector.extract_strided_slice %102 {offsets = [0, 0], sizes = [1, 32], strides = [1, 1]} : vector<2x32xf32> to vector<1x32xf32>
    %120 = vector.broadcast %119 : vector<1x32xf32> to vector<8x32xf32>
    %121 = arith.mulf %118, %120 : vector<8x32xf32>
    %122 = vector.extract_strided_slice %102 {offsets = [1, 0], sizes = [1, 32], strides = [1, 1]} : vector<2x32xf32> to vector<1x32xf32>
    %123 = vector.broadcast %122 : vector<1x32xf32> to vector<8x32xf32>
    %124 = arith.addf %121, %123 : vector<8x32xf32>
    %125 = arith.addf %124, %6 : vector<8x32xf32>
    %c0_50 = arith.constant 0 : index
    %c0_51 = arith.constant 0 : index
    %126 = vector.load %arg12[%c0_50, %c0_51] : memref<32x32xbf16, #tpu.memory_space<vmem>>, vector<32x32xbf16>
    %c0_52 = arith.constant 0 : index
    %c0_53 = arith.constant 0 : index
    %127 = vector.load %arg13[%c0_52, %c0_53] : memref<1x32xf32, #tpu.memory_space<vmem>>, vector<1x32xf32>
    %128 = arith.truncf %125 : vector<8x32xf32> to vector<8x32xbf16>
    %cst_54 = arith.constant dense<0.000000e+00> : vector<8x32xf32>
    %129 = tpu.matmul %128, %126, %cst_54 {dimension_numbers = #tpu.dot_dimension_numbers<[1], [0], [0], [1], [0, 0, 1, 1], [], []>} : vector<8x32xbf16>, vector<32x32xbf16>, vector<8x32xf32> -> vector<8x32xf32>
    %130 = vector.broadcast %127 : vector<1x32xf32> to vector<8x32xf32>
    %131 = arith.addf %129, %130 : vector<8x32xf32>
    %132 = arith.addf %3, %5 : vector<64x32xf32>
    %c0_55 = arith.constant 0 : index
    %c0_56 = arith.constant 0 : index
    %133 = vector.load %arg14[%c0_55, %c0_56] : memref<32x32xbf16, #tpu.memory_space<vmem>>, vector<32x32xbf16>
    %c0_57 = arith.constant 0 : index
    %c0_58 = arith.constant 0 : index
    %134 = vector.load %arg15[%c0_57, %c0_58] : memref<1x32xf32, #tpu.memory_space<vmem>>, vector<1x32xf32>
    %135 = arith.truncf %132 : vector<64x32xf32> to vector<64x32xbf16>
    %cst_59 = arith.constant dense<0.000000e+00> : vector<64x32xf32>
    %136 = tpu.matmul %135, %133, %cst_59 {dimension_numbers = #tpu.dot_dimension_numbers<[1], [0], [0], [1], [0, 0, 1, 1], [], []>} : vector<64x32xbf16>, vector<32x32xbf16>, vector<64x32xf32> -> vector<64x32xf32>
    %137 = vector.broadcast %134 : vector<1x32xf32> to vector<64x32xf32>
    %138 = arith.addf %136, %137 : vector<64x32xf32>
    %c0_60 = arith.constant 0 : index
    %c0_61 = arith.constant 0 : index
    %139 = vector.load %arg16[%c0_60, %c0_61] : memref<32x32xbf16, #tpu.memory_space<vmem>>, vector<32x32xbf16>
    %c0_62 = arith.constant 0 : index
    %c0_63 = arith.constant 0 : index
    %140 = vector.load %arg17[%c0_62, %c0_63] : memref<1x32xf32, #tpu.memory_space<vmem>>, vector<1x32xf32>
    %141 = arith.truncf %3 : vector<64x32xf32> to vector<64x32xbf16>
    %cst_64 = arith.constant dense<0.000000e+00> : vector<64x32xf32>
    %142 = tpu.matmul %141, %139, %cst_64 {dimension_numbers = #tpu.dot_dimension_numbers<[1], [0], [0], [1], [0, 0, 1, 1], [], []>} : vector<64x32xbf16>, vector<32x32xbf16>, vector<64x32xf32> -> vector<64x32xf32>
    %143 = vector.broadcast %140 : vector<1x32xf32> to vector<64x32xf32>
    %144 = arith.addf %142, %143 : vector<64x32xf32>
    %c0_65 = arith.constant 0 : index
    %c0_66 = arith.constant 0 : index
    %145 = vector.load %arg18[%c0_65, %c0_66] : memref<32x32xbf16, #tpu.memory_space<vmem>>, vector<32x32xbf16>
    %c0_67 = arith.constant 0 : index
    %c0_68 = arith.constant 0 : index
    %146 = vector.load %arg19[%c0_67, %c0_68] : memref<1x32xf32, #tpu.memory_space<vmem>>, vector<1x32xf32>
    %147 = vector.extract_strided_slice %131 {offsets = [0, 0], sizes = [8, 8], strides = [1, 1]} : vector<8x32xf32> to vector<8x8xf32>
    %148 = vector.extract_strided_slice %138 {offsets = [0, 0], sizes = [64, 8], strides = [1, 1]} : vector<64x32xf32> to vector<64x8xf32>
    %149 = vector.extract_strided_slice %144 {offsets = [0, 0], sizes = [64, 8], strides = [1, 1]} : vector<64x32xf32> to vector<64x8xf32>
    %cst_69 = arith.constant dense<0.000000e+00> : vector<8x64xf32>
    %150 = tpu.matmul %147, %148, %cst_69 {dimension_numbers = #tpu.dot_dimension_numbers<[1], [1], [0], [0], [0, 0, 1, 0], [], []>} : vector<8x8xf32>, vector<64x8xf32>, vector<8x64xf32> -> vector<8x64xf32>
    %cst_70 = arith.constant dense<0xFF800000> : vector<8xf32>
    %151 = vector.multi_reduction <maximumf>, %150, %cst_70 [1] : vector<8x64xf32> to vector<8xf32>
    %152 = vector.shape_cast %151 : vector<8xf32> to vector<8x1xf32>
    %153 = vector.broadcast %152 : vector<8x1xf32> to vector<8x64xf32>
    %154 = arith.subf %150, %153 : vector<8x64xf32>
    %155 = math.exp %154 : vector<8x64xf32>
    %cst_71 = arith.constant dense<0.000000e+00> : vector<8xf32>
    %156 = vector.multi_reduction <add>, %155, %cst_71 [1] : vector<8x64xf32> to vector<8xf32>
    %157 = vector.shape_cast %156 : vector<8xf32> to vector<8x1xf32>
    %158 = tpu.reciprocal %157 {approx = true} : vector<8x1xf32> -> vector<8x1xf32>
    %159 = vector.broadcast %158 : vector<8x1xf32> to vector<8x64xf32>
    %160 = arith.mulf %155, %159 : vector<8x64xf32>
    %cst_72 = arith.constant dense<0.000000e+00> : vector<8x8xf32>
    %161 = tpu.matmul %160, %149, %cst_72 {dimension_numbers = #tpu.dot_dimension_numbers<[1], [0], [0], [1], [0, 0, 1, 1], [], []>} : vector<8x64xf32>, vector<64x8xf32>, vector<8x8xf32> -> vector<8x8xf32>
    %162 = arith.truncf %161 : vector<8x8xf32> to vector<8x8xbf16>
    %163 = vector.extract_strided_slice %145 {offsets = [0, 0], sizes = [8, 32], strides = [1, 1]} : vector<32x32xbf16> to vector<8x32xbf16>
    %cst_73 = arith.constant dense<0.000000e+00> : vector<8x32xf32>
    %164 = tpu.matmul %162, %163, %cst_73 {dimension_numbers = #tpu.dot_dimension_numbers<[1], [0], [0], [1], [0, 0, 1, 1], [], []>} : vector<8x8xbf16>, vector<8x32xbf16>, vector<8x32xf32> -> vector<8x32xf32>
    %165 = vector.extract_strided_slice %131 {offsets = [0, 8], sizes = [8, 8], strides = [1, 1]} : vector<8x32xf32> to vector<8x8xf32>
    %166 = vector.extract_strided_slice %138 {offsets = [0, 8], sizes = [64, 8], strides = [1, 1]} : vector<64x32xf32> to vector<64x8xf32>
    %167 = vector.extract_strided_slice %144 {offsets = [0, 8], sizes = [64, 8], strides = [1, 1]} : vector<64x32xf32> to vector<64x8xf32>
    %cst_74 = arith.constant dense<0.000000e+00> : vector<8x64xf32>
    %168 = tpu.matmul %165, %166, %cst_74 {dimension_numbers = #tpu.dot_dimension_numbers<[1], [1], [0], [0], [0, 0, 1, 0], [], []>} : vector<8x8xf32>, vector<64x8xf32>, vector<8x64xf32> -> vector<8x64xf32>
    %cst_75 = arith.constant dense<0xFF800000> : vector<8xf32>
    %169 = vector.multi_reduction <maximumf>, %168, %cst_75 [1] : vector<8x64xf32> to vector<8xf32>
    %170 = vector.shape_cast %169 : vector<8xf32> to vector<8x1xf32>
    %171 = vector.broadcast %170 : vector<8x1xf32> to vector<8x64xf32>
    %172 = arith.subf %168, %171 : vector<8x64xf32>
    %173 = math.exp %172 : vector<8x64xf32>
    %cst_76 = arith.constant dense<0.000000e+00> : vector<8xf32>
    %174 = vector.multi_reduction <add>, %173, %cst_76 [1] : vector<8x64xf32> to vector<8xf32>
    %175 = vector.shape_cast %174 : vector<8xf32> to vector<8x1xf32>
    %176 = tpu.reciprocal %175 {approx = true} : vector<8x1xf32> -> vector<8x1xf32>
    %177 = vector.broadcast %176 : vector<8x1xf32> to vector<8x64xf32>
    %178 = arith.mulf %173, %177 : vector<8x64xf32>
    %cst_77 = arith.constant dense<0.000000e+00> : vector<8x8xf32>
    %179 = tpu.matmul %178, %167, %cst_77 {dimension_numbers = #tpu.dot_dimension_numbers<[1], [0], [0], [1], [0, 0, 1, 1], [], []>} : vector<8x64xf32>, vector<64x8xf32>, vector<8x8xf32> -> vector<8x8xf32>
    %180 = arith.truncf %179 : vector<8x8xf32> to vector<8x8xbf16>
    %181 = vector.extract_strided_slice %145 {offsets = [8, 0], sizes = [8, 32], strides = [1, 1]} : vector<32x32xbf16> to vector<8x32xbf16>
    %cst_78 = arith.constant dense<0.000000e+00> : vector<8x32xf32>
    %182 = tpu.matmul %180, %181, %cst_78 {dimension_numbers = #tpu.dot_dimension_numbers<[1], [0], [0], [1], [0, 0, 1, 1], [], []>} : vector<8x8xbf16>, vector<8x32xbf16>, vector<8x32xf32> -> vector<8x32xf32>
    %183 = arith.addf %164, %182 : vector<8x32xf32>
    %184 = vector.extract_strided_slice %131 {offsets = [0, 16], sizes = [8, 8], strides = [1, 1]} : vector<8x32xf32> to vector<8x8xf32>
    %185 = vector.extract_strided_slice %138 {offsets = [0, 16], sizes = [64, 8], strides = [1, 1]} : vector<64x32xf32> to vector<64x8xf32>
    %186 = vector.extract_strided_slice %144 {offsets = [0, 16], sizes = [64, 8], strides = [1, 1]} : vector<64x32xf32> to vector<64x8xf32>
    %cst_79 = arith.constant dense<0.000000e+00> : vector<8x64xf32>
    %187 = tpu.matmul %184, %185, %cst_79 {dimension_numbers = #tpu.dot_dimension_numbers<[1], [1], [0], [0], [0, 0, 1, 0], [], []>} : vector<8x8xf32>, vector<64x8xf32>, vector<8x64xf32> -> vector<8x64xf32>
    %cst_80 = arith.constant dense<0xFF800000> : vector<8xf32>
    %188 = vector.multi_reduction <maximumf>, %187, %cst_80 [1] : vector<8x64xf32> to vector<8xf32>
    %189 = vector.shape_cast %188 : vector<8xf32> to vector<8x1xf32>
    %190 = vector.broadcast %189 : vector<8x1xf32> to vector<8x64xf32>
    %191 = arith.subf %187, %190 : vector<8x64xf32>
    %192 = math.exp %191 : vector<8x64xf32>
    %cst_81 = arith.constant dense<0.000000e+00> : vector<8xf32>
    %193 = vector.multi_reduction <add>, %192, %cst_81 [1] : vector<8x64xf32> to vector<8xf32>
    %194 = vector.shape_cast %193 : vector<8xf32> to vector<8x1xf32>
    %195 = tpu.reciprocal %194 {approx = true} : vector<8x1xf32> -> vector<8x1xf32>
    %196 = vector.broadcast %195 : vector<8x1xf32> to vector<8x64xf32>
    %197 = arith.mulf %192, %196 : vector<8x64xf32>
    %cst_82 = arith.constant dense<0.000000e+00> : vector<8x8xf32>
    %198 = tpu.matmul %197, %186, %cst_82 {dimension_numbers = #tpu.dot_dimension_numbers<[1], [0], [0], [1], [0, 0, 1, 1], [], []>} : vector<8x64xf32>, vector<64x8xf32>, vector<8x8xf32> -> vector<8x8xf32>
    %199 = arith.truncf %198 : vector<8x8xf32> to vector<8x8xbf16>
    %200 = vector.extract_strided_slice %145 {offsets = [16, 0], sizes = [8, 32], strides = [1, 1]} : vector<32x32xbf16> to vector<8x32xbf16>
    %cst_83 = arith.constant dense<0.000000e+00> : vector<8x32xf32>
    %201 = tpu.matmul %199, %200, %cst_83 {dimension_numbers = #tpu.dot_dimension_numbers<[1], [0], [0], [1], [0, 0, 1, 1], [], []>} : vector<8x8xbf16>, vector<8x32xbf16>, vector<8x32xf32> -> vector<8x32xf32>
    %202 = arith.addf %183, %201 : vector<8x32xf32>
    %203 = vector.extract_strided_slice %131 {offsets = [0, 24], sizes = [8, 8], strides = [1, 1]} : vector<8x32xf32> to vector<8x8xf32>
    %204 = vector.extract_strided_slice %138 {offsets = [0, 24], sizes = [64, 8], strides = [1, 1]} : vector<64x32xf32> to vector<64x8xf32>
    %205 = vector.extract_strided_slice %144 {offsets = [0, 24], sizes = [64, 8], strides = [1, 1]} : vector<64x32xf32> to vector<64x8xf32>
    %cst_84 = arith.constant dense<0.000000e+00> : vector<8x64xf32>
    %206 = tpu.matmul %203, %204, %cst_84 {dimension_numbers = #tpu.dot_dimension_numbers<[1], [1], [0], [0], [0, 0, 1, 0], [], []>} : vector<8x8xf32>, vector<64x8xf32>, vector<8x64xf32> -> vector<8x64xf32>
    %cst_85 = arith.constant dense<0xFF800000> : vector<8xf32>
    %207 = vector.multi_reduction <maximumf>, %206, %cst_85 [1] : vector<8x64xf32> to vector<8xf32>
    %208 = vector.shape_cast %207 : vector<8xf32> to vector<8x1xf32>
    %209 = vector.broadcast %208 : vector<8x1xf32> to vector<8x64xf32>
    %210 = arith.subf %206, %209 : vector<8x64xf32>
    %211 = math.exp %210 : vector<8x64xf32>
    %cst_86 = arith.constant dense<0.000000e+00> : vector<8xf32>
    %212 = vector.multi_reduction <add>, %211, %cst_86 [1] : vector<8x64xf32> to vector<8xf32>
    %213 = vector.shape_cast %212 : vector<8xf32> to vector<8x1xf32>
    %214 = tpu.reciprocal %213 {approx = true} : vector<8x1xf32> -> vector<8x1xf32>
    %215 = vector.broadcast %214 : vector<8x1xf32> to vector<8x64xf32>
    %216 = arith.mulf %211, %215 : vector<8x64xf32>
    %cst_87 = arith.constant dense<0.000000e+00> : vector<8x8xf32>
    %217 = tpu.matmul %216, %205, %cst_87 {dimension_numbers = #tpu.dot_dimension_numbers<[1], [0], [0], [1], [0, 0, 1, 1], [], []>} : vector<8x64xf32>, vector<64x8xf32>, vector<8x8xf32> -> vector<8x8xf32>
    %218 = arith.truncf %217 : vector<8x8xf32> to vector<8x8xbf16>
    %219 = vector.extract_strided_slice %145 {offsets = [24, 0], sizes = [8, 32], strides = [1, 1]} : vector<32x32xbf16> to vector<8x32xbf16>
    %cst_88 = arith.constant dense<0.000000e+00> : vector<8x32xf32>
    %220 = tpu.matmul %218, %219, %cst_88 {dimension_numbers = #tpu.dot_dimension_numbers<[1], [0], [0], [1], [0, 0, 1, 1], [], []>} : vector<8x8xbf16>, vector<8x32xbf16>, vector<8x32xf32> -> vector<8x32xf32>
    %221 = arith.addf %202, %220 : vector<8x32xf32>
    %222 = vector.broadcast %146 : vector<1x32xf32> to vector<8x32xf32>
    %223 = arith.addf %221, %222 : vector<8x32xf32>
    %224 = arith.addf %124, %223 : vector<8x32xf32>
    %c0_89 = arith.constant 0 : index
    %c0_90 = arith.constant 0 : index
    %225 = vector.load %arg20[%c0_89, %c0_90] : memref<2x32xf32, #tpu.memory_space<vmem>>, vector<2x32xf32>
    %cst_91 = arith.constant dense<0.000000e+00> : vector<8xf32>
    %226 = vector.multi_reduction <add>, %224, %cst_91 [1] : vector<8x32xf32> to vector<8xf32>
    %227 = vector.shape_cast %226 : vector<8xf32> to vector<8x1xf32>
    %cst_92 = arith.constant 3.200000e+01 : f32
    %228 = vector.broadcast %cst_92 : f32 to vector<8x1xf32>
    %229 = arith.divf %227, %228 : vector<8x1xf32>
    %230 = vector.broadcast %229 : vector<8x1xf32> to vector<8x32xf32>
    %231 = arith.subf %224, %230 : vector<8x32xf32>
    %232 = arith.mulf %231, %231 : vector<8x32xf32>
    %cst_93 = arith.constant dense<0.000000e+00> : vector<8xf32>
    %233 = vector.multi_reduction <add>, %232, %cst_93 [1] : vector<8x32xf32> to vector<8xf32>
    %234 = vector.shape_cast %233 : vector<8xf32> to vector<8x1xf32>
    %cst_94 = arith.constant 3.200000e+01 : f32
    %235 = vector.broadcast %cst_94 : f32 to vector<8x1xf32>
    %236 = arith.divf %234, %235 : vector<8x1xf32>
    %cst_95 = arith.constant 9.99999974E-6 : f32
    %237 = vector.broadcast %cst_95 : f32 to vector<8x1xf32>
    %238 = arith.addf %236, %237 : vector<8x1xf32>
    %239 = math.rsqrt %238 : vector<8x1xf32>
    %240 = vector.broadcast %239 : vector<8x1xf32> to vector<8x32xf32>
    %241 = arith.mulf %231, %240 : vector<8x32xf32>
    %242 = vector.extract_strided_slice %225 {offsets = [0, 0], sizes = [1, 32], strides = [1, 1]} : vector<2x32xf32> to vector<1x32xf32>
    %243 = vector.broadcast %242 : vector<1x32xf32> to vector<8x32xf32>
    %244 = arith.mulf %241, %243 : vector<8x32xf32>
    %245 = vector.extract_strided_slice %225 {offsets = [1, 0], sizes = [1, 32], strides = [1, 1]} : vector<2x32xf32> to vector<1x32xf32>
    %246 = vector.broadcast %245 : vector<1x32xf32> to vector<8x32xf32>
    %247 = arith.addf %244, %246 : vector<8x32xf32>
    %c0_96 = arith.constant 0 : index
    %c0_97 = arith.constant 0 : index
    %248 = vector.load %arg21[%c0_96, %c0_97] : memref<32x64xbf16, #tpu.memory_space<vmem>>, vector<32x64xbf16>
    %c0_98 = arith.constant 0 : index
    %c0_99 = arith.constant 0 : index
    %249 = vector.load %arg22[%c0_98, %c0_99] : memref<1x64xf32, #tpu.memory_space<vmem>>, vector<1x64xf32>
    %250 = arith.truncf %247 : vector<8x32xf32> to vector<8x32xbf16>
    %cst_100 = arith.constant dense<0.000000e+00> : vector<8x64xf32>
    %251 = tpu.matmul %250, %248, %cst_100 {dimension_numbers = #tpu.dot_dimension_numbers<[1], [0], [0], [1], [0, 0, 1, 1], [], []>} : vector<8x32xbf16>, vector<32x64xbf16>, vector<8x64xf32> -> vector<8x64xf32>
    %252 = vector.broadcast %249 : vector<1x64xf32> to vector<8x64xf32>
    %253 = arith.addf %251, %252 : vector<8x64xf32>
    %cst_101 = arith.constant 0.000000e+00 : f32
    %254 = vector.broadcast %cst_101 : f32 to vector<8x64xf32>
    %255 = arith.maximumf %253, %254 : vector<8x64xf32>
    %c0_102 = arith.constant 0 : index
    %c0_103 = arith.constant 0 : index
    %256 = vector.load %arg23[%c0_102, %c0_103] : memref<64x32xbf16, #tpu.memory_space<vmem>>, vector<64x32xbf16>
    %c0_104 = arith.constant 0 : index
    %c0_105 = arith.constant 0 : index
    %257 = vector.load %arg24[%c0_104, %c0_105] : memref<1x32xf32, #tpu.memory_space<vmem>>, vector<1x32xf32>
    %258 = arith.truncf %255 : vector<8x64xf32> to vector<8x64xbf16>
    %cst_106 = arith.constant dense<0.000000e+00> : vector<8x32xf32>
    %259 = tpu.matmul %258, %256, %cst_106 {dimension_numbers = #tpu.dot_dimension_numbers<[1], [0], [0], [1], [0, 0, 1, 1], [], []>} : vector<8x64xbf16>, vector<64x32xbf16>, vector<8x32xf32> -> vector<8x32xf32>
    %260 = vector.broadcast %257 : vector<1x32xf32> to vector<8x32xf32>
    %261 = arith.addf %259, %260 : vector<8x32xf32>
    %262 = arith.addf %247, %261 : vector<8x32xf32>
    %c0_107 = arith.constant 0 : index
    %c0_108 = arith.constant 0 : index
    %263 = vector.load %arg25[%c0_107, %c0_108] : memref<2x32xf32, #tpu.memory_space<vmem>>, vector<2x32xf32>
    %cst_109 = arith.constant dense<0.000000e+00> : vector<8xf32>
    %264 = vector.multi_reduction <add>, %262, %cst_109 [1] : vector<8x32xf32> to vector<8xf32>
    %265 = vector.shape_cast %264 : vector<8xf32> to vector<8x1xf32>
    %cst_110 = arith.constant 3.200000e+01 : f32
    %266 = vector.broadcast %cst_110 : f32 to vector<8x1xf32>
    %267 = arith.divf %265, %266 : vector<8x1xf32>
    %268 = vector.broadcast %267 : vector<8x1xf32> to vector<8x32xf32>
    %269 = arith.subf %262, %268 : vector<8x32xf32>
    %270 = arith.mulf %269, %269 : vector<8x32xf32>
    %cst_111 = arith.constant dense<0.000000e+00> : vector<8xf32>
    %271 = vector.multi_reduction <add>, %270, %cst_111 [1] : vector<8x32xf32> to vector<8xf32>
    %272 = vector.shape_cast %271 : vector<8xf32> to vector<8x1xf32>
    %cst_112 = arith.constant 3.200000e+01 : f32
    %273 = vector.broadcast %cst_112 : f32 to vector<8x1xf32>
    %274 = arith.divf %272, %273 : vector<8x1xf32>
    %cst_113 = arith.constant 9.99999974E-6 : f32
    %275 = vector.broadcast %cst_113 : f32 to vector<8x1xf32>
    %276 = arith.addf %274, %275 : vector<8x1xf32>
    %277 = math.rsqrt %276 : vector<8x1xf32>
    %278 = vector.broadcast %277 : vector<8x1xf32> to vector<8x32xf32>
    %279 = arith.mulf %269, %278 : vector<8x32xf32>
    %280 = vector.extract_strided_slice %263 {offsets = [0, 0], sizes = [1, 32], strides = [1, 1]} : vector<2x32xf32> to vector<1x32xf32>
    %281 = vector.broadcast %280 : vector<1x32xf32> to vector<8x32xf32>
    %282 = arith.mulf %279, %281 : vector<8x32xf32>
    %283 = vector.extract_strided_slice %263 {offsets = [1, 0], sizes = [1, 32], strides = [1, 1]} : vector<2x32xf32> to vector<1x32xf32>
    %284 = vector.broadcast %283 : vector<1x32xf32> to vector<8x32xf32>
    %285 = arith.addf %282, %284 : vector<8x32xf32>
    %c0_114 = arith.constant 0 : index
    %c0_115 = arith.constant 0 : index
    %c0_116 = arith.constant 0 : index
    %286 = vector.load %arg27[%c0_114, %c0_115, %c0_116] : memref<1x8x32xf32, #tpu.memory_space<vmem>>, vector<1x8x32xf32>
    %287 = vector.shape_cast %286 : vector<1x8x32xf32> to vector<8x32xf32>
    %288 = vector.shape_cast %285 : vector<8x32xf32> to vector<1x8x32xf32>
    tpu.vector_store %arg27[%c0_114, %c0_115, %c0_116], %288 {strides = array<i32>} : memref<1x8x32xf32, #tpu.memory_space<vmem>>, vector<1x8x32xf32>,
    %c0_117 = arith.constant 0 : index
    %c0_118 = arith.constant 0 : index
    %289 = vector.load %arg26[%c0_117, %c0_118] : memref<2x32xf32, #tpu.memory_space<vmem>>, vector<2x32xf32>
    %cst_119 = arith.constant dense<0.000000e+00> : vector<8xf32>
    %290 = vector.multi_reduction <add>, %285, %cst_119 [1] : vector<8x32xf32> to vector<8xf32>
    %291 = vector.shape_cast %290 : vector<8xf32> to vector<8x1xf32>
    %cst_120 = arith.constant 3.200000e+01 : f32
    %292 = vector.broadcast %cst_120 : f32 to vector<8x1xf32>
    %293 = arith.divf %291, %292 : vector<8x1xf32>
    %294 = vector.broadcast %293 : vector<8x1xf32> to vector<8x32xf32>
    %295 = arith.subf %285, %294 : vector<8x32xf32>
    %296 = arith.mulf %295, %295 : vector<8x32xf32>
    %cst_121 = arith.constant dense<0.000000e+00> : vector<8xf32>
    %297 = vector.multi_reduction <add>, %296, %cst_121 [1] : vector<8x32xf32> to vector<8xf32>
    %298 = vector.shape_cast %297 : vector<8xf32> to vector<8x1xf32>
    %cst_122 = arith.constant 3.200000e+01 : f32
    %299 = vector.broadcast %cst_122 : f32 to vector<8x1xf32>
    %300 = arith.divf %298, %299 : vector<8x1xf32>
    %cst_123 = arith.constant 9.99999974E-6 : f32
    %301 = vector.broadcast %cst_123 : f32 to vector<8x1xf32>
    %302 = arith.addf %300, %301 : vector<8x1xf32>
    %303 = math.rsqrt %302 : vector<8x1xf32>
    %304 = vector.broadcast %303 : vector<8x1xf32> to vector<8x32xf32>
    %305 = arith.mulf %295, %304 : vector<8x32xf32>
    %306 = vector.extract_strided_slice %289 {offsets = [0, 0], sizes = [1, 32], strides = [1, 1]} : vector<2x32xf32> to vector<1x32xf32>
    %307 = vector.broadcast %306 : vector<1x32xf32> to vector<8x32xf32>
    %308 = arith.mulf %305, %307 : vector<8x32xf32>
    %309 = vector.extract_strided_slice %289 {offsets = [1, 0], sizes = [1, 32], strides = [1, 1]} : vector<2x32xf32> to vector<1x32xf32>
    %310 = vector.broadcast %309 : vector<1x32xf32> to vector<8x32xf32>
    %311 = arith.addf %308, %310 : vector<8x32xf32>
    %c0_124 = arith.constant 0 : index
    %c0_125 = arith.constant 0 : index
    %c0_126 = arith.constant 0 : index
    %312 = vector.load %arg28[%c0_124, %c0_125, %c0_126] : memref<1x8x32xf32, #tpu.memory_space<vmem>>, vector<1x8x32xf32>
    %313 = vector.shape_cast %312 : vector<1x8x32xf32> to vector<8x32xf32>
    %314 = vector.shape_cast %311 : vector<8x32xf32> to vector<1x8x32xf32>
    tpu.vector_store %arg28[%c0_124, %c0_125, %c0_126], %314 {strides = array<i32>} : memref<1x8x32xf32, #tpu.memory_space<vmem>>, vector<1x8x32xf32>,
    return
  }
  func.func @transform_0(%arg0: i32) -> (i32, i32, i32) {
    %c0_i32 = arith.constant 0 : i32
    %c0_i32_0 = arith.constant 0 : i32
    %c0_i32_1 = arith.constant 0 : i32
    return %arg0, %c0_i32, %c0_i32_0 : i32, i32, i32
  }
  func.func @transform_1(%arg0: i32) -> (i32, i32, i32) {
    %c0_i32 = arith.constant 0 : i32
    %c0_i32_0 = arith.constant 0 : i32
    %c0_i32_1 = arith.constant 0 : i32
    return %arg0, %c0_i32, %c0_i32_0 : i32, i32, i32
  }
  func.func @transform_2(%arg0: i32) -> (i32, i32, i32) {
    %c0_i32 = arith.constant 0 : i32
    %c0_i32_0 = arith.constant 0 : i32
    %c0_i32_1 = arith.constant 0 : i32
    return %arg0, %c0_i32, %c0_i32_0 : i32, i32, i32
  }
  func.func @transform_3(%arg0: i32) -> (i32, i32) {
    %c0_i32 = arith.constant 0 : i32
    %c0_i32_0 = arith.constant 0 : i32
    %c0_i32_1 = arith.constant 0 : i32
    return %c0_i32, %c0_i32_0 : i32, i32
  }
  func.func @transform_4(%arg0: i32) -> (i32, i32) {
    %c0_i32 = arith.constant 0 : i32
    %c0_i32_0 = arith.constant 0 : i32
    %c0_i32_1 = arith.constant 0 : i32
    return %c0_i32, %c0_i32_0 : i32, i32
  }
  func.func @transform_5(%arg0: i32) -> (i32, i32) {
    %c0_i32 = arith.constant 0 : i32
    %c0_i32_0 = arith.constant 0 : i32
    %c0_i32_1 = arith.constant 0 : i32
    return %c0_i32, %c0_i32_0 : i32, i32
  }
  func.func @transform_6(%arg0: i32) -> (i32, i32) {
    %c0_i32 = arith.constant 0 : i32
    %c0_i32_0 = arith.constant 0 : i32
    %c0_i32_1 = arith.constant 0 : i32
    return %c0_i32, %c0_i32_0 : i32, i32
  }
  func.func @transform_7(%arg0: i32) -> (i32, i32) {
    %c0_i32 = arith.constant 0 : i32
    %c0_i32_0 = arith.constant 0 : i32
    %c0_i32_1 = arith.constant 0 : i32
    return %c0_i32, %c0_i32_0 : i32, i32
  }
  func.func @transform_8(%arg0: i32) -> (i32, i32) {
    %c0_i32 = arith.constant 0 : i32
    %c0_i32_0 = arith.constant 0 : i32
    %c0_i32_1 = arith.constant 0 : i32
    return %c0_i32, %c0_i32_0 : i32, i32
  }
  func.func @transform_9(%arg0: i32) -> (i32, i32) {
    %c0_i32 = arith.constant 0 : i32
    %c0_i32_0 = arith.constant 0 : i32
    %c0_i32_1 = arith.constant 0 : i32
    return %c0_i32, %c0_i32_0 : i32, i32
  }
  func.func @transform_10(%arg0: i32) -> (i32, i32) {
    %c0_i32 = arith.constant 0 : i32
    %c0_i32_0 = arith.constant 0 : i32
    %c0_i32_1 = arith.constant 0 : i32
    return %c0_i32, %c0_i32_0 : i32, i32
  }
  func.func @transform_11(%arg0: i32) -> (i32, i32) {
    %c0_i32 = arith.constant 0 : i32
    %c0_i32_0 = arith.constant 0 : i32
    %c0_i32_1 = arith.constant 0 : i32
    return %c0_i32, %c0_i32_0 : i32, i32
  }
  func.func @transform_12(%arg0: i32) -> (i32, i32) {
    %c0_i32 = arith.constant 0 : i32
    %c0_i32_0 = arith.constant 0 : i32
    %c0_i32_1 = arith.constant 0 : i32
    return %c0_i32, %c0_i32_0 : i32, i32
  }
  func.func @transform_13(%arg0: i32) -> (i32, i32) {
    %c0_i32 = arith.constant 0 : i32
    %c0_i32_0 = arith.constant 0 : i32
    %c0_i32_1 = arith.constant 0 : i32
    return %c0_i32, %c0_i32_0 : i32, i32
  }
  func.func @transform_14(%arg0: i32) -> (i32, i32) {
    %c0_i32 = arith.constant 0 : i32
    %c0_i32_0 = arith.constant 0 : i32
    %c0_i32_1 = arith.constant 0 : i32
    return %c0_i32, %c0_i32_0 : i32, i32
  }
  func.func @transform_15(%arg0: i32) -> (i32, i32) {
    %c0_i32 = arith.constant 0 : i32
    %c0_i32_0 = arith.constant 0 : i32
    %c0_i32_1 = arith.constant 0 : i32
    return %c0_i32, %c0_i32_0 : i32, i32
  }
  func.func @transform_16(%arg0: i32) -> (i32, i32) {
    %c0_i32 = arith.constant 0 : i32
    %c0_i32_0 = arith.constant 0 : i32
    %c0_i32_1 = arith.constant 0 : i32
    return %c0_i32, %c0_i32_0 : i32, i32
  }
  func.func @transform_17(%arg0: i32) -> (i32, i32) {
    %c0_i32 = arith.constant 0 : i32
    %c0_i32_0 = arith.constant 0 : i32
    %c0_i32_1 = arith.constant 0 : i32
    return %c0_i32, %c0_i32_0 : i32, i32
  }
  func.func @transform_18(%arg0: i32) -> (i32, i32) {
    %c0_i32 = arith.constant 0 : i32
    %c0_i32_0 = arith.constant 0 : i32
    %c0_i32_1 = arith.constant 0 : i32
    return %c0_i32, %c0_i32_0 : i32, i32
  }
  func.func @transform_19(%arg0: i32) -> (i32, i32) {
    %c0_i32 = arith.constant 0 : i32
    %c0_i32_0 = arith.constant 0 : i32
    %c0_i32_1 = arith.constant 0 : i32
    return %c0_i32, %c0_i32_0 : i32, i32
  }
  func.func @transform_20(%arg0: i32) -> (i32, i32) {
    %c0_i32 = arith.constant 0 : i32
    %c0_i32_0 = arith.constant 0 : i32
    %c0_i32_1 = arith.constant 0 : i32
    return %c0_i32, %c0_i32_0 : i32, i32
  }
  func.func @transform_21(%arg0: i32) -> (i32, i32) {
    %c0_i32 = arith.constant 0 : i32
    %c0_i32_0 = arith.constant 0 : i32
    %c0_i32_1 = arith.constant 0 : i32
    return %c0_i32, %c0_i32_0 : i32, i32
  }
  func.func @transform_22(%arg0: i32) -> (i32, i32) {
    %c0_i32 = arith.constant 0 : i32
    %c0_i32_0 = arith.constant 0 : i32
    %c0_i32_1 = arith.constant 0 : i32
    return %c0_i32, %c0_i32_0 : i32, i32
  }
  func.func @transform_23(%arg0: i32) -> (i32, i32) {
    %c0_i32 = arith.constant 0 : i32
    %c0_i32_0 = arith.constant 0 : i32
    %c0_i32_1 = arith.constant 0 : i32
    return %c0_i32, %c0_i32_0 : i32, i32
  }
  func.func @transform_24(%arg0: i32) -> (i32, i32) {
    %c0_i32 = arith.constant 0 : i32
    %c0_i32_0 = arith.constant 0 : i32
    %c0_i32_1 = arith.constant 0 : i32
    return %c0_i32, %c0_i32_0 : i32, i32
  }
  func.func @transform_25(%arg0: i32) -> (i32, i32) {
    %c0_i32 = arith.constant 0 : i32
    %c0_i32_0 = arith.constant 0 : i32
    %c0_i32_1 = arith.constant 0 : i32
    return %c0_i32, %c0_i32_0 : i32, i32
  }
  func.func @transform_26(%arg0: i32) -> (i32, i32, i32) {
    %c0_i32 = arith.constant 0 : i32
    %c0_i32_0 = arith.constant 0 : i32
    %c0_i32_1 = arith.constant 0 : i32
    return %arg0, %c0_i32, %c0_i32_0 : i32, i32, i32
  }
  func.func @transform_27(%arg0: i32) -> (i32, i32, i32) {
    %c0_i32 = arith.constant 0 : i32
    %c0_i32_0 = arith.constant 0 : i32
    %c0_i32_1 = arith.constant 0 : i32
    return %arg0, %c0_i32, %c0_i32_0 : i32, i32, i32
  }
}

module attributes {stable_mosaic.version = 11 : i64} {
  func.func @_encoder_layer_kernel(%arg0: i32, %arg1: memref<1x64x32xf32, #tpu.memory_space<vmem>>, %arg2: memref<1x64x32xf32, #tpu.memory_space<vmem>>, %arg3: memref<32x64xbf16, #tpu.memory_space<vmem>>, %arg4: memref<1x64xf32, #tpu.memory_space<vmem>>, %arg5: memref<32x32xbf16, #tpu.memory_space<vmem>>, %arg6: memref<1x32xf32, #tpu.memory_space<vmem>>, %arg7: memref<32x32xbf16, #tpu.memory_space<vmem>>, %arg8: memref<1x32xf32, #tpu.memory_space<vmem>>, %arg9: memref<2x32xf32, #tpu.memory_space<vmem>>, %arg10: memref<32x64xbf16, #tpu.memory_space<vmem>>, %arg11: memref<1x64xf32, #tpu.memory_space<vmem>>, %arg12: memref<64x32xbf16, #tpu.memory_space<vmem>>, %arg13: memref<1x32xf32, #tpu.memory_space<vmem>>, %arg14: memref<2x32xf32, #tpu.memory_space<vmem>>, %arg15: memref<1x64x32xf32, #tpu.memory_space<vmem>>) attributes {dimension_semantics = [#tpu.dimension_semantics<parallel>], iteration_bounds = array<i64: 2>, scalar_prefetch = 0 : i64, scratch_operands = 0 : i64, tpu.core_type = #tpu.core_type<tc>, window_params = [{transform_indices = @transform_0, window_bounds = array<i64: 1, 64, 32>}, {transform_indices = @transform_1, window_bounds = array<i64: 1, 64, 32>}, {pipeline_mode = #tpu.pipeline_mode<synchronous>, transform_indices = @transform_2, window_bounds = array<i64: 32, 64>}, {pipeline_mode = #tpu.pipeline_mode<synchronous>, transform_indices = @transform_3, window_bounds = array<i64: 1, 64>}, {pipeline_mode = #tpu.pipeline_mode<synchronous>, transform_indices = @transform_4, window_bounds = array<i64: 32, 32>}, {pipeline_mode = #tpu.pipeline_mode<synchronous>, transform_indices = @transform_5, window_bounds = array<i64: 1, 32>}, {pipeline_mode = #tpu.pipeline_mode<synchronous>, transform_indices = @transform_6, window_bounds = array<i64: 32, 32>}, {pipeline_mode = #tpu.pipeline_mode<synchronous>, transform_indices = @transform_7, window_bounds = array<i64: 1, 32>}, {pipeline_mode = #tpu.pipeline_mode<synchronous>, transform_indices = @transform_8, window_bounds = array<i64: 2, 32>}, {pipeline_mode = #tpu.pipeline_mode<synchronous>, transform_indices = @transform_9, window_bounds = array<i64: 32, 64>}, {pipeline_mode = #tpu.pipeline_mode<synchronous>, transform_indices = @transform_10, window_bounds = array<i64: 1, 64>}, {pipeline_mode = #tpu.pipeline_mode<synchronous>, transform_indices = @transform_11, window_bounds = array<i64: 64, 32>}, {pipeline_mode = #tpu.pipeline_mode<synchronous>, transform_indices = @transform_12, window_bounds = array<i64: 1, 32>}, {pipeline_mode = #tpu.pipeline_mode<synchronous>, transform_indices = @transform_13, window_bounds = array<i64: 2, 32>}, {transform_indices = @transform_14, window_bounds = array<i64: 1, 64, 32>}]} {
    %c0 = arith.constant 0 : index
    %c0_0 = arith.constant 0 : index
    %c0_1 = arith.constant 0 : index
    %0 = vector.load %arg1[%c0, %c0_0, %c0_1] : memref<1x64x32xf32, #tpu.memory_space<vmem>>, vector<1x64x32xf32>
    %1 = vector.shape_cast %0 : vector<1x64x32xf32> to vector<64x32xf32>
    %c0_2 = arith.constant 0 : index
    %c0_3 = arith.constant 0 : index
    %c0_4 = arith.constant 0 : index
    %2 = vector.load %arg2[%c0_2, %c0_3, %c0_4] : memref<1x64x32xf32, #tpu.memory_space<vmem>>, vector<1x64x32xf32>
    %3 = vector.shape_cast %2 : vector<1x64x32xf32> to vector<64x32xf32>
    %4 = arith.addf %1, %3 : vector<64x32xf32>
    %c0_5 = arith.constant 0 : index
    %c0_6 = arith.constant 0 : index
    %5 = vector.load %arg3[%c0_5, %c0_6] : memref<32x64xbf16, #tpu.memory_space<vmem>>, vector<32x64xbf16>
    %c0_7 = arith.constant 0 : index
    %c0_8 = arith.constant 0 : index
    %6 = vector.load %arg4[%c0_7, %c0_8] : memref<1x64xf32, #tpu.memory_space<vmem>>, vector<1x64xf32>
    %7 = arith.truncf %4 : vector<64x32xf32> to vector<64x32xbf16>
    %cst = arith.constant dense<0.000000e+00> : vector<64x64xf32>
    %8 = tpu.matmul %7, %5, %cst {dimension_numbers = #tpu.dot_dimension_numbers<[1], [0], [0], [1], [0, 0, 1, 1], [], []>} : vector<64x32xbf16>, vector<32x64xbf16>, vector<64x64xf32> -> vector<64x64xf32>
    %9 = vector.broadcast %6 : vector<1x64xf32> to vector<64x64xf32>
    %10 = arith.addf %8, %9 : vector<64x64xf32>
    %c0_9 = arith.constant 0 : index
    %c0_10 = arith.constant 0 : index
    %11 = vector.load %arg5[%c0_9, %c0_10] : memref<32x32xbf16, #tpu.memory_space<vmem>>, vector<32x32xbf16>
    %c0_11 = arith.constant 0 : index
    %c0_12 = arith.constant 0 : index
    %12 = vector.load %arg6[%c0_11, %c0_12] : memref<1x32xf32, #tpu.memory_space<vmem>>, vector<1x32xf32>
    %13 = arith.truncf %1 : vector<64x32xf32> to vector<64x32xbf16>
    %cst_13 = arith.constant dense<0.000000e+00> : vector<64x32xf32>
    %14 = tpu.matmul %13, %11, %cst_13 {dimension_numbers = #tpu.dot_dimension_numbers<[1], [0], [0], [1], [0, 0, 1, 1], [], []>} : vector<64x32xbf16>, vector<32x32xbf16>, vector<64x32xf32> -> vector<64x32xf32>
    %15 = vector.broadcast %12 : vector<1x32xf32> to vector<64x32xf32>
    %16 = arith.addf %14, %15 : vector<64x32xf32>
    %17 = vector.extract_strided_slice %10 {offsets = [0, 0], sizes = [64, 32], strides = [1, 1]} : vector<64x64xf32> to vector<64x32xf32>
    %18 = vector.extract_strided_slice %10 {offsets = [0, 32], sizes = [64, 32], strides = [1, 1]} : vector<64x64xf32> to vector<64x32xf32>
    %c0_14 = arith.constant 0 : index
    %c0_15 = arith.constant 0 : index
    %19 = vector.load %arg7[%c0_14, %c0_15] : memref<32x32xbf16, #tpu.memory_space<vmem>>, vector<32x32xbf16>
    %c0_16 = arith.constant 0 : index
    %c0_17 = arith.constant 0 : index
    %20 = vector.load %arg8[%c0_16, %c0_17] : memref<1x32xf32, #tpu.memory_space<vmem>>, vector<1x32xf32>
    %21 = vector.extract_strided_slice %17 {offsets = [0, 0], sizes = [64, 8], strides = [1, 1]} : vector<64x32xf32> to vector<64x8xf32>
    %22 = vector.extract_strided_slice %18 {offsets = [0, 0], sizes = [64, 8], strides = [1, 1]} : vector<64x32xf32> to vector<64x8xf32>
    %23 = vector.extract_strided_slice %16 {offsets = [0, 0], sizes = [64, 8], strides = [1, 1]} : vector<64x32xf32> to vector<64x8xf32>
    %cst_18 = arith.constant dense<0.000000e+00> : vector<64x64xf32>
    %24 = tpu.matmul %21, %22, %cst_18 {dimension_numbers = #tpu.dot_dimension_numbers<[1], [1], [0], [0], [0, 0, 1, 0], [], []>} : vector<64x8xf32>, vector<64x8xf32>, vector<64x64xf32> -> vector<64x64xf32>
    %cst_19 = arith.constant dense<0xFF800000> : vector<64xf32>
    %25 = vector.multi_reduction <maximumf>, %24, %cst_19 [1] : vector<64x64xf32> to vector<64xf32>
    %26 = vector.shape_cast %25 : vector<64xf32> to vector<64x1xf32>
    %27 = vector.broadcast %26 : vector<64x1xf32> to vector<64x64xf32>
    %28 = arith.subf %24, %27 : vector<64x64xf32>
    %29 = math.exp %28 : vector<64x64xf32>
    %cst_20 = arith.constant dense<0.000000e+00> : vector<64xf32>
    %30 = vector.multi_reduction <add>, %29, %cst_20 [1] : vector<64x64xf32> to vector<64xf32>
    %31 = vector.shape_cast %30 : vector<64xf32> to vector<64x1xf32>
    %32 = tpu.reciprocal %31 {approx = true} : vector<64x1xf32> -> vector<64x1xf32>
    %33 = vector.broadcast %32 : vector<64x1xf32> to vector<64x64xf32>
    %34 = arith.mulf %29, %33 : vector<64x64xf32>
    %cst_21 = arith.constant dense<0.000000e+00> : vector<64x8xf32>
    %35 = tpu.matmul %34, %23, %cst_21 {dimension_numbers = #tpu.dot_dimension_numbers<[1], [0], [0], [1], [0, 0, 1, 1], [], []>} : vector<64x64xf32>, vector<64x8xf32>, vector<64x8xf32> -> vector<64x8xf32>
    %36 = arith.truncf %35 : vector<64x8xf32> to vector<64x8xbf16>
    %37 = vector.extract_strided_slice %19 {offsets = [0, 0], sizes = [8, 32], strides = [1, 1]} : vector<32x32xbf16> to vector<8x32xbf16>
    %cst_22 = arith.constant dense<0.000000e+00> : vector<64x32xf32>
    %38 = tpu.matmul %36, %37, %cst_22 {dimension_numbers = #tpu.dot_dimension_numbers<[1], [0], [0], [1], [0, 0, 1, 1], [], []>} : vector<64x8xbf16>, vector<8x32xbf16>, vector<64x32xf32> -> vector<64x32xf32>
    %39 = vector.extract_strided_slice %17 {offsets = [0, 8], sizes = [64, 8], strides = [1, 1]} : vector<64x32xf32> to vector<64x8xf32>
    %40 = vector.extract_strided_slice %18 {offsets = [0, 8], sizes = [64, 8], strides = [1, 1]} : vector<64x32xf32> to vector<64x8xf32>
    %41 = vector.extract_strided_slice %16 {offsets = [0, 8], sizes = [64, 8], strides = [1, 1]} : vector<64x32xf32> to vector<64x8xf32>
    %cst_23 = arith.constant dense<0.000000e+00> : vector<64x64xf32>
    %42 = tpu.matmul %39, %40, %cst_23 {dimension_numbers = #tpu.dot_dimension_numbers<[1], [1], [0], [0], [0, 0, 1, 0], [], []>} : vector<64x8xf32>, vector<64x8xf32>, vector<64x64xf32> -> vector<64x64xf32>
    %cst_24 = arith.constant dense<0xFF800000> : vector<64xf32>
    %43 = vector.multi_reduction <maximumf>, %42, %cst_24 [1] : vector<64x64xf32> to vector<64xf32>
    %44 = vector.shape_cast %43 : vector<64xf32> to vector<64x1xf32>
    %45 = vector.broadcast %44 : vector<64x1xf32> to vector<64x64xf32>
    %46 = arith.subf %42, %45 : vector<64x64xf32>
    %47 = math.exp %46 : vector<64x64xf32>
    %cst_25 = arith.constant dense<0.000000e+00> : vector<64xf32>
    %48 = vector.multi_reduction <add>, %47, %cst_25 [1] : vector<64x64xf32> to vector<64xf32>
    %49 = vector.shape_cast %48 : vector<64xf32> to vector<64x1xf32>
    %50 = tpu.reciprocal %49 {approx = true} : vector<64x1xf32> -> vector<64x1xf32>
    %51 = vector.broadcast %50 : vector<64x1xf32> to vector<64x64xf32>
    %52 = arith.mulf %47, %51 : vector<64x64xf32>
    %cst_26 = arith.constant dense<0.000000e+00> : vector<64x8xf32>
    %53 = tpu.matmul %52, %41, %cst_26 {dimension_numbers = #tpu.dot_dimension_numbers<[1], [0], [0], [1], [0, 0, 1, 1], [], []>} : vector<64x64xf32>, vector<64x8xf32>, vector<64x8xf32> -> vector<64x8xf32>
    %54 = arith.truncf %53 : vector<64x8xf32> to vector<64x8xbf16>
    %55 = vector.extract_strided_slice %19 {offsets = [8, 0], sizes = [8, 32], strides = [1, 1]} : vector<32x32xbf16> to vector<8x32xbf16>
    %cst_27 = arith.constant dense<0.000000e+00> : vector<64x32xf32>
    %56 = tpu.matmul %54, %55, %cst_27 {dimension_numbers = #tpu.dot_dimension_numbers<[1], [0], [0], [1], [0, 0, 1, 1], [], []>} : vector<64x8xbf16>, vector<8x32xbf16>, vector<64x32xf32> -> vector<64x32xf32>
    %57 = arith.addf %38, %56 : vector<64x32xf32>
    %58 = vector.extract_strided_slice %17 {offsets = [0, 16], sizes = [64, 8], strides = [1, 1]} : vector<64x32xf32> to vector<64x8xf32>
    %59 = vector.extract_strided_slice %18 {offsets = [0, 16], sizes = [64, 8], strides = [1, 1]} : vector<64x32xf32> to vector<64x8xf32>
    %60 = vector.extract_strided_slice %16 {offsets = [0, 16], sizes = [64, 8], strides = [1, 1]} : vector<64x32xf32> to vector<64x8xf32>
    %cst_28 = arith.constant dense<0.000000e+00> : vector<64x64xf32>
    %61 = tpu.matmul %58, %59, %cst_28 {dimension_numbers = #tpu.dot_dimension_numbers<[1], [1], [0], [0], [0, 0, 1, 0], [], []>} : vector<64x8xf32>, vector<64x8xf32>, vector<64x64xf32> -> vector<64x64xf32>
    %cst_29 = arith.constant dense<0xFF800000> : vector<64xf32>
    %62 = vector.multi_reduction <maximumf>, %61, %cst_29 [1] : vector<64x64xf32> to vector<64xf32>
    %63 = vector.shape_cast %62 : vector<64xf32> to vector<64x1xf32>
    %64 = vector.broadcast %63 : vector<64x1xf32> to vector<64x64xf32>
    %65 = arith.subf %61, %64 : vector<64x64xf32>
    %66 = math.exp %65 : vector<64x64xf32>
    %cst_30 = arith.constant dense<0.000000e+00> : vector<64xf32>
    %67 = vector.multi_reduction <add>, %66, %cst_30 [1] : vector<64x64xf32> to vector<64xf32>
    %68 = vector.shape_cast %67 : vector<64xf32> to vector<64x1xf32>
    %69 = tpu.reciprocal %68 {approx = true} : vector<64x1xf32> -> vector<64x1xf32>
    %70 = vector.broadcast %69 : vector<64x1xf32> to vector<64x64xf32>
    %71 = arith.mulf %66, %70 : vector<64x64xf32>
    %cst_31 = arith.constant dense<0.000000e+00> : vector<64x8xf32>
    %72 = tpu.matmul %71, %60, %cst_31 {dimension_numbers = #tpu.dot_dimension_numbers<[1], [0], [0], [1], [0, 0, 1, 1], [], []>} : vector<64x64xf32>, vector<64x8xf32>, vector<64x8xf32> -> vector<64x8xf32>
    %73 = arith.truncf %72 : vector<64x8xf32> to vector<64x8xbf16>
    %74 = vector.extract_strided_slice %19 {offsets = [16, 0], sizes = [8, 32], strides = [1, 1]} : vector<32x32xbf16> to vector<8x32xbf16>
    %cst_32 = arith.constant dense<0.000000e+00> : vector<64x32xf32>
    %75 = tpu.matmul %73, %74, %cst_32 {dimension_numbers = #tpu.dot_dimension_numbers<[1], [0], [0], [1], [0, 0, 1, 1], [], []>} : vector<64x8xbf16>, vector<8x32xbf16>, vector<64x32xf32> -> vector<64x32xf32>
    %76 = arith.addf %57, %75 : vector<64x32xf32>
    %77 = vector.extract_strided_slice %17 {offsets = [0, 24], sizes = [64, 8], strides = [1, 1]} : vector<64x32xf32> to vector<64x8xf32>
    %78 = vector.extract_strided_slice %18 {offsets = [0, 24], sizes = [64, 8], strides = [1, 1]} : vector<64x32xf32> to vector<64x8xf32>
    %79 = vector.extract_strided_slice %16 {offsets = [0, 24], sizes = [64, 8], strides = [1, 1]} : vector<64x32xf32> to vector<64x8xf32>
    %cst_33 = arith.constant dense<0.000000e+00> : vector<64x64xf32>
    %80 = tpu.matmul %77, %78, %cst_33 {dimension_numbers = #tpu.dot_dimension_numbers<[1], [1], [0], [0], [0, 0, 1, 0], [], []>} : vector<64x8xf32>, vector<64x8xf32>, vector<64x64xf32> -> vector<64x64xf32>
    %cst_34 = arith.constant dense<0xFF800000> : vector<64xf32>
    %81 = vector.multi_reduction <maximumf>, %80, %cst_34 [1] : vector<64x64xf32> to vector<64xf32>
    %82 = vector.shape_cast %81 : vector<64xf32> to vector<64x1xf32>
    %83 = vector.broadcast %82 : vector<64x1xf32> to vector<64x64xf32>
    %84 = arith.subf %80, %83 : vector<64x64xf32>
    %85 = math.exp %84 : vector<64x64xf32>
    %cst_35 = arith.constant dense<0.000000e+00> : vector<64xf32>
    %86 = vector.multi_reduction <add>, %85, %cst_35 [1] : vector<64x64xf32> to vector<64xf32>
    %87 = vector.shape_cast %86 : vector<64xf32> to vector<64x1xf32>
    %88 = tpu.reciprocal %87 {approx = true} : vector<64x1xf32> -> vector<64x1xf32>
    %89 = vector.broadcast %88 : vector<64x1xf32> to vector<64x64xf32>
    %90 = arith.mulf %85, %89 : vector<64x64xf32>
    %cst_36 = arith.constant dense<0.000000e+00> : vector<64x8xf32>
    %91 = tpu.matmul %90, %79, %cst_36 {dimension_numbers = #tpu.dot_dimension_numbers<[1], [0], [0], [1], [0, 0, 1, 1], [], []>} : vector<64x64xf32>, vector<64x8xf32>, vector<64x8xf32> -> vector<64x8xf32>
    %92 = arith.truncf %91 : vector<64x8xf32> to vector<64x8xbf16>
    %93 = vector.extract_strided_slice %19 {offsets = [24, 0], sizes = [8, 32], strides = [1, 1]} : vector<32x32xbf16> to vector<8x32xbf16>
    %cst_37 = arith.constant dense<0.000000e+00> : vector<64x32xf32>
    %94 = tpu.matmul %92, %93, %cst_37 {dimension_numbers = #tpu.dot_dimension_numbers<[1], [0], [0], [1], [0, 0, 1, 1], [], []>} : vector<64x8xbf16>, vector<8x32xbf16>, vector<64x32xf32> -> vector<64x32xf32>
    %95 = arith.addf %76, %94 : vector<64x32xf32>
    %96 = vector.broadcast %20 : vector<1x32xf32> to vector<64x32xf32>
    %97 = arith.addf %95, %96 : vector<64x32xf32>
    %98 = arith.addf %1, %97 : vector<64x32xf32>
    %c0_38 = arith.constant 0 : index
    %c0_39 = arith.constant 0 : index
    %99 = vector.load %arg9[%c0_38, %c0_39] : memref<2x32xf32, #tpu.memory_space<vmem>>, vector<2x32xf32>
    %cst_40 = arith.constant dense<0.000000e+00> : vector<64xf32>
    %100 = vector.multi_reduction <add>, %98, %cst_40 [1] : vector<64x32xf32> to vector<64xf32>
    %101 = vector.shape_cast %100 : vector<64xf32> to vector<64x1xf32>
    %cst_41 = arith.constant 3.200000e+01 : f32
    %102 = vector.broadcast %cst_41 : f32 to vector<64x1xf32>
    %103 = arith.divf %101, %102 : vector<64x1xf32>
    %104 = vector.broadcast %103 : vector<64x1xf32> to vector<64x32xf32>
    %105 = arith.subf %98, %104 : vector<64x32xf32>
    %106 = arith.mulf %105, %105 : vector<64x32xf32>
    %cst_42 = arith.constant dense<0.000000e+00> : vector<64xf32>
    %107 = vector.multi_reduction <add>, %106, %cst_42 [1] : vector<64x32xf32> to vector<64xf32>
    %108 = vector.shape_cast %107 : vector<64xf32> to vector<64x1xf32>
    %cst_43 = arith.constant 3.200000e+01 : f32
    %109 = vector.broadcast %cst_43 : f32 to vector<64x1xf32>
    %110 = arith.divf %108, %109 : vector<64x1xf32>
    %cst_44 = arith.constant 9.99999974E-6 : f32
    %111 = vector.broadcast %cst_44 : f32 to vector<64x1xf32>
    %112 = arith.addf %110, %111 : vector<64x1xf32>
    %113 = math.rsqrt %112 : vector<64x1xf32>
    %114 = vector.broadcast %113 : vector<64x1xf32> to vector<64x32xf32>
    %115 = arith.mulf %105, %114 : vector<64x32xf32>
    %116 = vector.extract_strided_slice %99 {offsets = [0, 0], sizes = [1, 32], strides = [1, 1]} : vector<2x32xf32> to vector<1x32xf32>
    %117 = vector.broadcast %116 : vector<1x32xf32> to vector<64x32xf32>
    %118 = arith.mulf %115, %117 : vector<64x32xf32>
    %119 = vector.extract_strided_slice %99 {offsets = [1, 0], sizes = [1, 32], strides = [1, 1]} : vector<2x32xf32> to vector<1x32xf32>
    %120 = vector.broadcast %119 : vector<1x32xf32> to vector<64x32xf32>
    %121 = arith.addf %118, %120 : vector<64x32xf32>
    %c0_45 = arith.constant 0 : index
    %c0_46 = arith.constant 0 : index
    %122 = vector.load %arg10[%c0_45, %c0_46] : memref<32x64xbf16, #tpu.memory_space<vmem>>, vector<32x64xbf16>
    %c0_47 = arith.constant 0 : index
    %c0_48 = arith.constant 0 : index
    %123 = vector.load %arg11[%c0_47, %c0_48] : memref<1x64xf32, #tpu.memory_space<vmem>>, vector<1x64xf32>
    %124 = arith.truncf %121 : vector<64x32xf32> to vector<64x32xbf16>
    %cst_49 = arith.constant dense<0.000000e+00> : vector<64x64xf32>
    %125 = tpu.matmul %124, %122, %cst_49 {dimension_numbers = #tpu.dot_dimension_numbers<[1], [0], [0], [1], [0, 0, 1, 1], [], []>} : vector<64x32xbf16>, vector<32x64xbf16>, vector<64x64xf32> -> vector<64x64xf32>
    %126 = vector.broadcast %123 : vector<1x64xf32> to vector<64x64xf32>
    %127 = arith.addf %125, %126 : vector<64x64xf32>
    %cst_50 = arith.constant 0.000000e+00 : f32
    %128 = vector.broadcast %cst_50 : f32 to vector<64x64xf32>
    %129 = arith.maximumf %127, %128 : vector<64x64xf32>
    %c0_51 = arith.constant 0 : index
    %c0_52 = arith.constant 0 : index
    %130 = vector.load %arg12[%c0_51, %c0_52] : memref<64x32xbf16, #tpu.memory_space<vmem>>, vector<64x32xbf16>
    %c0_53 = arith.constant 0 : index
    %c0_54 = arith.constant 0 : index
    %131 = vector.load %arg13[%c0_53, %c0_54] : memref<1x32xf32, #tpu.memory_space<vmem>>, vector<1x32xf32>
    %132 = arith.truncf %129 : vector<64x64xf32> to vector<64x64xbf16>
    %cst_55 = arith.constant dense<0.000000e+00> : vector<64x32xf32>
    %133 = tpu.matmul %132, %130, %cst_55 {dimension_numbers = #tpu.dot_dimension_numbers<[1], [0], [0], [1], [0, 0, 1, 1], [], []>} : vector<64x64xbf16>, vector<64x32xbf16>, vector<64x32xf32> -> vector<64x32xf32>
    %134 = vector.broadcast %131 : vector<1x32xf32> to vector<64x32xf32>
    %135 = arith.addf %133, %134 : vector<64x32xf32>
    %136 = arith.addf %121, %135 : vector<64x32xf32>
    %c0_56 = arith.constant 0 : index
    %c0_57 = arith.constant 0 : index
    %137 = vector.load %arg14[%c0_56, %c0_57] : memref<2x32xf32, #tpu.memory_space<vmem>>, vector<2x32xf32>
    %cst_58 = arith.constant dense<0.000000e+00> : vector<64xf32>
    %138 = vector.multi_reduction <add>, %136, %cst_58 [1] : vector<64x32xf32> to vector<64xf32>
    %139 = vector.shape_cast %138 : vector<64xf32> to vector<64x1xf32>
    %cst_59 = arith.constant 3.200000e+01 : f32
    %140 = vector.broadcast %cst_59 : f32 to vector<64x1xf32>
    %141 = arith.divf %139, %140 : vector<64x1xf32>
    %142 = vector.broadcast %141 : vector<64x1xf32> to vector<64x32xf32>
    %143 = arith.subf %136, %142 : vector<64x32xf32>
    %144 = arith.mulf %143, %143 : vector<64x32xf32>
    %cst_60 = arith.constant dense<0.000000e+00> : vector<64xf32>
    %145 = vector.multi_reduction <add>, %144, %cst_60 [1] : vector<64x32xf32> to vector<64xf32>
    %146 = vector.shape_cast %145 : vector<64xf32> to vector<64x1xf32>
    %cst_61 = arith.constant 3.200000e+01 : f32
    %147 = vector.broadcast %cst_61 : f32 to vector<64x1xf32>
    %148 = arith.divf %146, %147 : vector<64x1xf32>
    %cst_62 = arith.constant 9.99999974E-6 : f32
    %149 = vector.broadcast %cst_62 : f32 to vector<64x1xf32>
    %150 = arith.addf %148, %149 : vector<64x1xf32>
    %151 = math.rsqrt %150 : vector<64x1xf32>
    %152 = vector.broadcast %151 : vector<64x1xf32> to vector<64x32xf32>
    %153 = arith.mulf %143, %152 : vector<64x32xf32>
    %154 = vector.extract_strided_slice %137 {offsets = [0, 0], sizes = [1, 32], strides = [1, 1]} : vector<2x32xf32> to vector<1x32xf32>
    %155 = vector.broadcast %154 : vector<1x32xf32> to vector<64x32xf32>
    %156 = arith.mulf %153, %155 : vector<64x32xf32>
    %157 = vector.extract_strided_slice %137 {offsets = [1, 0], sizes = [1, 32], strides = [1, 1]} : vector<2x32xf32> to vector<1x32xf32>
    %158 = vector.broadcast %157 : vector<1x32xf32> to vector<64x32xf32>
    %159 = arith.addf %156, %158 : vector<64x32xf32>
    %c0_63 = arith.constant 0 : index
    %c0_64 = arith.constant 0 : index
    %c0_65 = arith.constant 0 : index
    %160 = vector.load %arg15[%c0_63, %c0_64, %c0_65] : memref<1x64x32xf32, #tpu.memory_space<vmem>>, vector<1x64x32xf32>
    %161 = vector.shape_cast %160 : vector<1x64x32xf32> to vector<64x32xf32>
    %162 = vector.shape_cast %159 : vector<64x32xf32> to vector<1x64x32xf32>
    tpu.vector_store %arg15[%c0_63, %c0_64, %c0_65], %162 {strides = array<i32>} : memref<1x64x32xf32, #tpu.memory_space<vmem>>, vector<1x64x32xf32>,
    return
  }
  func.func @transform_0(%arg0: i32) -> (i32, i32, i32) {
    %c0_i32 = arith.constant 0 : i32
    %c0_i32_0 = arith.constant 0 : i32
    %c0_i32_1 = arith.constant 0 : i32
    return %arg0, %c0_i32, %c0_i32_0 : i32, i32, i32
  }
  func.func @transform_1(%arg0: i32) -> (i32, i32, i32) {
    %c0_i32 = arith.constant 0 : i32
    %c0_i32_0 = arith.constant 0 : i32
    %c0_i32_1 = arith.constant 0 : i32
    return %arg0, %c0_i32, %c0_i32_0 : i32, i32, i32
  }
  func.func @transform_2(%arg0: i32) -> (i32, i32) {
    %c0_i32 = arith.constant 0 : i32
    %c0_i32_0 = arith.constant 0 : i32
    %c0_i32_1 = arith.constant 0 : i32
    return %c0_i32, %c0_i32_0 : i32, i32
  }
  func.func @transform_3(%arg0: i32) -> (i32, i32) {
    %c0_i32 = arith.constant 0 : i32
    %c0_i32_0 = arith.constant 0 : i32
    %c0_i32_1 = arith.constant 0 : i32
    return %c0_i32, %c0_i32_0 : i32, i32
  }
  func.func @transform_4(%arg0: i32) -> (i32, i32) {
    %c0_i32 = arith.constant 0 : i32
    %c0_i32_0 = arith.constant 0 : i32
    %c0_i32_1 = arith.constant 0 : i32
    return %c0_i32, %c0_i32_0 : i32, i32
  }
  func.func @transform_5(%arg0: i32) -> (i32, i32) {
    %c0_i32 = arith.constant 0 : i32
    %c0_i32_0 = arith.constant 0 : i32
    %c0_i32_1 = arith.constant 0 : i32
    return %c0_i32, %c0_i32_0 : i32, i32
  }
  func.func @transform_6(%arg0: i32) -> (i32, i32) {
    %c0_i32 = arith.constant 0 : i32
    %c0_i32_0 = arith.constant 0 : i32
    %c0_i32_1 = arith.constant 0 : i32
    return %c0_i32, %c0_i32_0 : i32, i32
  }
  func.func @transform_7(%arg0: i32) -> (i32, i32) {
    %c0_i32 = arith.constant 0 : i32
    %c0_i32_0 = arith.constant 0 : i32
    %c0_i32_1 = arith.constant 0 : i32
    return %c0_i32, %c0_i32_0 : i32, i32
  }
  func.func @transform_8(%arg0: i32) -> (i32, i32) {
    %c0_i32 = arith.constant 0 : i32
    %c0_i32_0 = arith.constant 0 : i32
    %c0_i32_1 = arith.constant 0 : i32
    return %c0_i32, %c0_i32_0 : i32, i32
  }
  func.func @transform_9(%arg0: i32) -> (i32, i32) {
    %c0_i32 = arith.constant 0 : i32
    %c0_i32_0 = arith.constant 0 : i32
    %c0_i32_1 = arith.constant 0 : i32
    return %c0_i32, %c0_i32_0 : i32, i32
  }
  func.func @transform_10(%arg0: i32) -> (i32, i32) {
    %c0_i32 = arith.constant 0 : i32
    %c0_i32_0 = arith.constant 0 : i32
    %c0_i32_1 = arith.constant 0 : i32
    return %c0_i32, %c0_i32_0 : i32, i32
  }
  func.func @transform_11(%arg0: i32) -> (i32, i32) {
    %c0_i32 = arith.constant 0 : i32
    %c0_i32_0 = arith.constant 0 : i32
    %c0_i32_1 = arith.constant 0 : i32
    return %c0_i32, %c0_i32_0 : i32, i32
  }
  func.func @transform_12(%arg0: i32) -> (i32, i32) {
    %c0_i32 = arith.constant 0 : i32
    %c0_i32_0 = arith.constant 0 : i32
    %c0_i32_1 = arith.constant 0 : i32
    return %c0_i32, %c0_i32_0 : i32, i32
  }
  func.func @transform_13(%arg0: i32) -> (i32, i32) {
    %c0_i32 = arith.constant 0 : i32
    %c0_i32_0 = arith.constant 0 : i32
    %c0_i32_1 = arith.constant 0 : i32
    return %c0_i32, %c0_i32_0 : i32, i32
  }
  func.func @transform_14(%arg0: i32) -> (i32, i32, i32) {
    %c0_i32 = arith.constant 0 : i32
    %c0_i32_0 = arith.constant 0 : i32
    %c0_i32_1 = arith.constant 0 : i32
    return %arg0, %c0_i32, %c0_i32_0 : i32, i32, i32
  }
}

module attributes {stable_mosaic.version = 11 : i64} {
  func.func @_decoder_layer_kernel(%arg0: i32, %arg1: memref<1x8x32xf32, #tpu.memory_space<vmem>>, %arg2: memref<1x64x32xf32, #tpu.memory_space<vmem>>, %arg3: memref<1x64x32xf32, #tpu.memory_space<vmem>>, %arg4: memref<8x32xf32, #tpu.memory_space<vmem>>, %arg5: memref<32x64xbf16, #tpu.memory_space<vmem>>, %arg6: memref<1x64xf32, #tpu.memory_space<vmem>>, %arg7: memref<32x32xbf16, #tpu.memory_space<vmem>>, %arg8: memref<1x32xf32, #tpu.memory_space<vmem>>, %arg9: memref<32x32xbf16, #tpu.memory_space<vmem>>, %arg10: memref<1x32xf32, #tpu.memory_space<vmem>>, %arg11: memref<2x32xf32, #tpu.memory_space<vmem>>, %arg12: memref<32x32xbf16, #tpu.memory_space<vmem>>, %arg13: memref<1x32xf32, #tpu.memory_space<vmem>>, %arg14: memref<32x32xbf16, #tpu.memory_space<vmem>>, %arg15: memref<1x32xf32, #tpu.memory_space<vmem>>, %arg16: memref<32x32xbf16, #tpu.memory_space<vmem>>, %arg17: memref<1x32xf32, #tpu.memory_space<vmem>>, %arg18: memref<32x32xbf16, #tpu.memory_space<vmem>>, %arg19: memref<1x32xf32, #tpu.memory_space<vmem>>, %arg20: memref<2x32xf32, #tpu.memory_space<vmem>>, %arg21: memref<32x64xbf16, #tpu.memory_space<vmem>>, %arg22: memref<1x64xf32, #tpu.memory_space<vmem>>, %arg23: memref<64x32xbf16, #tpu.memory_space<vmem>>, %arg24: memref<1x32xf32, #tpu.memory_space<vmem>>, %arg25: memref<2x32xf32, #tpu.memory_space<vmem>>, %arg26: memref<2x32xf32, #tpu.memory_space<vmem>>, %arg27: memref<1x8x32xf32, #tpu.memory_space<vmem>>, %arg28: memref<1x8x32xf32, #tpu.memory_space<vmem>>) attributes {dimension_semantics = [#tpu.dimension_semantics<parallel>], iteration_bounds = array<i64: 2>, scalar_prefetch = 0 : i64, scratch_operands = 0 : i64, tpu.core_type = #tpu.core_type<tc>, window_params = [{transform_indices = @transform_0, window_bounds = array<i64: 1, 8, 32>}, {transform_indices = @transform_1, window_bounds = array<i64: 1, 64, 32>}, {transform_indices = @transform_2, window_bounds = array<i64: 1, 64, 32>}, {pipeline_mode = #tpu.pipeline_mode<synchronous>, transform_indices = @transform_3, window_bounds = array<i64: 8, 32>}, {pipeline_mode = #tpu.pipeline_mode<synchronous>, transform_indices = @transform_4, window_bounds = array<i64: 32, 64>}, {pipeline_mode = #tpu.pipeline_mode<synchronous>, transform_indices = @transform_5, window_bounds = array<i64: 1, 64>}, {pipeline_mode = #tpu.pipeline_mode<synchronous>, transform_indices = @transform_6, window_bounds = array<i64: 32, 32>}, {pipeline_mode = #tpu.pipeline_mode<synchronous>, transform_indices = @transform_7, window_bounds = array<i64: 1, 32>}, {pipeline_mode = #tpu.pipeline_mode<synchronous>, transform_indices = @transform_8, window_bounds = array<i64: 32, 32>}, {pipeline_mode = #tpu.pipeline_mode<synchronous>, transform_indices = @transform_9, window_bounds = array<i64: 1, 32>}, {pipeline_mode = #tpu.pipeline_mode<synchronous>, transform_indices = @transform_10, window_bounds = array<i64: 2, 32>}, {pipeline_mode = #tpu.pipeline_mode<synchronous>, transform_indices = @transform_11, window_bounds = array<i64: 32, 32>}, {pipeline_mode = #tpu.pipeline_mode<synchronous>, transform_indices = @transform_12, window_bounds = array<i64: 1, 32>}, {pipeline_mode = #tpu.pipeline_mode<synchronous>, transform_indices = @transform_13, window_bounds = array<i64: 32, 32>}, {pipeline_mode = #tpu.pipeline_mode<synchronous>, transform_indices = @transform_14, window_bounds = array<i64: 1, 32>}, {pipeline_mode = #tpu.pipeline_mode<synchronous>, transform_indices = @transform_15, window_bounds = array<i64: 32, 32>}, {pipeline_mode = #tpu.pipeline_mode<synchronous>, transform_indices = @transform_16, window_bounds = array<i64: 1, 32>}, {pipeline_mode = #tpu.pipeline_mode<synchronous>, transform_indices = @transform_17, window_bounds = array<i64: 32, 32>}, {pipeline_mode = #tpu.pipeline_mode<synchronous>, transform_indices = @transform_18, window_bounds = array<i64: 1, 32>}, {pipeline_mode = #tpu.pipeline_mode<synchronous>, transform_indices = @transform_19, window_bounds = array<i64: 2, 32>}, {pipeline_mode = #tpu.pipeline_mode<synchronous>, transform_indices = @transform_20, window_bounds = array<i64: 32, 64>}, {pipeline_mode = #tpu.pipeline_mode<synchronous>, transform_indices = @transform_21, window_bounds = array<i64: 1, 64>}, {pipeline_mode = #tpu.pipeline_mode<synchronous>, transform_indices = @transform_22, window_bounds = array<i64: 64, 32>}, {pipeline_mode = #tpu.pipeline_mode<synchronous>, transform_indices = @transform_23, window_bounds = array<i64: 1, 32>}, {pipeline_mode = #tpu.pipeline_mode<synchronous>, transform_indices = @transform_24, window_bounds = array<i64: 2, 32>}, {pipeline_mode = #tpu.pipeline_mode<synchronous>, transform_indices = @transform_25, window_bounds = array<i64: 2, 32>}, {transform_indices = @transform_26, window_bounds = array<i64: 1, 8, 32>}, {transform_indices = @transform_27, window_bounds = array<i64: 1, 8, 32>}]} {
    %c0 = arith.constant 0 : index
    %c0_0 = arith.constant 0 : index
    %c0_1 = arith.constant 0 : index
    %0 = vector.load %arg1[%c0, %c0_0, %c0_1] : memref<1x8x32xf32, #tpu.memory_space<vmem>>, vector<1x8x32xf32>
    %1 = vector.shape_cast %0 : vector<1x8x32xf32> to vector<8x32xf32>
    %c0_2 = arith.constant 0 : index
    %c0_3 = arith.constant 0 : index
    %c0_4 = arith.constant 0 : index
    %2 = vector.load %arg2[%c0_2, %c0_3, %c0_4] : memref<1x64x32xf32, #tpu.memory_space<vmem>>, vector<1x64x32xf32>
    %3 = vector.shape_cast %2 : vector<1x64x32xf32> to vector<64x32xf32>
    %c0_5 = arith.constant 0 : index
    %c0_6 = arith.constant 0 : index
    %c0_7 = arith.constant 0 : index
    %4 = vector.load %arg3[%c0_5, %c0_6, %c0_7] : memref<1x64x32xf32, #tpu.memory_space<vmem>>, vector<1x64x32xf32>
    %5 = vector.shape_cast %4 : vector<1x64x32xf32> to vector<64x32xf32>
    %c0_8 = arith.constant 0 : index
    %c0_9 = arith.constant 0 : index
    %6 = vector.load %arg4[%c0_8, %c0_9] : memref<8x32xf32, #tpu.memory_space<vmem>>, vector<8x32xf32>
    %7 = arith.addf %1, %6 : vector<8x32xf32>
    %c0_10 = arith.constant 0 : index
    %c0_11 = arith.constant 0 : index
    %8 = vector.load %arg5[%c0_10, %c0_11] : memref<32x64xbf16, #tpu.memory_space<vmem>>, vector<32x64xbf16>
    %c0_12 = arith.constant 0 : index
    %c0_13 = arith.constant 0 : index
    %9 = vector.load %arg6[%c0_12, %c0_13] : memref<1x64xf32, #tpu.memory_space<vmem>>, vector<1x64xf32>
    %10 = arith.truncf %7 : vector<8x32xf32> to vector<8x32xbf16>
    %cst = arith.constant dense<0.000000e+00> : vector<8x64xf32>
    %11 = tpu.matmul %10, %8, %cst {dimension_numbers = #tpu.dot_dimension_numbers<[1], [0], [0], [1], [0, 0, 1, 1], [], []>} : vector<8x32xbf16>, vector<32x64xbf16>, vector<8x64xf32> -> vector<8x64xf32>
    %12 = vector.broadcast %9 : vector<1x64xf32> to vector<8x64xf32>
    %13 = arith.addf %11, %12 : vector<8x64xf32>
    %c0_14 = arith.constant 0 : index
    %c0_15 = arith.constant 0 : index
    %14 = vector.load %arg7[%c0_14, %c0_15] : memref<32x32xbf16, #tpu.memory_space<vmem>>, vector<32x32xbf16>
    %c0_16 = arith.constant 0 : index
    %c0_17 = arith.constant 0 : index
    %15 = vector.load %arg8[%c0_16, %c0_17] : memref<1x32xf32, #tpu.memory_space<vmem>>, vector<1x32xf32>
    %16 = arith.truncf %1 : vector<8x32xf32> to vector<8x32xbf16>
    %cst_18 = arith.constant dense<0.000000e+00> : vector<8x32xf32>
    %17 = tpu.matmul %16, %14, %cst_18 {dimension_numbers = #tpu.dot_dimension_numbers<[1], [0], [0], [1], [0, 0, 1, 1], [], []>} : vector<8x32xbf16>, vector<32x32xbf16>, vector<8x32xf32> -> vector<8x32xf32>
    %18 = vector.broadcast %15 : vector<1x32xf32> to vector<8x32xf32>
    %19 = arith.addf %17, %18 : vector<8x32xf32>
    %20 = vector.extract_strided_slice %13 {offsets = [0, 0], sizes = [8, 32], strides = [1, 1]} : vector<8x64xf32> to vector<8x32xf32>
    %21 = vector.extract_strided_slice %13 {offsets = [0, 32], sizes = [8, 32], strides = [1, 1]} : vector<8x64xf32> to vector<8x32xf32>
    %c0_19 = arith.constant 0 : index
    %c0_20 = arith.constant 0 : index
    %22 = vector.load %arg9[%c0_19, %c0_20] : memref<32x32xbf16, #tpu.memory_space<vmem>>, vector<32x32xbf16>
    %c0_21 = arith.constant 0 : index
    %c0_22 = arith.constant 0 : index
    %23 = vector.load %arg10[%c0_21, %c0_22] : memref<1x32xf32, #tpu.memory_space<vmem>>, vector<1x32xf32>
    %24 = vector.extract_strided_slice %20 {offsets = [0, 0], sizes = [8, 8], strides = [1, 1]} : vector<8x32xf32> to vector<8x8xf32>
    %25 = vector.extract_strided_slice %21 {offsets = [0, 0], sizes = [8, 8], strides = [1, 1]} : vector<8x32xf32> to vector<8x8xf32>
    %26 = vector.extract_strided_slice %19 {offsets = [0, 0], sizes = [8, 8], strides = [1, 1]} : vector<8x32xf32> to vector<8x8xf32>
    %cst_23 = arith.constant dense<0.000000e+00> : vector<8x8xf32>
    %27 = tpu.matmul %24, %25, %cst_23 {dimension_numbers = #tpu.dot_dimension_numbers<[1], [1], [0], [0], [0, 0, 1, 0], [], []>} : vector<8x8xf32>, vector<8x8xf32>, vector<8x8xf32> -> vector<8x8xf32>
    %cst_24 = arith.constant dense<0xFF800000> : vector<8xf32>
    %28 = vector.multi_reduction <maximumf>, %27, %cst_24 [1] : vector<8x8xf32> to vector<8xf32>
    %29 = vector.shape_cast %28 : vector<8xf32> to vector<8x1xf32>
    %30 = vector.broadcast %29 : vector<8x1xf32> to vector<8x8xf32>
    %31 = arith.subf %27, %30 : vector<8x8xf32>
    %32 = math.exp %31 : vector<8x8xf32>
    %cst_25 = arith.constant dense<0.000000e+00> : vector<8xf32>
    %33 = vector.multi_reduction <add>, %32, %cst_25 [1] : vector<8x8xf32> to vector<8xf32>
    %34 = vector.shape_cast %33 : vector<8xf32> to vector<8x1xf32>
    %35 = tpu.reciprocal %34 {approx = true} : vector<8x1xf32> -> vector<8x1xf32>
    %36 = vector.broadcast %35 : vector<8x1xf32> to vector<8x8xf32>
    %37 = arith.mulf %32, %36 : vector<8x8xf32>
    %cst_26 = arith.constant dense<0.000000e+00> : vector<8x8xf32>
    %38 = tpu.matmul %37, %26, %cst_26 {dimension_numbers = #tpu.dot_dimension_numbers<[1], [0], [0], [1], [0, 0, 1, 1], [], []>} : vector<8x8xf32>, vector<8x8xf32>, vector<8x8xf32> -> vector<8x8xf32>
    %39 = arith.truncf %38 : vector<8x8xf32> to vector<8x8xbf16>
    %40 = vector.extract_strided_slice %22 {offsets = [0, 0], sizes = [8, 32], strides = [1, 1]} : vector<32x32xbf16> to vector<8x32xbf16>
    %cst_27 = arith.constant dense<0.000000e+00> : vector<8x32xf32>
    %41 = tpu.matmul %39, %40, %cst_27 {dimension_numbers = #tpu.dot_dimension_numbers<[1], [0], [0], [1], [0, 0, 1, 1], [], []>} : vector<8x8xbf16>, vector<8x32xbf16>, vector<8x32xf32> -> vector<8x32xf32>
    %42 = vector.extract_strided_slice %20 {offsets = [0, 8], sizes = [8, 8], strides = [1, 1]} : vector<8x32xf32> to vector<8x8xf32>
    %43 = vector.extract_strided_slice %21 {offsets = [0, 8], sizes = [8, 8], strides = [1, 1]} : vector<8x32xf32> to vector<8x8xf32>
    %44 = vector.extract_strided_slice %19 {offsets = [0, 8], sizes = [8, 8], strides = [1, 1]} : vector<8x32xf32> to vector<8x8xf32>
    %cst_28 = arith.constant dense<0.000000e+00> : vector<8x8xf32>
    %45 = tpu.matmul %42, %43, %cst_28 {dimension_numbers = #tpu.dot_dimension_numbers<[1], [1], [0], [0], [0, 0, 1, 0], [], []>} : vector<8x8xf32>, vector<8x8xf32>, vector<8x8xf32> -> vector<8x8xf32>
    %cst_29 = arith.constant dense<0xFF800000> : vector<8xf32>
    %46 = vector.multi_reduction <maximumf>, %45, %cst_29 [1] : vector<8x8xf32> to vector<8xf32>
    %47 = vector.shape_cast %46 : vector<8xf32> to vector<8x1xf32>
    %48 = vector.broadcast %47 : vector<8x1xf32> to vector<8x8xf32>
    %49 = arith.subf %45, %48 : vector<8x8xf32>
    %50 = math.exp %49 : vector<8x8xf32>
    %cst_30 = arith.constant dense<0.000000e+00> : vector<8xf32>
    %51 = vector.multi_reduction <add>, %50, %cst_30 [1] : vector<8x8xf32> to vector<8xf32>
    %52 = vector.shape_cast %51 : vector<8xf32> to vector<8x1xf32>
    %53 = tpu.reciprocal %52 {approx = true} : vector<8x1xf32> -> vector<8x1xf32>
    %54 = vector.broadcast %53 : vector<8x1xf32> to vector<8x8xf32>
    %55 = arith.mulf %50, %54 : vector<8x8xf32>
    %cst_31 = arith.constant dense<0.000000e+00> : vector<8x8xf32>
    %56 = tpu.matmul %55, %44, %cst_31 {dimension_numbers = #tpu.dot_dimension_numbers<[1], [0], [0], [1], [0, 0, 1, 1], [], []>} : vector<8x8xf32>, vector<8x8xf32>, vector<8x8xf32> -> vector<8x8xf32>
    %57 = arith.truncf %56 : vector<8x8xf32> to vector<8x8xbf16>
    %58 = vector.extract_strided_slice %22 {offsets = [8, 0], sizes = [8, 32], strides = [1, 1]} : vector<32x32xbf16> to vector<8x32xbf16>
    %cst_32 = arith.constant dense<0.000000e+00> : vector<8x32xf32>
    %59 = tpu.matmul %57, %58, %cst_32 {dimension_numbers = #tpu.dot_dimension_numbers<[1], [0], [0], [1], [0, 0, 1, 1], [], []>} : vector<8x8xbf16>, vector<8x32xbf16>, vector<8x32xf32> -> vector<8x32xf32>
    %60 = arith.addf %41, %59 : vector<8x32xf32>
    %61 = vector.extract_strided_slice %20 {offsets = [0, 16], sizes = [8, 8], strides = [1, 1]} : vector<8x32xf32> to vector<8x8xf32>
    %62 = vector.extract_strided_slice %21 {offsets = [0, 16], sizes = [8, 8], strides = [1, 1]} : vector<8x32xf32> to vector<8x8xf32>
    %63 = vector.extract_strided_slice %19 {offsets = [0, 16], sizes = [8, 8], strides = [1, 1]} : vector<8x32xf32> to vector<8x8xf32>
    %cst_33 = arith.constant dense<0.000000e+00> : vector<8x8xf32>
    %64 = tpu.matmul %61, %62, %cst_33 {dimension_numbers = #tpu.dot_dimension_numbers<[1], [1], [0], [0], [0, 0, 1, 0], [], []>} : vector<8x8xf32>, vector<8x8xf32>, vector<8x8xf32> -> vector<8x8xf32>
    %cst_34 = arith.constant dense<0xFF800000> : vector<8xf32>
    %65 = vector.multi_reduction <maximumf>, %64, %cst_34 [1] : vector<8x8xf32> to vector<8xf32>
    %66 = vector.shape_cast %65 : vector<8xf32> to vector<8x1xf32>
    %67 = vector.broadcast %66 : vector<8x1xf32> to vector<8x8xf32>
    %68 = arith.subf %64, %67 : vector<8x8xf32>
    %69 = math.exp %68 : vector<8x8xf32>
    %cst_35 = arith.constant dense<0.000000e+00> : vector<8xf32>
    %70 = vector.multi_reduction <add>, %69, %cst_35 [1] : vector<8x8xf32> to vector<8xf32>
    %71 = vector.shape_cast %70 : vector<8xf32> to vector<8x1xf32>
    %72 = tpu.reciprocal %71 {approx = true} : vector<8x1xf32> -> vector<8x1xf32>
    %73 = vector.broadcast %72 : vector<8x1xf32> to vector<8x8xf32>
    %74 = arith.mulf %69, %73 : vector<8x8xf32>
    %cst_36 = arith.constant dense<0.000000e+00> : vector<8x8xf32>
    %75 = tpu.matmul %74, %63, %cst_36 {dimension_numbers = #tpu.dot_dimension_numbers<[1], [0], [0], [1], [0, 0, 1, 1], [], []>} : vector<8x8xf32>, vector<8x8xf32>, vector<8x8xf32> -> vector<8x8xf32>
    %76 = arith.truncf %75 : vector<8x8xf32> to vector<8x8xbf16>
    %77 = vector.extract_strided_slice %22 {offsets = [16, 0], sizes = [8, 32], strides = [1, 1]} : vector<32x32xbf16> to vector<8x32xbf16>
    %cst_37 = arith.constant dense<0.000000e+00> : vector<8x32xf32>
    %78 = tpu.matmul %76, %77, %cst_37 {dimension_numbers = #tpu.dot_dimension_numbers<[1], [0], [0], [1], [0, 0, 1, 1], [], []>} : vector<8x8xbf16>, vector<8x32xbf16>, vector<8x32xf32> -> vector<8x32xf32>
    %79 = arith.addf %60, %78 : vector<8x32xf32>
    %80 = vector.extract_strided_slice %20 {offsets = [0, 24], sizes = [8, 8], strides = [1, 1]} : vector<8x32xf32> to vector<8x8xf32>
    %81 = vector.extract_strided_slice %21 {offsets = [0, 24], sizes = [8, 8], strides = [1, 1]} : vector<8x32xf32> to vector<8x8xf32>
    %82 = vector.extract_strided_slice %19 {offsets = [0, 24], sizes = [8, 8], strides = [1, 1]} : vector<8x32xf32> to vector<8x8xf32>
    %cst_38 = arith.constant dense<0.000000e+00> : vector<8x8xf32>
    %83 = tpu.matmul %80, %81, %cst_38 {dimension_numbers = #tpu.dot_dimension_numbers<[1], [1], [0], [0], [0, 0, 1, 0], [], []>} : vector<8x8xf32>, vector<8x8xf32>, vector<8x8xf32> -> vector<8x8xf32>
    %cst_39 = arith.constant dense<0xFF800000> : vector<8xf32>
    %84 = vector.multi_reduction <maximumf>, %83, %cst_39 [1] : vector<8x8xf32> to vector<8xf32>
    %85 = vector.shape_cast %84 : vector<8xf32> to vector<8x1xf32>
    %86 = vector.broadcast %85 : vector<8x1xf32> to vector<8x8xf32>
    %87 = arith.subf %83, %86 : vector<8x8xf32>
    %88 = math.exp %87 : vector<8x8xf32>
    %cst_40 = arith.constant dense<0.000000e+00> : vector<8xf32>
    %89 = vector.multi_reduction <add>, %88, %cst_40 [1] : vector<8x8xf32> to vector<8xf32>
    %90 = vector.shape_cast %89 : vector<8xf32> to vector<8x1xf32>
    %91 = tpu.reciprocal %90 {approx = true} : vector<8x1xf32> -> vector<8x1xf32>
    %92 = vector.broadcast %91 : vector<8x1xf32> to vector<8x8xf32>
    %93 = arith.mulf %88, %92 : vector<8x8xf32>
    %cst_41 = arith.constant dense<0.000000e+00> : vector<8x8xf32>
    %94 = tpu.matmul %93, %82, %cst_41 {dimension_numbers = #tpu.dot_dimension_numbers<[1], [0], [0], [1], [0, 0, 1, 1], [], []>} : vector<8x8xf32>, vector<8x8xf32>, vector<8x8xf32> -> vector<8x8xf32>
    %95 = arith.truncf %94 : vector<8x8xf32> to vector<8x8xbf16>
    %96 = vector.extract_strided_slice %22 {offsets = [24, 0], sizes = [8, 32], strides = [1, 1]} : vector<32x32xbf16> to vector<8x32xbf16>
    %cst_42 = arith.constant dense<0.000000e+00> : vector<8x32xf32>
    %97 = tpu.matmul %95, %96, %cst_42 {dimension_numbers = #tpu.dot_dimension_numbers<[1], [0], [0], [1], [0, 0, 1, 1], [], []>} : vector<8x8xbf16>, vector<8x32xbf16>, vector<8x32xf32> -> vector<8x32xf32>
    %98 = arith.addf %79, %97 : vector<8x32xf32>
    %99 = vector.broadcast %23 : vector<1x32xf32> to vector<8x32xf32>
    %100 = arith.addf %98, %99 : vector<8x32xf32>
    %101 = arith.addf %1, %100 : vector<8x32xf32>
    %c0_43 = arith.constant 0 : index
    %c0_44 = arith.constant 0 : index
    %102 = vector.load %arg11[%c0_43, %c0_44] : memref<2x32xf32, #tpu.memory_space<vmem>>, vector<2x32xf32>
    %cst_45 = arith.constant dense<0.000000e+00> : vector<8xf32>
    %103 = vector.multi_reduction <add>, %101, %cst_45 [1] : vector<8x32xf32> to vector<8xf32>
    %104 = vector.shape_cast %103 : vector<8xf32> to vector<8x1xf32>
    %cst_46 = arith.constant 3.200000e+01 : f32
    %105 = vector.broadcast %cst_46 : f32 to vector<8x1xf32>
    %106 = arith.divf %104, %105 : vector<8x1xf32>
    %107 = vector.broadcast %106 : vector<8x1xf32> to vector<8x32xf32>
    %108 = arith.subf %101, %107 : vector<8x32xf32>
    %109 = arith.mulf %108, %108 : vector<8x32xf32>
    %cst_47 = arith.constant dense<0.000000e+00> : vector<8xf32>
    %110 = vector.multi_reduction <add>, %109, %cst_47 [1] : vector<8x32xf32> to vector<8xf32>
    %111 = vector.shape_cast %110 : vector<8xf32> to vector<8x1xf32>
    %cst_48 = arith.constant 3.200000e+01 : f32
    %112 = vector.broadcast %cst_48 : f32 to vector<8x1xf32>
    %113 = arith.divf %111, %112 : vector<8x1xf32>
    %cst_49 = arith.constant 9.99999974E-6 : f32
    %114 = vector.broadcast %cst_49 : f32 to vector<8x1xf32>
    %115 = arith.addf %113, %114 : vector<8x1xf32>
    %116 = math.rsqrt %115 : vector<8x1xf32>
    %117 = vector.broadcast %116 : vector<8x1xf32> to vector<8x32xf32>
    %118 = arith.mulf %108, %117 : vector<8x32xf32>
    %119 = vector.extract_strided_slice %102 {offsets = [0, 0], sizes = [1, 32], strides = [1, 1]} : vector<2x32xf32> to vector<1x32xf32>
    %120 = vector.broadcast %119 : vector<1x32xf32> to vector<8x32xf32>
    %121 = arith.mulf %118, %120 : vector<8x32xf32>
    %122 = vector.extract_strided_slice %102 {offsets = [1, 0], sizes = [1, 32], strides = [1, 1]} : vector<2x32xf32> to vector<1x32xf32>
    %123 = vector.broadcast %122 : vector<1x32xf32> to vector<8x32xf32>
    %124 = arith.addf %121, %123 : vector<8x32xf32>
    %125 = arith.addf %124, %6 : vector<8x32xf32>
    %c0_50 = arith.constant 0 : index
    %c0_51 = arith.constant 0 : index
    %126 = vector.load %arg12[%c0_50, %c0_51] : memref<32x32xbf16, #tpu.memory_space<vmem>>, vector<32x32xbf16>
    %c0_52 = arith.constant 0 : index
    %c0_53 = arith.constant 0 : index
    %127 = vector.load %arg13[%c0_52, %c0_53] : memref<1x32xf32, #tpu.memory_space<vmem>>, vector<1x32xf32>
    %128 = arith.truncf %125 : vector<8x32xf32> to vector<8x32xbf16>
    %cst_54 = arith.constant dense<0.000000e+00> : vector<8x32xf32>
    %129 = tpu.matmul %128, %126, %cst_54 {dimension_numbers = #tpu.dot_dimension_numbers<[1], [0], [0], [1], [0, 0, 1, 1], [], []>} : vector<8x32xbf16>, vector<32x32xbf16>, vector<8x32xf32> -> vector<8x32xf32>
    %130 = vector.broadcast %127 : vector<1x32xf32> to vector<8x32xf32>
    %131 = arith.addf %129, %130 : vector<8x32xf32>
    %132 = arith.addf %3, %5 : vector<64x32xf32>
    %c0_55 = arith.constant 0 : index
    %c0_56 = arith.constant 0 : index
    %133 = vector.load %arg14[%c0_55, %c0_56] : memref<32x32xbf16, #tpu.memory_space<vmem>>, vector<32x32xbf16>
    %c0_57 = arith.constant 0 : index
    %c0_58 = arith.constant 0 : index
    %134 = vector.load %arg15[%c0_57, %c0_58] : memref<1x32xf32, #tpu.memory_space<vmem>>, vector<1x32xf32>
    %135 = arith.truncf %132 : vector<64x32xf32> to vector<64x32xbf16>
    %cst_59 = arith.constant dense<0.000000e+00> : vector<64x32xf32>
    %136 = tpu.matmul %135, %133, %cst_59 {dimension_numbers = #tpu.dot_dimension_numbers<[1], [0], [0], [1], [0, 0, 1, 1], [], []>} : vector<64x32xbf16>, vector<32x32xbf16>, vector<64x32xf32> -> vector<64x32xf32>
    %137 = vector.broadcast %134 : vector<1x32xf32> to vector<64x32xf32>
    %138 = arith.addf %136, %137 : vector<64x32xf32>
    %c0_60 = arith.constant 0 : index
    %c0_61 = arith.constant 0 : index
    %139 = vector.load %arg16[%c0_60, %c0_61] : memref<32x32xbf16, #tpu.memory_space<vmem>>, vector<32x32xbf16>
    %c0_62 = arith.constant 0 : index
    %c0_63 = arith.constant 0 : index
    %140 = vector.load %arg17[%c0_62, %c0_63] : memref<1x32xf32, #tpu.memory_space<vmem>>, vector<1x32xf32>
    %141 = arith.truncf %3 : vector<64x32xf32> to vector<64x32xbf16>
    %cst_64 = arith.constant dense<0.000000e+00> : vector<64x32xf32>
    %142 = tpu.matmul %141, %139, %cst_64 {dimension_numbers = #tpu.dot_dimension_numbers<[1], [0], [0], [1], [0, 0, 1, 1], [], []>} : vector<64x32xbf16>, vector<32x32xbf16>, vector<64x32xf32> -> vector<64x32xf32>
    %143 = vector.broadcast %140 : vector<1x32xf32> to vector<64x32xf32>
    %144 = arith.addf %142, %143 : vector<64x32xf32>
    %c0_65 = arith.constant 0 : index
    %c0_66 = arith.constant 0 : index
    %145 = vector.load %arg18[%c0_65, %c0_66] : memref<32x32xbf16, #tpu.memory_space<vmem>>, vector<32x32xbf16>
    %c0_67 = arith.constant 0 : index
    %c0_68 = arith.constant 0 : index
    %146 = vector.load %arg19[%c0_67, %c0_68] : memref<1x32xf32, #tpu.memory_space<vmem>>, vector<1x32xf32>
    %147 = vector.extract_strided_slice %131 {offsets = [0, 0], sizes = [8, 8], strides = [1, 1]} : vector<8x32xf32> to vector<8x8xf32>
    %148 = vector.extract_strided_slice %138 {offsets = [0, 0], sizes = [64, 8], strides = [1, 1]} : vector<64x32xf32> to vector<64x8xf32>
    %149 = vector.extract_strided_slice %144 {offsets = [0, 0], sizes = [64, 8], strides = [1, 1]} : vector<64x32xf32> to vector<64x8xf32>
    %cst_69 = arith.constant dense<0.000000e+00> : vector<8x64xf32>
    %150 = tpu.matmul %147, %148, %cst_69 {dimension_numbers = #tpu.dot_dimension_numbers<[1], [1], [0], [0], [0, 0, 1, 0], [], []>} : vector<8x8xf32>, vector<64x8xf32>, vector<8x64xf32> -> vector<8x64xf32>
    %cst_70 = arith.constant dense<0xFF800000> : vector<8xf32>
    %151 = vector.multi_reduction <maximumf>, %150, %cst_70 [1] : vector<8x64xf32> to vector<8xf32>
    %152 = vector.shape_cast %151 : vector<8xf32> to vector<8x1xf32>
    %153 = vector.broadcast %152 : vector<8x1xf32> to vector<8x64xf32>
    %154 = arith.subf %150, %153 : vector<8x64xf32>
    %155 = math.exp %154 : vector<8x64xf32>
    %cst_71 = arith.constant dense<0.000000e+00> : vector<8xf32>
    %156 = vector.multi_reduction <add>, %155, %cst_71 [1] : vector<8x64xf32> to vector<8xf32>
    %157 = vector.shape_cast %156 : vector<8xf32> to vector<8x1xf32>
    %158 = tpu.reciprocal %157 {approx = true} : vector<8x1xf32> -> vector<8x1xf32>
    %159 = vector.broadcast %158 : vector<8x1xf32> to vector<8x64xf32>
    %160 = arith.mulf %155, %159 : vector<8x64xf32>
    %cst_72 = arith.constant dense<0.000000e+00> : vector<8x8xf32>
    %161 = tpu.matmul %160, %149, %cst_72 {dimension_numbers = #tpu.dot_dimension_numbers<[1], [0], [0], [1], [0, 0, 1, 1], [], []>} : vector<8x64xf32>, vector<64x8xf32>, vector<8x8xf32> -> vector<8x8xf32>
    %162 = arith.truncf %161 : vector<8x8xf32> to vector<8x8xbf16>
    %163 = vector.extract_strided_slice %145 {offsets = [0, 0], sizes = [8, 32], strides = [1, 1]} : vector<32x32xbf16> to vector<8x32xbf16>
    %cst_73 = arith.constant dense<0.000000e+00> : vector<8x32xf32>
    %164 = tpu.matmul %162, %163, %cst_73 {dimension_numbers = #tpu.dot_dimension_numbers<[1], [0], [0], [1], [0, 0, 1, 1], [], []>} : vector<8x8xbf16>, vector<8x32xbf16>, vector<8x32xf32> -> vector<8x32xf32>
    %165 = vector.extract_strided_slice %131 {offsets = [0, 8], sizes = [8, 8], strides = [1, 1]} : vector<8x32xf32> to vector<8x8xf32>
    %166 = vector.extract_strided_slice %138 {offsets = [0, 8], sizes = [64, 8], strides = [1, 1]} : vector<64x32xf32> to vector<64x8xf32>
    %167 = vector.extract_strided_slice %144 {offsets = [0, 8], sizes = [64, 8], strides = [1, 1]} : vector<64x32xf32> to vector<64x8xf32>
    %cst_74 = arith.constant dense<0.000000e+00> : vector<8x64xf32>
    %168 = tpu.matmul %165, %166, %cst_74 {dimension_numbers = #tpu.dot_dimension_numbers<[1], [1], [0], [0], [0, 0, 1, 0], [], []>} : vector<8x8xf32>, vector<64x8xf32>, vector<8x64xf32> -> vector<8x64xf32>
    %cst_75 = arith.constant dense<0xFF800000> : vector<8xf32>
    %169 = vector.multi_reduction <maximumf>, %168, %cst_75 [1] : vector<8x64xf32> to vector<8xf32>
    %170 = vector.shape_cast %169 : vector<8xf32> to vector<8x1xf32>
    %171 = vector.broadcast %170 : vector<8x1xf32> to vector<8x64xf32>
    %172 = arith.subf %168, %171 : vector<8x64xf32>
    %173 = math.exp %172 : vector<8x64xf32>
    %cst_76 = arith.constant dense<0.000000e+00> : vector<8xf32>
    %174 = vector.multi_reduction <add>, %173, %cst_76 [1] : vector<8x64xf32> to vector<8xf32>
    %175 = vector.shape_cast %174 : vector<8xf32> to vector<8x1xf32>
    %176 = tpu.reciprocal %175 {approx = true} : vector<8x1xf32> -> vector<8x1xf32>
    %177 = vector.broadcast %176 : vector<8x1xf32> to vector<8x64xf32>
    %178 = arith.mulf %173, %177 : vector<8x64xf32>
    %cst_77 = arith.constant dense<0.000000e+00> : vector<8x8xf32>
    %179 = tpu.matmul %178, %167, %cst_77 {dimension_numbers = #tpu.dot_dimension_numbers<[1], [0], [0], [1], [0, 0, 1, 1], [], []>} : vector<8x64xf32>, vector<64x8xf32>, vector<8x8xf32> -> vector<8x8xf32>
    %180 = arith.truncf %179 : vector<8x8xf32> to vector<8x8xbf16>
    %181 = vector.extract_strided_slice %145 {offsets = [8, 0], sizes = [8, 32], strides = [1, 1]} : vector<32x32xbf16> to vector<8x32xbf16>
    %cst_78 = arith.constant dense<0.000000e+00> : vector<8x32xf32>
    %182 = tpu.matmul %180, %181, %cst_78 {dimension_numbers = #tpu.dot_dimension_numbers<[1], [0], [0], [1], [0, 0, 1, 1], [], []>} : vector<8x8xbf16>, vector<8x32xbf16>, vector<8x32xf32> -> vector<8x32xf32>
    %183 = arith.addf %164, %182 : vector<8x32xf32>
    %184 = vector.extract_strided_slice %131 {offsets = [0, 16], sizes = [8, 8], strides = [1, 1]} : vector<8x32xf32> to vector<8x8xf32>
    %185 = vector.extract_strided_slice %138 {offsets = [0, 16], sizes = [64, 8], strides = [1, 1]} : vector<64x32xf32> to vector<64x8xf32>
    %186 = vector.extract_strided_slice %144 {offsets = [0, 16], sizes = [64, 8], strides = [1, 1]} : vector<64x32xf32> to vector<64x8xf32>
    %cst_79 = arith.constant dense<0.000000e+00> : vector<8x64xf32>
    %187 = tpu.matmul %184, %185, %cst_79 {dimension_numbers = #tpu.dot_dimension_numbers<[1], [1], [0], [0], [0, 0, 1, 0], [], []>} : vector<8x8xf32>, vector<64x8xf32>, vector<8x64xf32> -> vector<8x64xf32>
    %cst_80 = arith.constant dense<0xFF800000> : vector<8xf32>
    %188 = vector.multi_reduction <maximumf>, %187, %cst_80 [1] : vector<8x64xf32> to vector<8xf32>
    %189 = vector.shape_cast %188 : vector<8xf32> to vector<8x1xf32>
    %190 = vector.broadcast %189 : vector<8x1xf32> to vector<8x64xf32>
    %191 = arith.subf %187, %190 : vector<8x64xf32>
    %192 = math.exp %191 : vector<8x64xf32>
    %cst_81 = arith.constant dense<0.000000e+00> : vector<8xf32>
    %193 = vector.multi_reduction <add>, %192, %cst_81 [1] : vector<8x64xf32> to vector<8xf32>
    %194 = vector.shape_cast %193 : vector<8xf32> to vector<8x1xf32>
    %195 = tpu.reciprocal %194 {approx = true} : vector<8x1xf32> -> vector<8x1xf32>
    %196 = vector.broadcast %195 : vector<8x1xf32> to vector<8x64xf32>
    %197 = arith.mulf %192, %196 : vector<8x64xf32>
    %cst_82 = arith.constant dense<0.000000e+00> : vector<8x8xf32>
    %198 = tpu.matmul %197, %186, %cst_82 {dimension_numbers = #tpu.dot_dimension_numbers<[1], [0], [0], [1], [0, 0, 1, 1], [], []>} : vector<8x64xf32>, vector<64x8xf32>, vector<8x8xf32> -> vector<8x8xf32>
    %199 = arith.truncf %198 : vector<8x8xf32> to vector<8x8xbf16>
    %200 = vector.extract_strided_slice %145 {offsets = [16, 0], sizes = [8, 32], strides = [1, 1]} : vector<32x32xbf16> to vector<8x32xbf16>
    %cst_83 = arith.constant dense<0.000000e+00> : vector<8x32xf32>
    %201 = tpu.matmul %199, %200, %cst_83 {dimension_numbers = #tpu.dot_dimension_numbers<[1], [0], [0], [1], [0, 0, 1, 1], [], []>} : vector<8x8xbf16>, vector<8x32xbf16>, vector<8x32xf32> -> vector<8x32xf32>
    %202 = arith.addf %183, %201 : vector<8x32xf32>
    %203 = vector.extract_strided_slice %131 {offsets = [0, 24], sizes = [8, 8], strides = [1, 1]} : vector<8x32xf32> to vector<8x8xf32>
    %204 = vector.extract_strided_slice %138 {offsets = [0, 24], sizes = [64, 8], strides = [1, 1]} : vector<64x32xf32> to vector<64x8xf32>
    %205 = vector.extract_strided_slice %144 {offsets = [0, 24], sizes = [64, 8], strides = [1, 1]} : vector<64x32xf32> to vector<64x8xf32>
    %cst_84 = arith.constant dense<0.000000e+00> : vector<8x64xf32>
    %206 = tpu.matmul %203, %204, %cst_84 {dimension_numbers = #tpu.dot_dimension_numbers<[1], [1], [0], [0], [0, 0, 1, 0], [], []>} : vector<8x8xf32>, vector<64x8xf32>, vector<8x64xf32> -> vector<8x64xf32>
    %cst_85 = arith.constant dense<0xFF800000> : vector<8xf32>
    %207 = vector.multi_reduction <maximumf>, %206, %cst_85 [1] : vector<8x64xf32> to vector<8xf32>
    %208 = vector.shape_cast %207 : vector<8xf32> to vector<8x1xf32>
    %209 = vector.broadcast %208 : vector<8x1xf32> to vector<8x64xf32>
    %210 = arith.subf %206, %209 : vector<8x64xf32>
    %211 = math.exp %210 : vector<8x64xf32>
    %cst_86 = arith.constant dense<0.000000e+00> : vector<8xf32>
    %212 = vector.multi_reduction <add>, %211, %cst_86 [1] : vector<8x64xf32> to vector<8xf32>
    %213 = vector.shape_cast %212 : vector<8xf32> to vector<8x1xf32>
    %214 = tpu.reciprocal %213 {approx = true} : vector<8x1xf32> -> vector<8x1xf32>
    %215 = vector.broadcast %214 : vector<8x1xf32> to vector<8x64xf32>
    %216 = arith.mulf %211, %215 : vector<8x64xf32>
    %cst_87 = arith.constant dense<0.000000e+00> : vector<8x8xf32>
    %217 = tpu.matmul %216, %205, %cst_87 {dimension_numbers = #tpu.dot_dimension_numbers<[1], [0], [0], [1], [0, 0, 1, 1], [], []>} : vector<8x64xf32>, vector<64x8xf32>, vector<8x8xf32> -> vector<8x8xf32>
    %218 = arith.truncf %217 : vector<8x8xf32> to vector<8x8xbf16>
    %219 = vector.extract_strided_slice %145 {offsets = [24, 0], sizes = [8, 32], strides = [1, 1]} : vector<32x32xbf16> to vector<8x32xbf16>
    %cst_88 = arith.constant dense<0.000000e+00> : vector<8x32xf32>
    %220 = tpu.matmul %218, %219, %cst_88 {dimension_numbers = #tpu.dot_dimension_numbers<[1], [0], [0], [1], [0, 0, 1, 1], [], []>} : vector<8x8xbf16>, vector<8x32xbf16>, vector<8x32xf32> -> vector<8x32xf32>
    %221 = arith.addf %202, %220 : vector<8x32xf32>
    %222 = vector.broadcast %146 : vector<1x32xf32> to vector<8x32xf32>
    %223 = arith.addf %221, %222 : vector<8x32xf32>
    %224 = arith.addf %124, %223 : vector<8x32xf32>
    %c0_89 = arith.constant 0 : index
    %c0_90 = arith.constant 0 : index
    %225 = vector.load %arg20[%c0_89, %c0_90] : memref<2x32xf32, #tpu.memory_space<vmem>>, vector<2x32xf32>
    %cst_91 = arith.constant dense<0.000000e+00> : vector<8xf32>
    %226 = vector.multi_reduction <add>, %224, %cst_91 [1] : vector<8x32xf32> to vector<8xf32>
    %227 = vector.shape_cast %226 : vector<8xf32> to vector<8x1xf32>
    %cst_92 = arith.constant 3.200000e+01 : f32
    %228 = vector.broadcast %cst_92 : f32 to vector<8x1xf32>
    %229 = arith.divf %227, %228 : vector<8x1xf32>
    %230 = vector.broadcast %229 : vector<8x1xf32> to vector<8x32xf32>
    %231 = arith.subf %224, %230 : vector<8x32xf32>
    %232 = arith.mulf %231, %231 : vector<8x32xf32>
    %cst_93 = arith.constant dense<0.000000e+00> : vector<8xf32>
    %233 = vector.multi_reduction <add>, %232, %cst_93 [1] : vector<8x32xf32> to vector<8xf32>
    %234 = vector.shape_cast %233 : vector<8xf32> to vector<8x1xf32>
    %cst_94 = arith.constant 3.200000e+01 : f32
    %235 = vector.broadcast %cst_94 : f32 to vector<8x1xf32>
    %236 = arith.divf %234, %235 : vector<8x1xf32>
    %cst_95 = arith.constant 9.99999974E-6 : f32
    %237 = vector.broadcast %cst_95 : f32 to vector<8x1xf32>
    %238 = arith.addf %236, %237 : vector<8x1xf32>
    %239 = math.rsqrt %238 : vector<8x1xf32>
    %240 = vector.broadcast %239 : vector<8x1xf32> to vector<8x32xf32>
    %241 = arith.mulf %231, %240 : vector<8x32xf32>
    %242 = vector.extract_strided_slice %225 {offsets = [0, 0], sizes = [1, 32], strides = [1, 1]} : vector<2x32xf32> to vector<1x32xf32>
    %243 = vector.broadcast %242 : vector<1x32xf32> to vector<8x32xf32>
    %244 = arith.mulf %241, %243 : vector<8x32xf32>
    %245 = vector.extract_strided_slice %225 {offsets = [1, 0], sizes = [1, 32], strides = [1, 1]} : vector<2x32xf32> to vector<1x32xf32>
    %246 = vector.broadcast %245 : vector<1x32xf32> to vector<8x32xf32>
    %247 = arith.addf %244, %246 : vector<8x32xf32>
    %c0_96 = arith.constant 0 : index
    %c0_97 = arith.constant 0 : index
    %248 = vector.load %arg21[%c0_96, %c0_97] : memref<32x64xbf16, #tpu.memory_space<vmem>>, vector<32x64xbf16>
    %c0_98 = arith.constant 0 : index
    %c0_99 = arith.constant 0 : index
    %249 = vector.load %arg22[%c0_98, %c0_99] : memref<1x64xf32, #tpu.memory_space<vmem>>, vector<1x64xf32>
    %250 = arith.truncf %247 : vector<8x32xf32> to vector<8x32xbf16>
    %cst_100 = arith.constant dense<0.000000e+00> : vector<8x64xf32>
    %251 = tpu.matmul %250, %248, %cst_100 {dimension_numbers = #tpu.dot_dimension_numbers<[1], [0], [0], [1], [0, 0, 1, 1], [], []>} : vector<8x32xbf16>, vector<32x64xbf16>, vector<8x64xf32> -> vector<8x64xf32>
    %252 = vector.broadcast %249 : vector<1x64xf32> to vector<8x64xf32>
    %253 = arith.addf %251, %252 : vector<8x64xf32>
    %cst_101 = arith.constant 0.000000e+00 : f32
    %254 = vector.broadcast %cst_101 : f32 to vector<8x64xf32>
    %255 = arith.maximumf %253, %254 : vector<8x64xf32>
    %c0_102 = arith.constant 0 : index
    %c0_103 = arith.constant 0 : index
    %256 = vector.load %arg23[%c0_102, %c0_103] : memref<64x32xbf16, #tpu.memory_space<vmem>>, vector<64x32xbf16>
    %c0_104 = arith.constant 0 : index
    %c0_105 = arith.constant 0 : index
    %257 = vector.load %arg24[%c0_104, %c0_105] : memref<1x32xf32, #tpu.memory_space<vmem>>, vector<1x32xf32>
    %258 = arith.truncf %255 : vector<8x64xf32> to vector<8x64xbf16>
    %cst_106 = arith.constant dense<0.000000e+00> : vector<8x32xf32>
    %259 = tpu.matmul %258, %256, %cst_106 {dimension_numbers = #tpu.dot_dimension_numbers<[1], [0], [0], [1], [0, 0, 1, 1], [], []>} : vector<8x64xbf16>, vector<64x32xbf16>, vector<8x32xf32> -> vector<8x32xf32>
    %260 = vector.broadcast %257 : vector<1x32xf32> to vector<8x32xf32>
    %261 = arith.addf %259, %260 : vector<8x32xf32>
    %262 = arith.addf %247, %261 : vector<8x32xf32>
    %c0_107 = arith.constant 0 : index
    %c0_108 = arith.constant 0 : index
    %263 = vector.load %arg25[%c0_107, %c0_108] : memref<2x32xf32, #tpu.memory_space<vmem>>, vector<2x32xf32>
    %cst_109 = arith.constant dense<0.000000e+00> : vector<8xf32>
    %264 = vector.multi_reduction <add>, %262, %cst_109 [1] : vector<8x32xf32> to vector<8xf32>
    %265 = vector.shape_cast %264 : vector<8xf32> to vector<8x1xf32>
    %cst_110 = arith.constant 3.200000e+01 : f32
    %266 = vector.broadcast %cst_110 : f32 to vector<8x1xf32>
    %267 = arith.divf %265, %266 : vector<8x1xf32>
    %268 = vector.broadcast %267 : vector<8x1xf32> to vector<8x32xf32>
    %269 = arith.subf %262, %268 : vector<8x32xf32>
    %270 = arith.mulf %269, %269 : vector<8x32xf32>
    %cst_111 = arith.constant dense<0.000000e+00> : vector<8xf32>
    %271 = vector.multi_reduction <add>, %270, %cst_111 [1] : vector<8x32xf32> to vector<8xf32>
    %272 = vector.shape_cast %271 : vector<8xf32> to vector<8x1xf32>
    %cst_112 = arith.constant 3.200000e+01 : f32
    %273 = vector.broadcast %cst_112 : f32 to vector<8x1xf32>
    %274 = arith.divf %272, %273 : vector<8x1xf32>
    %cst_113 = arith.constant 9.99999974E-6 : f32
    %275 = vector.broadcast %cst_113 : f32 to vector<8x1xf32>
    %276 = arith.addf %274, %275 : vector<8x1xf32>
    %277 = math.rsqrt %276 : vector<8x1xf32>
    %278 = vector.broadcast %277 : vector<8x1xf32> to vector<8x32xf32>
    %279 = arith.mulf %269, %278 : vector<8x32xf32>
    %280 = vector.extract_strided_slice %263 {offsets = [0, 0], sizes = [1, 32], strides = [1, 1]} : vector<2x32xf32> to vector<1x32xf32>
    %281 = vector.broadcast %280 : vector<1x32xf32> to vector<8x32xf32>
    %282 = arith.mulf %279, %281 : vector<8x32xf32>
    %283 = vector.extract_strided_slice %263 {offsets = [1, 0], sizes = [1, 32], strides = [1, 1]} : vector<2x32xf32> to vector<1x32xf32>
    %284 = vector.broadcast %283 : vector<1x32xf32> to vector<8x32xf32>
    %285 = arith.addf %282, %284 : vector<8x32xf32>
    %c0_114 = arith.constant 0 : index
    %c0_115 = arith.constant 0 : index
    %c0_116 = arith.constant 0 : index
    %286 = vector.load %arg27[%c0_114, %c0_115, %c0_116] : memref<1x8x32xf32, #tpu.memory_space<vmem>>, vector<1x8x32xf32>
    %287 = vector.shape_cast %286 : vector<1x8x32xf32> to vector<8x32xf32>
    %288 = vector.shape_cast %285 : vector<8x32xf32> to vector<1x8x32xf32>
    tpu.vector_store %arg27[%c0_114, %c0_115, %c0_116], %288 {strides = array<i32>} : memref<1x8x32xf32, #tpu.memory_space<vmem>>, vector<1x8x32xf32>,
    %c0_117 = arith.constant 0 : index
    %c0_118 = arith.constant 0 : index
    %289 = vector.load %arg26[%c0_117, %c0_118] : memref<2x32xf32, #tpu.memory_space<vmem>>, vector<2x32xf32>
    %cst_119 = arith.constant dense<0.000000e+00> : vector<8xf32>
    %290 = vector.multi_reduction <add>, %285, %cst_119 [1] : vector<8x32xf32> to vector<8xf32>
    %291 = vector.shape_cast %290 : vector<8xf32> to vector<8x1xf32>
    %cst_120 = arith.constant 3.200000e+01 : f32
    %292 = vector.broadcast %cst_120 : f32 to vector<8x1xf32>
    %293 = arith.divf %291, %292 : vector<8x1xf32>
    %294 = vector.broadcast %293 : vector<8x1xf32> to vector<8x32xf32>
    %295 = arith.subf %285, %294 : vector<8x32xf32>
    %296 = arith.mulf %295, %295 : vector<8x32xf32>
    %cst_121 = arith.constant dense<0.000000e+00> : vector<8xf32>
    %297 = vector.multi_reduction <add>, %296, %cst_121 [1] : vector<8x32xf32> to vector<8xf32>
    %298 = vector.shape_cast %297 : vector<8xf32> to vector<8x1xf32>
    %cst_122 = arith.constant 3.200000e+01 : f32
    %299 = vector.broadcast %cst_122 : f32 to vector<8x1xf32>
    %300 = arith.divf %298, %299 : vector<8x1xf32>
    %cst_123 = arith.constant 9.99999974E-6 : f32
    %301 = vector.broadcast %cst_123 : f32 to vector<8x1xf32>
    %302 = arith.addf %300, %301 : vector<8x1xf32>
    %303 = math.rsqrt %302 : vector<8x1xf32>
    %304 = vector.broadcast %303 : vector<8x1xf32> to vector<8x32xf32>
    %305 = arith.mulf %295, %304 : vector<8x32xf32>
    %306 = vector.extract_strided_slice %289 {offsets = [0, 0], sizes = [1, 32], strides = [1, 1]} : vector<2x32xf32> to vector<1x32xf32>
    %307 = vector.broadcast %306 : vector<1x32xf32> to vector<8x32xf32>
    %308 = arith.mulf %305, %307 : vector<8x32xf32>
    %309 = vector.extract_strided_slice %289 {offsets = [1, 0], sizes = [1, 32], strides = [1, 1]} : vector<2x32xf32> to vector<1x32xf32>
    %310 = vector.broadcast %309 : vector<1x32xf32> to vector<8x32xf32>
    %311 = arith.addf %308, %310 : vector<8x32xf32>
    %c0_124 = arith.constant 0 : index
    %c0_125 = arith.constant 0 : index
    %c0_126 = arith.constant 0 : index
    %312 = vector.load %arg28[%c0_124, %c0_125, %c0_126] : memref<1x8x32xf32, #tpu.memory_space<vmem>>, vector<1x8x32xf32>
    %313 = vector.shape_cast %312 : vector<1x8x32xf32> to vector<8x32xf32>
    %314 = vector.shape_cast %311 : vector<8x32xf32> to vector<1x8x32xf32>
    tpu.vector_store %arg28[%c0_124, %c0_125, %c0_126], %314 {strides = array<i32>} : memref<1x8x32xf32, #tpu.memory_space<vmem>>, vector<1x8x32xf32>,
    return
  }
  func.func @transform_0(%arg0: i32) -> (i32, i32, i32) {
    %c0_i32 = arith.constant 0 : i32
    %c0_i32_0 = arith.constant 0 : i32
    %c0_i32_1 = arith.constant 0 : i32
    return %arg0, %c0_i32, %c0_i32_0 : i32, i32, i32
  }
  func.func @transform_1(%arg0: i32) -> (i32, i32, i32) {
    %c0_i32 = arith.constant 0 : i32
    %c0_i32_0 = arith.constant 0 : i32
    %c0_i32_1 = arith.constant 0 : i32
    return %arg0, %c0_i32, %c0_i32_0 : i32, i32, i32
  }
  func.func @transform_2(%arg0: i32) -> (i32, i32, i32) {
    %c0_i32 = arith.constant 0 : i32
    %c0_i32_0 = arith.constant 0 : i32
    %c0_i32_1 = arith.constant 0 : i32
    return %arg0, %c0_i32, %c0_i32_0 : i32, i32, i32
  }
  func.func @transform_3(%arg0: i32) -> (i32, i32) {
    %c0_i32 = arith.constant 0 : i32
    %c0_i32_0 = arith.constant 0 : i32
    %c0_i32_1 = arith.constant 0 : i32
    return %c0_i32, %c0_i32_0 : i32, i32
  }
  func.func @transform_4(%arg0: i32) -> (i32, i32) {
    %c0_i32 = arith.constant 0 : i32
    %c0_i32_0 = arith.constant 0 : i32
    %c0_i32_1 = arith.constant 0 : i32
    return %c0_i32, %c0_i32_0 : i32, i32
  }
  func.func @transform_5(%arg0: i32) -> (i32, i32) {
    %c0_i32 = arith.constant 0 : i32
    %c0_i32_0 = arith.constant 0 : i32
    %c0_i32_1 = arith.constant 0 : i32
    return %c0_i32, %c0_i32_0 : i32, i32
  }
  func.func @transform_6(%arg0: i32) -> (i32, i32) {
    %c0_i32 = arith.constant 0 : i32
    %c0_i32_0 = arith.constant 0 : i32
    %c0_i32_1 = arith.constant 0 : i32
    return %c0_i32, %c0_i32_0 : i32, i32
  }
  func.func @transform_7(%arg0: i32) -> (i32, i32) {
    %c0_i32 = arith.constant 0 : i32
    %c0_i32_0 = arith.constant 0 : i32
    %c0_i32_1 = arith.constant 0 : i32
    return %c0_i32, %c0_i32_0 : i32, i32
  }
  func.func @transform_8(%arg0: i32) -> (i32, i32) {
    %c0_i32 = arith.constant 0 : i32
    %c0_i32_0 = arith.constant 0 : i32
    %c0_i32_1 = arith.constant 0 : i32
    return %c0_i32, %c0_i32_0 : i32, i32
  }
  func.func @transform_9(%arg0: i32) -> (i32, i32) {
    %c0_i32 = arith.constant 0 : i32
    %c0_i32_0 = arith.constant 0 : i32
    %c0_i32_1 = arith.constant 0 : i32
    return %c0_i32, %c0_i32_0 : i32, i32
  }
  func.func @transform_10(%arg0: i32) -> (i32, i32) {
    %c0_i32 = arith.constant 0 : i32
    %c0_i32_0 = arith.constant 0 : i32
    %c0_i32_1 = arith.constant 0 : i32
    return %c0_i32, %c0_i32_0 : i32, i32
  }
  func.func @transform_11(%arg0: i32) -> (i32, i32) {
    %c0_i32 = arith.constant 0 : i32
    %c0_i32_0 = arith.constant 0 : i32
    %c0_i32_1 = arith.constant 0 : i32
    return %c0_i32, %c0_i32_0 : i32, i32
  }
  func.func @transform_12(%arg0: i32) -> (i32, i32) {
    %c0_i32 = arith.constant 0 : i32
    %c0_i32_0 = arith.constant 0 : i32
    %c0_i32_1 = arith.constant 0 : i32
    return %c0_i32, %c0_i32_0 : i32, i32
  }
  func.func @transform_13(%arg0: i32) -> (i32, i32) {
    %c0_i32 = arith.constant 0 : i32
    %c0_i32_0 = arith.constant 0 : i32
    %c0_i32_1 = arith.constant 0 : i32
    return %c0_i32, %c0_i32_0 : i32, i32
  }
  func.func @transform_14(%arg0: i32) -> (i32, i32) {
    %c0_i32 = arith.constant 0 : i32
    %c0_i32_0 = arith.constant 0 : i32
    %c0_i32_1 = arith.constant 0 : i32
    return %c0_i32, %c0_i32_0 : i32, i32
  }
  func.func @transform_15(%arg0: i32) -> (i32, i32) {
    %c0_i32 = arith.constant 0 : i32
    %c0_i32_0 = arith.constant 0 : i32
    %c0_i32_1 = arith.constant 0 : i32
    return %c0_i32, %c0_i32_0 : i32, i32
  }
  func.func @transform_16(%arg0: i32) -> (i32, i32) {
    %c0_i32 = arith.constant 0 : i32
    %c0_i32_0 = arith.constant 0 : i32
    %c0_i32_1 = arith.constant 0 : i32
    return %c0_i32, %c0_i32_0 : i32, i32
  }
  func.func @transform_17(%arg0: i32) -> (i32, i32) {
    %c0_i32 = arith.constant 0 : i32
    %c0_i32_0 = arith.constant 0 : i32
    %c0_i32_1 = arith.constant 0 : i32
    return %c0_i32, %c0_i32_0 : i32, i32
  }
  func.func @transform_18(%arg0: i32) -> (i32, i32) {
    %c0_i32 = arith.constant 0 : i32
    %c0_i32_0 = arith.constant 0 : i32
    %c0_i32_1 = arith.constant 0 : i32
    return %c0_i32, %c0_i32_0 : i32, i32
  }
  func.func @transform_19(%arg0: i32) -> (i32, i32) {
    %c0_i32 = arith.constant 0 : i32
    %c0_i32_0 = arith.constant 0 : i32
    %c0_i32_1 = arith.constant 0 : i32
    return %c0_i32, %c0_i32_0 : i32, i32
  }
  func.func @transform_20(%arg0: i32) -> (i32, i32) {
    %c0_i32 = arith.constant 0 : i32
    %c0_i32_0 = arith.constant 0 : i32
    %c0_i32_1 = arith.constant 0 : i32
    return %c0_i32, %c0_i32_0 : i32, i32
  }
  func.func @transform_21(%arg0: i32) -> (i32, i32) {
    %c0_i32 = arith.constant 0 : i32
    %c0_i32_0 = arith.constant 0 : i32
    %c0_i32_1 = arith.constant 0 : i32
    return %c0_i32, %c0_i32_0 : i32, i32
  }
  func.func @transform_22(%arg0: i32) -> (i32, i32) {
    %c0_i32 = arith.constant 0 : i32
    %c0_i32_0 = arith.constant 0 : i32
    %c0_i32_1 = arith.constant 0 : i32
    return %c0_i32, %c0_i32_0 : i32, i32
  }
  func.func @transform_23(%arg0: i32) -> (i32, i32) {
    %c0_i32 = arith.constant 0 : i32
    %c0_i32_0 = arith.constant 0 : i32
    %c0_i32_1 = arith.constant 0 : i32
    return %c0_i32, %c0_i32_0 : i32, i32
  }
  func.func @transform_24(%arg0: i32) -> (i32, i32) {
    %c0_i32 = arith.constant 0 : i32
    %c0_i32_0 = arith.constant 0 : i32
    %c0_i32_1 = arith.constant 0 : i32
    return %c0_i32, %c0_i32_0 : i32, i32
  }
  func.func @transform_25(%arg0: i32) -> (i32, i32) {
    %c0_i32 = arith.constant 0 : i32
    %c0_i32_0 = arith.constant 0 : i32
    %c0_i32_1 = arith.constant 0 : i32
    return %c0_i32, %c0_i32_0 : i32, i32
  }
  func.func @transform_26(%arg0: i32) -> (i32, i32, i32) {
    %c0_i32 = arith.constant 0 : i32
    %c0_i32_0 = arith.constant 0 : i32
    %c0_i32_1 = arith.constant 0 : i32
    return %arg0, %c0_i32, %c0_i32_0 : i32, i32, i32
  }
  func.func @transform_27(%arg0: i32) -> (i32, i32, i32) {
    %c0_i32 = arith.constant 0 : i32
    %c0_i32_0 = arith.constant 0 : i32
    %c0_i32_1 = arith.constant 0 : i32
    return %arg0, %c0_i32, %c0_i32_0 : i32, i32, i32
  }
}

module attributes {stable_mosaic.version = 11 : i64} {
  func.func @_heads_kernel(%arg0: i32, %arg1: memref<32x32xf32, #tpu.memory_space<vmem>>, %arg2: memref<32x36xbf16, #tpu.memory_space<vmem>>, %arg3: memref<1x36xf32, #tpu.memory_space<vmem>>, %arg4: memref<32x32xbf16, #tpu.memory_space<vmem>>, %arg5: memref<1x32xf32, #tpu.memory_space<vmem>>, %arg6: memref<32x16xbf16, #tpu.memory_space<vmem>>, %arg7: memref<1x16xf32, #tpu.memory_space<vmem>>, %arg8: memref<32x4xf32, #tpu.memory_space<vmem>>, %arg9: memref<32x16xf32, #tpu.memory_space<vmem>>) attributes {dimension_semantics = [#tpu.dimension_semantics<arbitrary>], iteration_bounds = array<i64: 1>, scalar_prefetch = 0 : i64, scratch_operands = 0 : i64, tpu.core_type = #tpu.core_type<tc>, window_params = [{pipeline_mode = #tpu.pipeline_mode<synchronous>, transform_indices = @transform_0, window_bounds = array<i64: 32, 32>}, {pipeline_mode = #tpu.pipeline_mode<synchronous>, transform_indices = @transform_1, window_bounds = array<i64: 32, 36>}, {pipeline_mode = #tpu.pipeline_mode<synchronous>, transform_indices = @transform_2, window_bounds = array<i64: 1, 36>}, {pipeline_mode = #tpu.pipeline_mode<synchronous>, transform_indices = @transform_3, window_bounds = array<i64: 32, 32>}, {pipeline_mode = #tpu.pipeline_mode<synchronous>, transform_indices = @transform_4, window_bounds = array<i64: 1, 32>}, {pipeline_mode = #tpu.pipeline_mode<synchronous>, transform_indices = @transform_5, window_bounds = array<i64: 32, 16>}, {pipeline_mode = #tpu.pipeline_mode<synchronous>, transform_indices = @transform_6, window_bounds = array<i64: 1, 16>}, {pipeline_mode = #tpu.pipeline_mode<synchronous>, transform_indices = @transform_7, window_bounds = array<i64: 32, 4>}, {pipeline_mode = #tpu.pipeline_mode<synchronous>, transform_indices = @transform_8, window_bounds = array<i64: 32, 16>}]} {
    %c0 = arith.constant 0 : index
    %c0_0 = arith.constant 0 : index
    %0 = vector.load %arg1[%c0, %c0_0] : memref<32x32xf32, #tpu.memory_space<vmem>>, vector<32x32xf32>
    %c0_1 = arith.constant 0 : index
    %c0_2 = arith.constant 0 : index
    %1 = vector.load %arg2[%c0_1, %c0_2] : memref<32x36xbf16, #tpu.memory_space<vmem>>, vector<32x36xbf16>
    %c0_3 = arith.constant 0 : index
    %c0_4 = arith.constant 0 : index
    %2 = vector.load %arg3[%c0_3, %c0_4] : memref<1x36xf32, #tpu.memory_space<vmem>>, vector<1x36xf32>
    %3 = arith.truncf %0 : vector<32x32xf32> to vector<32x32xbf16>
    %cst = arith.constant dense<0.000000e+00> : vector<32x36xf32>
    %4 = tpu.matmul %3, %1, %cst {dimension_numbers = #tpu.dot_dimension_numbers<[1], [0], [0], [1], [0, 0, 1, 1], [], []>} : vector<32x32xbf16>, vector<32x36xbf16>, vector<32x36xf32> -> vector<32x36xf32>
    %5 = vector.broadcast %2 : vector<1x36xf32> to vector<32x36xf32>
    %6 = arith.addf %4, %5 : vector<32x36xf32>
    %7 = vector.extract_strided_slice %6 {offsets = [0, 0], sizes = [32, 4], strides = [1, 1]} : vector<32x36xf32> to vector<32x4xf32>
    %c0_5 = arith.constant 0 : index
    %c0_6 = arith.constant 0 : index
    %8 = vector.load %arg8[%c0_5, %c0_6] : memref<32x4xf32, #tpu.memory_space<vmem>>, vector<32x4xf32>
    tpu.vector_store %arg8[%c0_5, %c0_6], %7 {strides = array<i32>} : memref<32x4xf32, #tpu.memory_space<vmem>>, vector<32x4xf32>,
    %9 = vector.extract_strided_slice %6 {offsets = [0, 4], sizes = [32, 32], strides = [1, 1]} : vector<32x36xf32> to vector<32x32xf32>
    %cst_7 = arith.constant 0.000000e+00 : f32
    %10 = vector.broadcast %cst_7 : f32 to vector<32x32xf32>
    %11 = arith.maximumf %9, %10 : vector<32x32xf32>
    %c0_8 = arith.constant 0 : index
    %c0_9 = arith.constant 0 : index
    %12 = vector.load %arg4[%c0_8, %c0_9] : memref<32x32xbf16, #tpu.memory_space<vmem>>, vector<32x32xbf16>
    %c0_10 = arith.constant 0 : index
    %c0_11 = arith.constant 0 : index
    %13 = vector.load %arg5[%c0_10, %c0_11] : memref<1x32xf32, #tpu.memory_space<vmem>>, vector<1x32xf32>
    %14 = arith.truncf %11 : vector<32x32xf32> to vector<32x32xbf16>
    %cst_12 = arith.constant dense<0.000000e+00> : vector<32x32xf32>
    %15 = tpu.matmul %14, %12, %cst_12 {dimension_numbers = #tpu.dot_dimension_numbers<[1], [0], [0], [1], [0, 0, 1, 1], [], []>} : vector<32x32xbf16>, vector<32x32xbf16>, vector<32x32xf32> -> vector<32x32xf32>
    %16 = vector.broadcast %13 : vector<1x32xf32> to vector<32x32xf32>
    %17 = arith.addf %15, %16 : vector<32x32xf32>
    %cst_13 = arith.constant 0.000000e+00 : f32
    %18 = vector.broadcast %cst_13 : f32 to vector<32x32xf32>
    %19 = arith.maximumf %17, %18 : vector<32x32xf32>
    %c0_14 = arith.constant 0 : index
    %c0_15 = arith.constant 0 : index
    %20 = vector.load %arg6[%c0_14, %c0_15] : memref<32x16xbf16, #tpu.memory_space<vmem>>, vector<32x16xbf16>
    %c0_16 = arith.constant 0 : index
    %c0_17 = arith.constant 0 : index
    %21 = vector.load %arg7[%c0_16, %c0_17] : memref<1x16xf32, #tpu.memory_space<vmem>>, vector<1x16xf32>
    %22 = arith.truncf %19 : vector<32x32xf32> to vector<32x32xbf16>
    %cst_18 = arith.constant dense<0.000000e+00> : vector<32x16xf32>
    %23 = tpu.matmul %22, %20, %cst_18 {dimension_numbers = #tpu.dot_dimension_numbers<[1], [0], [0], [1], [0, 0, 1, 1], [], []>} : vector<32x32xbf16>, vector<32x16xbf16>, vector<32x16xf32> -> vector<32x16xf32>
    %24 = vector.broadcast %21 : vector<1x16xf32> to vector<32x16xf32>
    %25 = arith.addf %23, %24 : vector<32x16xf32>
    %c0_19 = arith.constant 0 : index
    %c0_20 = arith.constant 0 : index
    %26 = vector.load %arg9[%c0_19, %c0_20] : memref<32x16xf32, #tpu.memory_space<vmem>>, vector<32x16xf32>
    tpu.vector_store %arg9[%c0_19, %c0_20], %25 {strides = array<i32>} : memref<32x16xf32, #tpu.memory_space<vmem>>, vector<32x16xf32>,
    return
  }
  func.func @transform_0(%arg0: i32) -> (i32, i32) {
    %c0_i32 = arith.constant 0 : i32
    %c0_i32_0 = arith.constant 0 : i32
    %c0_i32_1 = arith.constant 0 : i32
    return %c0_i32, %c0_i32_0 : i32, i32
  }
  func.func @transform_1(%arg0: i32) -> (i32, i32) {
    %c0_i32 = arith.constant 0 : i32
    %c0_i32_0 = arith.constant 0 : i32
    %c0_i32_1 = arith.constant 0 : i32
    return %c0_i32, %c0_i32_0 : i32, i32
  }
  func.func @transform_2(%arg0: i32) -> (i32, i32) {
    %c0_i32 = arith.constant 0 : i32
    %c0_i32_0 = arith.constant 0 : i32
    %c0_i32_1 = arith.constant 0 : i32
    return %c0_i32, %c0_i32_0 : i32, i32
  }
  func.func @transform_3(%arg0: i32) -> (i32, i32) {
    %c0_i32 = arith.constant 0 : i32
    %c0_i32_0 = arith.constant 0 : i32
    %c0_i32_1 = arith.constant 0 : i32
    return %c0_i32, %c0_i32_0 : i32, i32
  }
  func.func @transform_4(%arg0: i32) -> (i32, i32) {
    %c0_i32 = arith.constant 0 : i32
    %c0_i32_0 = arith.constant 0 : i32
    %c0_i32_1 = arith.constant 0 : i32
    return %c0_i32, %c0_i32_0 : i32, i32
  }
  func.func @transform_5(%arg0: i32) -> (i32, i32) {
    %c0_i32 = arith.constant 0 : i32
    %c0_i32_0 = arith.constant 0 : i32
    %c0_i32_1 = arith.constant 0 : i32
    return %c0_i32, %c0_i32_0 : i32, i32
  }
  func.func @transform_6(%arg0: i32) -> (i32, i32) {
    %c0_i32 = arith.constant 0 : i32
    %c0_i32_0 = arith.constant 0 : i32
    %c0_i32_1 = arith.constant 0 : i32
    return %c0_i32, %c0_i32_0 : i32, i32
  }
  func.func @transform_7(%arg0: i32) -> (i32, i32) {
    %c0_i32 = arith.constant 0 : i32
    %c0_i32_0 = arith.constant 0 : i32
    %c0_i32_1 = arith.constant 0 : i32
    return %c0_i32, %c0_i32_0 : i32, i32
  }
  func.func @transform_8(%arg0: i32) -> (i32, i32) {
    %c0_i32 = arith.constant 0 : i32
    %c0_i32_0 = arith.constant 0 : i32
    %c0_i32_1 = arith.constant 0 : i32
    return %c0_i32, %c0_i32_0 : i32, i32
  }
}

module attributes {stable_mosaic.version = 11 : i64} {
  func.func @_bmm_kernel(%arg0: i32, %arg1: i32, %arg2: memref<1x16x16xf32, #tpu.memory_space<vmem>>, %arg3: memref<1x16x256xf32, #tpu.memory_space<vmem>>, %arg4: memref<1x16x256xf32, #tpu.memory_space<vmem>>) attributes {dimension_semantics = [#tpu.dimension_semantics<parallel>, #tpu.dimension_semantics<parallel>], iteration_bounds = array<i64: 2, 1>, scalar_prefetch = 0 : i64, scratch_operands = 0 : i64, tpu.core_type = #tpu.core_type<tc>, window_params = [{transform_indices = @transform_0, window_bounds = array<i64: 1, 16, 16>}, {transform_indices = @transform_1, window_bounds = array<i64: 1, 16, 256>}, {transform_indices = @transform_2, window_bounds = array<i64: 1, 16, 256>}]} {
    %c0 = arith.constant 0 : index
    %c0_0 = arith.constant 0 : index
    %c0_1 = arith.constant 0 : index
    %0 = vector.load %arg2[%c0, %c0_0, %c0_1] : memref<1x16x16xf32, #tpu.memory_space<vmem>>, vector<1x16x16xf32>
    %1 = vector.shape_cast %0 : vector<1x16x16xf32> to vector<16x16xf32>
    %2 = arith.truncf %1 : vector<16x16xf32> to vector<16x16xbf16>
    %c0_2 = arith.constant 0 : index
    %c0_3 = arith.constant 0 : index
    %c0_4 = arith.constant 0 : index
    %3 = vector.load %arg3[%c0_2, %c0_3, %c0_4] : memref<1x16x256xf32, #tpu.memory_space<vmem>>, vector<1x16x256xf32>
    %4 = vector.shape_cast %3 : vector<1x16x256xf32> to vector<16x256xf32>
    %5 = arith.truncf %4 : vector<16x256xf32> to vector<16x256xbf16>
    %cst = arith.constant dense<0.000000e+00> : vector<16x256xf32>
    %6 = tpu.matmul %2, %5, %cst {dimension_numbers = #tpu.dot_dimension_numbers<[1], [0], [0], [1], [0, 0, 1, 1], [], []>} : vector<16x16xbf16>, vector<16x256xbf16>, vector<16x256xf32> -> vector<16x256xf32>
    %c0_5 = arith.constant 0 : index
    %c0_6 = arith.constant 0 : index
    %c0_7 = arith.constant 0 : index
    %7 = vector.load %arg4[%c0_5, %c0_6, %c0_7] : memref<1x16x256xf32, #tpu.memory_space<vmem>>, vector<1x16x256xf32>
    %8 = vector.shape_cast %7 : vector<1x16x256xf32> to vector<16x256xf32>
    %9 = vector.shape_cast %6 : vector<16x256xf32> to vector<1x16x256xf32>
    tpu.vector_store %arg4[%c0_5, %c0_6, %c0_7], %9 {strides = array<i32>} : memref<1x16x256xf32, #tpu.memory_space<vmem>>, vector<1x16x256xf32>,
    return
  }
  func.func @transform_0(%arg0: i32, %arg1: i32) -> (i32, i32, i32) {
    %c0_i32 = arith.constant 0 : i32
    %c0_i32_0 = arith.constant 0 : i32
    %c0_i32_1 = arith.constant 0 : i32
    return %arg0, %c0_i32, %c0_i32_0 : i32, i32, i32
  }
  func.func @transform_1(%arg0: i32, %arg1: i32) -> (i32, i32, i32) {
    %c0_i32 = arith.constant 0 : i32
    %c0_i32_0 = arith.constant 0 : i32
    return %arg0, %c0_i32, %arg1 : i32, i32, i32
  }
  func.func @transform_2(%arg0: i32, %arg1: i32) -> (i32, i32, i32) {
    %c0_i32 = arith.constant 0 : i32
    %c0_i32_0 = arith.constant 0 : i32
    return %arg0, %c0_i32, %arg1 : i32, i32, i32
  }
}

</mosaic_0001>

<bundles_post_ra>
// kernel: predictor_forward.6
= control target key start
LH: loop header
LB: loop body
LE: loop exit
PB: predicated region body
PF: predicated region fallthrough
CT: control target
= control target key end

     0   :  { %vm54_vm0 = vcmask 130048   ;;  %vm176_vm1 = vcmask 261120   ;;  %s383_s1 = inlined_call_operand.vmem [shape: bf16[16,32], index: 1, kind: input, shape index: {}]   ;;  %s384_s0 = inlined_call_operand.vmem [shape: f32[128,16], index: 0, kind: input, shape index: {}]   ;;  %s385_s2 = inlined_call_operand.vmem [shape: f32[1,32], index: 2, kind: input, shape index: {}]   ;;  %s386_s3 = inlined_call_operand.vmem [shape: f32[128,32], index: 3, kind: output, shape index: {}]  }
   0x1   :  { %v236_v0 = vld [vmem:[%s383_s1] sm:$0xff]   ;;  %v16_v2 = vld [vmem:[%s384_s0 + $0x8] sm:$0xff]  ;;  %v17_v6 = vld [vmem:[%s384_s0 + $0x10] sm:$0xff] }
   0x2   :  { %v15_v1 = vld [vmem:[%s384_s0] sm:$0xff]  ;;  %216 = vmatprep.subr.bf16.mxu0 %v236_v0  ;;  %234 = vmatprep.subr.bf16.mxu1 %v236_v0  ;;  %v24_v5 = vld [vmem:[%s384_s0 + $0x48] sm:$0xff]  ;;  %v18_v7 = vld [vmem:[%s384_s0 + $0x18] sm:$0xff] }
   0x3   :  { %v23_v3 = vld [vmem:[%s384_s0 + $0x40] sm:$0xff]  ;;  %v34_v4 = vpack.c.bf16 %v16_v2, %v15_v1  ;;  %217 = vmatpush3.bf16.msra.mxu0 %v236_v0  ;;  %235 = vmatpush3.bf16.msra.mxu1 %v236_v0  ;;  %v35_v9 = vpack.c.bf16 %v18_v7, %v17_v6  ;;  %v25_v10 = vld [vmem:[%s384_s0 + $0x50] sm:$0xff]  ;;  %v26_v11 = vld [vmem:[%s384_s0 + $0x58] sm:$0xff] }
   0x4   :  { %v38_v8 = vpack.c.bf16 %v24_v5, %v23_v3  ;;  %v19_v12 = vld [vmem:[%s384_s0 + $0x20] sm:$0xff]  ;;  %v39_v13 = vpack.c.bf16 %v26_v11, %v25_v10  ;;  %v20_v14 = vld [vmem:[%s384_s0 + $0x28] sm:$0xff]  ;;  %v21_v19 = vld [vmem:[%s384_s0 + $0x30] sm:$0xff] }
   0x5   :  { %218 = vmatprep.mubr.msk.bf16.mxu0 %vm54_vm0, %v34_v4  ;;  %v27_v15 = vld [vmem:[%s384_s0 + $0x60] sm:$0xff]  ;;  %v28_v16 = vld [vmem:[%s384_s0 + $0x68] sm:$0xff]  ;;  %v36_v17 = vpack.c.bf16 %v20_v14, %v19_v12  ;;  %v22_v20 = vld [vmem:[%s384_s0 + $0x38] sm:$0xff] }
   0x6   :  { %226 = vmatprep.mubr.msk.bf16.mxu1 %vm54_vm0, %v38_v8  ;;  %v40_v18 = vpack.c.bf16 %v28_v16, %v27_v15  ;;  %219 = vmatmul.mubr.msk.bf16.vlgmr.msra.gmra.mrb[0].mxu0 %vm54_vm0, %v35_v9  ;;  %v29_v21 = vld [vmem:[%s384_s0 + $0x70] sm:$0xff]  ;;  %v30_v22 = vld [vmem:[%s384_s0 + $0x78] sm:$0xff]  ;;  %v37_v23 = vpack.c.bf16 %v22_v20, %v21_v19  ;;  %v197_v25 = vld [vmem:[%s385_s2] ss:$0 sm:$0xff] }
   0x7   :  { %227 = vmatmul.mubr.msk.bf16.vlgmr.msra.gmra.mrb[0].mxu1 %vm54_vm0, %v39_v13  ;;  %222 = vmatprep.mubr.msk.bf16.mxu0 %vm54_vm0, %v36_v17  ;;  %v41_v24 = vpack.c.bf16 %v30_v22, %v29_v21 }
   0x8   :  { %230 = vmatprep.mubr.msk.bf16.mxu1 %vm54_vm0, %v40_v18 }
   0xe   :  { %223 = vmatmul.mubr.msk.bf16.gmra.mrb[4].mxu0 %vm54_vm0, %v37_v23 }
   0xf   :  { %231 = vmatmul.mubr.msk.bf16.gmra.mrb[4].mxu1 %vm54_vm0, %v41_v24 }
  0xd9   :  { %v220_v26 = vpop.f32.mrb[0].mxu0 }
  0xda   :  { %v228_v27 = vpop.f32.mrb[0].mxu1  ;;  %v122_v28 = vadd.f32 %v220_v26, %v197_v25  ;;  %v113_v30 = vpop.f32.mrb[1].mxu0 }
  0xdb   :  { %v154_v29 = vadd.f32 %v228_v27, %v197_v25  ;;  %v145_v31 = vpop.f32.mrb[1].mxu1  ;;  %v114_v32 = vadd.f32 %v197_v25, %v113_v30  ;;  %v221_v34 = vpop.f32.mrb[2].mxu0 }
  0xdc   :  { %v146_v33 = vadd.f32 %v197_v25, %v145_v31  ;;  %v229_v35 = vpop.f32.mrb[2].mxu1  ;;  %179 = vst.msk [vmem:[%s386_s3 + $0x10] sm:$0xff] %vm176_vm1, %v122_v28  ;;  %v125_v36 = vadd.f32 %v221_v34, %v197_v25  ;;  %v116_v38 = vpop.f32.mrb[3].mxu0 }
  0xdd   :  { %187 = vst.msk [vmem:[%s386_s3 + $0x50] sm:$0xff] %vm176_vm1, %v154_v29  ;;  %v157_v37 = vadd.f32 %v229_v35, %v197_v25  ;;  %v148_v39 = vpop.f32.mrb[3].mxu1  ;;  %177 = vst.msk [vmem:[%s386_s3] sm:$0xff] %vm176_vm1, %v114_v32  ;;  %v117_v40 = vadd.f32 %v197_v25, %v116_v38 }
  0xde   :  { %185 = vst.msk [vmem:[%s386_s3 + $0x40] sm:$0xff] %vm176_vm1, %v146_v33  ;;  %v149_v41 = vadd.f32 %v197_v25, %v148_v39  ;;  %180 = vst.msk [vmem:[%s386_s3 + $0x18] sm:$0xff] %vm176_vm1, %v125_v36 }
  0xdf   :  { %188 = vst.msk [vmem:[%s386_s3 + $0x58] sm:$0xff] %vm176_vm1, %v157_v37  ;;  %178 = vst.msk [vmem:[%s386_s3 + $0x8] sm:$0xff] %vm176_vm1, %v117_v40 }
  0xe0   :  { %186 = vst.msk [vmem:[%s386_s3 + $0x48] sm:$0xff] %vm176_vm1, %v149_v41 }
  0xe1   :  { %v224_v42 = vpop.f32.mrb[4].mxu0 }
  0xe2   :  { %v232_v43 = vpop.f32.mrb[4].mxu1  ;;  %v138_v44 = vadd.f32 %v224_v42, %v197_v25  ;;  %v129_v46 = vpop.f32.mrb[5].mxu0 }
  0xe3   :  { %v170_v45 = vadd.f32 %v232_v43, %v197_v25  ;;  %v161_v47 = vpop.f32.mrb[5].mxu1  ;;  %v130_v48 = vadd.f32 %v197_v25, %v129_v46  ;;  %v225_v50 = vpop.f32.mrb[6].mxu0 }
  0xe4   :  { %v162_v49 = vadd.f32 %v197_v25, %v161_v47  ;;  %v233_v51 = vpop.f32.mrb[6].mxu1  ;;  %183 = vst.msk [vmem:[%s386_s3 + $0x30] sm:$0xff] %vm176_vm1, %v138_v44  ;;  %v141_v52 = vadd.f32 %v225_v50, %v197_v25  ;;  %v132_v54 = vpop.f32.mrb[7].mxu0 }
  0xe5   :  { %191 = vst.msk [vmem:[%s386_s3 + $0x70] sm:$0xff] %vm176_vm1, %v170_v45  ;;  %v173_v53 = vadd.f32 %v233_v51, %v197_v25  ;;  %v164_v55 = vpop.f32.mrb[7].mxu1  ;;  %181 = vst.msk [vmem:[%s386_s3 + $0x20] sm:$0xff] %vm176_vm1, %v130_v48  ;;  %v133_v56 = vadd.f32 %v197_v25, %v132_v54 }
  0xe6   :  { %189 = vst.msk [vmem:[%s386_s3 + $0x60] sm:$0xff] %vm176_vm1, %v162_v49  ;;  %v165_v57 = vadd.f32 %v197_v25, %v164_v55  ;;  %184 = vst.msk [vmem:[%s386_s3 + $0x38] sm:$0xff] %vm176_vm1, %v141_v52 }
  0xe7   :  { %192 = vst.msk [vmem:[%s386_s3 + $0x78] sm:$0xff] %vm176_vm1, %v173_v53  ;;  %182 = vst.msk [vmem:[%s386_s3 + $0x28] sm:$0xff] %vm176_vm1, %v133_v56 }
  0xe8   :  { %190 = vst.msk [vmem:[%s386_s3 + $0x68] sm:$0xff] %vm176_vm1, %v165_v57 }

// kernel: predictor_forward.9
= control target key start
LH: loop header
LB: loop body
LE: loop exit
PB: predicated region body
PF: predicated region fallthrough
CT: control target
= control target key end

     0   :  { %s5328_s0 = inlined_call_operand.vmem [shape: f32[2,8,32], index: 0, kind: input, shape index: {}]   ;;  %s5329_s1 = inlined_call_operand.vmem [shape: f32[2,64,32], index: 1, kind: input, shape index: {}]   ;;  %s5330_s2 = inlined_call_operand.vmem [shape: f32[2,64,32], index: 2, kind: input, shape index: {}]   ;;  %s5331_s3 = inlined_call_operand.vmem [shape: f32[8,32], index: 3, kind: input, shape index: {}]   ;;  %s5332_s4 = inlined_call_operand.vmem [shape: bf16[32,64], index: 4, kind: input, shape index: {}]   ;;  %s5333_s5 = inlined_call_operand.vmem [shape: f32[1,64], index: 5, kind: input, shape index: {}]   ;;  %s5334_s6 = inlined_call_operand.vmem [shape: bf16[32,32], index: 6, kind: input, shape index: {}]   ;;  %s5335_s7 = inlined_call_operand.vmem [shape: f32[1,32], index: 7, kind: input, shape index: {}]   ;;  %s5336_s8 = inlined_call_operand.vmem [shape: bf16[32,32], index: 8, kind: input, shape index: {}]   ;;  %s5337_s9 = inlined_call_operand.vmem [shape: f32[1,32], index: 9, kind: input, shape index: {}]   ;;  %s5338_s10 = inlined_call_operand.vmem [shape: f32[2,32], index: 10, kind: input, shape index: {}]   ;;  %s5339_s11 = inlined_call_operand.vmem [shape: bf16[32,32], index: 11, kind: input, shape index: {}]   ;;  %s5340_s12 = inlined_call_operand.vmem [shape: f32[1,32], index: 12, kind: input, shape index: {}]   ;;  %s5341_s13 = inlined_call_operand.vmem [shape: bf16[32,32], index: 13, kind: input, shape index: {}]   ;;  %s5342_s14 = inlined_call_operand.vmem [shape: f32[1,32], index: 14, kind: input, shape index: {}]   ;;  %s5343_s15 = inlined_call_operand.vmem [shape: bf16[32,32], index: 15, kind: input, shape index: {}]   ;;  %s5344_s16 = inlined_call_operand.vmem [shape: f32[1,32], index: 16, kind: input, shape index: {}]   ;;  %s5345_s17 = inlined_call_operand.vmem [shape: bf16[32,32], index: 17, kind: input, shape index: {}]   ;;  %s5346_s18 = inlined_call_operand.vmem [shape: f32[1,32], index: 18, kind: input, shape index: {}]   ;;  %s5347_s19 = inlined_call_operand.vmem [shape: f32[2,32], index: 19, kind: input, shape index: {}]   ;;  %s5348_s20 = inlined_call_operand.vmem [shape: bf16[32,64], index: 20, kind: input, shape index: {}]   ;;  %s5349_s21 = inlined_call_operand.vmem [shape: f32[1,64], index: 21, kind: input, shape index: {}]   ;;  %s5350_s22 = inlined_call_operand.vmem [shape: bf16[64,32], index: 22, kind: input, shape index: {}]   ;;  %s5351_s23 = inlined_call_operand.vmem [shape: f32[1,32], index: 23, kind: input, shape index: {}]   ;;  %s5352_s24 = inlined_call_operand.vmem [shape: f32[2,32], index: 24, kind: input, shape index: {}]   ;;  %s5353_s25 = inlined_call_operand.vmem [shape: f32[2,32], index: 25, kind: input, shape index: {}]   ;;  %s5354_s26 = inlined_call_operand.hbm [shape: f32[2,8,32], index: 26, kind: output, shape index: {0}]   ;;  %s5355_s27 = inlined_call_operand.vmem [shape: f32[2,8,32], index: 27, kind: output, shape index: {1}]  }
   0x1   :  { %5377 = sst [smem:[#allocation11_spill]] %s5328_s0 }
   0x2   :  { %5378 = sst [smem:[#allocation12_spill]] %s5329_s1 }
   0x3   :  { %5379 = sst [smem:[#allocation13_spill]] %s5330_s2 }
   0x4   :  { %5380 = sst [smem:[#allocation14_spill]] %s5331_s3 }
   0x5   :  { %5381 = sst [smem:[#allocation15_spill]] %s5332_s4 }
   0x6   :  { %5382 = sst [smem:[#allocation16_spill]] %s5333_s5 }
   0x7   :  { %5383 = sst [smem:[#allocation17_spill]] %s5334_s6 }
   0x8   :  { %5384 = sst [smem:[#allocation18_spill]] %s5335_s7 }
   0x9   :  { %5385 = sst [smem:[#allocation19_spill]] %s5336_s8 }
   0xa   :  { %5386 = sst [smem:[#allocation20_spill]] %s5337_s9 }
   0xb   :  { %5387 = sst [smem:[#allocation21_spill]] %s5338_s10 }
   0xc   :  { %5388 = sst [smem:[#allocation22_spill]] %s5339_s11 }
   0xd   :  { %5389 = sst [smem:[#allocation23_spill]] %s5340_s12 }
   0xe   :  { %33 = vsyncpa [#allocation3], 0 }
   0xf   :  { %35 = vsyncpa [#allocation3 + $0x1], 0  ;;  %s4688_s7 = smov 0   ;;  %s4690_s4 = smov 0  }
  0x10   :  { %s4692_s8 = smov 0   ;;  %s4694_s30 = smov 0  }
  0x11 LB: > { %5390 = sst [smem:[#allocation5_spill]] %s4523_s7  ;;  %s4709_s9 = sadd.s32 4294967295, %s4535_s30   ;;  %s4535_s30 = sphi %s4694_s30, %s5421_s30   ;;  %s4531_s8 = sphi %s4692_s8, %s5423_s8   ;;  %s4527_s4 = sphi %s4690_s4, %s5425_s4   ;;  %s4523_s7 = sphi %s4688_s7, %s5424_s7  }
  0x12   : > { %5391 = sst [smem:[#allocation6_spill]] %s4531_s8  ;;  %s3580_s5 = sadd.s32 4294967294, %s4535_s30  }
  0x13   : > { %5392 = sst [smem:[#allocation7_spill]] %s4535_s30  ;;  %s4713_s28 = sadd.s32 1, %s4535_s30  }
  0x14   : > { %5393 = sst [smem:[#allocation8_spill]] %s4713_s28  ;;  %s609_s0 = sadd.s32 1, %s4531_s8 }
  0x15   : > { %s606_s10 = ssub.s32 %s4535_s30, %s4713_s28  ;;  %p619_p0 = scmp.ne.s32.totalorder %s4531_s8, %s4527_s4 }
  0x16   : > { %p607_p1 = scmp.eq.s32.totalorder %s606_s10, 0  ;;  %p620_p2 = scmp.eq.s32.totalorder %s4709_s9, 1 }
  0x17   : > { %p625_p3 = scmp.ne.s32.totalorder %s4527_s4, %s4523_s7  ;;  %p626_p4 = scmp.eq.s32.totalorder %s3580_s5, 1 }
  0x18   : > { %s4724_s29 = scalar_select %p607_p1, %s4531_s8, %s609_s0  }
  0x19   : > { %p4726_p5 = por %p620_p2, %p619_p0  ;;  %p4730_p6 = por %p626_p4, %p625_p3 }
  0x1a   : > { %5394 = sst [smem:[#allocation9_spill]] %s4724_s29  ;;  %p3583_p7 = scmp.ge.s32.totalorder %s4535_s30, 1 }
  0x1b   : > { %s5396_s6 = scalar_select %p4730_p6, 1, 0 }
  0x1c   : > { %p762_p8 = scmp.lt.s32.totalorder %s4535_s30, 3 }
  0x1d   : > { %5397 = sst [smem:[#allocation10_spill]] %s5396_s6 }
  0x1e   : > { %p763_p9 = pnand %p3583_p7, %p762_p8 }
  0x1f   : > { %s5398_s3 = sld [smem:[#allocation15_spill]] (!%p763_p9)  ;;  %v4537_v1 = vmov (!%p763_p9), 0.0   ;;  %vm4538_vm0 = vmmov (!%p763_p9), 0   ;;  %p847_p10 = scmp.lt.s32.totalorder (!%p763_p9), %s4709_s9, 1  ;;  %vm909_vm1 = vcmask (!%p763_p9), 261120   ;;  %vm1028_vm2 = vcmask (!%p763_p9), 64512  }
  0x20   : > { %766 = sbr.rel (%p763_p9) target bundleno = 7587 (0x1da3), region = 124  ;;  %3828 = vmatprep.subr.bf16.mxu0 (!%p763_p9), %v4537_v1  ;;  %3849 = vmatprep.subr.mxu1 (!%p763_p9), %v4537_v1  ;;  %s5399_s5 = sld [smem:[#allocation14_spill]] (!%p763_p9)  ;;  %vm1358_vm3 = vcmask (!%p763_p9), 1043456   ;;  %vm4972_vm4 = vmpackc.low (!%p763_p9), %vm1028_vm2, %vm1028_vm2  ;;  %vm2293_vm5 = vcmask (!%p763_p9), 523264  }
  0x21   : > { %3832 = vmatprep.mubr.msk.bf16.mxu0 (!%p763_p9), %vm4538_vm0, %v4537_v1  ;;  %3851 = vmatprep.mubr.msk.f32.mxu1 (!%p763_p9), %vm4538_vm0, %v4537_v1  ;;  %s5400_s8 = sld [smem:[#allocation11_spill]] (!%p763_p9)  ;;  %s5402_s29 = sld [smem:[#allocation16_spill]] (!%p763_p9) }
  0x22   : > { %s5370_s2 = smov (!%p763_p9), 120   ;;  %s5366_s0 = smov (!%p763_p9), 104  }
  0x23   : > { %s5409_s6 = sld [smem:[#allocation22_spill]] (!%p763_p9)  ;;  %s5414_s12 = sld [smem:[#allocation23_spill]] (!%p763_p9) }
  0x24   : > { %s5415_s30 = smov (!%p763_p9), 112  }
  0x25   : > { %v4417_v0 = vld [vmem:[%s5398_s3] sm:$0xff] (!%p763_p9)   ;;  %v4418_v2 = vld [vmem:[%s5398_s3 + $0x8] sm:$0xff] (!%p763_p9)   ;;  %s4541_s3 = smov (!%p763_p9), 88  }
  0x26   : > { %3829 = vmatpush3.bf16.msra.mxu0 (!%p763_p9), %v4417_v0  ;;  %v4757_v3 = vld [vmem:[%s5399_s5] sm:$0xff] (!%p763_p9)  ;;  %s5401_s5 = sld [smem:[#allocation17_spill]] (!%p763_p9) }
  0x27   : > { %3830 = vmatprep.subr.bf16.mxu0 %v4537_v1  ;;  %s4751_s10 = scalar_select %p847_p10, %s4709_s9, 1  ;;  %v3591_v10 = vld [vmem:[%s5402_s29] ss:$0 sm:$0xff] }
  0x28   : > { %s4545_s29 = smov 72  }
  0x29   : > { %s5364_s11 = sshll.u32 %s4751_s10, 3 }
  0x2a   : > { %3831 = vmatpush3.bf16.msra.mxu0 %v4418_v2  ;;  %s850_s28 = scalar_lea.vmem %s5400_s8, %s5364_s11  ;;  %s4540_s8 = smov 96  }
  0x2b   : > { %3836 = vmatprep.subr.bf16.mxu0 %v4537_v1  ;;  %v4765_v4 = vld [vmem:[%s850_s28] sm:$0xff]  ;;  %s5403_s28 = sld [smem:[#allocation18_spill]]  ;;  %s4542_s11 = smov 80  }
  0x2c   : > { %v884_v5 = vadd.f32 %v4757_v3, %v4765_v4  ;;  %v4419_v7 = vld [vmem:[%s5401_s5] sm:$0xff]   ;;  %v4420_v8 = vld [vmem:[%s5401_s5 + $0x8] sm:$0xff]   ;;  %v958_v9 = vpack.c.bf16 %v4765_v4, %v4765_v4  ;;  %s5368_s5 = smov 112  }
  0x2e   : > { %v890_v6 = vpack.c.bf16 %v884_v5, %v884_v5 }
  0x30   : > { %3833 = vmatmul.mubr.msk.bf16.vlgmr.msra.gmra.mrb[0].mxu0 %vm909_vm1, %v890_v6 }
  0x31   : > { %3840 = vmatprep.mubr.msk.bf16.mxu0 %vm4538_vm0, %v4537_v1  ;;  %3837 = vmatpush3.bf16.msra.mxu0 %v4419_v7  ;;  %v3595_v16 = vld [vmem:[%s5403_s28] ss:$0 sm:$0xff] }
  0x32   : > { %3838 = vmatprep.subr.bf16.mxu0 %v4537_v1 }
  0x35   : > { %3839 = vmatpush3.bf16.msra.mxu0 %v4420_v8 }
  0x36   : > { %3844 = vmatprep.subr.mxu0 %v4537_v1 }
  0x38   : > { %3841 = vmatmul.mubr.msk.bf16.vlgmr.msra.gmra.mrb[4].mxu0 %vm909_vm1, %v958_v9 }
  0x39   : > { %3846 = vmatprep.mubr.msk.f32.mxu0 %vm4538_vm0, %v4537_v1 }
 0x103   : > { %v947_v11 = vpop.f32.mrb[0].mxu0 }
 0x104   : > { %v4788_v12 = vadd.f32 %v3591_v10, %v947_v11  ;;  %v3834_v13 = vpop.f32.mrb[1].mxu0 }
 0x105   : > { %v950_v14 = vpop.f32.mrb[2].mxu0 }
 0x106   : > { %1188 = vrot.lane.b32.xlu1 %v4788_v12, %s5370_s2  ;;  %1026 = vrot.lane.b32.xlu0 %v4788_v12, %s4540_s8  ;;  %v3835_v15 = vpop.f32.mrb[3].mxu0  ;;  %s5404_s8 = sld [smem:[#allocation19_spill]] }
 0x10a   : > { %1190 = vrot.lane.b32.xlu0 %v4788_v12, %s4541_s3 }
 0x10b   : > { %v1014_v17 = vpop.f32.mrb[4].mxu0 }
 0x10c   : > { %v4797_v18 = vadd.f32 %v3595_v16, %v1014_v17  ;;  %v3842_v19 = vpop.f32.mrb[5].mxu0  ;;  %s5405_s3 = smov %s5404_s8  ;;  %v1021_v41 = vld [vmem:[%s5404_s8 + $0x4] sm:$0xf] }
 0x10d   : > { %v1017_v20 = vpop.f32.mrb[6].mxu0  ;;  %v1360_v42 = vsel %vm1358_vm3, %v1021_v41, 0  ;;  %v1020_v50 = vld [vmem:[%s5405_s3] sm:$0xf] }
 0x10e   : > { %v3843_v21 = vpop.f32.mrb[7].mxu0  ;;  %3850 = vmatpush3.msra.mxu1 %v4797_v18  ;;  %v1406_v51 = vsel %vm1358_vm3, %v1020_v50, 0 }
 0x10f   : > { %3859 = vmatprep.subr.mxu1 %v4537_v1 }
 0x178   : > { %v1027_v22 = vpop.permute.xlu0 %1026  ;;  %v1189_v24 = vpop.permute.xlu1 %1188 }
 0x179   : > { %3845 = vmatpush3.xpose.msk.msra.mxu0 %vm1028_vm2, %v1027_v22 }
 0x17a   : > { %3854 = vmatprep.subr.mxu0 %v4537_v1 }
 0x17c   : > { %3847 = vmatmul.mubr.msk.f32.vlgmr.msra.gmra.mrb[8].mxu0 %vm1028_vm2, %v4788_v12  ;;  %v1191_v23 = vpop.permute.xlu0 %1190 }
 0x17d   : > { %3855 = vmatpush3.xpose.msk.msra.mxu0 %vm1028_vm2, %v1191_v23  ;;  %3856 = vmatprep.mubr.msk.f32.mxu0 %vm4538_vm0, %v4537_v1 }
 0x17e   : > { %3864 = vmatprep.subr.bf16.mxu0 %v4537_v1 }
 0x180   : > { %3857 = vmatmul.mubr.msk.f32.vlgmr.msra.gmra.mrb[10].mxu0 %vm1028_vm2, %v1189_v24 }
 0x181   : > { %3866 = vmatprep.mubr.msk.bf16.mxu0 %vm4538_vm0, %v4537_v1  ;;  %3865 = vmatpush3.bf16.msra.mxu0 %v1360_v42 }
 0x182   : > { %3876 = vmatprep.subr.mxu0 %v4537_v1 }
 0x24f   : > { %v1099_v25 = vpop.f32.mrb[8].mxu0 }
 0x250   : > { %v3848_v26 = vpop.f32.mrb[9].mxu0  ;;  %v1103_v27 = vsel %vm1028_vm2, %v1099_v25, -inf }
 0x251   : > { %1104 = vmax.xlane.f32.xlu1 %v1103_v27 }
 0x253   : > { %v1262_v28 = vpop.f32.mrb[10].mxu0 }
 0x254   : > { %v3858_v29 = vpop.f32.mrb[11].mxu0  ;;  %v1266_v30 = vsel %vm1028_vm2, %v1262_v28, -inf }
 0x255   : > { %1267 = vmax.xlane.f32.xlu0 %v1266_v30 }
 0x2de   : > { %v1105_v31 = vpop.xlane.xlu1 %1104 }
 0x2df   : > { %v1106_v32 = vsub.f32 %v1099_v25, %v1105_v31 }
 0x2e1   : > { %v1107_v33 = vmul.f32 1.442695, %v1106_v32 }
 0x2e2   : > { %v1268_v34 = vpop.xlane.xlu0 %1267 }
 0x2e3   : > { %4433 = vpow2.f32 %v1107_v33  ;;  %v1269_v35 = vsub.f32 %v1262_v28, %v1268_v34 }
 0x2e5   : > { %v1270_v36 = vmul.f32 1.442695, %v1269_v35 }
 0x2e7   : > { %4435 = vpow2.f32 %v1270_v36 }
 0x2ed   : > { %v4434_v37 = vpop.eup %4433 }
 0x2ee   : > { %v1109_v38 = vsel %vm1028_vm2, %v4434_v37, 0.0 }
 0x2ef   : > { %1110 = vadd.xlane.f32.xlu0 %v1109_v38 }
 0x2f1   : > { %v4436_v39 = vpop.eup %4435 }
 0x2f2   : > { %v1272_v40 = vsel %vm1028_vm2, %v4436_v39, 0.0 }
 0x2f3   : > { %1273 = vadd.xlane.f32.xlu1 %v1272_v40 }
 0x304   : > { %1450 = vrot.lane.b32.xlu1 %v4788_v12, %s4542_s11  ;;  %s3693_s11 = sshll.u32 %s4751_s10, 6 }
 0x305   : > { %1278 = vrot.lane.b32.xlu0 %v4797_v18, %s5370_s2  ;;  %s5407_s2 = sld [smem:[#allocation12_spill]] }
 0x308   : > { %1448 = vrot.lane.b32.xlu1 %v4788_v12, %s5368_s5 }
 0x37c   : > { %v1111_v43 = vpop.xlane.xlu0 %1110 }
 0x37d   : > { %4437 = vrcp.f32 %v1111_v43 }
 0x380   : > { %v1274_v44 = vpop.xlane.xlu1 %1273  ;;  %v1279_v47 = vpop.permute.xlu0 %1278 }
 0x381   : > { %4439 = vrcp.f32 %v1274_v44 }
 0x384   : > { %v1451_v58 = vpop.permute.xlu1 %1450 }
 0x387   : > { %v4438_v45 = vpop.eup %4437 }
 0x388   : > { %v1113_v46 = vmul.f32 %v4438_v45, %v4434_v37  ;;  %v1449_v59 = vpop.permute.xlu1 %1448 }
 0x38a   : > { %3852 = vmatmul.mubr.msk.f32.vlgmr.msra.gmra.mrb[0].mxu1 %vm1028_vm2, %v1113_v46 }
 0x38b   : > { %v4440_v48 = vpop.eup %4439  ;;  %3860 = vmatpush3.msra.mxu1 %v1279_v47  ;;  %3861 = vmatprep.mubr.msk.f32.mxu1 %vm4538_vm0, %v4537_v1 }
 0x38c   : > { %v1276_v49 = vmul.f32 %v4440_v48, %v4436_v39  ;;  %3870 = vmatprep.subr.bf16.mxu1 %v4537_v1 }
 0x38e   : > { %3862 = vmatmul.mubr.msk.f32.vlgmr.msra.gmra.mrb[2].mxu1 %vm1028_vm2, %v1276_v49 }
 0x38f   : > { %3872 = vmatprep.mubr.msk.bf16.mxu1 %vm4538_vm0, %v4537_v1  ;;  %3871 = vmatpush3.bf16.msra.mxu1 %v1406_v51 }
 0x390   : > { %3881 = vmatprep.subr.mxu1 %v4537_v1 }
 0x45d   : > { %v1183_v52 = vpop.f32.mrb[0].mxu1 }
 0x45e   : > { %v1187_v53 = vpack.c.bf16 %v1183_v52, %v1183_v52  ;;  %v3853_v54 = vpop.f32.mrb[1].mxu1 }
 0x460   : > { %3873 = vmatmul.mubr.msk.bf16.vlgmr.msra.gmra.mrb[4].mxu1 %vm1028_vm2, %v1187_v53 }
 0x461   : > { %v1350_v55 = vpop.f32.mrb[2].mxu1  ;;  %3883 = vmatprep.mubr.msk.f32.mxu1 %vm4538_vm0, %v4537_v1 }
 0x462   : > { %v1354_v56 = vpack.c.bf16 %v1350_v55, %v1350_v55  ;;  %v3863_v57 = vpop.f32.mrb[3].mxu1 }
 0x464   : > { %3867 = vmatmul.mubr.msk.bf16.vlgmr.msra.gmra.mrb[12].mxu0 %vm1028_vm2, %v1354_v56 }
 0x465   : > { %3877 = vmatpush3.xpose.msk.msra.mxu0 %vm1028_vm2, %v1451_v58  ;;  %3878 = vmatprep.mubr.msk.f32.mxu0 %vm4538_vm0, %v4537_v1  ;;  %v4422_v58 = vld [vmem:[%s5341_s13 + $0x8] sm:$0xff]  }
 0x466   : > { %3886 = vmatprep.subr.bf16.mxu0 %v4537_v1 }
 0x46c   : > { %3879 = vmatmul.mubr.msk.f32.vlgmr.msra.gmra.mrb[16].mxu0 %vm1028_vm2, %v1449_v59 }
 0x46d   : > { %3888 = vmatprep.mubr.msk.bf16.mxu0 %vm4538_vm0, %v4537_v1 }
 0x533   : > { %v1442_v60 = vpop.f32.mrb[4].mxu1 }
 0x534   : > { %v3874_v61 = vpop.f32.mrb[5].mxu1 }
 0x535   : > { %v1445_v62 = vpop.f32.mrb[6].mxu1 }
 0x536   : > { %v3875_v63 = vpop.f32.mrb[7].mxu1 }
 0x537   : > { %v1396_v0 = vpop.f32.mrb[12].mxu0 }
 0x538   : > { %v1443_v2 = vadd.f32 %v1442_v60, %v1396_v0  ;;  %v3868_v5 = vpop.f32.mrb[13].mxu0 }
 0x539   : > { %v1399_v6 = vpop.f32.mrb[14].mxu0 }
 0x53a   : > { %v3869_v7 = vpop.f32.mrb[15].mxu0 }
 0x53f   : > { %v1522_v8 = vpop.f32.mrb[16].mxu0 }
 0x540   : > { %v3880_v9 = vpop.f32.mrb[17].mxu0  ;;  %v1526_v10 = vsel %vm1028_vm2, %v1522_v8, -inf }
 0x541   : > { %1527 = vmax.xlane.f32.xlu0 %v1526_v10 }
 0x557   : > { %1537 = vrot.lane.b32.xlu0 %v4797_v18, %s5368_s5  ;;  %s5413_s5 = sld [smem:[#allocation21_spill]] }
 0x55b   : > { %1661 = vrot.lane.b32.xlu0 %v4788_v12, %s5366_s0 }
 0x5ce   : > { %v1528_v11 = vpop.xlane.xlu0 %1527 }
 0x5cf   : > { %v1529_v13 = vsub.f32 %v1522_v8, %v1528_v11 }
 0x5d1   : > { %v1530_v14 = vmul.f32 1.442695, %v1529_v13 }
 0x5d2   : > { %v1538_v15 = vpop.permute.xlu0 %1537 }
 0x5d3   : > { %4441 = vpow2.f32 %v1530_v14  ;;  %3882 = vmatpush3.msra.mxu1 %v1538_v15 }
 0x5d4   : > { %3892 = vmatprep.subr.mxu1 %v4537_v1 }
 0x5d6   : > { %v1662_v23 = vpop.permute.xlu0 %1661 }
 0x5dd   : > { %v4442_v16 = vpop.eup %4441 }
 0x5de   : > { %v1532_v17 = vsel %vm1028_vm2, %v4442_v16, 0.0 }
 0x5df   : > { %1533 = vadd.xlane.f32.xlu1 %v1532_v17 }
 0x5f0   : > { %1663 = vrot.lane.b32.xlu1 %v4788_v12, %s4545_s29  ;;  %v1022_v12 = vld [vmem:[%s5405_s3 + $0x8] sm:$0xf] }
 0x5f1   : > { %v1618_v24 = vsel %vm1358_vm3, %v1022_v12, 0 }
 0x5f2   : > { %3887 = vmatpush3.bf16.msra.mxu0 %v1618_v24 }
 0x66c   : > { %v1534_v19 = vpop.xlane.xlu1 %1533 }
 0x66d   : > { %4443 = vrcp.f32 %v1534_v19 }
 0x670   : > { %v1664_v22 = vpop.permute.xlu1 %1663 }
 0x677   : > { %v4444_v20 = vpop.eup %4443 }
 0x678   : > { %v1536_v21 = vmul.f32 %v4444_v20, %v4442_v16 }
 0x67a   : > { %3884 = vmatmul.mubr.msk.f32.vlgmr.msra.gmra.mrb[8].mxu1 %vm1028_vm2, %v1536_v21 }
 0x67b   : > { %3893 = vmatpush3.xpose.msk.msra.mxu1 %vm1028_vm2, %v1664_v22  ;;  %3894 = vmatprep.mubr.msk.f32.mxu1 %vm4538_vm0, %v4537_v1 }
 0x67c   : > { %3897 = vmatprep.subr.mxu1 %v4537_v1 }
 0x67e   : > { %3895 = vmatmul.mubr.msk.f32.vlgmr.msra.gmra.mrb[10].mxu1 %vm1028_vm2, %v1662_v23 }
 0x67f   : > { %3899 = vmatprep.mubr.msk.f32.mxu1 %vm4538_vm0, %v4537_v1 }
 0x74d   : > { %v1609_v25 = vpop.f32.mrb[8].mxu1 }
 0x74e   : > { %v1613_v26 = vpack.c.bf16 %v1609_v25, %v1609_v25  ;;  %v3885_v27 = vpop.f32.mrb[9].mxu1 }
 0x750   : > { %3889 = vmatmul.mubr.msk.bf16.vlgmr.msra.gmra.mrb[20].mxu0 %vm1028_vm2, %v1613_v26 }
 0x751   : > { %v1735_v28 = vpop.f32.mrb[10].mxu1 }
 0x752   : > { %v3896_v29 = vpop.f32.mrb[11].mxu1  ;;  %v1739_v30 = vsel %vm1028_vm2, %v1735_v28, -inf }
 0x753   : > { %1740 = vmax.xlane.f32.xlu1 %v1739_v30 }
 0x7e0   : > { %v1741_v31 = vpop.xlane.xlu1 %1740 }
 0x7e1   : > { %v1742_v32 = vsub.f32 %v1735_v28, %v1741_v31 }
 0x7e3   : > { %v1743_v33 = vmul.f32 1.442695, %v1742_v32  ;;  %v4423_v32 = vld [vmem:[%s5409_s6] sm:$0xff]  }
 0x7e5   : > { %4445 = vpow2.f32 %v1743_v33  ;;  %v4424_v33 = vld [vmem:[%s5409_s6 + $0x8] sm:$0xff]  }
 0x7ef   : > { %v4446_v34 = vpop.eup %4445 }
 0x7f0   : > { %v1745_v35 = vsel %vm1028_vm2, %v4446_v34, 0.0 }
 0x7f1   : > { %1746 = vadd.xlane.f32.xlu0 %v1745_v35  ;;  %v3620_v35 = vld [vmem:[%s5342_s14] ss:$0 sm:$0xff] }
 0x807   : > { %1750 = vrot.lane.b32.xlu0 %v4797_v18, %s5366_s0  ;;  %v1023_v18 = vld [vmem:[%s5405_s3 + $0xc] sm:$0xf]  ;;  %s5406_s0 = sld [smem:[#allocation20_spill]]  ;;  %s4895_s3 = scalar_lea.vmem %s5407_s2, %s3693_s11 }
 0x808   : > { %v1831_v45 = vsel %vm1358_vm3, %v1023_v18, 0  ;;  %v4909_v59 = vld [vmem:[%s4895_s3] sm:$0xff]  ;;  %v4912_v60 = vld [vmem:[%s4895_s3 + $0x8] sm:$0xff]  ;;  %v4922_v5 = vld [vmem:[%s4895_s3 + $0x18] sm:$0xff] }
 0x809   : > { %v4928_v9 = vld [vmem:[%s4895_s3 + $0x20] sm:$0xff]  ;;  %v4931_v10 = vld [vmem:[%s4895_s3 + $0x28] sm:$0xff]  ;;  %v4940_v20 = vld [vmem:[%s4895_s3 + $0x30] sm:$0xff] }
 0x80a   : > { %v4943_v22 = vld [vmem:[%s4895_s3 + $0x38] sm:$0xff] }
 0x80d   : > { %v3615_v49 = vld [vmem:[%s5406_s0] ss:$0 sm:$0xff]  ;;  %s5408_s0 = sld [smem:[#allocation13_spill]] }
 0x813   : > { %s4900_s28 = scalar_lea.vmem %s5408_s0, %s3693_s11  ;;  %s5412_s0 = smov 120  }
 0x814   : > { %v875_v61 = vld [vmem:[%s4900_s28] sm:$0xff]  ;;  %v876_v62 = vld [vmem:[%s4900_s28 + $0x8] sm:$0xff]  ;;  %v877_v6 = vld [vmem:[%s4900_s28 + $0x10] sm:$0xff] }
 0x815   : > { %v1975_v63 = vadd.f32 %v875_v61, %v4909_v59  ;;  %v1976_v0 = vadd.f32 %v876_v62, %v4912_v60  ;;  %v878_v7 = vld [vmem:[%s4900_s28 + $0x18] sm:$0xff]  ;;  %v879_v14 = vld [vmem:[%s4900_s28 + $0x20] sm:$0xff]  ;;  %v880_v15 = vld [vmem:[%s4900_s28 + $0x28] sm:$0xff]  ;;  %v1897_v62 = vlaneseq }
 0x816   : > { %v1978_v13 = vadd.f32 %v878_v7, %v4922_v5  ;;  %v1979_v16 = vadd.f32 %v879_v14, %v4928_v9  ;;  %v1980_v17 = vadd.f32 %v880_v15, %v4931_v10  ;;  %v881_v23 = vld [vmem:[%s4900_s28 + $0x30] sm:$0xff]  ;;  %v882_v12 = vld [vmem:[%s4900_s28 + $0x38] sm:$0xff]  ;;  %v1882_v7 = vld [vmem:[%s5413_s5] sm:$0x3] }
 0x817   : > { %v1988_v11 = vpack.c.bf16 %v1976_v0, %v1975_v63  ;;  %v1981_v24 = vadd.f32 %v881_v23, %v4940_v20  ;;  %v1982_v25 = vadd.f32 %v882_v12, %v4943_v22  ;;  %v1898_v0 = vshrl.u32 %v1897_v62, 7  ;;  %v3616_v23 = vld [vmem:[%s5414_s12] ss:$0 sm:$0xff] }
 0x818   : > { %v1990_v21 = vpack.c.bf16 %v1980_v17, %v1979_v16 }
 0x819   : > { %3920 = vmatprep.mubr.msk.bf16.mxu0 %vm909_vm1, %v1988_v11  ;;  %v1991_v26 = vpack.c.bf16 %v1982_v25, %v1981_v24 }
 0x823   : > { %v1654_v36 = vpop.f32.mrb[20].mxu0 }
 0x824   : > { %v1660_v37 = vadd.f32 %v1654_v36, %v1443_v2  ;;  %v3890_v38 = vpop.f32.mrb[21].mxu0  ;;  %v4919_v2 = vld [vmem:[%s4895_s3 + $0x10] sm:$0xff] }
 0x825   : > { %v1657_v39 = vpop.f32.mrb[22].mxu0  ;;  %v1977_v8 = vadd.f32 %v877_v6, %v4919_v2  ;;  %v5002_v6 = vsub.s32 0, %v1898_v0 }
 0x826   : > { %v3891_v40 = vpop.f32.mrb[23].mxu0 }
 0x827   : > { %v1989_v19 = vpack.c.bf16 %v1978_v13, %v1977_v8  ;;  %v5007_v8 = vsub.s32 1, %v1898_v0  ;;  %v1900_v11 = vrot.slane %v1882_v7, %v5002_v6 }
 0x829   : > { %v1905_v15 = vrot.slane %v1882_v7, %v5007_v8 }
 0x87e   : > { %v1747_v41 = vpop.xlane.xlu0 %1746 }
 0x87f   : > { %4447 = vrcp.f32 %v1747_v41 }
 0x882   : > { %v1751_v42 = vpop.permute.xlu0 %1750 }
 0x883   : > { %3898 = vmatpush3.msra.mxu1 %v1751_v42 }
 0x884   : > { %3902 = vmatprep.subr.bf16.mxu1 %v4537_v1 }
 0x889   : > { %v4448_v43 = vpop.eup %4447 }
 0x88a   : > { %v1749_v44 = vmul.f32 %v4448_v43, %v4446_v34  ;;  %v4546_v34 = vmov 0.0|0.0  }
 0x88c   : > { %3900 = vmatmul.mubr.msk.f32.vlgmr.msra.gmra.mrb[12].mxu1 %vm1028_vm2, %v1749_v44 }
 0x88d   : > { %3904 = vmatprep.mubr.msk.bf16.mxu1 %vm4538_vm0, %v4537_v1  ;;  %3903 = vmatpush3.bf16.msra.mxu1 %v1831_v45 }
 0x88e   : > { %3908 = vmatprep.subr.bf16.mxu1 %v4537_v1 }
 0x95f   : > { %v1822_v46 = vpop.f32.mrb[12].mxu1 }
 0x960   : > { %v1826_v47 = vpack.c.bf16 %v1822_v46, %v1822_v46  ;;  %v3901_v48 = vpop.f32.mrb[13].mxu1 }
 0x962   : > { %3905 = vmatmul.mubr.msk.bf16.vlgmr.msra.gmra.mrb[16].mxu1 %vm1028_vm2, %v1826_v47 }
 0x963   : > { %3912 = vmatprep.mubr.msk.bf16.mxu1 %vm4538_vm0, %v4537_v1  ;;  %3909 = vmatpush3.bf16.msra.mxu1 %v4423_v32 }
 0x964   : > { %3910 = vmatprep.subr.bf16.mxu1 %v4537_v1 }
 0x967   : > { %3911 = vmatpush3.bf16.msra.mxu1 %v4424_v33 }
 0xa35   : > { %v1867_v50 = vpop.f32.mrb[16].mxu1 }
 0xa36   : > { %v1873_v51 = vadd.f32 %v1867_v50, %v1660_v37  ;;  %v3906_v52 = vpop.f32.mrb[17].mxu1 }
 0xa37   : > { %v1870_v53 = vpop.f32.mrb[18].mxu1 }
 0xa38   : > { %v1880_v54 = vadd.f32 %v3615_v49, %v1873_v51  ;;  %v3907_v55 = vpop.f32.mrb[19].mxu1 }
 0xa3a   : > { %v1881_v56 = vadd.f32 %v1880_v54, %v4765_v4  ;;  %v4421_v4 = vld [vmem:[%s5341_s13] sm:$0xff]  }
 0xa3b   : > { %3916 = vmatprep.subr.bf16.mxu0 %v4421_v4 }
 0xa3c   : > { %v1883_v57 = vsel %vm909_vm1, %v1881_v56, 0.0  ;;  %3917 = vmatpush3.bf16.msra.mxu0 %v4421_v4 }
 0xa3d   : > { %1884 = vadd.xlane.f32.xlu1 %v1883_v57  ;;  %3918 = vmatprep.subr.bf16.mxu0 %v4422_v58 }
 0xa40   : > { %3919 = vmatpush3.bf16.msra.mxu0 %v4422_v58 }
 0xa41   : > { %4136 = vmatprep.subr.bf16.mxu0 %v4546_v34 }
 0xa43   : > { %3921 = vmatmul.mubr.msk.bf16.vlgmr.msra.gmra.mrb[24].mxu0 %vm909_vm1, %v1989_v19 }
 0xa44   : > { %3924 = vmatprep.mubr.msk.bf16.mxu0 %vm909_vm1, %v1990_v21 }
 0xa4b   : > { %3925 = vmatmul.mubr.msk.bf16.gmra.mrb[28].mxu0 %vm909_vm1, %v1991_v26 }
 0xa4c   : > { %3956 = vmatprep.mubr.msk.f32.mxu0 %vm4538_vm0, %v4537_v1 }
 0xaca   : > { %v1885_v27 = vpop.xlane.xlu1 %1884 }
 0xacb   : > { %v1887_v28 = vmul.f32 0.03125, %v1885_v27 }
 0xacd   : > { %v1888_v29 = vsub.f32 %v1881_v56, %v1887_v28  ;;  %v4426_v28 = vld [vmem:[%s5343_s15 + $0x8] sm:$0xff]  }
 0xacf   : > { %v1889_v30 = vmul.f32 %v1888_v29, %v1888_v29 }
 0xad1   : > { %v1890_v31 = vsel %vm909_vm1, %v1889_v30, 0.0  ;;  %v2093_v30 = vpack.c.bf16 %v4922_v5, %v4919_v2 }
 0xad2   : > { %1891 = vadd.xlane.f32.xlu1 %v1890_v31  ;;  %v2094_v31 = vpack.c.bf16 %v4931_v10, %v4928_v9  ;;  %v3627_v9 = vld [vmem:[%s5344_s16] ss:$0 sm:$0xff] }
 0xb16   : > { %v3922_v36 = vpop.f32.mrb[24].mxu0 }
 0xb17   : > { %v2065_v37 = vadd.f32 %v3922_v36, %v3620_v35  ;;  %v2056_v38 = vpop.f32.mrb[25].mxu0 }
 0xb18   : > { %v4966_v39 = vadd.f32 %v3620_v35, %v2056_v38  ;;  %v3923_v40 = vpop.f32.mrb[26].mxu0 }
 0xb19   : > { %v2068_v41 = vadd.f32 %v3923_v40, %v3620_v35  ;;  %v2059_v42 = vpop.f32.mrb[27].mxu0 }
 0xb1a   : > { %v4968_v43 = vadd.f32 %v3620_v35, %v2059_v42 }
 0xb1b   : > { %v4976_v18 = vpack.i.bf16 %v2068_v41, %v2065_v37  ;;  %v4141_v49 = vpack.c.bf16 %v2068_v41, %v2065_v37 }
 0xb1c   : > { %v4137_v45 = vpack.c.bf16 %v4968_v43, %v4966_v39  ;;  %v5069_v7 = vpack.i.bf16 %v4968_v43, %v4966_v39 }
 0xb1d   : > { %4303 = vrot.lane.b32.xlu0 %v4976_v18, %s5412_s0 }
 0xb1e   : > { %4139 = vmatpush3.bf16.xpose.msk.msra.mxu0 %vm4972_vm4, %v4137_v45  ;;  %v3926_v46 = vpop.f32.mrb[28].mxu0 }
 0xb1f   : > { %4140 = vmatprep.subr.bf16.mxu0 %v4546_v34  ;;  %v2072_v47 = vpop.f32.mrb[29].mxu0  ;;  %v2081_v51 = vadd.f32 %v3926_v46, %v3620_v35 }
 0xb20   : > { %v3927_v48 = vpop.f32.mrb[30].mxu0  ;;  %v2073_v52 = vadd.f32 %v3620_v35, %v2072_v47 }
 0xb21   : > { %v2075_v50 = vpop.f32.mrb[31].mxu0  ;;  %v2084_v53 = vadd.f32 %v3927_v48, %v3620_v35 }
 0xb22   : > { %v2076_v54 = vadd.f32 %v3620_v35, %v2075_v50 }
 0xb23   : > { %v4991_v56 = vpack.i.bf16 %v2084_v53, %v2081_v51  ;;  %v4149_v4 = vpack.c.bf16 %v2084_v53, %v2081_v51 }
 0xb24   : > { %v4985_v55 = vpack.i.bf16 %v2076_v54, %v2073_v52  ;;  %v4145_v57 = vpack.c.bf16 %v2076_v54, %v2073_v52 }
 0xb26   : > { %4143 = vmatpush3.bf16.xpose.msk.msra.mxu0 %vm4972_vm4, %v4141_v49  ;;  %4308 = vrot.lane.b32.xlu0 %v4985_v55, %s5412_s0 }
 0xb27   : > { %4144 = vmatprep.subr.bf16.mxu0 %v4546_v34 }
 0xb2a   : > { %4313 = vrot.lane.b32.xlu0 %v4991_v56, %s5412_s0 }
 0xb2e   : > { %4147 = vmatpush3.bf16.xpose.msk.msra.mxu0 %vm4972_vm4, %v4145_v57 }
 0xb2f   : > { %4148 = vmatprep.subr.bf16.mxu0 %v4546_v34 }
 0xb36   : > { %4151 = vmatpush3.bf16.xpose.msk.msra.mxu0 %vm4972_vm4, %v4149_v4 }
 0xb37   : > { %4180 = vmatprep.subr.bf16.mxu0 %v4546_v34 }
 0xb5f   : > { %v1892_v58 = vpop.xlane.xlu1 %1891 }
 0xb60   : > { %v1893_v61 = vmul.f32 0.03125, %v1892_v58 }
 0xb62   : > { %v1894_v63 = vadd.f32 1e-05, %v1893_v61 }
 0xb64   : > { %4449 = vrsqrt.f32 %v1894_v63 }
 0xb6e   : > { %v4450_v13 = vpop.eup %4449 }
 0xb6f   : > { %v1896_v14 = vmul.f32 %v4450_v13, %v1888_v29  ;;  %v2092_v29 = vpack.c.bf16 %v4912_v60, %v4909_v59  ;;  %v2095_v59 = vpack.c.bf16 %v4943_v22, %v4940_v20 }
 0xb71   : > { %v1901_v16 = vmul.f32 %v1900_v11, %v1896_v14 }
 0xb73   : > { %v5011_v17 = vadd.f32 %v1905_v15, %v1901_v16 }
 0xb75   : > { %v1907_v19 = vadd.f32 %v5011_v17, %v4757_v3  ;;  %v4425_v3 = vld [vmem:[%s5343_s15] sm:$0xff]  }
 0xb76   : > { %3928 = vmatprep.subr.bf16.mxu1 %v4425_v3 }
 0xb77   : > { %v1913_v21 = vpack.c.bf16 %v1907_v19, %v1907_v19 }
 0xb79   : > { %3913 = vmatmul.mubr.msk.bf16.vlgmr.msra.gmra.mrb[20].mxu1 %vm909_vm1, %v1913_v21 }
 0xb7a   : > { %3932 = vmatprep.mubr.msk.bf16.mxu1 %vm909_vm1, %v2092_v29  ;;  %3929 = vmatpush3.bf16.msra.mxu1 %v4425_v3 }
 0xb7b   : > { %3930 = vmatprep.subr.bf16.mxu1 %v4426_v28 }
 0xb7e   : > { %3931 = vmatpush3.bf16.msra.mxu1 %v4426_v28 }
 0xb7f   : > { %4152 = vmatprep.subr.bf16.mxu1 %v4546_v34 }
 0xb81   : > { %3933 = vmatmul.mubr.msk.bf16.vlgmr.msra.gmra.mrb[24].mxu1 %vm909_vm1, %v2093_v30 }
 0xb82   : > { %3936 = vmatprep.mubr.msk.bf16.mxu1 %vm909_vm1, %v2094_v31 }
 0xb89   : > { %3937 = vmatmul.mubr.msk.bf16.gmra.mrb[28].mxu1 %vm909_vm1, %v2095_v59 }
 0xb8a   : > { %3975 = vmatprep.mubr.msk.f32.mxu1 %vm4538_vm0, %v4537_v1 }
 0xb8f   : > { %v4304_v11 = vpop.permute.xlu0 %4303 }
 0xb90   : > { %v4306_v28 = vunpack.i.h.bf16 %v4304_v11  ;;  %v4305_v29 = vunpack.i.l.bf16 %v4304_v11 }
 0xb92   : > { %v4169_v30 = vpack.c.bf16 %v4306_v28, %v4305_v29 }
 0xb98   : > { %v4309_v13 = vpop.permute.xlu0 %4308 }
 0xb99   : > { %v4311_v31 = vunpack.i.h.bf16 %v4309_v13  ;;  %v4310_v59 = vunpack.i.l.bf16 %v4309_v13 }
 0xb9c   : > { %v4314_v14 = vpop.permute.xlu0 %4313 }
 0xc4c   : > { %v1969_v12 = vpop.f32.mrb[20].mxu1 }
 0xc4d   : > { %v5019_v24 = vadd.f32 %v3616_v23, %v1969_v12  ;;  %v3914_v25 = vpop.f32.mrb[21].mxu1 }
 0xc4e   : > { %v1972_v26 = vpop.f32.mrb[22].mxu1 }
 0xc4f   : > { %v3915_v27 = vpop.f32.mrb[23].mxu1  ;;  %2379 = vrot.lane.b32.xlu0 %v5019_v24, %s5412_s0  ;;  %3957 = vmatmul.mubr.msk.f32.vlgmr.msra.gmra.mrb[18].mxu0 %vm1028_vm2, %v5019_v24 }
 0xc50   : > { %4013 = vmatprep.mubr.msk.f32.mxu0 %vm4538_vm0, %v4537_v1 }
 0xc54   : > { %v3934_v10 = vpop.f32.mrb[24].mxu1 }
 0xc55   : > { %v2169_v32 = vadd.f32 %v3934_v10, %v3627_v9  ;;  %v2160_v33 = vpop.f32.mrb[25].mxu1  ;;  %v2191_v10 = vld [vmem:[%s5345_s17] sm:$0xf] }
 0xc56   : > { %v2161_v35 = vadd.f32 %v3627_v9, %v2160_v33  ;;  %v3935_v20 = vpop.f32.mrb[26].mxu1 }
 0xc57   : > { %v2172_v22 = vadd.f32 %v3935_v20, %v3627_v9  ;;  %v2163_v36 = vpop.f32.mrb[27].mxu1 }
 0xc58   : > { %v2164_v37 = vadd.f32 %v3627_v9, %v2163_v36 }
 0xc59   : > { %v4156_v38 = vpack.c.bf16 %v2172_v22, %v2169_v32  ;;  %v5060_v61 = vpack.i.bf16 %v2172_v22, %v2169_v32  ;;  %v2652_v32 = vsel %vm1358_vm3, %v2191_v10, 0 }
 0xc5a   : > { %v4153_v40 = vpack.c.bf16 %v2164_v37, %v2161_v35  ;;  %v5052_v41 = vpack.i.bf16 %v2164_v37, %v2161_v35 }
 0xc5c   : > { %v3938_v42 = vpop.f32.mrb[28].mxu1  ;;  %4154 = vmatpush3.bf16.msra.mxu1 %v4153_v40  ;;  %4318 = vrot.lane.b32.xlu0 %v5052_v41, %s5412_s0 }
 0xc5d   : > { %v2185_v45 = vadd.f32 %v3938_v42, %v3627_v9  ;;  %v2176_v46 = vpop.f32.mrb[29].mxu1  ;;  %4155 = vmatprep.subr.bf16.mxu1 %v4546_v34 }
 0xc5e   : > { %v2177_v47 = vadd.f32 %v3627_v9, %v2176_v46  ;;  %v3939_v48 = vpop.f32.mrb[30].mxu1 }
 0xc5f   : > { %v2188_v49 = vadd.f32 %v3939_v48, %v3627_v9  ;;  %v2179_v50 = vpop.f32.mrb[31].mxu1 }
 0xc60   : > { %v2180_v51 = vadd.f32 %v3627_v9, %v2179_v50  ;;  %4157 = vmatpush3.bf16.msra.mxu1 %v4156_v38 }
 0xc61   : > { %4158 = vmatprep.subr.bf16.mxu1 %v4546_v34  ;;  %v4162_v62 = vpack.c.bf16 %v2188_v49, %v2185_v45  ;;  %v5064_v0 = vpack.i.bf16 %v2188_v49, %v2185_v45 }
 0xc62   : > { %v4159_v52 = vpack.c.bf16 %v2180_v51, %v2177_v47  ;;  %v5062_v63 = vpack.i.bf16 %v2180_v51, %v2177_v47 }
 0xc64   : > { %4160 = vmatpush3.bf16.msra.mxu1 %v4159_v52 }
 0xc65   : > { %4161 = vmatprep.subr.bf16.mxu1 %v4546_v34 }
 0xc68   : > { %4163 = vmatpush3.bf16.msra.mxu1 %v4162_v62 }
 0xc69   : > { %4164 = vmatprep.subr.bf16.mxu1 %v4546_v34 }
 0xcc1   : > { %v2380_v15 = vpop.permute.xlu0 %2379 }
 0xcce   : > { %v4319_v16 = vpop.permute.xlu0 %4318 }
 0xccf   : > { %v4321_v19 = vunpack.i.h.bf16 %v4319_v16  ;;  %v4320_v21 = vunpack.i.l.bf16 %v4319_v16 }
 0xcd1   : > { %v4181_v23 = vpack.c.bf16 %v4321_v19, %v4320_v21  ;;  %v2192_v19 = vld [vmem:[%s5345_s17 + $0x4] sm:$0xf] }
 0xcd3   : > { %4182 = vmatpush3.bf16.msra.mxu0 %v4181_v23 }
 0xcd4   : > { %4183 = vmatprep.subr.bf16.mxu0 %v4546_v34 }
 0xd22   : > { %v2289_v60 = vpop.f32.mrb[18].mxu0 }
 0xd23   : > { %v3958_v2 = vpop.f32.mrb[19].mxu0  ;;  %v2294_v5 = vsel %vm2293_vm5, %v2289_v60, -inf }
 0xd24   : > { %2295 = vmax.xlane.f32.xlu1 %v2294_v5  ;;  %v4316_v2 = vunpack.i.h.bf16 %v4314_v14  ;;  %v4315_v5 = vunpack.i.l.bf16 %v4314_v14 }
 0xd26   : > { %v4177_v9 = vpack.c.bf16 %v4316_v2, %v4315_v5 }
 0xdb1   : > { %v2296_v53 = vpop.xlane.xlu1 %2295 }
 0xdb2   : > { %v2297_v54 = vsub.f32 %v2289_v60, %v2296_v53  ;;  %v4173_v60 = vpack.c.bf16 %v4311_v31, %v4310_v59 }
 0xdb4   : > { %v2298_v57 = vmul.f32 1.442695, %v2297_v54 }
 0xdb6   : > { %4451 = vpow2.f32 %v2298_v57 }
 0xdc0   : > { %v4452_v4 = vpop.eup %4451 }
 0xdc1   : > { %v2300_v58 = vsel %vm2293_vm5, %v4452_v4, 0.0 }
 0xdc2   : > { %2301 = vadd.xlane.f32.xlu1 %v2300_v58 }
 0xdd3   : > { %4298 = vrot.lane.b32.xlu1 %v5069_v7, %s5412_s0 }
 0xe4f   : > { %v2302_v12 = vpop.xlane.xlu1 %2301 }
 0xe50   : > { %4453 = vrcp.f32 %v2302_v12  ;;  %v2606_v12 = vsel %vm1358_vm3, %v2192_v19, 0 }
 0xe53   : > { %v4299_v25 = vpop.permute.xlu1 %4298 }
 0xe54   : > { %v4301_v26 = vunpack.i.h.bf16 %v4299_v25  ;;  %v4300_v39 = vunpack.i.l.bf16 %v4299_v25 }
 0xe56   : > { %v4165_v3 = vpack.c.bf16 %v4301_v26, %v4300_v39 }
 0xe5a   : > { %v4454_v43 = vpop.eup %4453 }
 0xe5b   : > { %v2304_v27 = vmul.f32 %v4454_v43, %v4452_v4 }
 0xe5d   : > { %3976 = vmatmul.mubr.msk.f32.vlgmr.msra.gmra.mrb[14].mxu1 %vm2293_vm5, %v2304_v27 }
 0xe5e   : > { %4167 = vmatpush3.bf16.xpose.msk.msra.mxu1 %vm4972_vm4, %v4165_v3  ;;  %3994 = vmatprep.mubr.msk.f32.mxu1 %vm4538_vm0, %v4537_v1 }
 0xe5f   : > { %4168 = vmatprep.subr.bf16.mxu1 %v4546_v34 }
 0xe66   : > { %4171 = vmatpush3.bf16.xpose.msk.msra.mxu1 %vm4972_vm4, %v4169_v30 }
 0xe67   : > { %4172 = vmatprep.subr.bf16.mxu1 %v4546_v34 }
 0xe6e   : > { %4175 = vmatpush3.bf16.xpose.msk.msra.mxu1 %vm4972_vm4, %v4173_v60 }
 0xe6f   : > { %4176 = vmatprep.subr.bf16.mxu1 %v4546_v34 }
 0xe76   : > { %4179 = vmatpush3.bf16.xpose.msk.msra.mxu1 %vm4972_vm4, %v4177_v9 }
 0xe77   : > { %4022 = vmatprep.subr.bf16.mxu1 %v4537_v1 }
 0xe7d   : > { %3995 = vmatmul.mubr.msk.f32.vlgmr.msra.gmra.mrb[32].mxu1 %vm1028_vm2, %v2380_v15 }
 0xe7e   : > { %4024 = vmatprep.mubr.msk.bf16.mxu1 %vm4538_vm0, %v4537_v1  ;;  %4023 = vmatpush3.bf16.msra.mxu1 %v2652_v32 }
 0xe7f   : > { %4208 = vmatprep.subr.bf16.mxu1 %v4546_v34 }
 0xf30   : > { %v2374_v33 = vpop.f32.mrb[14].mxu1 }
 0xf31   : > { %v2378_v35 = vpack.c.bf16 %v2374_v33, %v2374_v33  ;;  %v3977_v20 = vpop.f32.mrb[15].mxu1 }
 0xf33   : > { %4025 = vmatmul.mubr.msk.bf16.vlgmr.msra.gmra.mrb[36].mxu1 %vm1028_vm2, %v2378_v35 }
 0xf34   : > { %4063 = vmatprep.mubr.msk.f32.mxu1 %vm4538_vm0, %v4537_v1 }
 0xf50   : > { %v2481_v22 = vpop.f32.mrb[32].mxu1 }
 0xf51   : > { %v3996_v36 = vpop.f32.mrb[33].mxu1  ;;  %v2485_v37 = vsel %vm2293_vm5, %v2481_v22, -inf }
 0xf52   : > { %2486 = vmax.xlane.f32.xlu1 %v2485_v37 }
 0xf63   : > { %4323 = vrot.lane.b32.xlu1 %v5060_v61, %s5412_s0 }
 0xf67   : > { %4328 = vrot.lane.b32.xlu1 %v5062_v63, %s5412_s0 }
 0xf6b   : > { %4338 = vrot.lane.b32.xlu1 %v5069_v7, %s5415_s30 }
 0xf6f   : > { %4348 = vrot.lane.b32.xlu1 %v4985_v55, %s5415_s30 }
 0xf73   : > { %2694 = vrot.lane.b32.xlu1 %v5019_v24, %s5415_s30 }
 0xf77   : > { %4363 = vrot.lane.b32.xlu1 %v5060_v61, %s5415_s30 }
 0xfdf   : > { %v2487_v38 = vpop.xlane.xlu1 %2486 }
 0xfe0   : > { %v2488_v40 = vsub.f32 %v2481_v22, %v2487_v38 }
 0xfe2   : > { %v2489_v42 = vmul.f32 1.442695, %v2488_v40 }
 0xfe3   : > { %v4324_v45 = vpop.permute.xlu1 %4323 }
 0xfe4   : > { %4455 = vpow2.f32 %v2489_v42  ;;  %v4326_v46 = vunpack.i.h.bf16 %v4324_v45  ;;  %v4325_v47 = vunpack.i.l.bf16 %v4324_v45 }
 0xfe6   : > { %v4184_v48 = vpack.c.bf16 %v4326_v46, %v4325_v47 }
 0xfe7   : > { %v4329_v49 = vpop.permute.xlu1 %4328 }
 0xfe8   : > { %v4331_v50 = vunpack.i.h.bf16 %v4329_v49  ;;  %v4330_v51 = vunpack.i.l.bf16 %v4329_v49  ;;  %4185 = vmatpush3.bf16.msra.mxu0 %v4184_v48 }
 0xfe9   : > { %4186 = vmatprep.subr.bf16.mxu0 %v4546_v34 }
 0xfea   : > { %v4187_v52 = vpack.c.bf16 %v4331_v50, %v4330_v51 }
 0xfeb   : > { %v4339_v25 = vpop.permute.xlu1 %4338 }
 0xfec   : > { %4188 = vmatpush3.bf16.msra.mxu0 %v4187_v52  ;;  %v4341_v26 = vunpack.i.h.bf16 %v4339_v25  ;;  %v4340_v39 = vunpack.i.l.bf16 %v4339_v25 }
 0xfed   : > { %4189 = vmatprep.subr.bf16.mxu0 %v4546_v34 }
 0xfee   : > { %v4456_v53 = vpop.eup %4455  ;;  %v4193_v28 = vpack.c.bf16 %v4341_v26, %v4340_v39 }
 0xfef   : > { %v2491_v54 = vsel %vm2293_vm5, %v4456_v53, 0.0  ;;  %v4349_v60 = vpop.permute.xlu1 %4348 }
 0xff0   : > { %2492 = vadd.xlane.f32.xlu0 %v2491_v54  ;;  %v4351_v2 = vunpack.i.h.bf16 %v4349_v60  ;;  %v4350_v5 = vunpack.i.l.bf16 %v4349_v60 }
 0xff2   : > { %v4201_v9 = vpack.c.bf16 %v4351_v2, %v4350_v5 }
 0xff3   : > { %v2695_v20 = vpop.permute.xlu1 %2694 }
 0xff7   : > { %v4364_v50 = vpop.permute.xlu1 %4363 }
 0xff8   : > { %v4366_v54 = vunpack.i.h.bf16 %v4364_v50 }
0x1006   : > { %4333 = vrot.lane.b32.xlu0 %v5064_v0, %s5412_s0  ;;  %v2688_v57 = vpop.f32.mrb[36].mxu1  ;;  %s5416_s0 = smov 104  }
0x1007   : > { %v4026_v4 = vpop.f32.mrb[37].mxu1 }
0x1008   : > { %v2691_v58 = vpop.f32.mrb[38].mxu1 }
0x1009   : > { %v4027_v62 = vpop.f32.mrb[39].mxu1 }
0x100a   : > { %4343 = vrot.lane.b32.xlu0 %v4976_v18, %s5415_s30 }
0x100e   : > { %4353 = vrot.lane.b32.xlu0 %v4991_v56, %s5415_s30 }
0x107d   : > { %v2493_v11 = vpop.xlane.xlu0 %2492 }
0x107e   : > { %4457 = vrcp.f32 %v2493_v11 }
0x1081   : > { %v4334_v13 = vpop.permute.xlu0 %4333 }
0x1082   : > { %v4336_v14 = vunpack.i.h.bf16 %v4334_v13  ;;  %v4335_v15 = vunpack.i.l.bf16 %v4334_v13 }
0x1084   : > { %v4190_v16 = vpack.c.bf16 %v4336_v14, %v4335_v15 }
0x1085   : > { %v4344_v29 = vpop.permute.xlu0 %4343 }
0x1086   : > { %4191 = vmatpush3.bf16.msra.mxu0 %v4190_v16  ;;  %v4346_v30 = vunpack.i.h.bf16 %v4344_v29  ;;  %v4345_v31 = vunpack.i.l.bf16 %v4344_v29 }
0x1087   : > { %4016 = vmatprep.subr.bf16.mxu0 %v4537_v1 }
0x1088   : > { %v4458_v21 = vpop.eup %4457  ;;  %v4197_v59 = vpack.c.bf16 %v4346_v30, %v4345_v31 }
0x1089   : > { %v2495_v23 = vmul.f32 %v4458_v21, %v4456_v53  ;;  %v4354_v10 = vpop.permute.xlu0 %4353 }
0x108a   : > { %v4356_v32 = vunpack.i.h.bf16 %v4354_v10  ;;  %v4355_v33 = vunpack.i.l.bf16 %v4354_v10 }
0x108b   : > { %4014 = vmatmul.mubr.msk.f32.vlgmr.msra.gmra.mrb[32].mxu0 %vm2293_vm5, %v2495_v23 }
0x108c   : > { %4017 = vmatpush3.bf16.msra.mxu0 %v2606_v12  ;;  %4018 = vmatprep.mubr.msk.bf16.mxu0 %vm4538_vm0, %v4537_v1  ;;  %v4205_v35 = vpack.c.bf16 %v4356_v32, %v4355_v33 }
0x108d   : > { %4192 = vmatprep.subr.bf16.mxu0 %v4546_v34 }
0x115e   : > { %v2597_v43 = vpop.f32.mrb[32].mxu0 }
0x115f   : > { %v2601_v27 = vpack.c.bf16 %v2597_v43, %v2597_v43  ;;  %v4015_v3 = vpop.f32.mrb[33].mxu0 }
0x1161   : > { %4019 = vmatmul.mubr.msk.bf16.vlgmr.msra.gmra.mrb[36].mxu0 %vm1028_vm2, %v2601_v27  ;;  %v2193_v27 = vld [vmem:[%s5345_s17 + $0x8] sm:$0xf] }
0x1162   : > { %4195 = vmatpush3.bf16.xpose.msk.msra.mxu0 %vm4972_vm4, %v4193_v28  ;;  %4044 = vmatprep.mubr.msk.f32.mxu0 %vm4538_vm0, %v4537_v1 }
0x1163   : > { %4196 = vmatprep.subr.bf16.mxu0 %v4546_v34 }
0x116a   : > { %4199 = vmatpush3.bf16.xpose.msk.msra.mxu0 %vm4972_vm4, %v4197_v59 }
0x116b   : > { %4200 = vmatprep.subr.bf16.mxu0 %v4546_v34 }
0x1172   : > { %4203 = vmatpush3.bf16.xpose.msk.msra.mxu0 %vm4972_vm4, %v4201_v9 }
0x1173   : > { %4204 = vmatprep.subr.bf16.mxu0 %v4546_v34 }
0x117a   : > { %4207 = vmatpush3.bf16.xpose.msk.msra.mxu0 %vm4972_vm4, %v4205_v35 }
0x117b   : > { %4236 = vmatprep.subr.bf16.mxu0 %v4546_v34 }
0x1181   : > { %4045 = vmatmul.mubr.msk.f32.vlgmr.msra.gmra.mrb[34].mxu0 %vm1028_vm2, %v2695_v20 }
0x1182   : > { %4107 = vmatprep.mubr.msk.f32.mxu0 %vm4538_vm0, %v4537_v1 }
0x1234   : > { %v2642_v22 = vpop.f32.mrb[36].mxu0 }
0x1235   : > { %v5149_v36 = vadd.f32 %v2688_v57, %v2642_v22  ;;  %v4020_v37 = vpop.f32.mrb[37].mxu0  ;;  %v4365_v57 = vunpack.i.l.bf16 %v4364_v50 }
0x1236   : > { %v2645_v38 = vpop.f32.mrb[38].mxu0 }
0x1237   : > { %v4021_v40 = vpop.f32.mrb[39].mxu0 }
0x1254   : > { %v2796_v42 = vpop.f32.mrb[34].mxu0 }
0x1255   : > { %v4046_v45 = vpop.f32.mrb[35].mxu0  ;;  %v2800_v46 = vsel %vm2293_vm5, %v2796_v42, -inf }
0x1256   : > { %2801 = vmax.xlane.f32.xlu0 %v2800_v46 }
0x126c   : > { %4358 = vrot.lane.b32.xlu0 %v5052_v41, %s5415_s30 }
0x1270   : > { %4368 = vrot.lane.b32.xlu0 %v5062_v63, %s5415_s30 }
0x1274   : > { %4378 = vrot.lane.b32.xlu0 %v5069_v7, %s5416_s0 }
0x1278   : > { %4388 = vrot.lane.b32.xlu0 %v4985_v55, %s5416_s0  ;;  %v4212_v55 = vpack.c.bf16 %v4366_v54, %v4365_v57 }
0x127c   : > { %2956 = vrot.lane.b32.xlu0 %v5019_v24, %s5416_s0 }
0x1280   : > { %4398 = vrot.lane.b32.xlu0 %v5052_v41, %s5416_s0 }
0x12e3   : > { %v2802_v47 = vpop.xlane.xlu0 %2801 }
0x12e4   : > { %v2803_v48 = vsub.f32 %v2796_v42, %v2802_v47 }
0x12e6   : > { %v2804_v49 = vmul.f32 1.442695, %v2803_v48 }
0x12e7   : > { %v4359_v51 = vpop.permute.xlu0 %4358 }
0x12e8   : > { %4459 = vpow2.f32 %v2804_v49  ;;  %v4361_v52 = vunpack.i.h.bf16 %v4359_v51  ;;  %v4360_v53 = vunpack.i.l.bf16 %v4359_v51 }
0x12ea   : > { %v4209_v7 = vpack.c.bf16 %v4361_v52, %v4360_v53 }
0x12eb   : > { %v4369_v4 = vpop.permute.xlu0 %4368 }
0x12ec   : > { %4210 = vmatpush3.bf16.msra.mxu1 %v4209_v7  ;;  %v4371_v24 = vunpack.i.h.bf16 %v4369_v4  ;;  %v4370_v58 = vunpack.i.l.bf16 %v4369_v4 }
0x12ed   : > { %4211 = vmatprep.subr.bf16.mxu1 %v4546_v34 }
0x12ee   : > { %v4215_v11 = vpack.c.bf16 %v4371_v24, %v4370_v58 }
0x12ef   : > { %v4379_v62 = vpop.permute.xlu0 %4378 }
0x12f0   : > { %4213 = vmatpush3.bf16.msra.mxu1 %v4212_v55  ;;  %v4380_v29 = vunpack.i.l.bf16 %v4379_v62 }
0x12f1   : > { %4214 = vmatprep.subr.bf16.mxu1 %v4546_v34 }
0x12f2   : > { %v4460_v41 = vpop.eup %4459 }
0x12f3   : > { %v4389_v13 = vpop.permute.xlu0 %4388  ;;  %v2806_v14 = vsel %vm2293_vm5, %v4460_v41, 0.0 }
0x12f4   : > { %2807 = vadd.xlane.f32.xlu1 %v2806_v14  ;;  %4216 = vmatpush3.bf16.msra.mxu1 %v4215_v11  ;;  %v4391_v32 = vunpack.i.h.bf16 %v4389_v13  ;;  %v4390_v33 = vunpack.i.l.bf16 %v4389_v13 }
0x12f5   : > { %4217 = vmatprep.subr.bf16.mxu1 %v4546_v34 }
0x12f6   : > { %v4229_v35 = vpack.c.bf16 %v4391_v32, %v4390_v33  ;;  %v3226_v32 = vld [vmem:[%s5347_s19] sm:$0x3] }
0x12f7   : > { %v2957_v15 = vpop.permute.xlu0 %2956  ;;  %v3243_v33 = vrot.slane %v3226_v32, %v5002_v6 }
0x12fb   : > { %v4399_v16 = vpop.permute.xlu0 %4398 }
0x12fc   : > { %v4401_v19 = vunpack.i.h.bf16 %v4399_v16  ;;  %v4400_v21 = vunpack.i.l.bf16 %v4399_v16 }
0x12fe   : > { %v4237_v23 = vpack.c.bf16 %v4401_v19, %v4400_v21 }
0x1300   : > { %4238 = vmatpush3.bf16.msra.mxu0 %v4237_v23  ;;  %v3678_v23 = vld [vmem:[%s5346_s18] ss:$0 sm:$0xff] }
0x1301   : > { %4239 = vmatprep.subr.bf16.mxu0 %v4546_v34 }
0x1305   : > { %4373 = vrot.lane.b32.xlu1 %v5064_v0, %s5415_s30  ;;  %s838_s30 = sand.u32 1, %s4527_s4  }
0x1306   : > { %s3584_s3 = sshll.u32 %s838_s30, 3  ;;  %s3453_s5 = scalar_lea.sflag [#allocation3], %s838_s30 }
0x1307   : > { %s840_s11 = scalar_lea.vmem [#allocation2], %s3584_s3  ;;  %s4547_s3 = smov [#allocation2]  }
0x1308   : > { %s3470_s29 = sshll.u32 %s840_s11, 4  ;;  %s4477_s6 = sshll.u32 %s4547_s3, 4  ;;  %s3471_s29 = int_to_ptr.vmem [resolvable:$true] %s3470_s29  ;;  %s4478_s6 = int_to_ptr.vmem [resolvable:$false] %s4477_s6 }
0x1309   : > { %4383 = vrot.lane.b32.xlu1 %v4976_v18, %s5416_s0  ;;  %v2913_v18 = vsel %vm1358_vm3, %v2193_v27, 0  ;;  %s4473_s7 = scalar_lea.vmem %s3471_s29, 128  ;;  %s4479_s12 = scalar_lea.vmem %s4478_s6, 256 }
0x130a   : > { %p4474_p11 = scmp.ne.s32.totalorder %s3471_s29, %s4473_s7  ;;  %p4480_p0 = scmp.lt.s32.totalorder %s3471_s29, %s4478_s6 }
0x130b   : > { %p4481_p1 = scmp.lt.s32.totalorder %s4479_s12, %s4473_s7 }
0x130c   : > { %p4475_p12 = pnand %p4474_p11, %p4726_p5 }
0x130d   : > { %4393 = vrot.lane.b32.xlu1 %v4991_v56, %s5416_s0  ;;  %v4381_v56 = vunpack.i.h.bf16 %v4379_v62  ;;  %p4482_p2 = por %p4481_p1, %p4480_p0 }
0x130e   : > { %p4476_p13 = pneg %p4475_p12 }
0x130f   : > { %v4221_v60 = vpack.c.bf16 %v4381_v56, %v4380_v29 }
0x1310   : > { %p4483_p3 = pnand %p4482_p2, %p4476_p13 }
0x1381   : > { %v2808_v12 = vpop.xlane.xlu1 %2807 }
0x1382   : > { %4461 = vrcp.f32 %v2808_v12 }
0x1385   : > { %v4374_v25 = vpop.permute.xlu1 %4373 }
0x1386   : > { %v4376_v26 = vunpack.i.h.bf16 %v4374_v25  ;;  %v4375_v39 = vunpack.i.l.bf16 %v4374_v25 }
0x1388   : > { %v4218_v43 = vpack.c.bf16 %v4376_v26, %v4375_v39 }
0x1389   : > { %v4384_v2 = vpop.permute.xlu1 %4383 }
0x138a   : > { %4219 = vmatpush3.bf16.msra.mxu1 %v4218_v43  ;;  %v4386_v5 = vunpack.i.h.bf16 %v4384_v2  ;;  %v4385_v9 = vunpack.i.l.bf16 %v4384_v2  ;;  %v4430_v2 = vld [vmem:[%s5350_s22 + $0x8] sm:$0xff]  }
0x138b   : > { %4066 = vmatprep.subr.bf16.mxu1 %v4537_v1 }
0x138c   : > { %v4462_v3 = vpop.eup %4461  ;;  %v4225_v10 = vpack.c.bf16 %v4386_v5, %v4385_v9 }
0x138d   : > { %v2810_v28 = vmul.f32 %v4462_v3, %v4460_v41  ;;  %v4394_v20 = vpop.permute.xlu1 %4393 }
0x138e   : > { %v4396_v22 = vunpack.i.h.bf16 %v4394_v20  ;;  %v4395_v37 = vunpack.i.l.bf16 %v4394_v20 }
0x138f   : > { %4064 = vmatmul.mubr.msk.f32.vlgmr.msra.gmra.mrb[34].mxu1 %vm2293_vm5, %v2810_v28 }
0x1390   : > { %4067 = vmatpush3.bf16.msra.mxu1 %v2913_v18  ;;  %4068 = vmatprep.mubr.msk.bf16.mxu1 %vm4538_vm0, %v4537_v1  ;;  %v4233_v38 = vpack.c.bf16 %v4396_v22, %v4395_v37  ;;  %v3248_v22 = vrot.slane %v3226_v32, %v5007_v8 }
0x1391   : > { %4220 = vmatprep.subr.bf16.mxu1 %v4546_v34 }
0x1462   : > { %v2904_v30 = vpop.f32.mrb[34].mxu1 }
0x1463   : > { %v2908_v31 = vpack.c.bf16 %v2904_v30, %v2904_v30  ;;  %v4065_v59 = vpop.f32.mrb[35].mxu1 }
0x1464   : > { %v4427_v59 = vld [vmem:[%s5348_s20] sm:$0xff]  }
0x1465   : > { %4069 = vmatmul.mubr.msk.bf16.vlgmr.msra.gmra.mrb[40].mxu1 %vm1028_vm2, %v2908_v31 }
0x1466   : > { %4223 = vmatpush3.bf16.xpose.msk.msra.mxu1 %vm4972_vm4, %v4221_v60  ;;  %4088 = vmatprep.mubr.msk.f32.mxu1 %vm4538_vm0, %v4537_v1  ;;  %v4429_v60 = vld [vmem:[%s5350_s22] sm:$0xff]  }
0x1467   : > { %4224 = vmatprep.subr.bf16.mxu1 %v4546_v34 }
0x146e   : > { %4227 = vmatpush3.bf16.xpose.msk.msra.mxu1 %vm4972_vm4, %v4225_v10 }
0x146f   : > { %4228 = vmatprep.subr.bf16.mxu1 %v4546_v34 }
0x1476   : > { %4231 = vmatpush3.bf16.xpose.msk.msra.mxu1 %vm4972_vm4, %v4229_v35 }
0x1477   : > { %4232 = vmatprep.subr.bf16.mxu1 %v4546_v34 }
0x147e   : > { %4235 = vmatpush3.bf16.xpose.msk.msra.mxu1 %vm4972_vm4, %v4233_v38 }
0x147f   : > { %4124 = vmatprep.subr.bf16.mxu1 %v4537_v1 }
0x1485   : > { %4089 = vmatmul.mubr.msk.f32.vlgmr.msra.gmra.mrb[44].mxu1 %vm1028_vm2, %v2957_v15 }
0x1486   : > { %4132 = vmatprep.mubr.msk.bf16.mxu1 %vm4538_vm0, %v4537_v1  ;;  %4125 = vmatpush3.bf16.msra.mxu1 %v4429_v60 }
0x1487   : > { %4126 = vmatprep.subr.bf16.mxu1 %v4537_v1 }
0x148a   : > { %4127 = vmatpush3.bf16.msra.mxu1 %v4430_v2 }
0x148b   : > { %4128 = vmatprep.subr.bf16.mxu1 %v4537_v1 }
0x1538   : > { %v2949_v40 = vpop.f32.mrb[40].mxu1 }
0x1539   : > { %v2955_v42 = vadd.f32 %v2949_v40, %v5149_v36  ;;  %v4070_v45 = vpop.f32.mrb[41].mxu1 }
0x153a   : > { %v2952_v46 = vpop.f32.mrb[42].mxu1  ;;  %v4432_v45 = vld [vmem:[%s5350_s22 + $0x18] sm:$0xff]  }
0x153b   : > { %v4071_v47 = vpop.f32.mrb[43].mxu1  ;;  %v3679_v46 = vld [vmem:[%s5349_s21] ss:$0 sm:$0xff] }
0x1558   : > { %v3058_v48 = vpop.f32.mrb[44].mxu1 }
0x1559   : > { %v4090_v49 = vpop.f32.mrb[45].mxu1  ;;  %v3062_v50 = vsel %vm2293_vm5, %v3058_v48, -inf }
0x155a   : > { %3063 = vmax.xlane.f32.xlu1 %v3062_v50 }
0x156b   : > { %4403 = vrot.lane.b32.xlu1 %v5060_v61, %s5416_s0 }
0x156f   : > { %4408 = vrot.lane.b32.xlu1 %v5062_v63, %s5416_s0 }
0x15e7   : > { %v3064_v44 = vpop.xlane.xlu1 %3063 }
0x15e8   : > { %v3065_v51 = vsub.f32 %v3058_v48, %v3064_v44 }
0x15ea   : > { %v3066_v52 = vmul.f32 1.442695, %v3065_v51 }
0x15eb   : > { %v4404_v53 = vpop.permute.xlu1 %4403 }
0x15ec   : > { %4463 = vpow2.f32 %v3066_v52  ;;  %v4406_v36 = vunpack.i.h.bf16 %v4404_v53  ;;  %v4405_v54 = vunpack.i.l.bf16 %v4404_v53 }
0x15ee   : > { %v4240_v57 = vpack.c.bf16 %v4406_v36, %v4405_v54 }
0x15ef   : > { %v4409_v7 = vpop.permute.xlu1 %4408 }
0x15f0   : > { %v4411_v4 = vunpack.i.h.bf16 %v4409_v7  ;;  %v4410_v55 = vunpack.i.l.bf16 %v4409_v7  ;;  %4241 = vmatpush3.bf16.msra.mxu0 %v4240_v57 }
0x15f1   : > { %4242 = vmatprep.subr.bf16.mxu0 %v4546_v34 }
0x15f2   : > { %v4243_v24 = vpack.c.bf16 %v4411_v4, %v4410_v55 }
0x15f4   : > { %4244 = vmatpush3.bf16.msra.mxu0 %v4243_v24 }
0x15f5   : > { %4245 = vmatprep.subr.bf16.mxu0 %v4546_v34  ;;  %v2194_v34 = vld [vmem:[%s5345_s17 + $0xc] sm:$0xf] }
0x15f6   : > { %v4464_v61 = vpop.eup %4463 }
0x15f7   : > { %v3068_v63 = vsel %vm2293_vm5, %v4464_v61, 0.0 }
0x15f8   : > { %3069 = vadd.xlane.f32.xlu0 %v3068_v63 }
0x160e   : > { %4413 = vrot.lane.b32.xlu0 %v5064_v0, %s5416_s0  ;;  %v3175_v0 = vsel %vm1358_vm3, %v2194_v34, 0  ;;  %s3690_s0 = sshll.u32 %s4709_s9, 7 }
0x160f   : > { %s5281_s2 = scalar_lea.hbm %s5354_s26, %s3690_s0 }
0x1685   : > { %v3070_v58 = vpop.xlane.xlu0 %3069 }
0x1686   : > { %4465 = vrcp.f32 %v3070_v58 }
0x1689   : > { %v4414_v62 = vpop.permute.xlu0 %4413 }
0x168a   : > { %v4416_v41 = vunpack.i.h.bf16 %v4414_v62  ;;  %v4415_v11 = vunpack.i.l.bf16 %v4414_v62 }
0x168c   : > { %v4246_v13 = vpack.c.bf16 %v4416_v41, %v4415_v11 }
0x168e   : > { %4247 = vmatpush3.bf16.msra.mxu0 %v4246_v13 }
0x168f   : > { %4110 = vmatprep.subr.bf16.mxu0 %v4537_v1 }
0x1690   : > { %v4466_v14 = vpop.eup %4465 }
0x1691   : > { %v3072_v15 = vmul.f32 %v4466_v14, %v4464_v61  ;;  %v3402_v14 = vld [vmem:[%s5352_s24] sm:$0x3] }
0x1693   : > { %4108 = vmatmul.mubr.msk.f32.vlgmr.msra.gmra.mrb[40].mxu0 %vm2293_vm5, %v3072_v15  ;;  %v3419_v15 = vrot.slane %v3402_v14, %v5002_v6 }
0x1694   : > { %4112 = vmatprep.mubr.msk.bf16.mxu0 %vm4538_vm0, %v4537_v1  ;;  %4111 = vmatpush3.bf16.msra.mxu0 %v3175_v0 }
0x1695   : > { %4116 = vmatprep.subr.bf16.mxu0 %v4537_v1 }
0x1766   : > { %v3166_v16 = vpop.f32.mrb[40].mxu0 }
0x1767   : > { %v3170_v19 = vpack.c.bf16 %v3166_v16, %v3166_v16  ;;  %v4109_v21 = vpop.f32.mrb[41].mxu0  ;;  %v3424_v16 = vrot.slane %v3402_v14, %v5007_v8 }
0x1769   : > { %4113 = vmatmul.mubr.msk.bf16.vlgmr.msra.gmra.mrb[44].mxu0 %vm1028_vm2, %v3170_v19 }
0x176a   : > { %4120 = vmatprep.mubr.msk.bf16.mxu0 %vm4538_vm0, %v4537_v1  ;;  %4117 = vmatpush3.bf16.msra.mxu0 %v4427_v59 }
0x176b   : > { %4118 = vmatprep.subr.bf16.mxu0 %v4537_v1 }
0x183c   : > { %v3211_v12 = vpop.f32.mrb[44].mxu0 }
0x183d   : > { %v3217_v25 = vadd.f32 %v3211_v12, %v2955_v42  ;;  %v4114_v26 = vpop.f32.mrb[45].mxu0  ;;  %v4431_v42 = vld [vmem:[%s5350_s22 + $0x10] sm:$0xff]  }
0x183e   : > { %v3214_v39 = vpop.f32.mrb[46].mxu0  ;;  %4129 = vmatpush3.bf16.msra.mxu1 %v4431_v42 }
0x183f   : > { %v3224_v43 = vadd.f32 %v3678_v23, %v3217_v25  ;;  %v4115_v27 = vpop.f32.mrb[47].mxu0  ;;  %4130 = vmatprep.subr.bf16.mxu1 %v4537_v1  ;;  %v3683_v1 = vld [vmem:[%s5351_s23] ss:$0 sm:$0xff] }
0x1841   : > { %v3225_v3 = vadd.f32 %v3224_v43, %v5011_v17  ;;  %v4428_v17 = vld [vmem:[%s5348_s20 + $0x8] sm:$0xff]  }
0x1842   : > { %4119 = vmatpush3.bf16.msra.mxu0 %v4428_v17  ;;  %4131 = vmatpush3.bf16.msra.mxu1 %v4432_v45 }
0x1843   : > { %v3227_v28 = vsel %vm909_vm1, %v3225_v3, 0.0 }
0x1844   : > { %3228 = vadd.xlane.f32.xlu1 %v3227_v28 }
0x18d1   : > { %v3229_v18 = vpop.xlane.xlu1 %3228 }
0x18d2   : > { %v3230_v56 = vmul.f32 0.03125, %v3229_v18 }
0x18d4   : > { %v3231_v29 = vsub.f32 %v3225_v3, %v3230_v56 }
0x18d6   : > { %v3232_v30 = vmul.f32 %v3231_v29, %v3231_v29 }
0x18d8   : > { %v3233_v31 = vsel %vm909_vm1, %v3232_v30, 0.0 }
0x18d9   : > { %3234 = vadd.xlane.f32.xlu0 %v3233_v31 }
0x1966   : > { %v3235_v5 = vpop.xlane.xlu0 %3234 }
0x1967   : > { %v3236_v9 = vmul.f32 0.03125, %v3235_v5 }
0x1969   : > { %v3237_v10 = vadd.f32 1e-05, %v3236_v9 }
0x196b   : > { %4467 = vrsqrt.f32 %v3237_v10 }
0x1975   : > { %v4468_v35 = vpop.eup %4467 }
0x1976   : > { %v3239_v20 = vmul.f32 %v4468_v35, %v3231_v29 }
0x1978   : > { %v3244_v37 = vmul.f32 %v3243_v33, %v3239_v20 }
0x197a   : > { %v3249_v38 = vadd.f32 %v3248_v22, %v3244_v37 }
0x197c   : > { %v3255_v40 = vpack.c.bf16 %v3249_v38, %v3249_v38 }
0x197e   : > { %4121 = vmatmul.mubr.msk.bf16.vlgmr.msra.gmra.mrb[48].mxu0 %vm909_vm1, %v3255_v40 }
0x1a51   : > { %v3311_v47 = vpop.f32.mrb[48].mxu0 }
0x1a52   : > { %v3312_v48 = vadd.f32 %v3679_v46, %v3311_v47  ;;  %v4122_v49 = vpop.f32.mrb[49].mxu0 }
0x1a53   : > { %v3314_v50 = vpop.f32.mrb[50].mxu0 }
0x1a54   : > { %v3317_v44 = vmax.f32 %v3312_v48, 0.0  ;;  %v4123_v51 = vpop.f32.mrb[51].mxu0 }
0x1a56   : > { %v3327_v52 = vpack.c.bf16 %v3317_v44, %v3317_v44 }
0x1a58   : > { %4133 = vmatmul.mubr.msk.bf16.vlgmr.msra.gmra.mrb[48].mxu1 %vm2293_vm5, %v3327_v52 }
0x1b2b   : > { %v3395_v53 = vpop.f32.mrb[48].mxu1 }
0x1b2c   : > { %v3396_v36 = vadd.f32 %v3683_v1, %v3395_v53  ;;  %v4134_v54 = vpop.f32.mrb[49].mxu1 }
0x1b2d   : > { %v3398_v57 = vpop.f32.mrb[50].mxu1 }
0x1b2e   : > { %v4135_v7 = vpop.f32.mrb[51].mxu1  ;;  %v3401_v4 = vadd.f32 %v3396_v36, %v3249_v38 }
0x1b30   : > { %v3403_v55 = vsel %vm909_vm1, %v3401_v4, 0.0 }
0x1b31   : > { %3404 = vadd.xlane.f32.xlu0 %v3403_v55 }
0x1bbe   : > { %v3405_v24 = vpop.xlane.xlu0 %3404 }
0x1bbf   : > { %v3406_v61 = vmul.f32 0.03125, %v3405_v24 }
0x1bc1   : > { %v3407_v63 = vsub.f32 %v3401_v4, %v3406_v61 }
0x1bc3   : > { %v3408_v58 = vmul.f32 %v3407_v63, %v3407_v63 }
0x1bc5   : > { %v3409_v62 = vsel %vm909_vm1, %v3408_v58, 0.0 }
0x1bc6   : > { %3410 = vadd.xlane.f32.xlu1 %v3409_v62 }
0x1c53   : > { %v3411_v41 = vpop.xlane.xlu1 %3410 }
0x1c54   : > { %v3412_v11 = vmul.f32 0.03125, %v3411_v41 }
0x1c56   : > { %v3413_v13 = vadd.f32 1e-05, %v3412_v11 }
0x1c58   : > { %4469 = vrsqrt.f32 %v3413_v13 }
0x1c62   : > { %v4470_v34 = vpop.eup %4469 }
0x1c63   : > { %v3415_v0 = vmul.f32 %v4470_v34, %v3407_v63 }
0x1c65   : > { %v3420_v19 = vmul.f32 %v3419_v15, %v3415_v0 }
0x1c67   : > { %v3425_v21 = vadd.f32 %v3424_v16, %v3420_v19 }
0x1c69   : > { %v3428_v23 = vsel %vm909_vm1, %v3425_v21, 0.0  ;;  %3426 = vst.msk [vmem:[%s840_s11] sm:$0xff] %vm909_vm1, %v3425_v21 }
0x1c6a   : > { %3429 = vadd.xlane.f32.xlu0 %v3428_v23 }
0x1cf7   : > { %v3430_v12 = vpop.xlane.xlu0 %3429 }
0x1cf8   : > { %v3431_v25 = vmul.f32 0.03125, %v3430_v12 }
0x1cfa   : > { %v3432_v26 = vsub.f32 %v3425_v21, %v3431_v25 }
0x1cfc   : > { %v3433_v39 = vmul.f32 %v3432_v26, %v3432_v26 }
0x1cfe   : > { %v3434_v43 = vsel %vm909_vm1, %v3433_v39, 0.0 }
0x1cff   : > { %3435 = vadd.xlane.f32.xlu1 %v3434_v43 }
0x1d00   : > { %4486 = shalt.err (!%p4483_p3)
}
0x1d01   : > { %s4487_s9 = scalar_lea.hbm %s5281_s2, 128  ;;  %s4491_s0 = scalar_lea.hbm %s5354_s26, 256 }
0x1d02   : > { %p4488_p4 = scmp.ne.s32.totalorder %s5281_s2, %s4487_s9  ;;  %p4492_p9 = scmp.lt.u32.totalorder %s5281_s2, %s5354_s26 }
0x1d03   : > { %p4493_p10 = scmp.lt.u32.totalorder %s4491_s0, %s4487_s9  ;;  %p4495_p12 = scmp.lt.u32.totalorder %s4487_s9, %s5281_s2 }
0x1d04   : > { %p4489_p7 = pnand %p4488_p4, %p4726_p5 }
0x1d05   : > { %p4494_p11 = por %p4493_p10, %p4492_p9 }
0x1d06   : > { %p4490_p8 = pneg %p4489_p7 }
0x1d07   : > { %p4496_p13 = por %p4495_p12, %p4494_p11 }
0x1d09   : > { %p4497_p0 = pnand %p4496_p13, %p4490_p8 }
0x1d0b   : > { %4500 = shalt.err (!%p4497_p0)
}
0x1d0c   : > { %4248 = dma.vmem_to_hbm [thread:$0]  (%p4726_p5), %s3471_s29, 128, %s5281_s2, %s3453_s5   ;;  %v3427_v18 = vld [vmem:[%s5353_s25] sm:$0x3] }
0x1d0d   : > { %v3444_v56 = vrot.slane %v3427_v18, %v5002_v6  ;;  %v3449_v30 = vrot.slane %v3427_v18, %v5007_v8  ;;  %s5417_s7 = sshll.u32 %s4751_s10, 3 }
0x1d0e   : > { %s864_s29 = scalar_lea.vmem %s5355_s27, %s5417_s7 }
0x1d8c   : > { %v3436_v27 = vpop.xlane.xlu1 %3435 }
0x1d8d   : > { %v3437_v3 = vmul.f32 0.03125, %v3436_v27 }
0x1d8f   : > { %v3438_v28 = vadd.f32 1e-05, %v3437_v3 }
0x1d91   : > { %4471 = vrsqrt.f32 %v3438_v28 }
0x1d9b   : > { %v4472_v29 = vpop.eup %4471 }
0x1d9c   : > { %v3440_v31 = vmul.f32 %v4472_v29, %v3432_v26 }
0x1d9e   : > { %v3445_v59 = vmul.f32 %v3444_v56, %v3440_v31 }
0x1da0   : > { %v3450_v17 = vadd.f32 %v3449_v30, %v3445_v59 }
0x1da2   : > { %3451 = vst.msk [vmem:[%s864_s29] sm:$0xff] %vm909_vm1, %v3450_v17 }
0x1da3 PF: > { %s5418_s2 = sld [smem:[#allocation7_spill]]  ;;  %s5419_s5 = sld [smem:[#allocation5_spill]] }
0x1da9   : > { %p4254_p5 = scmp.ge.s32.totalorder %s5418_s2, 2  ;;  %s3485_s30 = sand.u32 1, %s5419_s5  }
0x1daa   : > { %s3486_s11 = scalar_lea.sflag [#allocation3], %s3485_s30 }
0x1dab   : > { %p4251_p1 = pnand %p4254_p5, %p4730_p6 }
0x1dad   : > { %4518 = dma.done.wait (!%p4251_p1), %s3486_s11, 128  }
0x1dae   : > { %4520 = vsyncadd (!%p4251_p1), %s3486_s11, 4294967168  ;;  %s5421_s30 = sld [smem:[#allocation8_spill]]  ;;  %s5422_s10 = sld [smem:[#allocation6_spill]] }
0x1daf   : > { %s5423_s8 = sld [smem:[#allocation9_spill]]  ;;  %s5424_s7 = smov %s4527_s4 }
0x1db4   : > { %p38_p2 = scmp.ge.s32.totalorder %s5421_s30, 4   ;;  %s5425_s4 = smov %s5422_s10 }
0x1db6   :  { %40 = sbr.rel (!%p38_p2) target bundleno = 17 (0x11), region = 177 }
0x1dbd   :  { %3498 = vsyncpa [#allocation3], 1 }
0x1dbe   :  { %3500 = vsyncpa [#allocation3 + $0x1], 1 }

// kernel: predictor_forward.7
= control target key start
LH: loop header
LB: loop body
LE: loop exit
PB: predicated region body
PF: predicated region fallthrough
CT: control target
= control target key end

     0   :  { %s4554_s29 = smov 0   ;;  %s5512_s0 = inlined_call_operand.vmem [shape: f32[2,64,32], index: 0, kind: input, shape index: {}]   ;;  %s5513_s1 = inlined_call_operand.vmem [shape: f32[2,64,32], index: 1, kind: input, shape index: {}]   ;;  %s5514_s2 = inlined_call_operand.vmem [shape: bf16[32,64], index: 2, kind: input, shape index: {}]   ;;  %s5515_s3 = inlined_call_operand.vmem [shape: f32[1,64], index: 3, kind: input, shape index: {}]   ;;  %s5516_s4 = inlined_call_operand.vmem [shape: bf16[32,32], index: 4, kind: input, shape index: {}]   ;;  %s5517_s5 = inlined_call_operand.vmem [shape: f32[1,32], index: 5, kind: input, shape index: {}]   ;;  %s5518_s6 = inlined_call_operand.vmem [shape: bf16[32,32], index: 6, kind: input, shape index: {}]   ;;  %s5519_s7 = inlined_call_operand.vmem [shape: f32[1,32], index: 7, kind: input, shape index: {}]   ;;  %s5520_s8 = inlined_call_operand.vmem [shape: f32[2,32], index: 8, kind: input, shape index: {}]   ;;  %s5521_s9 = inlined_call_operand.vmem [shape: bf16[32,64], index: 9, kind: input, shape index: {}]   ;;  %s5522_s10 = inlined_call_operand.vmem [shape: f32[1,64], index: 10, kind: input, shape index: {}]   ;;  %s5523_s11 = inlined_call_operand.vmem [shape: bf16[64,32], index: 11, kind: input, shape index: {}]   ;;  %s5524_s12 = inlined_call_operand.vmem [shape: f32[1,32], index: 12, kind: input, shape index: {}]   ;;  %s5525_s13 = inlined_call_operand.vmem [shape: f32[2,32], index: 13, kind: input, shape index: {}]   ;;  %s5526_s14 = inlined_call_operand.vmem [shape: f32[2,64,32], index: 14, kind: output, shape index: {}]  }
   0x1 LB: > { %s3294_s30 = sadd.s32 4294967295, %s4470_s29   ;;  %p3298_p0 = scmp.ge.s32.totalorder %s4470_s29, 1  ;;  %s4470_s29 = sphi %s4554_s29, %s24_s29  }
   0x2   : > { %p422_p1 = scmp.lt.s32.totalorder %s4470_s29, 3 }
   0x4   : > { %p423_p2 = pnand %p3298_p0, %p422_p1 }
   0x5   : > { %v4286_v0 = vld [vmem:[%s5514_s2] sm:$0xff] (!%p423_p2)   ;;  %p473_p3 = scmp.lt.s32.totalorder (!%p423_p2), %s3294_s30, 1  ;;  %v4287_v1 = vld [vmem:[%s5514_s2 + $0x8] sm:$0xff] (!%p423_p2)   ;;  %vm540_vm0 = vcmask (!%p423_p2), 261120   ;;  %vm751_vm1 = vcmask (!%p423_p2), 64512   ;;  %s4472_s28 = smov (!%p423_p2), 96  }
   0x6   : > { %426 = sbr.rel (%p423_p2) target bundleno = 3603 (0xe13), region = 76  ;;  %3627 = vmatprep.subr.bf16.mxu0 (!%p423_p2), %v4286_v0  ;;  %v3305_v30 = vld [vmem:[%s5515_s3] ss:$0 sm:$0xff] (!%p423_p2)  ;;  %v4289_v52 = vld [vmem:[%s5516_s4 + $0x8] sm:$0xff] (!%p423_p2)   ;;  %vm4665_vm2 = vmpackc.low (!%p423_p2), %vm751_vm1, %vm751_vm1  ;;  %vm889_vm3 = vcmask (!%p423_p2), 523264   ;;  %s4473_s21 = smov (!%p423_p2), 88  }
   0x7   : > { %3628 = vmatpush3.bf16.msra.mxu0 (!%p423_p2), %v4286_v0  ;;  %v4288_v51 = vld [vmem:[%s5516_s4] sm:$0xff] (!%p423_p2)   ;;  %s4474_s23 = smov (!%p423_p2), 120   ;;  %s4475_s24 = smov (!%p423_p2), 80   ;;  %vm1545_vm4 = vcmask (!%p423_p2), 1043456  }
   0x8   : > { %3629 = vmatprep.subr.bf16.mxu0 (!%p423_p2), %v4287_v1  ;;  %3639 = vmatprep.subr.bf16.mxu1 (!%p423_p2), %v4288_v51  ;;  %s4477_s26 = smov (!%p423_p2), 72   ;;  %s4478_s27 = smov (!%p423_p2), 104  }
   0x9   : > { %3640 = vmatpush3.bf16.msra.mxu1 (!%p423_p2), %v4288_v51 }
   0xa   : > { %3641 = vmatprep.subr.bf16.mxu1 (!%p423_p2), %v4289_v52 }
   0xb   : > { %3630 = vmatpush3.bf16.msra.mxu0 (!%p423_p2), %v4287_v1 }
   0xd   : > { %s5531_s30 = smov (!%p473_p3, %s3294_s30), 1  ;;  %3642 = vmatpush3.bf16.msra.mxu1 %v4289_v52 }
   0xe   : > { %s4568_s19 = sshll.u32 %s5531_s30, 6 }
   0xf   : > { %s4574_s22 = scalar_lea.vmem %s5512_s0, %s4568_s19  ;;  %s482_s25 = scalar_lea.vmem %s5513_s1, %s4568_s19 }
  0x10   : > { %v4581_v2 = vld [vmem:[%s4574_s22] sm:$0xff]  ;;  %v4584_v3 = vld [vmem:[%s4574_s22 + $0x8] sm:$0xff]  ;;  %v4588_v7 = vld [vmem:[%s4574_s22 + $0x10] sm:$0xff]  ;;  %s5485_s17 = scalar_lea.vmem %s5526_s14, %s4568_s19 }
  0x11   : > { %v497_v4 = vld [vmem:[%s482_s25] sm:$0xff]  ;;  %v498_v5 = vld [vmem:[%s482_s25 + $0x8] sm:$0xff]  ;;  %v4591_v8 = vld [vmem:[%s4574_s22 + $0x18] sm:$0xff]  ;;  %v623_v53 = vpack.c.bf16 %v4584_v3, %v4581_v2 }
  0x12   : > { %v505_v6 = vadd.f32 %v497_v4, %v4581_v2  ;;  %v506_v9 = vadd.f32 %v498_v5, %v4584_v3  ;;  %v499_v10 = vld [vmem:[%s482_s25 + $0x10] sm:$0xff]  ;;  %v500_v11 = vld [vmem:[%s482_s25 + $0x18] sm:$0xff]  ;;  %v4595_v12 = vld [vmem:[%s4574_s22 + $0x20] sm:$0xff]  ;;  %v624_v54 = vpack.c.bf16 %v4591_v8, %v4588_v7 }
  0x13   : > { %v507_v13 = vadd.f32 %v499_v10, %v4588_v7  ;;  %v508_v14 = vadd.f32 %v500_v11, %v4591_v8  ;;  %v494_v15 = vld [vmem:[%s4574_s22 + $0x28] sm:$0xff]  ;;  %v501_v16 = vld [vmem:[%s482_s25 + $0x20] sm:$0xff]  ;;  %v495_v21 = vld [vmem:[%s4574_s22 + $0x30] sm:$0xff]  ;;  %3643 = vmatprep.mubr.msk.bf16.mxu1 %vm540_vm0, %v623_v53 }
  0x14   : > { %v502_v17 = vld [vmem:[%s482_s25 + $0x28] sm:$0xff]  ;;  %v518_v18 = vpack.c.bf16 %v506_v9, %v505_v6  ;;  %v509_v19 = vadd.f32 %v501_v16, %v4595_v12  ;;  %v496_v22 = vld [vmem:[%s4574_s22 + $0x38] sm:$0xff]  ;;  %v503_v23 = vld [vmem:[%s482_s25 + $0x30] sm:$0xff]  ;;  %v625_v55 = vpack.c.bf16 %v494_v15, %v4595_v12  ;;  %3644 = vmatmul.mubr.msk.bf16.vlgmr.msra.gmra.mrb[0].mxu1 %vm540_vm0, %v624_v54 }
  0x15   : > { %v510_v20 = vadd.f32 %v502_v17, %v494_v15  ;;  %v519_v24 = vpack.c.bf16 %v508_v14, %v507_v13  ;;  %v504_v25 = vld [vmem:[%s482_s25 + $0x38] sm:$0xff]  ;;  %v511_v27 = vadd.f32 %v503_v23, %v495_v21  ;;  %v626_v56 = vpack.c.bf16 %v496_v22, %v495_v21  ;;  %s4476_s25 = smov 112  }
  0x16   : > { %3631 = vmatprep.mubr.msk.bf16.mxu0 %vm540_vm0, %v518_v18  ;;  %v512_v28 = vadd.f32 %v504_v25, %v496_v22  ;;  %3647 = vmatprep.mubr.msk.bf16.mxu1 %vm540_vm0, %v625_v55 }
  0x17   : > { %v520_v26 = vpack.c.bf16 %v510_v20, %v509_v19  ;;  %3632 = vmatmul.mubr.msk.bf16.vlgmr.msra.gmra.mrb[0].mxu0 %vm540_vm0, %v519_v24 }
  0x18   : > { %v521_v29 = vpack.c.bf16 %v512_v28, %v511_v27 }
  0x19   : > { %3635 = vmatprep.mubr.msk.bf16.mxu0 %vm540_vm0, %v520_v26  ;;  %v3312_v26 = vld [vmem:[%s5517_s5] ss:$0 sm:$0xff] }
  0x1c   : > { %3648 = vmatmul.mubr.msk.bf16.gmra.mrb[4].mxu1 %vm540_vm0, %v626_v56 }
  0x1f   : > { %3636 = vmatmul.mubr.msk.bf16.gmra.mrb[4].mxu0 %vm540_vm0, %v521_v29 }
  0xe7   : > { %v3645_v10 = vpop.f32.mrb[0].mxu1 }
  0xe8   : > { %v691_v27 = vpop.f32.mrb[1].mxu1 }
  0xe9   : > { %v3646_v28 = vpop.f32.mrb[2].mxu1 }
  0xea   : > { %v3633_v31 = vpop.f32.mrb[0].mxu0 }
  0xeb   : > { %v587_v32 = vpop.f32.mrb[1].mxu0  ;;  %v4622_v39 = vadd.f32 %v3633_v31, %v3305_v30  ;;  %v4722_v31 = vadd.f32 %v3312_v26, %v691_v27 }
  0xec   : > { %v4610_v33 = vadd.f32 %v3305_v30, %v587_v32  ;;  %v3634_v34 = vpop.f32.mrb[2].mxu0 }
  0xed   : > { %v590_v35 = vpop.f32.mrb[3].mxu0  ;;  %v4616_v37 = vadd.f32 %v3634_v34, %v3305_v30 }
  0xee   : > { %v4612_v36 = vadd.f32 %v3305_v30, %v590_v35  ;;  %3667 = vmatprep.mubr.msk.f32.mxu0 %vm751_vm1, %v4610_v33  ;;  %v4728_v35 = vadd.f32 %v3645_v10, %v3312_v26 }
  0xef   : > { %v4629_v44 = vpack.i.bf16 %v4616_v37, %v4622_v39 }
  0xf0   : > { %v4620_v38 = vpack.i.bf16 %v4612_v36, %v4610_v33 }
  0xf2   : > { %4147 = vrot.lane.b32.xlu0 %v4620_v38, %s4472_s28  ;;  %v3637_v40 = vpop.f32.mrb[4].mxu0 }
  0xf3   : > { %v603_v41 = vpop.f32.mrb[5].mxu0  ;;  %v4631_v46 = vadd.f32 %v3637_v40, %v3305_v30  ;;  %v4730_v40 = vadd.f32 %v3646_v28, %v3312_v26 }
  0xf4   : > { %v4625_v42 = vadd.f32 %v3305_v30, %v603_v41  ;;  %v3638_v43 = vpop.f32.mrb[6].mxu0 }
  0xf5   : > { %v606_v45 = vpop.f32.mrb[7].mxu0  ;;  %v4633_v47 = vadd.f32 %v3638_v43, %v3305_v30  ;;  %v3971_v52 = vpack.c.bf16 %v4730_v40, %v4728_v35 }
  0xf6   : > { %v4635_v48 = vadd.f32 %v3305_v30, %v606_v45  ;;  %4152 = vrot.lane.b32.xlu0 %v4629_v44, %s4472_s28  ;;  %v694_v30 = vpop.f32.mrb[3].mxu1 }
  0xf7   : > { %v4645_v50 = vpack.i.bf16 %v4633_v47, %v4631_v46  ;;  %v4724_v32 = vadd.f32 %v3312_v26, %v694_v30  ;;  %v3649_v41 = vpop.f32.mrb[4].mxu1 }
  0xf8   : > { %v4640_v49 = vpack.i.bf16 %v4635_v48, %v4625_v42  ;;  %v707_v43 = vpop.f32.mrb[5].mxu1  ;;  %v4738_v55 = vadd.f32 %v3649_v41, %v3312_v26 }
  0xf9   : > { %v3967_v34 = vpack.c.bf16 %v4724_v32, %v4722_v31  ;;  %v4732_v45 = vadd.f32 %v3312_v26, %v707_v43  ;;  %v3650_v51 = vpop.f32.mrb[6].mxu1 }
  0xfa   : > { %4157 = vrot.lane.b32.xlu1 %v4640_v49, %s4472_s28  ;;  %v710_v53 = vpop.f32.mrb[7].mxu1  ;;  %v4740_v56 = vadd.f32 %v3650_v51, %v3312_v26 }
  0xfb   : > { %3968 = vmatprep.subr.bf16.mxu1 %v3967_v34  ;;  %v4736_v54 = vadd.f32 %v3312_v26, %v710_v53 }
  0xfc   : > { %3970 = vmatpush3.bf16.msra.mxu1 %v3967_v34 }
  0xfd   : > { %3972 = vmatprep.subr.bf16.mxu1 %v3971_v52 }
  0xfe   : > { %4162 = vrot.lane.b32.xlu1 %v4645_v50, %s4472_s28 }
 0x100   : > { %3974 = vmatpush3.bf16.msra.mxu1 %v3971_v52 }
 0x164   : > { %v4148_v57 = vpop.permute.xlu0 %4147 }
 0x165   : > { %v4150_v58 = vunpack.i.h.bf16 %v4148_v57  ;;  %v4149_v59 = vunpack.i.l.bf16 %v4148_v57  ;;  %v3975_v57 = vpack.c.bf16 %v4736_v54, %v4732_v45 }
 0x167   : > { %v3943_v61 = vpack.c.bf16 %v4150_v58, %v4149_v59  ;;  %3976 = vmatprep.subr.bf16.mxu1 %v3975_v57  ;;  %v3979_v58 = vpack.c.bf16 %v4740_v56, %v4738_v55 }
 0x168   : > { %v4153_v62 = vpop.permute.xlu0 %4152  ;;  %3978 = vmatpush3.bf16.msra.mxu1 %v3975_v57 }
 0x169   : > { %v4155_v63 = vunpack.i.h.bf16 %v4153_v62  ;;  %v4154_v0 = vunpack.i.l.bf16 %v4153_v62  ;;  %3945 = vmatprep.subr.msk.bf16.mxu0 %vm4665_vm2, %v3943_v61  ;;  %3980 = vmatprep.subr.bf16.mxu1 %v3979_v58 }
 0x16a   : > { %3948 = vmatpush3.bf16.xpose.msk.msra.mxu0 %vm4665_vm2, %v3943_v61 }
 0x16b   : > { %v3949_v1 = vpack.c.bf16 %v4155_v63, %v4154_v0 }
 0x16c   : > { %v4158_v2 = vpop.permute.xlu1 %4157  ;;  %3982 = vmatpush3.bf16.msra.mxu1 %v3979_v58 }
 0x16d   : > { %v4160_v3 = vunpack.i.h.bf16 %v4158_v2  ;;  %v4159_v4 = vunpack.i.l.bf16 %v4158_v2  ;;  %3951 = vmatprep.subr.msk.bf16.mxu0 %vm4665_vm2, %v3949_v1 }
 0x16f   : > { %v3955_v5 = vpack.c.bf16 %v4160_v3, %v4159_v4 }
 0x170   : > { %v4163_v6 = vpop.permute.xlu1 %4162 }
 0x171   : > { %v4165_v7 = vunpack.i.h.bf16 %v4163_v6  ;;  %v4164_v8 = vunpack.i.l.bf16 %v4163_v6 }
 0x172   : > { %3954 = vmatpush3.bf16.xpose.msk.msra.mxu0 %vm4665_vm2, %v3949_v1 }
 0x173   : > { %3957 = vmatprep.subr.msk.bf16.mxu0 %vm4665_vm2, %v3955_v5  ;;  %v3961_v9 = vpack.c.bf16 %v4165_v7, %v4164_v8 }
 0x17a   : > { %3960 = vmatpush3.bf16.xpose.msk.msra.mxu0 %vm4665_vm2, %v3955_v5 }
 0x17b   : > { %3963 = vmatprep.subr.msk.bf16.mxu0 %vm4665_vm2, %v3961_v9 }
 0x182   : > { %3966 = vmatpush3.bf16.xpose.msk.msra.mxu0 %vm4665_vm2, %v3961_v9 }
 0x189   : > { %3668 = vmatmul.mubr.msk.f32.vlgmr.msra.gmra.mrb[8].mxu0 %vm751_vm1, %v4612_v36 }
 0x18a   : > { %3670 = vmatprep.mubr.msk.f32.mxu0 %vm751_vm1, %v4622_v39 }
 0x18d   : > { %3671 = vmatmul.mubr.msk.f32.gmra.mrb[10].mxu0 %vm751_vm1, %v4616_v37 }
 0x18e   : > { %3673 = vmatprep.mubr.msk.f32.mxu0 %vm751_vm1, %v4625_v42 }
 0x191   : > { %3674 = vmatmul.mubr.msk.f32.gmra.mrb[12].mxu0 %vm751_vm1, %v4635_v48 }
 0x192   : > { %3676 = vmatprep.mubr.msk.f32.mxu0 %vm751_vm1, %v4631_v46 }
 0x195   : > { %3677 = vmatmul.mubr.msk.f32.gmra.mrb[14].mxu0 %vm751_vm1, %v4633_v47 }
 0x25c   : > { %v3669_v11 = vpop.f32.mrb[8].mxu0 }
 0x25d   : > { %v850_v12 = vpop.f32.mrb[9].mxu0  ;;  %v893_v13 = vsel %vm889_vm3, %v3669_v11, -inf }
 0x25e   : > { %894 = vmax.xlane.f32.xlu1 %v893_v13  ;;  %v890_v14 = vsel %vm889_vm3, %v850_v12, -inf }
 0x25f   : > { %891 = vmax.xlane.f32.xlu0 %v890_v14 }
 0x260   : > { %v4701_v15 = vpop.f32.mrb[10].mxu0 }
 0x261   : > { %v860_v16 = vpop.f32.mrb[11].mxu0  ;;  %v899_v20 = vsel %vm889_vm3, %v4701_v15, -inf }
 0x262   : > { %v896_v17 = vsel %vm889_vm3, %v860_v16, -inf }
 0x263   : > { %897 = vmax.xlane.f32.xlu0 %v896_v17 }
 0x264   : > { %v4704_v18 = vpop.f32.mrb[12].mxu0 }
 0x265   : > { %v870_v19 = vpop.f32.mrb[13].mxu0  ;;  %v905_v24 = vsel %vm889_vm3, %v4704_v18, -inf }
 0x266   : > { %v902_v21 = vsel %vm889_vm3, %v870_v19, -inf }
 0x267   : > { %900 = vmax.xlane.f32.xlu0 %v899_v20  ;;  %903 = vmax.xlane.f32.xlu1 %v902_v21 }
 0x268   : > { %v4709_v22 = vpop.f32.mrb[14].mxu0 }
 0x269   : > { %v4711_v23 = vpop.f32.mrb[15].mxu0  ;;  %v911_v29 = vsel %vm889_vm3, %v4709_v22, -inf }
 0x26a   : > { %v908_v25 = vsel %vm889_vm3, %v4711_v23, -inf }
 0x26b   : > { %906 = vmax.xlane.f32.xlu0 %v905_v24  ;;  %909 = vmax.xlane.f32.xlu1 %v908_v25 }
 0x26f   : > { %912 = vmax.xlane.f32.xlu0 %v911_v29 }
 0x27c   : > { %4167 = vrot.lane.b32.xlu1 %v4620_v38, %s4473_s21 }
 0x2eb   : > { %v895_v59 = vpop.xlane.xlu1 %894 }
 0x2ec   : > { %v915_v61 = vsub.f32 %v3669_v11, %v895_v59  ;;  %v892_v62 = vpop.xlane.xlu0 %891 }
 0x2ed   : > { %v914_v63 = vsub.f32 %v850_v12, %v892_v62 }
 0x2ee   : > { %v924_v0 = vmul.f32 1.442695, %v915_v61 }
 0x2ef   : > { %v922_v1 = vmul.f32 1.442695, %v914_v63 }
 0x2f0   : > { %4296 = vpow2.f32 %v924_v0  ;;  %v898_v2 = vpop.xlane.xlu0 %897 }
 0x2f1   : > { %4298 = vpow2.f32 %v922_v1  ;;  %v916_v3 = vsub.f32 %v860_v16, %v898_v2 }
 0x2f3   : > { %v926_v4 = vmul.f32 1.442695, %v916_v3 }
 0x2f4   : > { %v901_v5 = vpop.xlane.xlu0 %900  ;;  %v904_v6 = vpop.xlane.xlu1 %903 }
 0x2f5   : > { %4300 = vpow2.f32 %v926_v4  ;;  %v917_v7 = vsub.f32 %v4701_v15, %v901_v5  ;;  %v918_v8 = vsub.f32 %v870_v19, %v904_v6 }
 0x2f7   : > { %v928_v9 = vmul.f32 1.442695, %v917_v7  ;;  %v930_v10 = vmul.f32 1.442695, %v918_v8 }
 0x2f8   : > { %v907_v13 = vpop.xlane.xlu0 %906  ;;  %v910_v14 = vpop.xlane.xlu1 %909 }
 0x2f9   : > { %4302 = vpow2.f32 %v928_v9  ;;  %v919_v11 = vsub.f32 %v4704_v18, %v907_v13  ;;  %v920_v20 = vsub.f32 %v4711_v23, %v910_v14 }
 0x2fa   : > { %v4750_v12 = vpop.eup %4296  ;;  %4304 = vpow2.f32 %v930_v10 }
 0x2fb   : > { %v4752_v17 = vpop.eup %4298  ;;  %v932_v16 = vmul.f32 1.442695, %v919_v11  ;;  %v941_v21 = vsel %vm889_vm3, %v4750_v12, 0.0  ;;  %v934_v28 = vmul.f32 1.442695, %v920_v20 }
 0x2fc   : > { %942 = vadd.xlane.f32.xlu0 %v941_v21  ;;  %v913_v15 = vpop.xlane.xlu0 %912  ;;  %v4168_v19 = vpop.permute.xlu1 %4167  ;;  %v938_v24 = vsel %vm889_vm3, %v4752_v17, 0.0 }
 0x2fd   : > { %4306 = vpow2.f32 %v932_v16  ;;  %v921_v18 = vsub.f32 %v4709_v22, %v913_v15  ;;  %v4170_v25 = vunpack.i.h.bf16 %v4168_v19  ;;  %v4169_v26 = vunpack.i.l.bf16 %v4168_v19  ;;  %939 = vadd.xlane.f32.xlu1 %v938_v24 }
 0x2ff   : > { %v4760_v27 = vpop.eup %4300  ;;  %v936_v29 = vmul.f32 1.442695, %v921_v18  ;;  %v4762_v23 = vpack.c.bf16 %v4170_v25, %v4169_v26 }
 0x300   : > { %v944_v30 = vsel %vm889_vm3, %v4760_v27, 0.0 }
 0x301   : > { %4308 = vpow2.f32 %v936_v29  ;;  %945 = vadd.xlane.f32.xlu1 %v944_v30  ;;  %3985 = vmatprep.subr.msk.bf16.mxu1 %vm4665_vm2, %v4762_v23 }
 0x302   : > { %4310 = vpow2.f32 %v934_v28 }
 0x303   : > { %v4769_v34 = vpop.eup %4302 }
 0x304   : > { %v4771_v22 = vpop.eup %4304  ;;  %v947_v41 = vsel %vm889_vm3, %v4769_v34, 0.0 }
 0x305   : > { %948 = vadd.xlane.f32.xlu0 %v947_v41  ;;  %v950_v43 = vsel %vm889_vm3, %v4771_v22, 0.0 }
 0x306   : > { %951 = vadd.xlane.f32.xlu1 %v950_v43 }
 0x307   : > { %v4777_v51 = vpop.eup %4306 }
 0x308   : > { %v953_v52 = vsel %vm889_vm3, %v4777_v51, 0.0 }
 0x309   : > { %954 = vadd.xlane.f32.xlu0 %v953_v52 }
 0x30b   : > { %v4781_v53 = vpop.eup %4308 }
 0x30c   : > { %v959_v57 = vsel %vm889_vm3, %v4781_v53, 0.0  ;;  %v4785_v58 = vpop.eup %4310 }
 0x30d   : > { %960 = vadd.xlane.f32.xlu0 %v959_v57  ;;  %v956_v59 = vsel %vm889_vm3, %v4785_v58, 0.0 }
 0x311   : > { %957 = vadd.xlane.f32.xlu0 %v956_v59 }
 0x317   : > { %4177 = vrot.lane.b32.xlu1 %v4640_v49, %s4473_s21 }
 0x31b   : > { %4182 = vrot.lane.b32.xlu1 %v4645_v50, %s4473_s21 }
 0x31f   : > { %1111 = vrot.lane.b32.xlu1 %v4610_v33, %s4474_s23 }
 0x323   : > { %1113 = vrot.lane.b32.xlu1 %v4612_v36, %s4474_s23 }
 0x327   : > { %1117 = vrot.lane.b32.xlu1 %v4616_v37, %s4474_s23  ;;  %4172 = vrot.lane.b32.xlu0 %v4629_v44, %s4473_s21 }
 0x32b   : > { %1121 = vrot.lane.b32.xlu1 %v4635_v48, %s4474_s23  ;;  %1115 = vrot.lane.b32.xlu0 %v4622_v39, %s4474_s23 }
 0x32f   : > { %1125 = vrot.lane.b32.xlu1 %v4633_v47, %s4474_s23  ;;  %1119 = vrot.lane.b32.xlu0 %v4625_v42, %s4474_s23 }
 0x333   : > { %4192 = vrot.lane.b32.xlu1 %v4629_v44, %s4475_s24  ;;  %1123 = vrot.lane.b32.xlu0 %v4631_v46, %s4474_s23 }
 0x337   : > { %4202 = vrot.lane.b32.xlu1 %v4645_v50, %s4475_s24  ;;  %4187 = vrot.lane.b32.xlu0 %v4620_v38, %s4475_s24 }
 0x33b   : > { %1696 = vrot.lane.b32.xlu1 %v4612_v36, %s4476_s25  ;;  %4197 = vrot.lane.b32.xlu0 %v4640_v49, %s4475_s24 }
 0x33f   : > { %1700 = vrot.lane.b32.xlu1 %v4616_v37, %s4476_s25  ;;  %1694 = vrot.lane.b32.xlu0 %v4610_v33, %s4476_s25 }
 0x343   : > { %1704 = vrot.lane.b32.xlu1 %v4635_v48, %s4476_s25  ;;  %1698 = vrot.lane.b32.xlu0 %v4622_v39, %s4476_s25 }
 0x347   : > { %1708 = vrot.lane.b32.xlu1 %v4633_v47, %s4476_s25  ;;  %1702 = vrot.lane.b32.xlu0 %v4625_v42, %s4476_s25 }
 0x34b   : > { %1706 = vrot.lane.b32.xlu0 %v4631_v46, %s4476_s25 }
 0x389   : > { %v943_v61 = vpop.xlane.xlu0 %942 }
 0x38a   : > { %4312 = vrcp.f32 %v943_v61  ;;  %v940_v62 = vpop.xlane.xlu1 %939 }
 0x38b   : > { %4314 = vrcp.f32 %v940_v62 }
 0x38e   : > { %v946_v63 = vpop.xlane.xlu1 %945 }
 0x38f   : > { %4316 = vrcp.f32 %v946_v63 }
 0x392   : > { %v949_v0 = vpop.xlane.xlu0 %948 }
 0x393   : > { %4318 = vrcp.f32 %v949_v0  ;;  %v952_v1 = vpop.xlane.xlu1 %951 }
 0x394   : > { %v4313_v2 = vpop.eup %4312  ;;  %4320 = vrcp.f32 %v952_v1 }
 0x395   : > { %v4315_v3 = vpop.eup %4314  ;;  %v971_v6 = vmul.f32 %v4313_v2, %v4750_v12 }
 0x396   : > { %v955_v4 = vpop.xlane.xlu0 %954  ;;  %v970_v5 = vmul.f32 %v4315_v3, %v4752_v17 }
 0x397   : > { %4322 = vrcp.f32 %v955_v4  ;;  %v4178_v7 = vpop.permute.xlu1 %4177 }
 0x398   : > { %3695 = vmatprep.mubr.msk.f32.mxu1 %vm889_vm3, %v970_v5  ;;  %v4180_v24 = vunpack.i.h.bf16 %v4178_v7  ;;  %v4179_v18 = vunpack.i.l.bf16 %v4178_v7 }
 0x399   : > { %v4317_v8 = vpop.eup %4316  ;;  %3696 = vmatmul.mubr.msk.f32.vlgmr.msra.gmra.mrb[8].mxu1 %vm889_vm3, %v971_v6 }
 0x39a   : > { %3988 = vmatpush3.bf16.xpose.msk.msra.mxu1 %vm4665_vm2, %v4762_v23  ;;  %v961_v9 = vpop.xlane.xlu0 %960  ;;  %v972_v10 = vmul.f32 %v4317_v8, %v4760_v27  ;;  %v3995_v23 = vpack.c.bf16 %v4180_v24, %v4179_v18 }
 0x39b   : > { %v4183_v13 = vpop.permute.xlu1 %4182  ;;  %4324 = vrcp.f32 %v961_v9 }
 0x39c   : > { %3698 = vmatprep.mubr.msk.f32.mxu1 %vm889_vm3, %v972_v10  ;;  %v4184_v52 = vunpack.i.l.bf16 %v4183_v13 }
 0x39d   : > { %v4319_v14 = vpop.eup %4318 }
 0x39e   : > { %v4321_v11 = vpop.eup %4320  ;;  %v958_v12 = vpop.xlane.xlu0 %957  ;;  %v973_v17 = vmul.f32 %v4319_v14, %v4769_v34 }
 0x39f   : > { %4326 = vrcp.f32 %v958_v12  ;;  %v1112_v16 = vpop.permute.xlu1 %1111  ;;  %v974_v20 = vmul.f32 %v4321_v11, %v4771_v22 }
 0x3a0   : > { %3699 = vmatmul.mubr.msk.f32.gmra.mrb[10].mxu1 %vm889_vm3, %v973_v17 }
 0x3a1   : > { %v4323_v21 = vpop.eup %4322  ;;  %3701 = vmatprep.mubr.msk.f32.mxu1 %vm889_vm3, %v974_v20 }
 0x3a2   : > { %v4173_v15 = vpop.permute.xlu0 %4172  ;;  %v975_v19 = vmul.f32 %v4323_v21, %v4777_v51  ;;  %v4185_v51 = vunpack.i.h.bf16 %v4183_v13 }
 0x3a3   : > { %v4175_v25 = vunpack.i.h.bf16 %v4173_v15  ;;  %v4174_v26 = vunpack.i.l.bf16 %v4173_v15  ;;  %v1114_v27 = vpop.permute.xlu1 %1113 }
 0x3a4   : > { %3702 = vmatmul.mubr.msk.f32.gmra.mrb[12].mxu1 %vm889_vm3, %v975_v19  ;;  %v4001_v62 = vpack.c.bf16 %v4185_v51, %v4184_v52 }
 0x3a5   : > { %v3989_v28 = vpack.c.bf16 %v4175_v25, %v4174_v26  ;;  %v4325_v34 = vpop.eup %4324 }
 0x3a6   : > { %v1116_v29 = vpop.permute.xlu0 %1115  ;;  %v977_v57 = vmul.f32 %v4325_v34, %v4781_v53 }
 0x3a7   : > { %v1118_v30 = vpop.permute.xlu1 %1117  ;;  %3991 = vmatprep.subr.msk.bf16.mxu1 %vm4665_vm2, %v3989_v28 }
 0x3a8   : > { %3994 = vmatpush3.bf16.xpose.msk.msra.mxu1 %vm4665_vm2, %v3989_v28 }
 0x3a9   : > { %v4327_v22 = vpop.eup %4326  ;;  %3997 = vmatprep.subr.msk.bf16.mxu1 %vm4665_vm2, %v3995_v23 }
 0x3aa   : > { %v1120_v41 = vpop.permute.xlu0 %1119  ;;  %v976_v43 = vmul.f32 %v4327_v22, %v4785_v58 }
 0x3ab   : > { %v1122_v59 = vpop.permute.xlu1 %1121 }
 0x3ac   : > { %3704 = vmatprep.mubr.msk.f32.mxu1 %vm889_vm3, %v976_v43 }
 0x3ad   : > { %3705 = vmatmul.mubr.msk.f32.gmra.mrb[14].mxu1 %vm889_vm3, %v977_v57 }
 0x3ae   : > { %v1124_v61 = vpop.permute.xlu0 %1123  ;;  %3723 = vmatprep.mubr.msk.f32.mxu1 %vm751_vm1, %v1112_v16 }
 0x3af   : > { %v1126_v58 = vpop.permute.xlu1 %1125 }
 0x3b0   : > { %4000 = vmatpush3.bf16.xpose.msk.msra.mxu1 %vm4665_vm2, %v3995_v23 }
 0x3b1   : > { %4003 = vmatprep.subr.msk.bf16.mxu1 %vm4665_vm2, %v4001_v62 }
 0x3b2   : > { %v4188_v63 = vpop.permute.xlu0 %4187 }
 0x3b3   : > { %v4190_v0 = vunpack.i.h.bf16 %v4188_v63  ;;  %v4189_v1 = vunpack.i.l.bf16 %v4188_v63  ;;  %v4193_v2 = vpop.permute.xlu1 %4192 }
 0x3b4   : > { %v4195_v3 = vunpack.i.h.bf16 %v4193_v2  ;;  %v4194_v4 = vunpack.i.l.bf16 %v4193_v2 }
 0x3b5   : > { %v4023_v53 = vpack.c.bf16 %v4190_v0, %v4189_v1 }
 0x3b6   : > { %v4029_v5 = vpack.c.bf16 %v4195_v3, %v4194_v4  ;;  %v4198_v6 = vpop.permute.xlu0 %4197 }
 0x3b7   : > { %v4200_v7 = vunpack.i.h.bf16 %v4198_v6  ;;  %v4199_v8 = vunpack.i.l.bf16 %v4198_v6  ;;  %v4203_v10 = vpop.permute.xlu1 %4202 }
 0x3b8   : > { %4006 = vmatpush3.bf16.xpose.msk.msra.mxu1 %vm4665_vm2, %v4001_v62  ;;  %v4205_v13 = vunpack.i.h.bf16 %v4203_v10  ;;  %v4204_v14 = vunpack.i.l.bf16 %v4203_v10 }
 0x3b9   : > { %4025 = vmatprep.subr.msk.bf16.mxu1 %vm4665_vm2, %v4023_v53  ;;  %v4035_v9 = vpack.c.bf16 %v4200_v7, %v4199_v8  ;;  %v4928_v7 = vpack.i.bf16 %v4724_v32, %v4722_v31 }
 0x3ba   : > { %v1695_v11 = vpop.permute.xlu0 %1694  ;;  %v4041_v12 = vpack.c.bf16 %v4205_v13, %v4204_v14 }
 0x3bb   : > { %v1697_v17 = vpop.permute.xlu1 %1696 }
 0x3be   : > { %v1699_v16 = vpop.permute.xlu0 %1698 }
 0x3bf   : > { %3724 = vmatmul.mubr.msk.f32.vlgmr.msra.gmra.mrb[16].mxu1 %vm751_vm1, %v1114_v27  ;;  %v1701_v20 = vpop.permute.xlu1 %1700 }
 0x3c0   : > { %3726 = vmatprep.mubr.msk.f32.mxu1 %vm751_vm1, %v1116_v29  ;;  %4028 = vmatpush3.bf16.xpose.msk.msra.mxu1 %vm4665_vm2, %v4023_v53 }
 0x3c1   : > { %4031 = vmatprep.subr.msk.bf16.mxu1 %vm4665_vm2, %v4029_v5 }
 0x3c2   : > { %v1703_v21 = vpop.permute.xlu0 %1702 }
 0x3c3   : > { %3727 = vmatmul.mubr.msk.f32.gmra.mrb[18].mxu1 %vm751_vm1, %v1118_v30  ;;  %v1705_v15 = vpop.permute.xlu1 %1704 }
 0x3c4   : > { %3729 = vmatprep.mubr.msk.f32.mxu1 %vm751_vm1, %v1120_v41 }
 0x3c6   : > { %v1707_v19 = vpop.permute.xlu0 %1706 }
 0x3c7   : > { %3730 = vmatmul.mubr.msk.f32.gmra.mrb[20].mxu1 %vm751_vm1, %v1122_v59  ;;  %v1709_v24 = vpop.permute.xlu1 %1708 }
 0x3c8   : > { %3732 = vmatprep.mubr.msk.f32.mxu1 %vm751_vm1, %v1124_v61  ;;  %4034 = vmatpush3.bf16.xpose.msk.msra.mxu1 %vm4665_vm2, %v4029_v5 }
 0x3c9   : > { %4037 = vmatprep.subr.msk.bf16.mxu1 %vm4665_vm2, %v4035_v9 }
 0x3cb   : > { %3733 = vmatmul.mubr.msk.f32.gmra.mrb[22].mxu1 %vm751_vm1, %v1126_v58 }
 0x3cc   : > { %3799 = vmatprep.mubr.msk.f32.mxu1 %vm751_vm1, %v1695_v11 }
 0x3d0   : > { %4040 = vmatpush3.bf16.xpose.msk.msra.mxu1 %vm4665_vm2, %v4035_v9 }
 0x3d1   : > { %4043 = vmatprep.subr.msk.bf16.mxu1 %vm4665_vm2, %v4041_v12 }
 0x3d8   : > { %4046 = vmatpush3.bf16.xpose.msk.msra.mxu1 %vm4665_vm2, %v4041_v12 }
 0x3df   : > { %3800 = vmatmul.mubr.msk.f32.vlgmr.msra.gmra.mrb[24].mxu1 %vm751_vm1, %v1697_v17 }
 0x3e0   : > { %3802 = vmatprep.mubr.msk.f32.mxu1 %vm751_vm1, %v1699_v16 }
 0x3e3   : > { %3803 = vmatmul.mubr.msk.f32.gmra.mrb[26].mxu1 %vm751_vm1, %v1701_v20 }
 0x3e4   : > { %3805 = vmatprep.mubr.msk.f32.mxu1 %vm751_vm1, %v1703_v21 }
 0x3e7   : > { %3806 = vmatmul.mubr.msk.f32.gmra.mrb[28].mxu1 %vm751_vm1, %v1705_v15 }
 0x3e8   : > { %3808 = vmatprep.mubr.msk.f32.mxu1 %vm751_vm1, %v1707_v19 }
 0x3eb   : > { %3809 = vmatmul.mubr.msk.f32.gmra.mrb[30].mxu1 %vm751_vm1, %v1709_v24 }
 0x46c   : > { %v4894_v18 = vpop.f32.mrb[8].mxu1 }
 0x46d   : > { %v4896_v25 = vpop.f32.mrb[9].mxu1 }
 0x46e   : > { %v1107_v26 = vpack.c.bf16 %v4894_v18, %v4896_v25 }
 0x473   : > { %v4900_v27 = vpop.f32.mrb[10].mxu1 }
 0x474   : > { %v4902_v28 = vpop.f32.mrb[11].mxu1 }
 0x475   : > { %v1108_v29 = vpack.c.bf16 %v4900_v27, %v4902_v28 }
 0x477   : > { %v4906_v23 = vpop.f32.mrb[12].mxu1 }
 0x478   : > { %v4908_v30 = vpop.f32.mrb[13].mxu1 }
 0x479   : > { %v1109_v34 = vpack.c.bf16 %v4906_v23, %v4908_v30 }
 0x480   : > { %v4912_v22 = vpop.f32.mrb[14].mxu1 }
 0x481   : > { %v4914_v41 = vpop.f32.mrb[15].mxu1 }
 0x492   : > { %v3725_v51 = vpop.f32.mrb[16].mxu1 }
 0x493   : > { %v1241_v52 = vpop.f32.mrb[17].mxu1  ;;  %v1283_v57 = vsel %vm889_vm3, %v3725_v51, -inf }
 0x494   : > { %1284 = vmax.xlane.f32.xlu1 %v1283_v57  ;;  %v1280_v59 = vsel %vm889_vm3, %v1241_v52, -inf }
 0x495   : > { %1281 = vmax.xlane.f32.xlu0 %v1280_v59 }
 0x496   : > { %v3728_v61 = vpop.f32.mrb[18].mxu1 }
 0x497   : > { %v1251_v62 = vpop.f32.mrb[19].mxu1  ;;  %v1289_v1 = vsel %vm889_vm3, %v3728_v61, -inf }
 0x498   : > { %v1286_v58 = vsel %vm889_vm3, %v1251_v62, -inf }
 0x499   : > { %1287 = vmax.xlane.f32.xlu0 %v1286_v58 }
 0x49a   : > { %v3731_v63 = vpop.f32.mrb[20].mxu1 }
 0x49b   : > { %v1261_v0 = vpop.f32.mrb[21].mxu1  ;;  %v1295_v4 = vsel %vm889_vm3, %v3731_v63, -inf }
 0x49c   : > { %v1292_v53 = vsel %vm889_vm3, %v1261_v0, -inf }
 0x49d   : > { %1290 = vmax.xlane.f32.xlu0 %v1289_v1  ;;  %1293 = vmax.xlane.f32.xlu1 %v1292_v53 }
 0x49e   : > { %v3734_v2 = vpop.f32.mrb[22].mxu1 }
 0x49f   : > { %v1271_v3 = vpop.f32.mrb[23].mxu1  ;;  %v1301_v6 = vsel %vm889_vm3, %v3734_v2, -inf }
 0x4a0   : > { %v1298_v5 = vsel %vm889_vm3, %v1271_v3, -inf }
 0x4a1   : > { %1296 = vmax.xlane.f32.xlu0 %v1295_v4  ;;  %1299 = vmax.xlane.f32.xlu1 %v1298_v5 }
 0x4a5   : > { %1302 = vmax.xlane.f32.xlu0 %v1301_v6 }
 0x4b2   : > { %v4930_v8 = vpop.f32.mrb[24].mxu1  ;;  %4207 = vrot.lane.b32.xlu1 %v4928_v7, %s4474_s23 }
 0x4b3   : > { %v4934_v9 = vpop.f32.mrb[25].mxu1 }
 0x4b6   : > { %v4936_v10 = vpop.f32.mrb[26].mxu1 }
 0x4b7   : > { %v4938_v13 = vpop.f32.mrb[27].mxu1 }
 0x4ba   : > { %v4940_v14 = vpop.f32.mrb[28].mxu1 }
 0x4bb   : > { %v4942_v11 = vpop.f32.mrb[29].mxu1 }
 0x4be   : > { %v4944_v12 = vpop.f32.mrb[30].mxu1 }
 0x4bf   : > { %v4946_v17 = vpop.f32.mrb[31].mxu1 }
 0x521   : > { %v1285_v31 = vpop.xlane.xlu1 %1284 }
 0x522   : > { %v1305_v32 = vsub.f32 %v3725_v51, %v1285_v31  ;;  %v1282_v16 = vpop.xlane.xlu0 %1281 }
 0x523   : > { %v1304_v20 = vsub.f32 %v1241_v52, %v1282_v16 }
 0x524   : > { %v1314_v21 = vmul.f32 1.442695, %v1305_v32 }
 0x525   : > { %v1312_v15 = vmul.f32 1.442695, %v1304_v20 }
 0x526   : > { %4328 = vpow2.f32 %v1314_v21  ;;  %v1288_v19 = vpop.xlane.xlu0 %1287 }
 0x527   : > { %4330 = vpow2.f32 %v1312_v15  ;;  %v1306_v24 = vsub.f32 %v1251_v62, %v1288_v19 }
 0x529   : > { %v1316_v57 = vmul.f32 1.442695, %v1306_v24 }
 0x52a   : > { %v1291_v59 = vpop.xlane.xlu0 %1290  ;;  %v1294_v58 = vpop.xlane.xlu1 %1293 }
 0x52b   : > { %4332 = vpow2.f32 %v1316_v57  ;;  %v1307_v1 = vsub.f32 %v3728_v61, %v1291_v59  ;;  %v1308_v53 = vsub.f32 %v1261_v0, %v1294_v58 }
 0x52d   : > { %v1318_v4 = vmul.f32 1.442695, %v1307_v1  ;;  %v1320_v5 = vmul.f32 1.442695, %v1308_v53 }
 0x52e   : > { %v1297_v6 = vpop.xlane.xlu0 %1296  ;;  %v1300_v43 = vpop.xlane.xlu1 %1299 }
 0x52f   : > { %4334 = vpow2.f32 %v1318_v4  ;;  %v1309_v51 = vsub.f32 %v3731_v63, %v1297_v6  ;;  %v1310_v16 = vsub.f32 %v1271_v3, %v1300_v43 }
 0x530   : > { %v4948_v31 = vpop.eup %4328  ;;  %4336 = vpow2.f32 %v1320_v5 }
 0x531   : > { %v4950_v52 = vpop.eup %4330  ;;  %v1322_v32 = vmul.f32 1.442695, %v1309_v51  ;;  %v1331_v62 = vsel %vm889_vm3, %v4948_v31, 0.0  ;;  %v1324_v24 = vmul.f32 1.442695, %v1310_v16  ;;  %v4982_v16 = vpack.i.bf16 %v4736_v54, %v4732_v45 }
 0x532   : > { %1332 = vadd.xlane.f32.xlu0 %v1331_v62  ;;  %v1303_v20 = vpop.xlane.xlu0 %1302  ;;  %v4208_v61 = vpop.permute.xlu1 %4207  ;;  %v1328_v0 = vsel %vm889_vm3, %v4950_v52, 0.0  ;;  %v4988_v62 = vpack.i.bf16 %v4740_v56, %v4738_v55 }
 0x533   : > { %4338 = vpow2.f32 %v1322_v32  ;;  %v1311_v21 = vsub.f32 %v3734_v2, %v1303_v20  ;;  %v4210_v15 = vunpack.i.h.bf16 %v4208_v61  ;;  %v4209_v63 = vunpack.i.l.bf16 %v4208_v61  ;;  %1329 = vadd.xlane.f32.xlu1 %v1328_v0 }
 0x534   : > { %v4996_v20 = vpack.i.bf16 %v4730_v40, %v4728_v35 }
 0x535   : > { %v4956_v19 = vpop.eup %4332  ;;  %v1326_v57 = vmul.f32 1.442695, %v1311_v21  ;;  %v4007_v59 = vpack.c.bf16 %v4210_v15, %v4209_v63 }
 0x536   : > { %v1334_v43 = vsel %vm889_vm3, %v4956_v19, 0.0 }
 0x537   : > { %4340 = vpow2.f32 %v1326_v57  ;;  %1335 = vadd.xlane.f32.xlu1 %v1334_v43  ;;  %4008 = vmatprep.subr.bf16.mxu0 %v4007_v59 }
 0x538   : > { %4010 = vmatpush3.bf16.msra.mxu0 %v4007_v59  ;;  %4342 = vpow2.f32 %v1324_v24 }
 0x539   : > { %v4960_v3 = vpop.eup %4334 }
 0x53a   : > { %v4962_v58 = vpop.eup %4336  ;;  %v1337_v2 = vsel %vm889_vm3, %v4960_v3, 0.0 }
 0x53b   : > { %1338 = vadd.xlane.f32.xlu0 %v1337_v2  ;;  %v1340_v1 = vsel %vm889_vm3, %v4962_v58, 0.0 }
 0x53c   : > { %1341 = vadd.xlane.f32.xlu1 %v1340_v1 }
 0x53d   : > { %v4968_v53 = vpop.eup %4338 }
 0x53e   : > { %v1343_v4 = vsel %vm889_vm3, %v4968_v53, 0.0 }
 0x53f   : > { %1344 = vadd.xlane.f32.xlu0 %v1343_v4 }
 0x541   : > { %v4972_v5 = vpop.eup %4340 }
 0x542   : > { %v1349_v6 = vsel %vm889_vm3, %v4972_v5, 0.0  ;;  %v4976_v51 = vpop.eup %4342 }
 0x543   : > { %1350 = vadd.xlane.f32.xlu0 %v1349_v6  ;;  %v1346_v32 = vsel %vm889_vm3, %v4976_v51, 0.0 }
 0x547   : > { %1347 = vadd.xlane.f32.xlu0 %v1346_v32 }
 0x54d   : > { %4217 = vrot.lane.b32.xlu1 %v4982_v16, %s4474_s23 }
 0x551   : > { %4222 = vrot.lane.b32.xlu1 %v4988_v62, %s4474_s23 }
 0x555   : > { %4227 = vrot.lane.b32.xlu1 %v4620_v38, %s4477_s26  ;;  %v1875_v38 = vsel %vm889_vm3, %v4942_v11, -inf }
 0x559   : > { %4232 = vrot.lane.b32.xlu1 %v4629_v44, %s4477_s26  ;;  %v1878_v44 = vsel %vm889_vm3, %v4940_v14, -inf }
 0x55d   : > { %4242 = vrot.lane.b32.xlu1 %v4645_v50, %s4477_s26  ;;  %4212 = vrot.lane.b32.xlu0 %v4996_v20, %s4474_s23 }
 0x561   : > { %2198 = vrot.lane.b32.xlu1 %v4612_v36, %s4478_s27  ;;  %4237 = vrot.lane.b32.xlu0 %v4640_v49, %s4477_s26  ;;  %v1863_v36 = vsel %vm889_vm3, %v4934_v9, -inf }
 0x565   : > { %2202 = vrot.lane.b32.xlu1 %v4616_v37, %s4478_s27  ;;  %2196 = vrot.lane.b32.xlu0 %v4610_v33, %s4478_s27  ;;  %v1866_v33 = vsel %vm889_vm3, %v4930_v8, -inf  ;;  %v1869_v37 = vsel %vm889_vm3, %v4938_v13, -inf }
 0x569   : > { %2206 = vrot.lane.b32.xlu1 %v4635_v48, %s4478_s27  ;;  %2200 = vrot.lane.b32.xlu0 %v4622_v39, %s4478_s27  ;;  %v1872_v39 = vsel %vm889_vm3, %v4936_v10, -inf }
 0x56d   : > { %2210 = vrot.lane.b32.xlu1 %v4633_v47, %s4478_s27  ;;  %2204 = vrot.lane.b32.xlu0 %v4625_v42, %s4478_s27  ;;  %v1881_v42 = vsel %vm889_vm3, %v4946_v17, -inf }
 0x571   : > { %2208 = vrot.lane.b32.xlu0 %v4631_v46, %s4478_s27  ;;  %v1884_v46 = vsel %vm889_vm3, %v4944_v12, -inf }
 0x590   : > { %1864 = vmax.xlane.f32.xlu0 %v1863_v36 }
 0x591   : > { %1867 = vmax.xlane.f32.xlu1 %v1866_v33 }
 0x594   : > { %1870 = vmax.xlane.f32.xlu0 %v1869_v37 }
 0x595   : > { %1876 = vmax.xlane.f32.xlu1 %v1875_v38 }
 0x598   : > { %1873 = vmax.xlane.f32.xlu0 %v1872_v39 }
 0x599   : > { %1882 = vmax.xlane.f32.xlu1 %v1881_v42 }
 0x59c   : > { %1879 = vmax.xlane.f32.xlu0 %v1878_v44 }
 0x5a0   : > { %1885 = vmax.xlane.f32.xlu0 %v1884_v46 }
 0x5aa   : > { %4247 = vrot.lane.b32.xlu1 %v4928_v7, %s4476_s25 }
 0x5bf   : > { %v1333_v48 = vpop.xlane.xlu0 %1332 }
 0x5c0   : > { %v1330_v47 = vpop.xlane.xlu1 %1329 }
 0x5c1   : > { %4344 = vrcp.f32 %v1330_v47 }
 0x5c2   : > { %4346 = vrcp.f32 %v1333_v48 }
 0x5c4   : > { %v1336_v49 = vpop.xlane.xlu1 %1335 }
 0x5c5   : > { %4348 = vrcp.f32 %v1336_v49 }
 0x5c8   : > { %v1339_v50 = vpop.xlane.xlu0 %1338 }
 0x5c9   : > { %v1342_v35 = vpop.xlane.xlu1 %1341  ;;  %4350 = vrcp.f32 %v1339_v50 }
 0x5ca   : > { %4352 = vrcp.f32 %v1342_v35 }
 0x5cb   : > { %v4345_v40 = vpop.eup %4344 }
 0x5cc   : > { %v1345_v45 = vpop.xlane.xlu0 %1344  ;;  %v1360_v54 = vmul.f32 %v4345_v40, %v4950_v52  ;;  %v4347_v50 = vpop.eup %4346 }
 0x5cd   : > { %v4218_v55 = vpop.permute.xlu1 %4217  ;;  %4354 = vrcp.f32 %v1345_v45 }
 0x5ce   : > { %3751 = vmatprep.mubr.msk.f32.mxu0 %vm889_vm3, %v1360_v54  ;;  %v4220_v59 = vunpack.i.h.bf16 %v4218_v55  ;;  %v4219_v43 = vunpack.i.l.bf16 %v4218_v55  ;;  %v1361_v55 = vmul.f32 %v4347_v50, %v4948_v31 }
 0x5cf   : > { %v4349_v40 = vpop.eup %4348 }
 0x5d0   : > { %v1351_v56 = vpop.xlane.xlu0 %1350  ;;  %v4015_v37 = vpack.c.bf16 %v4220_v59, %v4219_v43 }
 0x5d1   : > { %v4223_v61 = vpop.permute.xlu1 %4222 }
 0x5d2   : > { %v4225_v38 = vunpack.i.h.bf16 %v4223_v61  ;;  %v4224_v39 = vunpack.i.l.bf16 %v4223_v61  ;;  %v1362_v61 = vmul.f32 %v4349_v40, %v4956_v19 }
 0x5d3   : > { %v4351_v45 = vpop.eup %4350 }
 0x5d4   : > { %v1348_v0 = vpop.xlane.xlu0 %1347  ;;  %v4019_v47 = vpack.c.bf16 %v4225_v38, %v4224_v39 }
 0x5d5   : > { %v4228_v21 = vpop.permute.xlu1 %4227  ;;  %4356 = vrcp.f32 %v1348_v0  ;;  %v4353_v0 = vpop.eup %4352 }
 0x5d6   : > { %v4230_v15 = vunpack.i.h.bf16 %v4228_v21  ;;  %v4229_v63 = vunpack.i.l.bf16 %v4228_v21  ;;  %4358 = vrcp.f32 %v1351_v56  ;;  %v1364_v31 = vmul.f32 %v4353_v0, %v4962_v58 }
 0x5d7   : > { %v4355_v56 = vpop.eup %4354 }
 0x5d8   : > { %v4063_v24 = vpack.c.bf16 %v4230_v15, %v4229_v63  ;;  %v4213_v57 = vpop.permute.xlu0 %4212  ;;  %v1363_v15 = vmul.f32 %v4351_v45, %v4960_v3  ;;  %v1365_v19 = vmul.f32 %v4355_v56, %v4968_v53 }
 0x5d9   : > { %v4215_v2 = vunpack.i.h.bf16 %v4213_v57  ;;  %v4214_v1 = vunpack.i.l.bf16 %v4213_v57  ;;  %v4233_v4 = vpop.permute.xlu1 %4232 }
 0x5da   : > { %v4235_v6 = vunpack.i.h.bf16 %v4233_v4  ;;  %v4234_v32 = vunpack.i.l.bf16 %v4233_v4  ;;  %4065 = vmatprep.subr.msk.bf16.mxu1 %vm4665_vm2, %v4063_v24 }
 0x5db   : > { %v4011_v52 = vpack.c.bf16 %v4215_v2, %v4214_v1  ;;  %4068 = vmatpush3.bf16.xpose.msk.msra.mxu1 %vm4665_vm2, %v4063_v24 }
 0x5dc   : > { %v4069_v36 = vpack.c.bf16 %v4235_v6, %v4234_v32  ;;  %v4238_v33 = vpop.permute.xlu0 %4237 }
 0x5dd   : > { %4012 = vmatprep.subr.bf16.mxu0 %v4011_v52  ;;  %v4240_v42 = vunpack.i.h.bf16 %v4238_v33  ;;  %v4239_v44 = vunpack.i.l.bf16 %v4238_v33  ;;  %v4243_v49 = vpop.permute.xlu1 %4242 }
 0x5de   : > { %4071 = vmatprep.subr.msk.bf16.mxu1 %vm4665_vm2, %v4069_v36  ;;  %4014 = vmatpush3.bf16.msra.mxu0 %v4011_v52  ;;  %v4245_v35 = vunpack.i.h.bf16 %v4243_v49  ;;  %v4244_v54 = vunpack.i.l.bf16 %v4243_v49 }
 0x5df   : > { %4016 = vmatprep.subr.bf16.mxu0 %v4015_v37  ;;  %v4075_v48 = vpack.c.bf16 %v4240_v42, %v4239_v44  ;;  %v4357_v63 = vpop.eup %4356 }
 0x5e0   : > { %v2197_v46 = vpop.permute.xlu0 %2196  ;;  %v4081_v21 = vpack.c.bf16 %v4245_v35, %v4244_v54  ;;  %v4359_v24 = vpop.eup %4358  ;;  %v1366_v57 = vmul.f32 %v4357_v63, %v4976_v51 }
 0x5e1   : > { %3865 = vmatprep.mubr.msk.f32.mxu1 %vm751_vm1, %v2197_v46  ;;  %v2199_v3 = vpop.permute.xlu1 %2198  ;;  %v1367_v58 = vmul.f32 %v4359_v24, %v4972_v5  ;;  %v723_v24 = vld [vmem:[%s5518_s6 + $0x4] sm:$0xf] }
 0x5e2   : > { %4018 = vmatpush3.bf16.msra.mxu0 %v4015_v37 }
 0x5e3   : > { %4074 = vmatpush3.bf16.xpose.msk.msra.mxu1 %vm4665_vm2, %v4069_v36  ;;  %4020 = vmatprep.subr.bf16.mxu0 %v4019_v47 }
 0x5e4   : > { %4077 = vmatprep.subr.msk.bf16.mxu1 %vm4665_vm2, %v4075_v48  ;;  %v2201_v59 = vpop.permute.xlu0 %2200 }
 0x5e5   : > { %v2203_v43 = vpop.permute.xlu1 %2202 }
 0x5e6   : > { %4022 = vmatpush3.bf16.msra.mxu0 %v4019_v47 }
 0x5e7   : > { %4127 = vmatprep.subr.msk.bf16.mxu0 %vm1545_vm4, %v723_v24 }
 0x5e8   : > { %v2205_v53 = vpop.permute.xlu0 %2204 }
 0x5e9   : > { %3752 = vmatmul.mubr.msk.f32.vlgmr.msra.gmra.mrb[16].mxu0 %vm889_vm3, %v1361_v55  ;;  %v2207_v51 = vpop.permute.xlu1 %2206 }
 0x5ea   : > { %3754 = vmatprep.mubr.msk.f32.mxu0 %vm889_vm3, %v1362_v61 }
 0x5eb   : > { %4080 = vmatpush3.bf16.xpose.msk.msra.mxu1 %vm4665_vm2, %v4075_v48 }
 0x5ec   : > { %4083 = vmatprep.subr.msk.bf16.mxu1 %vm4665_vm2, %v4081_v21  ;;  %v2209_v2 = vpop.permute.xlu0 %2208 }
 0x5ed   : > { %3755 = vmatmul.mubr.msk.f32.gmra.mrb[18].mxu0 %vm889_vm3, %v1363_v15  ;;  %v2211_v60 = vpop.permute.xlu1 %2210 }
 0x5ee   : > { %3757 = vmatprep.mubr.msk.f32.mxu0 %vm889_vm3, %v1364_v31 }
 0x5f1   : > { %3758 = vmatmul.mubr.msk.f32.gmra.mrb[20].mxu0 %vm889_vm3, %v1365_v19 }
 0x5f2   : > { %3760 = vmatprep.mubr.msk.f32.mxu0 %vm889_vm3, %v1366_v57  ;;  %v1547_v57 = vsel %vm1545_vm4, %v723_v24, 0 }
 0x5f3   : > { %4086 = vmatpush3.bf16.xpose.msk.msra.mxu1 %vm4665_vm2, %v4081_v21  ;;  %3764 = vmatpush3.bf16.msra.mxu0 %v1547_v57 }
 0x5f5   : > { %3761 = vmatmul.mubr.msk.f32.gmra.mrb[22].mxu0 %vm889_vm3, %v1367_v58  ;;  %v722_v58 = vld [vmem:[%s5518_s6] sm:$0xf] }
 0x5f6   : > { %4128 = vmatprep.subr.msk.bf16.mxu0 %vm1545_vm4, %v722_v58 }
 0x5fa   : > { %3866 = vmatmul.mubr.msk.f32.vlgmr.msra.gmra.mrb[32].mxu1 %vm751_vm1, %v2199_v3 }
 0x5fb   : > { %3868 = vmatprep.mubr.msk.f32.mxu1 %vm751_vm1, %v2201_v59 }
 0x5fe   : > { %3869 = vmatmul.mubr.msk.f32.gmra.mrb[34].mxu1 %vm751_vm1, %v2203_v43 }
 0x5ff   : > { %3871 = vmatprep.mubr.msk.f32.mxu1 %vm751_vm1, %v2205_v53 }
 0x602   : > { %3872 = vmatmul.mubr.msk.f32.gmra.mrb[36].mxu1 %vm751_vm1, %v2207_v51 }
 0x603   : > { %3874 = vmatprep.mubr.msk.f32.mxu1 %vm751_vm1, %v2209_v2 }
 0x606   : > { %3875 = vmatmul.mubr.msk.f32.gmra.mrb[38].mxu1 %vm751_vm1, %v2211_v60 }
 0x61d   : > { %v1865_v5 = vpop.xlane.xlu0 %1864 }
 0x61e   : > { %v1887_v1 = vsub.f32 %v4934_v9, %v1865_v5  ;;  %v1868_v4 = vpop.xlane.xlu1 %1867 }
 0x61f   : > { %v1888_v6 = vsub.f32 %v4930_v8, %v1868_v4 }
 0x620   : > { %v1895_v32 = vmul.f32 1.442695, %v1887_v1 }
 0x621   : > { %v1897_v52 = vmul.f32 1.442695, %v1888_v6  ;;  %v1871_v36 = vpop.xlane.xlu0 %1870 }
 0x622   : > { %4360 = vpow2.f32 %v1895_v32  ;;  %v1889_v33 = vsub.f32 %v4938_v13, %v1871_v36  ;;  %v1877_v37 = vpop.xlane.xlu1 %1876 }
 0x623   : > { %4362 = vpow2.f32 %v1897_v52  ;;  %v1891_v38 = vsub.f32 %v4942_v11, %v1877_v37  ;;  %v1627_v52 = vsel %vm1545_vm4, %v722_v58, 0 }
 0x624   : > { %v1899_v39 = vmul.f32 1.442695, %v1889_v33 }
 0x625   : > { %v1903_v42 = vmul.f32 1.442695, %v1891_v38  ;;  %v1874_v44 = vpop.xlane.xlu0 %1873 }
 0x626   : > { %4364 = vpow2.f32 %v1899_v39  ;;  %v1890_v46 = vsub.f32 %v4936_v10, %v1874_v44  ;;  %v1883_v47 = vpop.xlane.xlu1 %1882 }
 0x627   : > { %4366 = vpow2.f32 %v1903_v42  ;;  %v1893_v13 = vsub.f32 %v4946_v17, %v1883_v47 }
 0x628   : > { %v1901_v9 = vmul.f32 1.442695, %v1890_v46 }
 0x629   : > { %v1880_v8 = vpop.xlane.xlu0 %1879  ;;  %v1907_v55 = vmul.f32 1.442695, %v1893_v13 }
 0x62a   : > { %4368 = vpow2.f32 %v1901_v9  ;;  %v1892_v48 = vsub.f32 %v4940_v14, %v1880_v8  ;;  %v4248_v59 = vpop.permute.xlu1 %4247 }
 0x62b   : > { %v4250_v5 = vunpack.i.h.bf16 %v4248_v59  ;;  %v4249_v1 = vunpack.i.l.bf16 %v4248_v59 }
 0x62c   : > { %v5082_v49 = vpop.eup %4360  ;;  %v1905_v50 = vmul.f32 1.442695, %v1892_v48 }
 0x62d   : > { %v5085_v40 = vpop.eup %4362  ;;  %v1886_v11 = vpop.xlane.xlu0 %1885  ;;  %v1911_v35 = vsel %vm889_vm3, %v5082_v49, 0.0  ;;  %v4047_v37 = vpack.c.bf16 %v4250_v5, %v4249_v1 }
 0x62e   : > { %4370 = vpow2.f32 %v1905_v50  ;;  %v1894_v10 = vsub.f32 %v4944_v12, %v1886_v11  ;;  %1912 = vadd.xlane.f32.xlu1 %v1911_v35  ;;  %v1914_v54 = vsel %vm889_vm3, %v5085_v40, 0.0 }
 0x62f   : > { %1915 = vadd.xlane.f32.xlu0 %v1914_v54 }
 0x630   : > { %v5092_v14 = vpop.eup %4364  ;;  %v1909_v45 = vmul.f32 1.442695, %v1894_v10 }
 0x631   : > { %v1917_v17 = vsel %vm889_vm3, %v5092_v14, 0.0  ;;  %v5096_v61 = vpop.eup %4366 }
 0x632   : > { %4372 = vpow2.f32 %v1909_v45  ;;  %1918 = vadd.xlane.f32.xlu1 %v1917_v17  ;;  %v1923_v21 = vsel %vm889_vm3, %v5096_v61, 0.0 }
 0x633   : > { %4374 = vpow2.f32 %v1907_v55 }
 0x634   : > { %v5098_v0 = vpop.eup %4368 }
 0x635   : > { %v1920_v12 = vsel %vm889_vm3, %v5098_v0, 0.0 }
 0x636   : > { %1921 = vadd.xlane.f32.xlu0 %v1920_v12  ;;  %1924 = vadd.xlane.f32.xlu1 %v1923_v21 }
 0x638   : > { %v5104_v15 = vpop.eup %4370 }
 0x639   : > { %v1926_v56 = vsel %vm889_vm3, %v5104_v15, 0.0 }
 0x63a   : > { %1927 = vadd.xlane.f32.xlu0 %v1926_v56 }
 0x63c   : > { %v5108_v31 = vpop.eup %4372 }
 0x63d   : > { %v1932_v63 = vsel %vm889_vm3, %v5108_v31, 0.0  ;;  %v5112_v19 = vpop.eup %4374 }
 0x63e   : > { %1933 = vadd.xlane.f32.xlu0 %v1932_v63  ;;  %v1929_v3 = vsel %vm889_vm3, %v5112_v19, 0.0 }
 0x642   : > { %1930 = vadd.xlane.f32.xlu0 %v1929_v3 }
 0x647   : > { %4257 = vrot.lane.b32.xlu1 %v4982_v16, %s4476_s25 }
 0x64b   : > { %4262 = vrot.lane.b32.xlu1 %v4988_v62, %s4476_s25 }
 0x658   : > { %4252 = vrot.lane.b32.xlu0 %v4996_v20, %s4476_s25 }
 0x6bb   : > { %v1913_v53 = vpop.xlane.xlu1 %1912 }
 0x6bc   : > { %v3753_v43 = vpop.f32.mrb[16].mxu0  ;;  %v1916_v60 = vpop.xlane.xlu0 %1915  ;;  %4376 = vrcp.f32 %v1913_v53 }
 0x6bd   : > { %v1490_v51 = vpop.f32.mrb[17].mxu0  ;;  %4378 = vrcp.f32 %v1916_v60  ;;  %v5529_v60 = vpack.c.bf16 %v4912_v22, %v4914_v41 }
 0x6be   : > { %v1529_v2 = vpack.c.bf16 %v3753_v43, %v1490_v51 }
 0x6bf   : > { %v1919_v36 = vpop.xlane.xlu1 %1918 }
 0x6c0   : > { %v3756_v4 = vpop.f32.mrb[18].mxu0  ;;  %3765 = vmatprep.mubr.msk.bf16.mxu0 %vm751_vm1, %v1529_v2  ;;  %4380 = vrcp.f32 %v1919_v36 }
 0x6c1   : > { %v1500_v6 = vpop.f32.mrb[19].mxu0 }
 0x6c2   : > { %v1530_v32 = vpack.c.bf16 %v3756_v4, %v1500_v6 }
 0x6c3   : > { %v1922_v33 = vpop.xlane.xlu0 %1921  ;;  %v1925_v9 = vpop.xlane.xlu1 %1924 }
 0x6c4   : > { %v3759_v38 = vpop.f32.mrb[20].mxu0  ;;  %3766 = vmatmul.mubr.msk.bf16.vlgmr.msra.gmra.mrb[24].mxu0 %vm751_vm1, %v1530_v32  ;;  %4382 = vrcp.f32 %v1922_v33 }
 0x6c5   : > { %3774 = vmatpush3.bf16.msra.mxu0 %v1627_v52  ;;  %v1510_v39 = vpop.f32.mrb[21].mxu0  ;;  %4384 = vrcp.f32 %v1925_v9 }
 0x6c6   : > { %v1531_v42 = vpack.c.bf16 %v3759_v38, %v1510_v39  ;;  %4048 = vmatprep.subr.bf16.mxu0 %v4047_v37  ;;  %v4377_v28 = vpop.eup %4376 }
 0x6c7   : > { %v1928_v44 = vpop.xlane.xlu0 %1927  ;;  %v4258_v35 = vpop.permute.xlu1 %4257  ;;  %v1943_v51 = vmul.f32 %v4377_v28, %v5082_v49 }
 0x6c8   : > { %v3762_v46 = vpop.f32.mrb[22].mxu0  ;;  %3769 = vmatprep.mubr.msk.bf16.mxu0 %vm751_vm1, %v1531_v42  ;;  %v4260_v17 = vunpack.i.h.bf16 %v4258_v35  ;;  %v4259_v12 = vunpack.i.l.bf16 %v4258_v35  ;;  %4386 = vrcp.f32 %v1928_v44  ;;  %v4379_v5 = vpop.eup %4378 }
 0x6c9   : > { %v1520_v47 = vpop.f32.mrb[23].mxu0  ;;  %v1944_v4 = vmul.f32 %v4379_v5, %v5085_v40 }
 0x6ca   : > { %v1532_v8 = vpack.c.bf16 %v3762_v46, %v1520_v47  ;;  %v4381_v1 = vpop.eup %4380 }
 0x6cb   : > { %v1934_v48 = vpop.xlane.xlu0 %1933  ;;  %v4263_v63 = vpop.permute.xlu1 %4262  ;;  %v1945_v6 = vmul.f32 %v4381_v1, %v5092_v14 }
 0x6cc   : > { %3770 = vmatmul.mubr.msk.bf16.gmra.mrb[28].mxu0 %vm751_vm1, %v1532_v8  ;;  %v4265_v59 = vunpack.i.h.bf16 %v4263_v63  ;;  %v4264_v43 = vunpack.i.l.bf16 %v4263_v63 }
 0x6cd   : > { %v5136_v13 = vpop.f32.mrb[32].mxu1  ;;  %3775 = vmatprep.mubr.msk.bf16.mxu0 %vm751_vm1, %v1107_v26 }
 0x6ce   : > { %v5142_v50 = vpop.f32.mrb[33].mxu1  ;;  %v2368_v11 = vsel %vm889_vm3, %v5136_v13, -inf  ;;  %v4059_v2 = vpack.c.bf16 %v4265_v59, %v4264_v43  ;;  %v4383_v49 = vpop.eup %4382 }
 0x6cf   : > { %2369 = vmax.xlane.f32.xlu0 %v2368_v11  ;;  %v1931_v10 = vpop.xlane.xlu0 %1930  ;;  %v2365_v54 = vsel %vm889_vm3, %v5142_v50, -inf  ;;  %v4385_v32 = vpop.eup %4384  ;;  %v1946_v22 = vmul.f32 %v4383_v49, %v5098_v0 }
 0x6d0   : > { %2366 = vmax.xlane.f32.xlu1 %v2365_v54  ;;  %4388 = vrcp.f32 %v1931_v10  ;;  %v1947_v52 = vmul.f32 %v4385_v32, %v5096_v61  ;;  %v724_v61 = vld [vmem:[%s5518_s6 + $0x8] sm:$0xf] }
 0x6d1   : > { %v5148_v55 = vpop.f32.mrb[34].mxu1  ;;  %4390 = vrcp.f32 %v1934_v48 }
 0x6d2   : > { %v5150_v45 = vpop.f32.mrb[35].mxu1  ;;  %v2374_v18 = vsel %vm889_vm3, %v5148_v55, -inf  ;;  %v4387_v41 = vpop.eup %4386 }
 0x6d3   : > { %2375 = vmax.xlane.f32.xlu0 %v2374_v18  ;;  %v4253_v25 = vpop.permute.xlu0 %4252  ;;  %v2371_v26 = vsel %vm889_vm3, %v5150_v45, -inf  ;;  %v1948_v40 = vmul.f32 %v4387_v41, %v5104_v15  ;;  %v2121_v15 = vsel %vm1545_vm4, %v724_v61, 0 }
 0x6d4   : > { %v4255_v21 = vunpack.i.h.bf16 %v4253_v25  ;;  %v4254_v56 = vunpack.i.l.bf16 %v4253_v25  ;;  %2372 = vmax.xlane.f32.xlu1 %v2371_v26  ;;  %3776 = vmatmul.mubr.msk.bf16.vlgmr.msra.gmra.mrb[24].mxu0 %vm751_vm1, %v1108_v29  ;;  %v4055_v29 = vpack.c.bf16 %v4260_v17, %v4259_v12 }
 0x6d5   : > { %4050 = vmatpush3.bf16.msra.mxu0 %v4047_v37  ;;  %v5160_v24 = vpop.f32.mrb[36].mxu1  ;;  %3779 = vmatprep.mubr.msk.bf16.mxu0 %vm751_vm1, %v1109_v34 }
 0x6d6   : > { %v4051_v57 = vpack.c.bf16 %v4255_v21, %v4254_v56  ;;  %v5166_v3 = vpop.f32.mrb[37].mxu1  ;;  %v2380_v58 = vsel %vm889_vm3, %v5160_v24, -inf }
 0x6d7   : > { %2381 = vmax.xlane.f32.xlu0 %v2380_v58  ;;  %v2377_v27 = vsel %vm889_vm3, %v5166_v3, -inf }
 0x6d8   : > { %2378 = vmax.xlane.f32.xlu1 %v2377_v27  ;;  %4052 = vmatprep.subr.bf16.mxu0 %v4051_v57 }
 0x6d9   : > { %v5172_v23 = vpop.f32.mrb[38].mxu1  ;;  %4054 = vmatpush3.bf16.msra.mxu0 %v4051_v57 }
 0x6da   : > { %v5174_v30 = vpop.f32.mrb[39].mxu1  ;;  %v2386_v34 = vsel %vm889_vm3, %v5172_v23, -inf  ;;  %4056 = vmatprep.subr.bf16.mxu0 %v4055_v29  ;;  %v4389_v36 = vpop.eup %4388 }
 0x6db   : > { %2387 = vmax.xlane.f32.xlu0 %v2386_v34  ;;  %v2383_v53 = vsel %vm889_vm3, %v5174_v30, -inf  ;;  %v4391_v33 = vpop.eup %4390  ;;  %v1949_v14 = vmul.f32 %v4389_v36, %v5112_v19 }
 0x6dc   : > { %2384 = vmax.xlane.f32.xlu1 %v2383_v53  ;;  %3780 = vmatmul.mubr.msk.bf16.gmra.mrb[28].mxu0 %vm751_vm1, %v5529_v60  ;;  %v1950_v0 = vmul.f32 %v4391_v33, %v5108_v31 }
 0x6dd   : > { %4058 = vmatpush3.bf16.msra.mxu0 %v4055_v29  ;;  %3827 = vmatprep.mubr.msk.f32.mxu0 %vm889_vm3, %v1943_v51 }
 0x6de   : > { %4060 = vmatprep.subr.bf16.mxu0 %v4059_v2 }
 0x6e1   : > { %4062 = vmatpush3.bf16.msra.mxu0 %v4059_v2 }
 0x6e2   : > { %4129 = vmatprep.subr.msk.bf16.mxu0 %vm1545_vm4, %v724_v61 }
 0x6e4   : > { %3828 = vmatmul.mubr.msk.f32.vlgmr.msra.gmra.mrb[32].mxu0 %vm889_vm3, %v1944_v4 }
 0x6e5   : > { %3830 = vmatprep.mubr.msk.f32.mxu0 %vm889_vm3, %v1945_v6  ;;  %3840 = vmatpush3.bf16.msra.mxu0 %v2121_v15 }
 0x6e8   : > { %3831 = vmatmul.mubr.msk.f32.gmra.mrb[34].mxu0 %vm889_vm3, %v1946_v22 }
 0x6e9   : > { %3833 = vmatprep.mubr.msk.f32.mxu0 %vm889_vm3, %v1947_v52 }
 0x6ec   : > { %3834 = vmatmul.mubr.msk.f32.gmra.mrb[36].mxu0 %vm889_vm3, %v1948_v40 }
 0x6ed   : > { %4267 = vrot.lane.b32.xlu1 %v4928_v7, %s4478_s27  ;;  %3836 = vmatprep.mubr.msk.f32.mxu0 %vm889_vm3, %v1949_v14 }
 0x6f0   : > { %3837 = vmatmul.mubr.msk.f32.gmra.mrb[38].mxu0 %vm889_vm3, %v1950_v0 }
 0x75c   : > { %v2370_v19 = vpop.xlane.xlu0 %2369 }
 0x75d   : > { %v2390_v37 = vsub.f32 %v5136_v13, %v2370_v19  ;;  %v2367_v38 = vpop.xlane.xlu1 %2366 }
 0x75e   : > { %v2389_v7 = vsub.f32 %v5142_v50, %v2367_v38 }
 0x75f   : > { %v2399_v39 = vmul.f32 1.442695, %v2390_v37 }
 0x760   : > { %v2397_v42 = vmul.f32 1.442695, %v2389_v7  ;;  %v2376_v31 = vpop.xlane.xlu0 %2375 }
 0x761   : > { %4392 = vpow2.f32 %v2399_v39  ;;  %v2392_v44 = vsub.f32 %v5148_v55, %v2376_v31  ;;  %v2373_v46 = vpop.xlane.xlu1 %2372 }
 0x762   : > { %4394 = vpow2.f32 %v2397_v42  ;;  %v2391_v9 = vsub.f32 %v5150_v45, %v2373_v46 }
 0x763   : > { %v2403_v47 = vmul.f32 1.442695, %v2392_v44 }
 0x764   : > { %v2401_v8 = vmul.f32 1.442695, %v2391_v9  ;;  %v2382_v48 = vpop.xlane.xlu0 %2381 }
 0x765   : > { %4396 = vpow2.f32 %v2403_v47  ;;  %v2394_v11 = vsub.f32 %v5160_v24, %v2382_v48  ;;  %v2379_v13 = vpop.xlane.xlu1 %2378 }
 0x766   : > { %4398 = vpow2.f32 %v2401_v8  ;;  %v2393_v50 = vsub.f32 %v5166_v3, %v2379_v13 }
 0x767   : > { %v2407_v35 = vmul.f32 1.442695, %v2394_v11 }
 0x768   : > { %v2405_v10 = vmul.f32 1.442695, %v2393_v50  ;;  %v2388_v54 = vpop.xlane.xlu0 %2387  ;;  %v725_v50 = vld [vmem:[%s5518_s6 + $0xc] sm:$0xf] }
 0x769   : > { %4400 = vpow2.f32 %v2407_v35  ;;  %v2396_v55 = vsub.f32 %v5172_v23, %v2388_v54  ;;  %v2385_v18 = vpop.xlane.xlu1 %2384  ;;  %v2623_v54 = vsel %vm1545_vm4, %v725_v50, 0 }
 0x76a   : > { %4402 = vpow2.f32 %v2405_v10  ;;  %v2395_v45 = vsub.f32 %v5174_v30, %v2385_v18 }
 0x76b   : > { %v5215_v25 = vpop.eup %4392  ;;  %v2411_v26 = vmul.f32 1.442695, %v2396_v55 }
 0x76c   : > { %v4395_v17 = vpop.eup %4394  ;;  %v2409_v12 = vmul.f32 1.442695, %v2395_v45  ;;  %v2416_v21 = vsel %vm889_vm3, %v5215_v25, 0.0 }
 0x76d   : > { %4404 = vpow2.f32 %v2411_v26  ;;  %2417 = vadd.xlane.f32.xlu0 %v2416_v21  ;;  %v4268_v56 = vpop.permute.xlu1 %4267  ;;  %v2413_v63 = vsel %vm889_vm3, %v4395_v17, 0.0 }
 0x76e   : > { %v4270_v24 = vunpack.i.h.bf16 %v4268_v56  ;;  %v4269_v57 = vunpack.i.l.bf16 %v4268_v56  ;;  %2414 = vadd.xlane.f32.xlu1 %v2413_v63  ;;  %4406 = vpow2.f32 %v2409_v12 }
 0x76f   : > { %v5220_v3 = vpop.eup %4396 }
 0x770   : > { %v5222_v58 = vpop.eup %4398  ;;  %v4087_v27 = vpack.c.bf16 %v4270_v24, %v4269_v57  ;;  %v2422_v28 = vsel %vm889_vm3, %v5220_v3, 0.0 }
 0x771   : > { %2423 = vadd.xlane.f32.xlu0 %v2422_v28  ;;  %v2419_v29 = vsel %vm889_vm3, %v5222_v58, 0.0 }
 0x772   : > { %2420 = vadd.xlane.f32.xlu1 %v2419_v29  ;;  %4088 = vmatprep.subr.bf16.mxu0 %v4087_v27 }
 0x773   : > { %v5228_v59 = vpop.eup %4400 }
 0x774   : > { %v5230_v43 = vpop.eup %4402  ;;  %v2428_v23 = vsel %vm889_vm3, %v5228_v59, 0.0 }
 0x775   : > { %2429 = vadd.xlane.f32.xlu0 %v2428_v23  ;;  %v2425_v30 = vsel %vm889_vm3, %v5230_v43, 0.0 }
 0x776   : > { %2426 = vadd.xlane.f32.xlu1 %v2425_v30 }
 0x777   : > { %v5236_v34 = vpop.eup %4404 }
 0x778   : > { %v2434_v53 = vsel %vm889_vm3, %v5236_v34, 0.0  ;;  %v5240_v51 = vpop.eup %4406 }
 0x779   : > { %2435 = vadd.xlane.f32.xlu0 %v2434_v53  ;;  %v2431_v2 = vsel %vm889_vm3, %v5240_v51, 0.0 }
 0x77d   : > { %2432 = vadd.xlane.f32.xlu0 %v2431_v2 }
 0x787   : > { %4277 = vrot.lane.b32.xlu1 %v4982_v16, %s4478_s27 }
 0x78b   : > { %4282 = vrot.lane.b32.xlu1 %v4988_v62, %s4478_s27 }
 0x793   : > { %4272 = vrot.lane.b32.xlu0 %v4996_v20, %s4478_s27 }
 0x7b7   : > { %v3829_v60 = vpop.f32.mrb[32].mxu0 }
 0x7b8   : > { %v2065_v5 = vpop.f32.mrb[33].mxu0 }
 0x7b9   : > { %v2104_v1 = vpack.c.bf16 %v3829_v60, %v2065_v5 }
 0x7bb   : > { %v3832_v4 = vpop.f32.mrb[34].mxu0  ;;  %3841 = vmatprep.mubr.msk.bf16.mxu0 %vm751_vm1, %v2104_v1 }
 0x7bc   : > { %v2075_v49 = vpop.f32.mrb[35].mxu0 }
 0x7bd   : > { %v2105_v6 = vpack.c.bf16 %v3832_v4, %v2075_v49 }
 0x7bf   : > { %v3835_v32 = vpop.f32.mrb[36].mxu0  ;;  %3842 = vmatmul.mubr.msk.bf16.vlgmr.msra.gmra.mrb[24].mxu0 %vm751_vm1, %v2105_v6  ;;  %v4456_v6 = vld [vmem:[%s4574_s22] sm:$0xff] }
 0x7c0   : > { %4090 = vmatpush3.bf16.msra.mxu0 %v4087_v27  ;;  %v2085_v22 = vpop.f32.mrb[37].mxu0 }
 0x7c1   : > { %v2106_v16 = vpack.c.bf16 %v3835_v32, %v2085_v22 }
 0x7c3   : > { %v3838_v41 = vpop.f32.mrb[38].mxu0  ;;  %3845 = vmatprep.mubr.msk.bf16.mxu0 %vm751_vm1, %v2106_v16 }
 0x7c4   : > { %v2095_v62 = vpop.f32.mrb[39].mxu0 }
 0x7c5   : > { %v2107_v52 = vpack.c.bf16 %v3838_v41, %v2095_v62  ;;  %v4457_v41 = vld [vmem:[%s4574_s22 + $0x10] sm:$0xff] }
 0x7c7   : > { %3846 = vmatmul.mubr.msk.bf16.gmra.mrb[28].mxu0 %vm751_vm1, %v2107_v52  ;;  %v4458_v52 = vld [vmem:[%s4574_s22 + $0x8] sm:$0xff] }
 0x7fa   : > { %v2418_v20 = vpop.xlane.xlu0 %2417 }
 0x7fb   : > { %v2415_v36 = vpop.xlane.xlu1 %2414 }
 0x7fc   : > { %4408 = vrcp.f32 %v2415_v36 }
 0x7fd   : > { %4410 = vrcp.f32 %v2418_v20 }
 0x7fe   : > { %v2424_v40 = vpop.xlane.xlu0 %2423 }
 0x7ff   : > { %v2421_v33 = vpop.xlane.xlu1 %2420 }
 0x800   : > { %4412 = vrcp.f32 %v2421_v33 }
 0x801   : > { %4414 = vrcp.f32 %v2424_v40  ;;  %v4459_v40 = vld [vmem:[%s4574_s22 + $0x18] sm:$0xff] }
 0x802   : > { %v2430_v14 = vpop.xlane.xlu0 %2429 }
 0x803   : > { %v2427_v0 = vpop.xlane.xlu1 %2426 }
 0x804   : > { %4416 = vrcp.f32 %v2427_v0 }
 0x805   : > { %4418 = vrcp.f32 %v2430_v14 }
 0x806   : > { %v4409_v61 = vpop.eup %4408  ;;  %v2436_v15 = vpop.xlane.xlu0 %2435 }
 0x807   : > { %v2445_v19 = vmul.f32 %v4409_v61, %v4395_v17  ;;  %v4278_v37 = vpop.permute.xlu1 %4277  ;;  %v4411_v13 = vpop.eup %4410 }
 0x808   : > { %v4280_v39 = vunpack.i.h.bf16 %v4278_v37  ;;  %v4279_v42 = vunpack.i.l.bf16 %v4278_v37  ;;  %v2446_v10 = vmul.f32 %v4411_v13, %v5215_v25  ;;  %v4463_v13 = vld [vmem:[%s4574_s22 + $0x38] sm:$0xff] }
 0x809   : > { %3893 = vmatprep.mubr.msk.f32.mxu0 %vm889_vm3, %v2445_v19 }
 0x80a   : > { %v2433_v38 = vpop.xlane.xlu0 %2432  ;;  %v4095_v47 = vpack.c.bf16 %v4280_v39, %v4279_v42  ;;  %v4413_v35 = vpop.eup %4412  ;;  %v4460_v39 = vld [vmem:[%s4574_s22 + $0x20] sm:$0xff] }
 0x80b   : > { %v4283_v46 = vpop.permute.xlu1 %4282  ;;  %4420 = vrcp.f32 %v2433_v38  ;;  %v4415_v55 = vpop.eup %4414  ;;  %v2447_v18 = vmul.f32 %v4413_v35, %v5222_v58 }
 0x80c   : > { %v4285_v8 = vunpack.i.h.bf16 %v4283_v46  ;;  %v4284_v48 = vunpack.i.l.bf16 %v4283_v46  ;;  %4422 = vrcp.f32 %v2436_v15  ;;  %v2448_v26 = vmul.f32 %v4415_v55, %v5220_v3 }
 0x80e   : > { %v4273_v7 = vpop.permute.xlu0 %4272  ;;  %v4099_v11 = vpack.c.bf16 %v4285_v8, %v4284_v48  ;;  %v4417_v45 = vpop.eup %4416  ;;  %v4462_v8 = vld [vmem:[%s4574_s22 + $0x28] sm:$0xff] }
 0x80f   : > { %v4275_v31 = vunpack.i.h.bf16 %v4273_v7  ;;  %v4274_v44 = vunpack.i.l.bf16 %v4273_v7  ;;  %v4419_v17 = vpop.eup %4418  ;;  %v2449_v12 = vmul.f32 %v4417_v45, %v5230_v43 }
 0x810   : > { %v2450_v25 = vmul.f32 %v4419_v17, %v5228_v59 }
 0x811   : > { %v4091_v9 = vpack.c.bf16 %v4275_v31, %v4274_v44 }
 0x813   : > { %4092 = vmatprep.subr.bf16.mxu0 %v4091_v9 }
 0x814   : > { %4094 = vmatpush3.bf16.msra.mxu0 %v4091_v9  ;;  %v4461_v9 = vld [vmem:[%s4574_s22 + $0x30] sm:$0xff] }
 0x815   : > { %4096 = vmatprep.subr.bf16.mxu0 %v4095_v47  ;;  %v4421_v21 = vpop.eup %4420 }
 0x816   : > { %v4423_v56 = vpop.eup %4422  ;;  %v2451_v63 = vmul.f32 %v4421_v21, %v5240_v51  ;;  %v3431_v51 = vld [vmem:[%s5519_s7] ss:$0 sm:$0xff] }
 0x817   : > { %v2452_v24 = vmul.f32 %v4423_v56, %v5236_v34 }
 0x818   : > { %4098 = vmatpush3.bf16.msra.mxu0 %v4095_v47 }
 0x819   : > { %4100 = vmatprep.subr.bf16.mxu0 %v4099_v11 }
 0x81c   : > { %4102 = vmatpush3.bf16.msra.mxu0 %v4099_v11 }
 0x81d   : > { %4130 = vmatprep.subr.msk.bf16.mxu0 %vm1545_vm4, %v725_v50 }
 0x81f   : > { %3894 = vmatmul.mubr.msk.f32.vlgmr.msra.gmra.mrb[40].mxu0 %vm889_vm3, %v2446_v10 }
 0x820   : > { %3896 = vmatprep.mubr.msk.f32.mxu0 %vm889_vm3, %v2447_v18  ;;  %3906 = vmatpush3.bf16.msra.mxu0 %v2623_v54 }
 0x823   : > { %3897 = vmatmul.mubr.msk.f32.gmra.mrb[42].mxu0 %vm889_vm3, %v2448_v26 }
 0x824   : > { %3899 = vmatprep.mubr.msk.f32.mxu0 %vm889_vm3, %v2449_v12 }
 0x827   : > { %3900 = vmatmul.mubr.msk.f32.gmra.mrb[44].mxu0 %vm889_vm3, %v2450_v25 }
 0x828   : > { %3902 = vmatprep.mubr.msk.f32.mxu0 %vm889_vm3, %v2451_v63 }
 0x82b   : > { %3903 = vmatmul.mubr.msk.f32.gmra.mrb[46].mxu0 %vm889_vm3, %v2452_v24 }
 0x8f2   : > { %v3895_v57 = vpop.f32.mrb[40].mxu0 }
 0x8f3   : > { %v2567_v3 = vpop.f32.mrb[41].mxu0 }
 0x8f4   : > { %v2606_v58 = vpack.c.bf16 %v3895_v57, %v2567_v3 }
 0x8f6   : > { %v3898_v27 = vpop.f32.mrb[42].mxu0  ;;  %3907 = vmatprep.mubr.msk.bf16.mxu0 %vm751_vm1, %v2606_v58 }
 0x8f7   : > { %v2577_v28 = vpop.f32.mrb[43].mxu0 }
 0x8f8   : > { %v2607_v29 = vpack.c.bf16 %v3898_v27, %v2577_v28 }
 0x8fa   : > { %v3901_v59 = vpop.f32.mrb[44].mxu0  ;;  %3908 = vmatmul.mubr.msk.bf16.vlgmr.msra.gmra.mrb[24].mxu0 %vm751_vm1, %v2607_v29 }
 0x8fb   : > { %v2587_v43 = vpop.f32.mrb[45].mxu0 }
 0x8fc   : > { %v2608_v23 = vpack.c.bf16 %v3901_v59, %v2587_v43 }
 0x8fe   : > { %v3904_v30 = vpop.f32.mrb[46].mxu0  ;;  %3911 = vmatprep.mubr.msk.bf16.mxu0 %vm751_vm1, %v2608_v23 }
 0x8ff   : > { %v2597_v34 = vpop.f32.mrb[47].mxu0 }
 0x900   : > { %v2609_v53 = vpack.c.bf16 %v3904_v30, %v2597_v34 }
 0x902   : > { %3912 = vmatmul.mubr.msk.bf16.gmra.mrb[28].mxu0 %vm751_vm1, %v2609_v53 }
 0x9cd   : > { %v3909_v2 = vpop.f32.mrb[24].mxu0 }
 0x9ce   : > { %v2659_v60 = vpop.f32.mrb[25].mxu0  ;;  %v2706_v5 = vadd.f32 %v3909_v2, %v3431_v51 }
 0x9cf   : > { %v2704_v1 = vadd.f32 %v3431_v51, %v2659_v60  ;;  %v3910_v4 = vpop.f32.mrb[26].mxu0 }
 0x9d0   : > { %v2662_v49 = vpop.f32.mrb[27].mxu0  ;;  %v2707_v22 = vadd.f32 %v3910_v4, %v3431_v51  ;;  %v2714_v62 = vadd.f32 %v4457_v41, %v2706_v5 }
 0x9d1   : > { %v2712_v32 = vadd.f32 %v4456_v6, %v2704_v1  ;;  %v2705_v16 = vadd.f32 %v3431_v51, %v2662_v49 }
 0x9d2   : > { %v2715_v33 = vadd.f32 %v4459_v40, %v2707_v22  ;;  %v2727_v38 = vsel %vm540_vm0, %v2714_v62, 0.0 }
 0x9d3   : > { %v2713_v20 = vadd.f32 %v4458_v52, %v2705_v16  ;;  %v2721_v36 = vsel %vm540_vm0, %v2712_v32, 0.0 }
 0x9d4   : > { %2722 = vadd.xlane.f32.xlu1 %v2721_v36  ;;  %v2730_v46 = vsel %vm540_vm0, %v2715_v33, 0.0 }
 0x9d5   : > { %v3913_v14 = vpop.f32.mrb[28].mxu0  ;;  %v2724_v0 = vsel %vm540_vm0, %v2713_v20, 0.0 }
 0x9d6   : > { %2725 = vadd.xlane.f32.xlu0 %v2724_v0  ;;  %v2675_v61 = vpop.f32.mrb[29].mxu0  ;;  %v2710_v15 = vadd.f32 %v3913_v14, %v3431_v51  ;;  %v4291_v14 = vld [vmem:[%s5521_s9 + $0x8] sm:$0xff]   ;;  %v5346_v0 = vld [vmem:[%s5523_s11] sm:$0xff]  }
 0x9d7   : > { %v2708_v19 = vadd.f32 %v3431_v51, %v2675_v61  ;;  %v3914_v37 = vpop.f32.mrb[30].mxu0 }
 0x9d8   : > { %2728 = vadd.xlane.f32.xlu1 %v2727_v38  ;;  %v2678_v7 = vpop.f32.mrb[31].mxu0  ;;  %v2711_v31 = vadd.f32 %v3914_v37, %v3431_v51  ;;  %v2718_v47 = vadd.f32 %v4461_v9, %v2710_v15  ;;  %v2826_v37 = vlaneseq }
 0x9d9   : > { %v2716_v42 = vadd.f32 %v4460_v39, %v2708_v19  ;;  %v2709_v44 = vadd.f32 %v3431_v51, %v2678_v7 }
 0x9da   : > { %2731 = vadd.xlane.f32.xlu0 %v2730_v46  ;;  %v2719_v50 = vadd.f32 %v4463_v13, %v2711_v31  ;;  %v2739_v10 = vsel %vm540_vm0, %v2718_v47, 0.0 }
 0x9db   : > { %v2717_v48 = vadd.f32 %v4462_v8, %v2709_v44  ;;  %v2733_v11 = vsel %vm540_vm0, %v2716_v42, 0.0  ;;  %v5349_v44 = vshrl.u32 %v2826_v37, 7 }
 0x9dc   : > { %2734 = vadd.xlane.f32.xlu1 %v2733_v11  ;;  %v2742_v54 = vsel %vm540_vm0, %v2719_v50, 0.0 }
 0x9dd   : > { %v2736_v35 = vsel %vm540_vm0, %v2717_v48, 0.0  ;;  %v2828_v13 = vsub.s32 0, %v5349_v44 }
 0x9de   : > { %2737 = vadd.xlane.f32.xlu0 %v2736_v35  ;;  %v2720_v35 = vld [vmem:[%s5520_s8] sm:$0x3] }
 0x9e0   : > { %2740 = vadd.xlane.f32.xlu1 %v2739_v10 }
 0x9e2   : > { %2743 = vadd.xlane.f32.xlu0 %v2742_v54 }
 0xa61   : > { %v2723_v55 = vpop.xlane.xlu1 %2722 }
 0xa62   : > { %v2746_v18 = vmul.f32 0.03125, %v2723_v55 }
 0xa63   : > { %v2726_v45 = vpop.xlane.xlu0 %2725 }
 0xa64   : > { %v5297_v26 = vsub.f32 %v2712_v32, %v2746_v18  ;;  %v2747_v17 = vmul.f32 0.03125, %v2726_v45 }
 0xa65   : > { %v2729_v12 = vpop.xlane.xlu1 %2728 }
 0xa66   : > { %v5299_v21 = vsub.f32 %v2713_v20, %v2747_v17  ;;  %v2748_v25 = vmul.f32 0.03125, %v2729_v12  ;;  %v2762_v56 = vmul.f32 %v5297_v26, %v5297_v26  ;;  %v2829_v17 = vrot.slane %v2720_v35, %v2828_v13 }
 0xa67   : > { %v2732_v63 = vpop.xlane.xlu0 %2731  ;;  %v2840_v12 = vsub.s32 1, %v5349_v44 }
 0xa68   : > { %v5303_v24 = vsub.f32 %v2714_v62, %v2748_v25  ;;  %v2749_v57 = vmul.f32 0.03125, %v2732_v63  ;;  %v2770_v3 = vsel %vm540_vm0, %v2762_v56, 0.0  ;;  %v2763_v58 = vmul.f32 %v5299_v21, %v5299_v21 }
 0xa69   : > { %2771 = vadd.xlane.f32.xlu1 %v2770_v3  ;;  %v2735_v27 = vpop.xlane.xlu1 %2734 }
 0xa6a   : > { %v5308_v28 = vsub.f32 %v2715_v33, %v2749_v57  ;;  %v2750_v29 = vmul.f32 0.03125, %v2735_v27  ;;  %v2773_v59 = vsel %vm540_vm0, %v2763_v58, 0.0  ;;  %v2764_v43 = vmul.f32 %v5303_v24, %v5303_v24  ;;  %v4290_v33 = vld [vmem:[%s5521_s9] sm:$0xff]  }
 0xa6b   : > { %2774 = vadd.xlane.f32.xlu0 %v2773_v59  ;;  %v2738_v23 = vpop.xlane.xlu0 %2737  ;;  %3915 = vmatprep.subr.bf16.mxu1 %v4290_v33  ;;  %v2841_v59 = vrot.slane %v2720_v35, %v2840_v12 }
 0xa6c   : > { %v5313_v30 = vsub.f32 %v2716_v42, %v2750_v29  ;;  %v2751_v34 = vmul.f32 0.03125, %v2738_v23  ;;  %v2776_v53 = vsel %vm540_vm0, %v2764_v43, 0.0  ;;  %v2765_v51 = vmul.f32 %v5308_v28, %v5308_v28  ;;  %3916 = vmatpush3.bf16.msra.mxu1 %v4290_v33 }
 0xa6d   : > { %2777 = vadd.xlane.f32.xlu1 %v2776_v53  ;;  %v2741_v2 = vpop.xlane.xlu1 %2740  ;;  %3917 = vmatprep.subr.bf16.mxu1 %v4291_v14 }
 0xa6e   : > { %v5318_v60 = vsub.f32 %v2717_v48, %v2751_v34  ;;  %v2752_v5 = vmul.f32 0.03125, %v2741_v2  ;;  %v2779_v1 = vsel %vm540_vm0, %v2765_v51, 0.0  ;;  %v2766_v4 = vmul.f32 %v5313_v30, %v5313_v30 }
 0xa6f   : > { %2780 = vadd.xlane.f32.xlu0 %v2779_v1  ;;  %v2744_v49 = vpop.xlane.xlu0 %2743 }
 0xa70   : > { %v5323_v6 = vsub.f32 %v2718_v47, %v2752_v5  ;;  %v2753_v32 = vmul.f32 0.03125, %v2744_v49  ;;  %v2782_v22 = vsel %vm540_vm0, %v2766_v4, 0.0  ;;  %v2767_v16 = vmul.f32 %v5318_v60, %v5318_v60  ;;  %3918 = vmatpush3.bf16.msra.mxu1 %v4291_v14 }
 0xa71   : > { %2783 = vadd.xlane.f32.xlu1 %v2782_v22  ;;  %3927 = vmatprep.subr.bf16.mxu1 %v5346_v0 }
 0xa72   : > { %v5328_v41 = vsub.f32 %v2719_v50, %v2753_v32  ;;  %v2785_v62 = vsel %vm540_vm0, %v2767_v16, 0.0  ;;  %v2768_v52 = vmul.f32 %v5323_v6, %v5323_v6 }
 0xa73   : > { %2786 = vadd.xlane.f32.xlu0 %v2785_v62 }
 0xa74   : > { %v2788_v20 = vsel %vm540_vm0, %v2768_v52, 0.0  ;;  %v2769_v36 = vmul.f32 %v5328_v41, %v5328_v41 }
 0xa75   : > { %2789 = vadd.xlane.f32.xlu1 %v2788_v20 }
 0xa76   : > { %v2791_v40 = vsel %vm540_vm0, %v2769_v36, 0.0 }
 0xa77   : > { %2792 = vadd.xlane.f32.xlu0 %v2791_v40  ;;  %v4293_v40 = vld [vmem:[%s5523_s11 + $0x8] sm:$0xff]  }
 0xaf6   : > { %v2772_v61 = vpop.xlane.xlu1 %2771 }
 0xaf7   : > { %v2794_v15 = vmul.f32 0.03125, %v2772_v61 }
 0xaf8   : > { %v2775_v19 = vpop.xlane.xlu0 %2774 }
 0xaf9   : > { %v2802_v38 = vadd.f32 1e-05, %v2794_v15  ;;  %v2795_v7 = vmul.f32 0.03125, %v2775_v19 }
 0xafa   : > { %v2778_v39 = vpop.xlane.xlu1 %2777 }
 0xafb   : > { %4424 = vrsqrt.f32 %v2802_v38  ;;  %v2803_v42 = vadd.f32 1e-05, %v2795_v7  ;;  %v2796_v31 = vmul.f32 0.03125, %v2778_v39  ;;  %v4295_v7 = vld [vmem:[%s5523_s11 + $0x18] sm:$0xff]   ;;  %v3432_v39 = vld [vmem:[%s5522_s10] ss:$0 sm:$0xff] }
 0xafc   : > { %v2781_v46 = vpop.xlane.xlu0 %2780 }
 0xafd   : > { %4426 = vrsqrt.f32 %v2803_v42  ;;  %v2804_v9 = vadd.f32 1e-05, %v2796_v31  ;;  %v2797_v47 = vmul.f32 0.03125, %v2781_v46 }
 0xafe   : > { %v2784_v8 = vpop.xlane.xlu1 %2783 }
 0xaff   : > { %4428 = vrsqrt.f32 %v2804_v9  ;;  %v2805_v48 = vadd.f32 1e-05, %v2797_v47  ;;  %v2798_v11 = vmul.f32 0.03125, %v2784_v8 }
 0xb00   : > { %v2787_v50 = vpop.xlane.xlu0 %2786 }
 0xb01   : > { %4430 = vrsqrt.f32 %v2805_v48  ;;  %v2806_v10 = vadd.f32 1e-05, %v2798_v11  ;;  %v2799_v54 = vmul.f32 0.03125, %v2787_v50 }
 0xb02   : > { %v2790_v55 = vpop.xlane.xlu1 %2789 }
 0xb03   : > { %4432 = vrsqrt.f32 %v2806_v10  ;;  %v2807_v18 = vadd.f32 1e-05, %v2799_v54  ;;  %v2800_v45 = vmul.f32 0.03125, %v2790_v55 }
 0xb04   : > { %v2793_v25 = vpop.xlane.xlu0 %2792 }
 0xb05   : > { %v4425_v56 = vpop.eup %4424  ;;  %4434 = vrsqrt.f32 %v2807_v18  ;;  %v2808_v63 = vadd.f32 1e-05, %v2800_v45  ;;  %v2801_v57 = vmul.f32 0.03125, %v2793_v25 }
 0xb06   : > { %v2818_v3 = vmul.f32 %v4425_v56, %v5297_v26 }
 0xb07   : > { %v4427_v58 = vpop.eup %4426  ;;  %4436 = vrsqrt.f32 %v2808_v63  ;;  %v2809_v27 = vadd.f32 1e-05, %v2801_v57 }
 0xb08   : > { %v2819_v29 = vmul.f32 %v4427_v58, %v5299_v21  ;;  %v2830_v43 = vmul.f32 %v2829_v17, %v2818_v3 }
 0xb09   : > { %v4429_v23 = vpop.eup %4428  ;;  %4438 = vrsqrt.f32 %v2809_v27 }
 0xb0a   : > { %v2820_v34 = vmul.f32 %v4429_v23, %v5303_v24  ;;  %v2831_v53 = vmul.f32 %v2829_v17, %v2819_v29  ;;  %v5364_v1 = vadd.f32 %v2841_v59, %v2830_v43 }
 0xb0b   : > { %v4431_v51 = vpop.eup %4430 }
 0xb0c   : > { %v2832_v2 = vmul.f32 %v2829_v17, %v2820_v34  ;;  %v2821_v5 = vmul.f32 %v4431_v51, %v5308_v28  ;;  %v5366_v26 = vadd.f32 %v2841_v59, %v2831_v53  ;;  %v3439_v53 = vld [vmem:[%s5524_s12] ss:$0 sm:$0xff] }
 0xb0d   : > { %v4433_v4 = vpop.eup %4432 }
 0xb0e   : > { %v2833_v49 = vmul.f32 %v2829_v17, %v2821_v5  ;;  %v2822_v21 = vmul.f32 %v4433_v4, %v5313_v30  ;;  %v2855_v32 = vpack.c.bf16 %v5366_v26, %v5364_v1  ;;  %v5371_v16 = vadd.f32 %v2841_v59, %v2832_v2 }
 0xb0f   : > { %v4435_v22 = vpop.eup %4434 }
 0xb10   : > { %v5373_v24 = vadd.f32 %v2841_v59, %v2833_v49  ;;  %v2823_v62 = vmul.f32 %v4435_v22, %v5318_v60  ;;  %3919 = vmatprep.mubr.msk.bf16.mxu1 %vm540_vm0, %v2855_v32  ;;  %v2834_v28 = vmul.f32 %v2829_v17, %v2822_v21 }
 0xb11   : > { %v4437_v52 = vpop.eup %4436 }
 0xb12   : > { %v2824_v20 = vmul.f32 %v4437_v52, %v5323_v6  ;;  %v2856_v36 = vpack.c.bf16 %v5373_v24, %v5371_v16  ;;  %v2835_v30 = vmul.f32 %v2829_v17, %v2823_v62  ;;  %v5385_v60 = vadd.f32 %v2841_v59, %v2834_v28 }
 0xb13   : > { %v4439_v33 = vpop.eup %4438 }
 0xb14   : > { %v2825_v14 = vmul.f32 %v4439_v33, %v5328_v41  ;;  %3920 = vmatmul.mubr.msk.bf16.vlgmr.msra.gmra.mrb[40].mxu1 %vm540_vm0, %v2856_v36  ;;  %v5387_v61 = vadd.f32 %v2841_v59, %v2835_v30  ;;  %v2836_v15 = vmul.f32 %v2829_v17, %v2824_v20 }
 0xb15   : > { %3928 = vmatpush3.bf16.msra.mxu1 %v5346_v0  ;;  %v4294_v0 = vld [vmem:[%s5523_s11 + $0x10] sm:$0xff]  }
 0xb16   : > { %v2857_v6 = vpack.c.bf16 %v5387_v61, %v5385_v60  ;;  %v2837_v19 = vmul.f32 %v2829_v17, %v2825_v14  ;;  %3929 = vmatprep.subr.bf16.mxu1 %v4293_v40  ;;  %v5393_v37 = vadd.f32 %v2841_v59, %v2836_v15 }
 0xb18   : > { %3923 = vmatprep.mubr.msk.bf16.mxu1 %vm540_vm0, %v2857_v6  ;;  %v5395_v38 = vadd.f32 %v2841_v59, %v2837_v19 }
 0xb19   : > { %3930 = vmatpush3.bf16.msra.mxu1 %v4293_v40 }
 0xb1a   : > { %v2858_v41 = vpack.c.bf16 %v5395_v38, %v5393_v37  ;;  %3931 = vmatprep.subr.bf16.mxu1 %v4294_v0 }
 0xb1c   : > { %3924 = vmatmul.mubr.msk.bf16.gmra.mrb[44].mxu1 %vm540_vm0, %v2858_v41 }
 0xb1d   : > { %3932 = vmatpush3.bf16.msra.mxu1 %v4294_v0 }
 0xb1e   : > { %3933 = vmatprep.subr.bf16.mxu1 %v4295_v7 }
 0xb21   : > { %3934 = vmatpush3.bf16.msra.mxu1 %v4295_v7 }
 0xbe7   : > { %v3921_v42 = vpop.f32.mrb[40].mxu1 }
 0xbe8   : > { %v2932_v31 = vadd.f32 %v3921_v42, %v3432_v39  ;;  %v2923_v46 = vpop.f32.mrb[41].mxu1 }
 0xbe9   : > { %v2924_v9 = vadd.f32 %v3432_v39, %v2923_v46  ;;  %v3922_v47 = vpop.f32.mrb[42].mxu1 }
 0xbea   : > { %v2935_v8 = vadd.f32 %v3922_v47, %v3432_v39  ;;  %v2926_v48 = vpop.f32.mrb[43].mxu1  ;;  %v2956_v50 = vmax.f32 %v2932_v31, 0.0 }
 0xbeb   : > { %v2927_v11 = vadd.f32 %v3432_v39, %v2926_v48  ;;  %v2954_v10 = vmax.f32 %v2924_v9, 0.0 }
 0xbec   : > { %v2957_v35 = vmax.f32 %v2935_v8, 0.0 }
 0xbed   : > { %v2955_v54 = vmax.f32 %v2927_v11, 0.0 }
 0xbee   : > { %v2972_v55 = vpack.c.bf16 %v2957_v35, %v2956_v50 }
 0xbef   : > { %v2971_v18 = vpack.c.bf16 %v2955_v54, %v2954_v10  ;;  %v3925_v45 = vpop.f32.mrb[44].mxu1 }
 0xbf0   : > { %v2948_v17 = vadd.f32 %v3925_v45, %v3432_v39  ;;  %v2939_v25 = vpop.f32.mrb[45].mxu1 }
 0xbf1   : > { %v2940_v56 = vadd.f32 %v3432_v39, %v2939_v25  ;;  %v3926_v63 = vpop.f32.mrb[46].mxu1  ;;  %3935 = vmatprep.mubr.msk.bf16.mxu1 %vm889_vm3, %v2971_v18 }
 0xbf2   : > { %v2951_v57 = vadd.f32 %v3926_v63, %v3432_v39  ;;  %v2942_v3 = vpop.f32.mrb[47].mxu1  ;;  %3936 = vmatmul.mubr.msk.bf16.vlgmr.msra.gmra.mrb[48].mxu1 %vm889_vm3, %v2972_v55  ;;  %v2960_v27 = vmax.f32 %v2948_v17, 0.0 }
 0xbf3   : > { %v2943_v58 = vadd.f32 %v3432_v39, %v2942_v3  ;;  %v2958_v59 = vmax.f32 %v2940_v56, 0.0 }
 0xbf4   : > { %v2961_v29 = vmax.f32 %v2951_v57, 0.0 }
 0xbf5   : > { %v2959_v43 = vmax.f32 %v2943_v58, 0.0 }
 0xbf6   : > { %v2974_v23 = vpack.c.bf16 %v2961_v29, %v2960_v27 }
 0xbf7   : > { %v2973_v34 = vpack.c.bf16 %v2959_v43, %v2958_v59 }
 0xbf9   : > { %3939 = vmatprep.mubr.msk.bf16.mxu1 %vm889_vm3, %v2973_v34 }
 0xbfa   : > { %3940 = vmatmul.mubr.msk.bf16.gmra.mrb[52].mxu1 %vm889_vm3, %v2974_v23 }
 0xcc5   : > { %v3937_v51 = vpop.f32.mrb[48].mxu1 }
 0xcc6   : > { %v3060_v2 = vadd.f32 %v3937_v51, %v3439_v53  ;;  %v3051_v5 = vpop.f32.mrb[49].mxu1 }
 0xcc7   : > { %v3052_v4 = vadd.f32 %v3439_v53, %v3051_v5  ;;  %v3938_v49 = vpop.f32.mrb[50].mxu1 }
 0xcc8   : > { %v3084_v21 = vadd.f32 %v3060_v2, %v5371_v16  ;;  %v3063_v32 = vadd.f32 %v3938_v49, %v3439_v53  ;;  %v3054_v22 = vpop.f32.mrb[51].mxu1 }
 0xcc9   : > { %v3055_v62 = vadd.f32 %v3439_v53, %v3054_v22  ;;  %v3082_v28 = vadd.f32 %v3052_v4, %v5364_v1 }
 0xcca   : > { %v3085_v52 = vadd.f32 %v3063_v32, %v5373_v24  ;;  %v3097_v20 = vsel %vm540_vm0, %v3084_v21, 0.0 }
 0xccb   : > { %3098 = vadd.xlane.f32.xlu1 %v3097_v20  ;;  %v3083_v36 = vadd.f32 %v3055_v62, %v5366_v26  ;;  %v3091_v14 = vsel %vm540_vm0, %v3082_v28, 0.0 }
 0xccc   : > { %v3100_v30 = vsel %vm540_vm0, %v3085_v52, 0.0 }
 0xccd   : > { %3101 = vadd.xlane.f32.xlu0 %v3100_v30  ;;  %v3941_v40 = vpop.f32.mrb[52].mxu1  ;;  %v3094_v1 = vsel %vm540_vm0, %v3083_v36, 0.0 }
 0xcce   : > { %v3067_v33 = vpop.f32.mrb[53].mxu1  ;;  %v3076_v16 = vadd.f32 %v3941_v40, %v3439_v53 }
 0xccf   : > { %v3068_v15 = vadd.f32 %v3439_v53, %v3067_v33  ;;  %3092 = vadd.xlane.f32.xlu1 %v3091_v14  ;;  %v3942_v6 = vpop.f32.mrb[54].mxu1 }
 0xcd0   : > { %v3070_v19 = vpop.f32.mrb[55].mxu1  ;;  %v3079_v41 = vadd.f32 %v3942_v6, %v3439_v53  ;;  %v3088_v26 = vadd.f32 %v3076_v16, %v5393_v37 }
 0xcd1   : > { %v3086_v24 = vadd.f32 %v3068_v15, %v5385_v60  ;;  %v3071_v0 = vadd.f32 %v3439_v53, %v3070_v19  ;;  %3095 = vadd.xlane.f32.xlu0 %v3094_v1 }
 0xcd2   : > { %v3089_v42 = vadd.f32 %v3079_v41, %v5395_v38  ;;  %v3109_v46 = vsel %vm540_vm0, %v3088_v26, 0.0 }
 0xcd3   : > { %v3087_v7 = vadd.f32 %v3071_v0, %v5387_v61  ;;  %v3103_v39 = vsel %vm540_vm0, %v3086_v24, 0.0 }
 0xcd4   : > { %3104 = vadd.xlane.f32.xlu1 %v3103_v39  ;;  %v3112_v60 = vsel %vm540_vm0, %v3089_v42, 0.0 }
 0xcd5   : > { %v3106_v31 = vsel %vm540_vm0, %v3087_v7, 0.0 }
 0xcd6   : > { %3107 = vadd.xlane.f32.xlu0 %v3106_v31 }
 0xcd8   : > { %3110 = vadd.xlane.f32.xlu1 %v3109_v46 }
 0xcda   : > { %3113 = vadd.xlane.f32.xlu0 %v3112_v60 }
 0xd58   : > { %v3099_v9 = vpop.xlane.xlu1 %3098 }
 0xd59   : > { %v3117_v47 = vmul.f32 0.03125, %v3099_v9 }
 0xd5a   : > { %v3102_v8 = vpop.xlane.xlu0 %3101 }
 0xd5b   : > { %v5432_v37 = vsub.f32 %v3084_v21, %v3117_v47  ;;  %v3118_v61 = vmul.f32 0.03125, %v3102_v8 }
 0xd5c   : > { %v3093_v48 = vpop.xlane.xlu1 %3092 }
 0xd5d   : > { %v5434_v11 = vsub.f32 %v3085_v52, %v3118_v61  ;;  %v3115_v50 = vmul.f32 0.03125, %v3093_v48  ;;  %v3133_v38 = vmul.f32 %v5432_v37, %v5432_v37 }
 0xd5e   : > { %v3096_v35 = vpop.xlane.xlu0 %3095 }
 0xd5f   : > { %v5438_v10 = vsub.f32 %v3082_v28, %v3115_v50  ;;  %v3116_v54 = vmul.f32 0.03125, %v3096_v35  ;;  %v3145_v55 = vsel %vm540_vm0, %v3133_v38, 0.0  ;;  %v3134_v18 = vmul.f32 %v5434_v11, %v5434_v11 }
 0xd60   : > { %3146 = vadd.xlane.f32.xlu1 %v3145_v55 }
 0xd61   : > { %v5443_v45 = vsub.f32 %v3083_v36, %v3116_v54  ;;  %v3105_v17 = vpop.xlane.xlu1 %3104  ;;  %v3148_v25 = vsel %vm540_vm0, %v3134_v18, 0.0  ;;  %v3131_v56 = vmul.f32 %v5438_v10, %v5438_v10 }
 0xd62   : > { %v3119_v63 = vmul.f32 0.03125, %v3105_v17  ;;  %3149 = vadd.xlane.f32.xlu0 %v3148_v25 }
 0xd63   : > { %v3108_v57 = vpop.xlane.xlu0 %3107  ;;  %v3139_v3 = vsel %vm540_vm0, %v3131_v56, 0.0  ;;  %v3132_v58 = vmul.f32 %v5443_v45, %v5443_v45 }
 0xd64   : > { %v5451_v27 = vsub.f32 %v3086_v24, %v3119_v63  ;;  %v3120_v29 = vmul.f32 0.03125, %v3108_v57  ;;  %3140 = vadd.xlane.f32.xlu1 %v3139_v3 }
 0xd65   : > { %v3111_v59 = vpop.xlane.xlu1 %3110  ;;  %v3142_v43 = vsel %vm540_vm0, %v3132_v58, 0.0 }
 0xd66   : > { %v5454_v23 = vsub.f32 %v3087_v7, %v3120_v29  ;;  %v3121_v34 = vmul.f32 0.03125, %v3111_v59  ;;  %3143 = vadd.xlane.f32.xlu0 %v3142_v43  ;;  %v3135_v53 = vmul.f32 %v5451_v27, %v5451_v27 }
 0xd67   : > { %v3114_v51 = vpop.xlane.xlu0 %3113 }
 0xd68   : > { %v5458_v2 = vsub.f32 %v3088_v26, %v3121_v34  ;;  %v3122_v5 = vmul.f32 0.03125, %v3114_v51  ;;  %v3151_v4 = vsel %vm540_vm0, %v3135_v53, 0.0  ;;  %v3136_v49 = vmul.f32 %v5454_v23, %v5454_v23  ;;  %v3090_v26 = vld [vmem:[%s5525_s13] sm:$0x3] }
 0xd69   : > { %3152 = vadd.xlane.f32.xlu1 %v3151_v4  ;;  %v3198_v46 = vrot.slane %v3090_v26, %v2828_v13  ;;  %v3210_v8 = vrot.slane %v3090_v26, %v2840_v12 }
 0xd6a   : > { %v5463_v21 = vsub.f32 %v3089_v42, %v3122_v5  ;;  %v3154_v32 = vsel %vm540_vm0, %v3136_v49, 0.0  ;;  %v3137_v22 = vmul.f32 %v5458_v2, %v5458_v2 }
 0xd6b   : > { %3155 = vadd.xlane.f32.xlu0 %v3154_v32 }
 0xd6c   : > { %v3157_v62 = vsel %vm540_vm0, %v3137_v22, 0.0  ;;  %v3138_v28 = vmul.f32 %v5463_v21, %v5463_v21 }
 0xd6d   : > { %3158 = vadd.xlane.f32.xlu1 %v3157_v62 }
 0xd6e   : > { %v3160_v52 = vsel %vm540_vm0, %v3138_v28, 0.0 }
 0xd6f   : > { %3161 = vadd.xlane.f32.xlu0 %v3160_v52 }
 0xded   : > { %v3147_v20 = vpop.xlane.xlu1 %3146 }
 0xdee   : > { %v3165_v36 = vmul.f32 0.03125, %v3147_v20 }
 0xdef   : > { %v3150_v30 = vpop.xlane.xlu0 %3149 }
 0xdf0   : > { %v3173_v40 = vadd.f32 1e-05, %v3165_v36  ;;  %v3166_v33 = vmul.f32 0.03125, %v3150_v30 }
 0xdf1   : > { %v3141_v14 = vpop.xlane.xlu1 %3140 }
 0xdf2   : > { %4440 = vrsqrt.f32 %v3173_v40  ;;  %v3174_v16 = vadd.f32 1e-05, %v3166_v33  ;;  %v3163_v15 = vmul.f32 0.03125, %v3141_v14 }
 0xdf3   : > { %v3144_v6 = vpop.xlane.xlu0 %3143 }
 0xdf4   : > { %4442 = vrsqrt.f32 %v3174_v16  ;;  %v3171_v19 = vadd.f32 1e-05, %v3163_v15  ;;  %v3164_v1 = vmul.f32 0.03125, %v3144_v6 }
 0xdf6   : > { %4444 = vrsqrt.f32 %v3171_v19  ;;  %v3172_v24 = vadd.f32 1e-05, %v3164_v1  ;;  %v3153_v41 = vpop.xlane.xlu1 %3152 }
 0xdf7   : > { %v3167_v0 = vmul.f32 0.03125, %v3153_v41 }
 0xdf8   : > { %4446 = vrsqrt.f32 %v3172_v24  ;;  %v3156_v7 = vpop.xlane.xlu0 %3155 }
 0xdf9   : > { %v3175_v39 = vadd.f32 1e-05, %v3167_v0  ;;  %v3168_v42 = vmul.f32 0.03125, %v3156_v7 }
 0xdfa   : > { %v3159_v31 = vpop.xlane.xlu1 %3158 }
 0xdfb   : > { %4448 = vrsqrt.f32 %v3175_v39  ;;  %v3176_v60 = vadd.f32 1e-05, %v3168_v42  ;;  %v3169_v9 = vmul.f32 0.03125, %v3159_v31 }
 0xdfc   : > { %v4441_v47 = vpop.eup %4440  ;;  %v3162_v61 = vpop.xlane.xlu0 %3161 }
 0xdfd   : > { %v3189_v48 = vmul.f32 %v4441_v47, %v5432_v37  ;;  %4450 = vrsqrt.f32 %v3176_v60  ;;  %v3177_v50 = vadd.f32 1e-05, %v3169_v9  ;;  %v3170_v38 = vmul.f32 0.03125, %v3162_v61 }
 0xdfe   : > { %v4443_v35 = vpop.eup %4442 }
 0xdff   : > { %v3201_v54 = vmul.f32 %v3198_v46, %v3189_v48  ;;  %v3190_v55 = vmul.f32 %v4443_v35, %v5434_v11  ;;  %4452 = vrsqrt.f32 %v3177_v50  ;;  %v3178_v13 = vadd.f32 1e-05, %v3170_v38 }
 0xe00   : > { %v4445_v18 = vpop.eup %4444 }
 0xe01   : > { %v3213_v44 = vadd.f32 %v3210_v8, %v3201_v54  ;;  %v3202_v12 = vmul.f32 %v3198_v46, %v3190_v55  ;;  %v3187_v37 = vmul.f32 %v4445_v18, %v5438_v10  ;;  %4454 = vrsqrt.f32 %v3178_v13 }
 0xe02   : > { %v4447_v17 = vpop.eup %4446 }
 0xe03   : > { %3221 = vst.msk [vmem:[%s5485_s17 + $0x10] sm:$0xff] %vm540_vm0, %v3213_v44  ;;  %v3214_v11 = vadd.f32 %v3210_v8, %v3202_v12  ;;  %v3199_v25 = vmul.f32 %v3198_v46, %v3187_v37  ;;  %v3188_v56 = vmul.f32 %v4447_v17, %v5443_v45 }
 0xe05   : > { %v4449_v63 = vpop.eup %4448  ;;  %3222 = vst.msk [vmem:[%s5485_s17 + $0x18] sm:$0xff] %vm540_vm0, %v3214_v11  ;;  %v3211_v57 = vadd.f32 %v3210_v8, %v3199_v25  ;;  %v3200_v3 = vmul.f32 %v3198_v46, %v3188_v56 }
 0xe06   : > { %v3191_v58 = vmul.f32 %v4449_v63, %v5451_v27 }
 0xe07   : > { %v4451_v29 = vpop.eup %4450  ;;  %3219 = vst.msk [vmem:[%s5485_s17] sm:$0xff] %vm540_vm0, %v3211_v57  ;;  %v3212_v10 = vadd.f32 %v3210_v8, %v3200_v3 }
 0xe08   : > { %v3203_v59 = vmul.f32 %v3198_v46, %v3191_v58  ;;  %v3192_v43 = vmul.f32 %v4451_v29, %v5454_v23 }
 0xe09   : > { %v4453_v34 = vpop.eup %4452  ;;  %3220 = vst.msk [vmem:[%s5485_s17 + $0x8] sm:$0xff] %vm540_vm0, %v3212_v10 }
 0xe0a   : > { %v3215_v45 = vadd.f32 %v3210_v8, %v3203_v59  ;;  %v3204_v53 = vmul.f32 %v3198_v46, %v3192_v43  ;;  %v3193_v51 = vmul.f32 %v4453_v34, %v5458_v2 }
 0xe0b   : > { %v4455_v5 = vpop.eup %4454 }
 0xe0c   : > { %3223 = vst.msk [vmem:[%s5485_s17 + $0x20] sm:$0xff] %vm540_vm0, %v3215_v45  ;;  %v3216_v27 = vadd.f32 %v3210_v8, %v3204_v53  ;;  %v3205_v4 = vmul.f32 %v3198_v46, %v3193_v51  ;;  %v3194_v49 = vmul.f32 %v4455_v5, %v5463_v21 }
 0xe0e   : > { %3224 = vst.msk [vmem:[%s5485_s17 + $0x28] sm:$0xff] %vm540_vm0, %v3216_v27  ;;  %v3217_v32 = vadd.f32 %v3210_v8, %v3205_v4  ;;  %v3206_v22 = vmul.f32 %v3198_v46, %v3194_v49 }
 0xe10   : > { %3225 = vst.msk [vmem:[%s5485_s17 + $0x30] sm:$0xff] %vm540_vm0, %v3217_v32  ;;  %v3218_v23 = vadd.f32 %v3210_v8, %v3206_v22 }
 0xe12   : > { %3226 = vst.msk [vmem:[%s5485_s17 + $0x38] sm:$0xff] %vm540_vm0, %v3218_v23 }
 0xe13 PF: > { %s24_s29 = sadd.s32 1, %s4470_s29  }
 0xe14   : > { %p21_p4 = scmp.ge.s32.totalorder %s24_s29, 4  }
 0xe16   :  { %23 = sbr.rel (!%p21_p4) target bundleno = 1 (0x1), region = 109 }

// kernel: predictor_forward.8
= control target key start
LH: loop header
LB: loop body
LE: loop exit
PB: predicated region body
PF: predicated region fallthrough
CT: control target
= control target key end

     0   :  { %s5438_s0 = inlined_call_operand.vmem [shape: f32[2,8,32], index: 0, kind: input, shape index: {}]   ;;  %s5439_s1 = inlined_call_operand.vmem [shape: f32[2,64,32], index: 1, kind: input, shape index: {}]   ;;  %s5440_s2 = inlined_call_operand.vmem [shape: f32[2,64,32], index: 2, kind: input, shape index: {}]   ;;  %s5441_s3 = inlined_call_operand.vmem [shape: f32[8,32], index: 3, kind: input, shape index: {}]   ;;  %s5442_s4 = inlined_call_operand.vmem [shape: bf16[32,64], index: 4, kind: input, shape index: {}]   ;;  %s5443_s5 = inlined_call_operand.vmem [shape: f32[1,64], index: 5, kind: input, shape index: {}]   ;;  %s5444_s6 = inlined_call_operand.vmem [shape: bf16[32,32], index: 6, kind: input, shape index: {}]   ;;  %s5445_s7 = inlined_call_operand.vmem [shape: f32[1,32], index: 7, kind: input, shape index: {}]   ;;  %s5446_s8 = inlined_call_operand.vmem [shape: bf16[32,32], index: 8, kind: input, shape index: {}]   ;;  %s5447_s9 = inlined_call_operand.vmem [shape: f32[1,32], index: 9, kind: input, shape index: {}]   ;;  %s5448_s10 = inlined_call_operand.vmem [shape: f32[2,32], index: 10, kind: input, shape index: {}]   ;;  %s5449_s11 = inlined_call_operand.vmem [shape: bf16[32,32], index: 11, kind: input, shape index: {}]   ;;  %s5450_s12 = inlined_call_operand.vmem [shape: f32[1,32], index: 12, kind: input, shape index: {}]   ;;  %s5451_s13 = inlined_call_operand.vmem [shape: bf16[32,32], index: 13, kind: input, shape index: {}]   ;;  %s5452_s14 = inlined_call_operand.vmem [shape: f32[1,32], index: 14, kind: input, shape index: {}]   ;;  %s5453_s15 = inlined_call_operand.vmem [shape: bf16[32,32], index: 15, kind: input, shape index: {}]   ;;  %s5454_s16 = inlined_call_operand.vmem [shape: f32[1,32], index: 16, kind: input, shape index: {}]   ;;  %s5455_s17 = inlined_call_operand.vmem [shape: bf16[32,32], index: 17, kind: input, shape index: {}]   ;;  %s5456_s18 = inlined_call_operand.hbm [shape: f32[1,32], index: 18, kind: input, shape index: {}]   ;;  %s5457_s19 = inlined_call_operand.vmem [shape: f32[2,32], index: 19, kind: input, shape index: {}]   ;;  %s5458_s20 = inlined_call_operand.vmem [shape: bf16[32,64], index: 20, kind: input, shape index: {}]   ;;  %s5459_s21 = inlined_call_operand.hbm [shape: f32[1,64], index: 21, kind: input, shape index: {}]   ;;  %s5460_s22 = inlined_call_operand.vmem [shape: bf16[64,32], index: 22, kind: input, shape index: {}]   ;;  %s5461_s23 = inlined_call_operand.hbm [shape: f32[1,32], index: 23, kind: input, shape index: {}]   ;;  %s5462_s24 = inlined_call_operand.vmem [shape: f32[2,32], index: 24, kind: input, shape index: {}]   ;;  %s5463_s25 = inlined_call_operand.vmem [shape: f32[2,32], index: 25, kind: input, shape index: {}]   ;;  %s5464_s26 = inlined_call_operand.vmem [shape: f32[2,8,32], index: 26, kind: output, shape index: {0}]   ;;  %s5465_s27 = inlined_call_operand.vmem [shape: f32[2,8,32], index: 27, kind: output, shape index: {1}]  }
   0x1   :  { %5479 = sst [smem:[#allocation10_spill]] %s5438_s0 }
   0x2   :  { %5480 = sst [smem:[#allocation11_spill]] %s5439_s1 }
   0x3   :  { %5481 = sst [smem:[#allocation12_spill]] %s5440_s2 }
   0x4   :  { %5482 = sst [smem:[#allocation13_spill]] %s5441_s3 }
   0x5   :  { %5483 = sst [smem:[#allocation14_spill]] %s5442_s4 }
   0x6   :  { %5484 = sst [smem:[#allocation15_spill]] %s5443_s5 }
   0x7   :  { %5485 = sst [smem:[#allocation16_spill]] %s5444_s6 }
   0x8   :  { %5486 = sst [smem:[#allocation17_spill]] %s5445_s7 }
   0x9   :  { %5487 = sst [smem:[#allocation18_spill]] %s5446_s8 }
   0xa   :  { %5488 = sst [smem:[#allocation19_spill]] %s5447_s9 }
   0xb   :  { %5489 = sst [smem:[#allocation20_spill]] %s5448_s10 }
   0xc   :  { %5490 = sst [smem:[#allocation21_spill]] %s5449_s11 }
   0xd   :  { %5491 = sst [smem:[#allocation22_spill]] %s5465_s27 }
   0xe   :  { %33 = vsyncpa [#allocation3], 0 }
   0xf   :  { %34 = vsyncpa [#allocation5], 0  ;;  %s4780_s7 = smov 0  }
  0x10 LB: > { %5492 = sst [smem:[#allocation9_spill]] %s4625_s7  ;;  %s4786_s4 = sadd.s32 4294967295, %s4625_s7   ;;  %s4625_s7 = sphi %s4780_s7, %s40_s7  }
  0x11   : > { %p3631_p0 = scmp.ge.s32.totalorder %s4625_s7, 1  ;;  %p658_p1 = scmp.lt.s32.totalorder %s4625_s7, 3 }
  0x12   : > { %p5470_p2 = scmp.eq.s32.totalorder %s4786_s4, 0  ;;  %s4627_s30 = smov [#allocation4]  }
  0x13   : > { %p4791_p3 = pnand %p3631_p0, %p658_p1  ;;  %s733_s9 = sshll.u32 %s4627_s30, 4  ;;  %s734_s9 = int_to_ptr.vmem [resolvable:$true] %s733_s9 }
  0x14   : > { %s4628_s5 = smov [#allocation2]   ;;  %s4629_s0 = smov [#allocation6]  }
  0x15   : > { %s5493_s8 = scalar_select %p4791_p3, 1, 0 }
  0x16   : > { %p4314_p4 = pneg %p4791_p3  ;;  %s716_s28 = sshll.u32 %s4628_s5, 4  ;;  %s4803_s28 = int_to_ptr.vmem [resolvable:$true] %s716_s28 }
  0x17   : > { %s747_s10 = sshll.u32 %s4629_s0, 4  ;;  %s4527_s11 = scalar_lea.hbm %s5459_s21, 16  ;;  %s4805_s10 = int_to_ptr.vmem [resolvable:$true] %s747_s10 }
  0x18   : > { %p4799_p5 = pnand %p5470_p2, %p4314_p4  ;;  %p4528_p6 = scmp.ne.s32.totalorder %s5459_s21, %s4527_s11 }
  0x19   : > { %p4534_p10 = scmp.lt.u32.totalorder %s4527_s11, %s5459_s21 }
  0x1a   : > { %p4815_p7 = pneg %p4799_p5 }
  0x1c   : > { %p4530_p8 = pnand %p4815_p7, %p4528_p6 }
  0x1e   : > { %p4531_p9 = pneg %p4530_p8 }
  0x20   : > { %p4536_p11 = pnand %p4534_p10, %p4531_p9 }
  0x22   : > { %4539 = shalt.err (!%p4536_p11)
}
  0x23   : > { %s4540_s1 = scalar_lea.vmem %s734_s9, 16  ;;  %s4547_s6 = scalar_lea.vmem %s734_s9, 32 }
  0x24   : > { %p4541_p12 = scmp.ne.s32.totalorder %s734_s9, %s4540_s1  ;;  %p4548_p1 = scmp.lt.s32.totalorder %s734_s9, %s734_s9 }
  0x25   : > { %p4549_p4 = scmp.lt.s32.totalorder %s4547_s6, %s4540_s1 }
  0x26   : > { %p4543_p13 = pnand %p4541_p12, %p4815_p7 }
  0x27   : > { %p4550_p2 = por %p4549_p4, %p4548_p1 }
  0x28   : > { %p4544_p0 = pneg %p4543_p13 }
  0x2a   : > { %p4551_p3 = pnand %p4550_p2, %p4544_p0 }
  0x2c   : > { %4554 = shalt.err (!%p4551_p3)
}
  0x2d   : > { %4320 = dma.hbm_to_vmem [thread:$0]  (!%p4799_p5), %s5459_s21, 16, %s734_s9, [#allocation5]  }
  0x2e   : > { %s4555_s0 = scalar_lea.hbm %s5456_s18, 16 }
  0x2f   : > { %p4556_p6 = scmp.ne.s32.totalorder %s5456_s18, %s4555_s0  ;;  %p4562_p2 = scmp.lt.u32.totalorder %s4555_s0, %s5456_s18 }
  0x31   : > { %p4558_p8 = pnand %p4556_p6, %p4815_p7 }
  0x33   : > { %p4559_p9 = pneg %p4558_p8 }
  0x35   : > { %p4564_p3 = pnand %p4562_p2, %p4559_p9 }
  0x37   : > { %4567 = shalt.err (!%p4564_p3)
}
  0x38   : > { %s4568_s9 = scalar_lea.vmem %s4803_s28, 16  ;;  %s4575_s27 = scalar_lea.vmem %s4803_s28, 32 }
  0x39   : > { %p4569_p10 = scmp.ne.s32.totalorder %s4803_s28, %s4568_s9  ;;  %p4576_p13 = scmp.lt.s32.totalorder %s4803_s28, %s4803_s28 }
  0x3a   : > { %p4577_p0 = scmp.lt.s32.totalorder %s4575_s27, %s4568_s9 }
  0x3b   : > { %p4571_p11 = pnand %p4569_p10, %p4815_p7 }
  0x3c   : > { %p4578_p1 = por %p4577_p0, %p4576_p13 }
  0x3d   : > { %p4572_p12 = pneg %p4571_p11 }
  0x3f   : > { %p4579_p4 = pnand %p4578_p1, %p4572_p12 }
  0x41   : > { %4582 = shalt.err (!%p4579_p4)
}
  0x42   : > { %4317 = dma.hbm_to_vmem [thread:$0]  (!%p4799_p5), %s5456_s18, 16, %s4803_s28, [#allocation3]  }
  0x43   : > { %s4583_s5 = scalar_lea.hbm %s5461_s23, 16 }
  0x44   : > { %p4584_p6 = scmp.ne.s32.totalorder %s5461_s23, %s4583_s5  ;;  %p4590_p2 = scmp.lt.u32.totalorder %s4583_s5, %s5461_s23 }
  0x46   : > { %p4586_p8 = pnand %p4584_p6, %p4815_p7 }
  0x48   : > { %p4587_p9 = pneg %p4586_p8 }
  0x4a   : > { %p4592_p3 = pnand %p4590_p2, %p4587_p9 }
  0x4c   : > { %4595 = shalt.err (!%p4592_p3)
}
  0x4d   : > { %s4596_s28 = scalar_lea.vmem %s4805_s10, 16  ;;  %s4603_s27 = scalar_lea.vmem %s4805_s10, 32 }
  0x4e   : > { %p4597_p10 = scmp.ne.s32.totalorder %s4805_s10, %s4596_s28  ;;  %p4604_p13 = scmp.lt.s32.totalorder %s4805_s10, %s4805_s10 }
  0x4f   : > { %p4605_p0 = scmp.lt.s32.totalorder %s4603_s27, %s4596_s28 }
  0x50   : > { %p4599_p11 = pnand %p4597_p10, %p4815_p7 }
  0x51   : > { %p4606_p1 = por %p4605_p0, %p4604_p13 }
  0x52   : > { %p4600_p12 = pneg %p4599_p11 }
  0x54   : > { %p4607_p4 = pnand %p4606_p1, %p4600_p12 }
  0x56   : > { %4610 = shalt.err (!%p4607_p4)
}
  0x57   : > { %4323 = dma.hbm_to_vmem [thread:$0]  (!%p4799_p5), %s5461_s23, 16, %s4805_s10, [#allocation5]  }
  0x58   : > { %p5496_p6 = scmp.ne.s32.totalorder %s5493_s8, 0 }
  0x59   : > { %p5497_p7 = scmp.eq.s32.totalorder (!%p5496_p6), %s4786_s4, 0 }
  0x5a   : > { %789 = sbr.rel (%p5496_p6) target bundleno = 7655 (0x1de7), region = 124 }
  0x61   : > { %4616 = dma.done.wait (%p5497_p7), [#allocation3], 16   ;;  %p5498_p8 = pmov %p5497_p7 }
  0x62   : > { %p5499_p9 = pmov %p5497_p7 }
  0x63   : > { %4618 = vsyncadd (%p5498_p8), [#allocation3], 4294967280 }
  0x64   : > { %4620 = dma.done.wait (%p5499_p9), [#allocation5], 32   ;;  %p5500_p2 = pmov %p5497_p7 }
  0x65   : > { %p881_p3 = scmp.lt.s32.totalorder %s4786_s4, 1  ;;  %v4630_v0 = vmov 0.0   ;;  %vm4631_vm0 = vmmov 0   ;;  %s5501_s30 = sld [smem:[#allocation10_spill]]  ;;  %vm947_vm1 = vcmask 261120   ;;  %vm1066_vm2 = vcmask 64512  }
  0x66   : > { %4622 = vsyncadd (%p5500_p2), [#allocation5], 4294967264  ;;  %3882 = vmatprep.subr.bf16.mxu0 %v4630_v0  ;;  %3886 = vmatprep.mubr.msk.bf16.mxu0 %vm4631_vm0, %v4630_v0  ;;  %s5502_s0 = sld [smem:[#allocation14_spill]]  ;;  %s5503_s27 = sld [smem:[#allocation13_spill]]  ;;  %vm1396_vm3 = vcmask 1043456   ;;  %vm2331_vm5 = vcmask 523264  }
  0x67   : > { %s5521_s4 = smov (!%p881_p3, %s4786_s4), 1  ;;  %3903 = vmatprep.subr.mxu1 %v4630_v0  ;;  %3905 = vmatprep.mubr.msk.f32.mxu1 %vm4631_vm0, %v4630_v0  ;;  %s5504_s10 = sld [smem:[#allocation16_spill]]  ;;  %vm5126_vm4 = vmpackc.low %vm1066_vm2, %vm1066_vm2 }
  0x68   : > { %s4900_s8 = sshll.u32 %s5521_s4, 3  ;;  %s5505_s5 = sld [smem:[#allocation15_spill]] }
  0x69   : > { %s5477_s1 = smov 120   ;;  %s4633_s6 = smov 96  }
  0x6a   : > { %s4634_s9 = smov 88   ;;  %s5506_s7 = sld [smem:[#allocation17_spill]] }
  0x6b   : > { %s884_s3 = scalar_lea.vmem %s5501_s30, %s4900_s8  ;;  %s4635_s2 = smov 80  }
  0x6c   : > { %v4471_v1 = vld [vmem:[%s5502_s0] sm:$0xff]   ;;  %v4472_v2 = vld [vmem:[%s5502_s0 + $0x8] sm:$0xff]   ;;  %s5475_s29 = smov 112   ;;  %s5507_s11 = sld [smem:[#allocation18_spill]] }
  0x6d   : > { %3883 = vmatpush3.bf16.msra.mxu0 %v4471_v1  ;;  %v4912_v3 = vld [vmem:[%s884_s3] sm:$0xff]  ;;  %v4474_v8 = vld [vmem:[%s5504_s10 + $0x8] sm:$0xff]   ;;  %s4638_s28 = smov 72   ;;  %s5514_s3 = smov 120  }
  0x6e   : > { %v4917_v4 = vld [vmem:[%s5503_s27] sm:$0xff]  ;;  %3884 = vmatprep.subr.bf16.mxu0 %v4630_v0  ;;  %v996_v9 = vpack.c.bf16 %v4912_v3, %v4912_v3  ;;  %s5516_s27 = smov 112  }
  0x6f   : > { %v922_v5 = vadd.f32 %v4917_v4, %v4912_v3  ;;  %v4473_v7 = vld [vmem:[%s5504_s10] sm:$0xff]  }
  0x70   : > { %v3647_v10 = vld [vmem:[%s5505_s5] ss:$0 sm:$0xff]  ;;  %s5510_s5 = sld [smem:[#allocation12_spill]] }
  0x71   : > { %v928_v6 = vpack.c.bf16 %v922_v5, %v922_v5  ;;  %3885 = vmatpush3.bf16.msra.mxu0 %v4472_v2  ;;  %v3651_v16 = vld [vmem:[%s5506_s7] ss:$0 sm:$0xff] }
  0x72   : > { %3890 = vmatprep.subr.bf16.mxu0 %v4630_v0  ;;  %v1059_v41 = vld [vmem:[%s5507_s11 + $0x4] sm:$0xf]  ;;  %v1058_v50 = vld [vmem:[%s5507_s11] sm:$0xf] }
  0x73   : > { %v1398_v42 = vsel %vm1396_vm3, %v1059_v41, 0  ;;  %v1444_v51 = vsel %vm1396_vm3, %v1058_v50, 0 }
  0x74   : > { %3887 = vmatmul.mubr.msk.bf16.vlgmr.msra.gmra.mrb[0].mxu0 %vm947_vm1, %v928_v6 }
  0x75   : > { %3894 = vmatprep.mubr.msk.bf16.mxu0 %vm4631_vm0, %v4630_v0  ;;  %3891 = vmatpush3.bf16.msra.mxu0 %v4473_v7 }
  0x76   : > { %3892 = vmatprep.subr.bf16.mxu0 %v4630_v0 }
  0x79   : > { %3893 = vmatpush3.bf16.msra.mxu0 %v4474_v8 }
  0x7a   : > { %3898 = vmatprep.subr.mxu0 %v4630_v0 }
  0x7c   : > { %3895 = vmatmul.mubr.msk.bf16.vlgmr.msra.gmra.mrb[4].mxu0 %vm947_vm1, %v996_v9 }
  0x7d   : > { %3900 = vmatprep.mubr.msk.f32.mxu0 %vm4631_vm0, %v4630_v0 }
 0x147   : > { %v985_v11 = vpop.f32.mrb[0].mxu0 }
 0x148   : > { %v4942_v12 = vadd.f32 %v3647_v10, %v985_v11  ;;  %v3888_v13 = vpop.f32.mrb[1].mxu0 }
 0x149   : > { %v988_v14 = vpop.f32.mrb[2].mxu0 }
 0x14a   : > { %1226 = vrot.lane.b32.xlu1 %v4942_v12, %s5477_s1  ;;  %1064 = vrot.lane.b32.xlu0 %v4942_v12, %s4633_s6  ;;  %v3889_v15 = vpop.f32.mrb[3].mxu0  ;;  %s5508_s6 = sld [smem:[#allocation19_spill]] }
 0x14e   : > { %1228 = vrot.lane.b32.xlu0 %v4942_v12, %s4634_s9  ;;  %s5473_s9 = smov 104  }
 0x14f   : > { %v1052_v17 = vpop.f32.mrb[4].mxu0 }
 0x150   : > { %v4951_v18 = vadd.f32 %v3651_v16, %v1052_v17  ;;  %v3896_v19 = vpop.f32.mrb[5].mxu0 }
 0x151   : > { %v1055_v20 = vpop.f32.mrb[6].mxu0 }
 0x152   : > { %v3897_v21 = vpop.f32.mrb[7].mxu0  ;;  %3904 = vmatpush3.msra.mxu1 %v4951_v18 }
 0x153   : > { %3913 = vmatprep.subr.mxu1 %v4630_v0 }
 0x1bc   : > { %v1065_v22 = vpop.permute.xlu0 %1064  ;;  %v1227_v24 = vpop.permute.xlu1 %1226 }
 0x1bd   : > { %3899 = vmatpush3.xpose.msk.msra.mxu0 %vm1066_vm2, %v1065_v22 }
 0x1be   : > { %3908 = vmatprep.subr.mxu0 %v4630_v0 }
 0x1c0   : > { %3901 = vmatmul.mubr.msk.f32.vlgmr.msra.gmra.mrb[8].mxu0 %vm1066_vm2, %v4942_v12  ;;  %v1229_v23 = vpop.permute.xlu0 %1228 }
 0x1c1   : > { %3909 = vmatpush3.xpose.msk.msra.mxu0 %vm1066_vm2, %v1229_v23  ;;  %3910 = vmatprep.mubr.msk.f32.mxu0 %vm4631_vm0, %v4630_v0 }
 0x1c2   : > { %3918 = vmatprep.subr.bf16.mxu0 %v4630_v0 }
 0x1c4   : > { %3911 = vmatmul.mubr.msk.f32.vlgmr.msra.gmra.mrb[10].mxu0 %vm1066_vm2, %v1227_v24 }
 0x1c5   : > { %3920 = vmatprep.mubr.msk.bf16.mxu0 %vm4631_vm0, %v4630_v0  ;;  %3919 = vmatpush3.bf16.msra.mxu0 %v1398_v42 }
 0x1c6   : > { %3930 = vmatprep.subr.mxu0 %v4630_v0 }
 0x293   : > { %v1137_v25 = vpop.f32.mrb[8].mxu0 }
 0x294   : > { %v3902_v26 = vpop.f32.mrb[9].mxu0  ;;  %v1141_v27 = vsel %vm1066_vm2, %v1137_v25, -inf }
 0x295   : > { %1142 = vmax.xlane.f32.xlu1 %v1141_v27 }
 0x297   : > { %v1300_v28 = vpop.f32.mrb[10].mxu0 }
 0x298   : > { %v3912_v29 = vpop.f32.mrb[11].mxu0  ;;  %v1304_v30 = vsel %vm1066_vm2, %v1300_v28, -inf }
 0x299   : > { %1305 = vmax.xlane.f32.xlu0 %v1304_v30 }
 0x322   : > { %v1143_v31 = vpop.xlane.xlu1 %1142 }
 0x323   : > { %v1144_v32 = vsub.f32 %v1137_v25, %v1143_v31 }
 0x325   : > { %v1145_v33 = vmul.f32 1.442695, %v1144_v32 }
 0x326   : > { %v1306_v34 = vpop.xlane.xlu0 %1305 }
 0x327   : > { %4487 = vpow2.f32 %v1145_v33  ;;  %v1307_v35 = vsub.f32 %v1300_v28, %v1306_v34 }
 0x329   : > { %v1308_v36 = vmul.f32 1.442695, %v1307_v35 }
 0x32b   : > { %4489 = vpow2.f32 %v1308_v36 }
 0x331   : > { %v4488_v37 = vpop.eup %4487 }
 0x332   : > { %v1147_v38 = vsel %vm1066_vm2, %v4488_v37, 0.0 }
 0x333   : > { %1148 = vadd.xlane.f32.xlu0 %v1147_v38 }
 0x335   : > { %v4490_v39 = vpop.eup %4489 }
 0x336   : > { %v1310_v40 = vsel %vm1066_vm2, %v4490_v39, 0.0 }
 0x337   : > { %1311 = vadd.xlane.f32.xlu1 %v1310_v40 }
 0x348   : > { %1488 = vrot.lane.b32.xlu1 %v4942_v12, %s4635_s2  ;;  %s5509_s2 = sld [smem:[#allocation11_spill]] }
 0x349   : > { %1316 = vrot.lane.b32.xlu0 %v4951_v18, %s5477_s1 }
 0x34c   : > { %1486 = vrot.lane.b32.xlu1 %v4942_v12, %s5475_s29 }
 0x3c0   : > { %v1149_v43 = vpop.xlane.xlu0 %1148 }
 0x3c1   : > { %4491 = vrcp.f32 %v1149_v43 }
 0x3c4   : > { %v1312_v44 = vpop.xlane.xlu1 %1311  ;;  %v1317_v47 = vpop.permute.xlu0 %1316 }
 0x3c5   : > { %4493 = vrcp.f32 %v1312_v44 }
 0x3c8   : > { %v1489_v58 = vpop.permute.xlu1 %1488 }
 0x3cb   : > { %v4492_v45 = vpop.eup %4491 }
 0x3cc   : > { %v1151_v46 = vmul.f32 %v4492_v45, %v4488_v37  ;;  %v1487_v59 = vpop.permute.xlu1 %1486 }
 0x3ce   : > { %3906 = vmatmul.mubr.msk.f32.vlgmr.msra.gmra.mrb[0].mxu1 %vm1066_vm2, %v1151_v46 }
 0x3cf   : > { %v4494_v48 = vpop.eup %4493  ;;  %3914 = vmatpush3.msra.mxu1 %v1317_v47  ;;  %3915 = vmatprep.mubr.msk.f32.mxu1 %vm4631_vm0, %v4630_v0 }
 0x3d0   : > { %v1314_v49 = vmul.f32 %v4494_v48, %v4490_v39  ;;  %3924 = vmatprep.subr.bf16.mxu1 %v4630_v0 }
 0x3d2   : > { %3916 = vmatmul.mubr.msk.f32.vlgmr.msra.gmra.mrb[2].mxu1 %vm1066_vm2, %v1314_v49  ;;  %v3671_v49 = vld [vmem:[%s5508_s6] ss:$0 sm:$0xff] }
 0x3d3   : > { %3926 = vmatprep.mubr.msk.bf16.mxu1 %vm4631_vm0, %v4630_v0  ;;  %3925 = vmatpush3.bf16.msra.mxu1 %v1444_v51 }
 0x3d4   : > { %3935 = vmatprep.subr.mxu1 %v4630_v0 }
 0x4a1   : > { %v1221_v52 = vpop.f32.mrb[0].mxu1 }
 0x4a2   : > { %v1225_v53 = vpack.c.bf16 %v1221_v52, %v1221_v52  ;;  %v3907_v54 = vpop.f32.mrb[1].mxu1 }
 0x4a4   : > { %3927 = vmatmul.mubr.msk.bf16.vlgmr.msra.gmra.mrb[4].mxu1 %vm1066_vm2, %v1225_v53 }
 0x4a5   : > { %v1388_v55 = vpop.f32.mrb[2].mxu1  ;;  %3937 = vmatprep.mubr.msk.f32.mxu1 %vm4631_vm0, %v4630_v0 }
 0x4a6   : > { %v1392_v56 = vpack.c.bf16 %v1388_v55, %v1388_v55  ;;  %v3917_v57 = vpop.f32.mrb[3].mxu1 }
 0x4a8   : > { %3921 = vmatmul.mubr.msk.bf16.vlgmr.msra.gmra.mrb[12].mxu0 %vm1066_vm2, %v1392_v56 }
 0x4a9   : > { %3931 = vmatpush3.xpose.msk.msra.mxu0 %vm1066_vm2, %v1489_v58  ;;  %3932 = vmatprep.mubr.msk.f32.mxu0 %vm4631_vm0, %v4630_v0  ;;  %v4476_v58 = vld [vmem:[%s5451_s13 + $0x8] sm:$0xff]  }
 0x4aa   : > { %3940 = vmatprep.subr.bf16.mxu0 %v4630_v0 }
 0x4b0   : > { %3933 = vmatmul.mubr.msk.f32.vlgmr.msra.gmra.mrb[16].mxu0 %vm1066_vm2, %v1487_v59 }
 0x4b1   : > { %3942 = vmatprep.mubr.msk.bf16.mxu0 %vm4631_vm0, %v4630_v0 }
 0x577   : > { %v1480_v60 = vpop.f32.mrb[4].mxu1 }
 0x578   : > { %v3928_v61 = vpop.f32.mrb[5].mxu1 }
 0x579   : > { %v1483_v62 = vpop.f32.mrb[6].mxu1 }
 0x57a   : > { %v3929_v63 = vpop.f32.mrb[7].mxu1 }
 0x57b   : > { %v1434_v1 = vpop.f32.mrb[12].mxu0 }
 0x57c   : > { %v1481_v2 = vadd.f32 %v1480_v60, %v1434_v1  ;;  %v3922_v5 = vpop.f32.mrb[13].mxu0 }
 0x57d   : > { %v1437_v6 = vpop.f32.mrb[14].mxu0 }
 0x57e   : > { %v3923_v7 = vpop.f32.mrb[15].mxu0 }
 0x583   : > { %v1560_v8 = vpop.f32.mrb[16].mxu0 }
 0x584   : > { %v3934_v9 = vpop.f32.mrb[17].mxu0  ;;  %v1564_v10 = vsel %vm1066_vm2, %v1560_v8, -inf }
 0x585   : > { %1565 = vmax.xlane.f32.xlu0 %v1564_v10 }
 0x59b   : > { %1575 = vrot.lane.b32.xlu0 %v4951_v18, %s5475_s29 }
 0x59f   : > { %1699 = vrot.lane.b32.xlu0 %v4942_v12, %s5473_s9 }
 0x612   : > { %v1566_v11 = vpop.xlane.xlu0 %1565 }
 0x613   : > { %v1567_v13 = vsub.f32 %v1560_v8, %v1566_v11 }
 0x615   : > { %v1568_v14 = vmul.f32 1.442695, %v1567_v13 }
 0x616   : > { %v1576_v15 = vpop.permute.xlu0 %1575 }
 0x617   : > { %4495 = vpow2.f32 %v1568_v14  ;;  %3936 = vmatpush3.msra.mxu1 %v1576_v15 }
 0x618   : > { %3946 = vmatprep.subr.mxu1 %v4630_v0 }
 0x61a   : > { %v1700_v23 = vpop.permute.xlu0 %1699 }
 0x621   : > { %v4496_v16 = vpop.eup %4495 }
 0x622   : > { %v1570_v17 = vsel %vm1066_vm2, %v4496_v16, 0.0 }
 0x623   : > { %1571 = vadd.xlane.f32.xlu1 %v1570_v17 }
 0x634   : > { %1701 = vrot.lane.b32.xlu1 %v4942_v12, %s4638_s28  ;;  %v1060_v12 = vld [vmem:[%s5507_s11 + $0x8] sm:$0xf]  ;;  %s3747_s28 = sshll.u32 %s5521_s4, 6  ;;  %s5515_s4 = sld [smem:[#allocation20_spill]] }
 0x635   : > { %v1656_v24 = vsel %vm1396_vm3, %v1060_v12, 0  ;;  %s5049_s30 = scalar_lea.vmem %s5509_s2, %s3747_s28  ;;  %s5054_s6 = scalar_lea.vmem %s5510_s5, %s3747_s28 }
 0x636   : > { %3941 = vmatpush3.bf16.msra.mxu0 %v1656_v24  ;;  %v5063_v59 = vld [vmem:[%s5049_s30] sm:$0xff]  ;;  %v5066_v60 = vld [vmem:[%s5049_s30 + $0x8] sm:$0xff]  ;;  %v5076_v5 = vld [vmem:[%s5049_s30 + $0x18] sm:$0xff]  ;;  %s898_s28 = scalar_lea.vmem %s5464_s26, %s4900_s8 }
 0x637   : > { %v913_v61 = vld [vmem:[%s5054_s6] sm:$0xff]  ;;  %v914_v62 = vld [vmem:[%s5054_s6 + $0x8] sm:$0xff]  ;;  %v915_v6 = vld [vmem:[%s5054_s6 + $0x10] sm:$0xff] }
 0x638   : > { %v2013_v63 = vadd.f32 %v913_v61, %v5063_v59  ;;  %v2014_v1 = vadd.f32 %v914_v62, %v5066_v60  ;;  %v916_v7 = vld [vmem:[%s5054_s6 + $0x18] sm:$0xff]  ;;  %v5082_v9 = vld [vmem:[%s5049_s30 + $0x20] sm:$0xff]  ;;  %v5085_v10 = vld [vmem:[%s5049_s30 + $0x28] sm:$0xff]  ;;  %v1935_v62 = vlaneseq }
 0x639   : > { %v2016_v13 = vadd.f32 %v916_v7, %v5076_v5  ;;  %v917_v14 = vld [vmem:[%s5054_s6 + $0x20] sm:$0xff]  ;;  %v918_v15 = vld [vmem:[%s5054_s6 + $0x28] sm:$0xff]  ;;  %v920_v12 = vld [vmem:[%s5054_s6 + $0x38] sm:$0xff] }
 0x63a   : > { %v2026_v11 = vpack.c.bf16 %v2014_v1, %v2013_v63  ;;  %v2018_v17 = vadd.f32 %v918_v15, %v5085_v10  ;;  %v1936_v1 = vshrl.u32 %v1935_v62, 7  ;;  %v1920_v7 = vld [vmem:[%s5515_s4] sm:$0x3] }
 0x6b0   : > { %v1572_v19 = vpop.xlane.xlu1 %1571 }
 0x6b1   : > { %4497 = vrcp.f32 %v1572_v19 }
 0x6b4   : > { %v1702_v22 = vpop.permute.xlu1 %1701 }
 0x6bb   : > { %v4498_v20 = vpop.eup %4497 }
 0x6bc   : > { %v1574_v21 = vmul.f32 %v4498_v20, %v4496_v16  ;;  %v2017_v16 = vadd.f32 %v917_v14, %v5082_v9  ;;  %v5094_v20 = vld [vmem:[%s5049_s30 + $0x30] sm:$0xff] }
 0x6be   : > { %3938 = vmatmul.mubr.msk.f32.vlgmr.msra.gmra.mrb[8].mxu1 %vm1066_vm2, %v1574_v21  ;;  %v2028_v21 = vpack.c.bf16 %v2018_v17, %v2017_v16 }
 0x6bf   : > { %3947 = vmatpush3.xpose.msk.msra.mxu1 %vm1066_vm2, %v1702_v22  ;;  %3948 = vmatprep.mubr.msk.f32.mxu1 %vm4631_vm0, %v4630_v0  ;;  %v5097_v22 = vld [vmem:[%s5049_s30 + $0x38] sm:$0xff] }
 0x6c0   : > { %3951 = vmatprep.subr.mxu1 %v4630_v0 }
 0x6c2   : > { %3949 = vmatmul.mubr.msk.f32.vlgmr.msra.gmra.mrb[10].mxu1 %vm1066_vm2, %v1700_v23  ;;  %v919_v23 = vld [vmem:[%s5054_s6 + $0x30] sm:$0xff]  ;;  %s5518_s6 = sld [smem:[#allocation22_spill]] }
 0x6c3   : > { %3953 = vmatprep.mubr.msk.f32.mxu1 %vm4631_vm0, %v4630_v0  ;;  %v2019_v24 = vadd.f32 %v919_v23, %v5094_v20  ;;  %v3672_v23 = vld [vmem:[%s5450_s12] ss:$0 sm:$0xff] }
 0x6c8   : > { %s902_s4 = scalar_lea.vmem %s5518_s6, %s4900_s8 }
 0x791   : > { %v1647_v25 = vpop.f32.mrb[8].mxu1 }
 0x792   : > { %v1651_v26 = vpack.c.bf16 %v1647_v25, %v1647_v25  ;;  %v3939_v27 = vpop.f32.mrb[9].mxu1  ;;  %v2020_v25 = vadd.f32 %v920_v12, %v5097_v22 }
 0x794   : > { %3943 = vmatmul.mubr.msk.bf16.vlgmr.msra.gmra.mrb[20].mxu0 %vm1066_vm2, %v1651_v26  ;;  %v2029_v26 = vpack.c.bf16 %v2020_v25, %v2019_v24 }
 0x795   : > { %v1773_v28 = vpop.f32.mrb[10].mxu1  ;;  %3974 = vmatprep.mubr.msk.bf16.mxu0 %vm947_vm1, %v2026_v11 }
 0x796   : > { %v3950_v29 = vpop.f32.mrb[11].mxu1  ;;  %v1777_v30 = vsel %vm1066_vm2, %v1773_v28, -inf }
 0x797   : > { %1778 = vmax.xlane.f32.xlu1 %v1777_v30 }
 0x824   : > { %v1779_v31 = vpop.xlane.xlu1 %1778 }
 0x825   : > { %v1780_v32 = vsub.f32 %v1773_v28, %v1779_v31 }
 0x827   : > { %v1781_v33 = vmul.f32 1.442695, %v1780_v32 }
 0x829   : > { %4499 = vpow2.f32 %v1781_v33 }
 0x833   : > { %v4500_v34 = vpop.eup %4499 }
 0x834   : > { %v1783_v35 = vsel %vm1066_vm2, %v4500_v34, 0.0 }
 0x835   : > { %1784 = vadd.xlane.f32.xlu0 %v1783_v35  ;;  %v3676_v35 = vld [vmem:[%s5452_s14] ss:$0 sm:$0xff] }
 0x84b   : > { %1788 = vrot.lane.b32.xlu0 %v4951_v18, %s5473_s9  ;;  %v1061_v18 = vld [vmem:[%s5507_s11 + $0xc] sm:$0xf]  ;;  %s5511_s9 = sld [smem:[#allocation21_spill]] }
 0x84c   : > { %v1869_v45 = vsel %vm1396_vm3, %v1061_v18, 0 }
 0x851   : > { %v4477_v32 = vld [vmem:[%s5511_s9] sm:$0xff]   ;;  %v4478_v33 = vld [vmem:[%s5511_s9 + $0x8] sm:$0xff]  }
 0x867   : > { %v1692_v36 = vpop.f32.mrb[20].mxu0 }
 0x868   : > { %v1698_v37 = vadd.f32 %v1692_v36, %v1481_v2  ;;  %v3944_v38 = vpop.f32.mrb[21].mxu0  ;;  %v5073_v2 = vld [vmem:[%s5049_s30 + $0x10] sm:$0xff] }
 0x869   : > { %v1695_v39 = vpop.f32.mrb[22].mxu0  ;;  %v2015_v8 = vadd.f32 %v915_v6, %v5073_v2  ;;  %v5156_v6 = vsub.s32 0, %v1936_v1 }
 0x86a   : > { %v3945_v40 = vpop.f32.mrb[23].mxu0 }
 0x86b   : > { %v2027_v19 = vpack.c.bf16 %v2016_v13, %v2015_v8  ;;  %v5161_v8 = vsub.s32 1, %v1936_v1  ;;  %v1938_v11 = vrot.slane %v1920_v7, %v5156_v6 }
 0x86d   : > { %v1943_v15 = vrot.slane %v1920_v7, %v5161_v8 }
 0x8c2   : > { %v1785_v41 = vpop.xlane.xlu0 %1784 }
 0x8c3   : > { %4501 = vrcp.f32 %v1785_v41 }
 0x8c6   : > { %v1789_v42 = vpop.permute.xlu0 %1788 }
 0x8c7   : > { %3952 = vmatpush3.msra.mxu1 %v1789_v42 }
 0x8c8   : > { %3956 = vmatprep.subr.bf16.mxu1 %v4630_v0 }
 0x8cd   : > { %v4502_v43 = vpop.eup %4501 }
 0x8ce   : > { %v1787_v44 = vmul.f32 %v4502_v43, %v4500_v34  ;;  %v4639_v34 = vmov 0.0|0.0  }
 0x8d0   : > { %3954 = vmatmul.mubr.msk.f32.vlgmr.msra.gmra.mrb[12].mxu1 %vm1066_vm2, %v1787_v44 }
 0x8d1   : > { %3958 = vmatprep.mubr.msk.bf16.mxu1 %vm4631_vm0, %v4630_v0  ;;  %3957 = vmatpush3.bf16.msra.mxu1 %v1869_v45 }
 0x8d2   : > { %3962 = vmatprep.subr.bf16.mxu1 %v4630_v0 }
 0x9a3   : > { %v1860_v46 = vpop.f32.mrb[12].mxu1 }
 0x9a4   : > { %v1864_v47 = vpack.c.bf16 %v1860_v46, %v1860_v46  ;;  %v3955_v48 = vpop.f32.mrb[13].mxu1 }
 0x9a6   : > { %3959 = vmatmul.mubr.msk.bf16.vlgmr.msra.gmra.mrb[16].mxu1 %vm1066_vm2, %v1864_v47 }
 0x9a7   : > { %3966 = vmatprep.mubr.msk.bf16.mxu1 %vm4631_vm0, %v4630_v0  ;;  %3963 = vmatpush3.bf16.msra.mxu1 %v4477_v32 }
 0x9a8   : > { %3964 = vmatprep.subr.bf16.mxu1 %v4630_v0 }
 0x9ab   : > { %3965 = vmatpush3.bf16.msra.mxu1 %v4478_v33 }
 0xa79   : > { %v1905_v50 = vpop.f32.mrb[16].mxu1 }
 0xa7a   : > { %v1911_v51 = vadd.f32 %v1905_v50, %v1698_v37  ;;  %v3960_v52 = vpop.f32.mrb[17].mxu1 }
 0xa7b   : > { %v1908_v53 = vpop.f32.mrb[18].mxu1 }
 0xa7c   : > { %v1918_v54 = vadd.f32 %v3671_v49, %v1911_v51  ;;  %v3961_v55 = vpop.f32.mrb[19].mxu1 }
 0xa7e   : > { %v1919_v56 = vadd.f32 %v1918_v54, %v4912_v3  ;;  %v4475_v3 = vld [vmem:[%s5451_s13] sm:$0xff]  }
 0xa7f   : > { %3970 = vmatprep.subr.bf16.mxu0 %v4475_v3 }
 0xa80   : > { %v1921_v57 = vsel %vm947_vm1, %v1919_v56, 0.0  ;;  %3971 = vmatpush3.bf16.msra.mxu0 %v4475_v3 }
 0xa81   : > { %1922 = vadd.xlane.f32.xlu1 %v1921_v57  ;;  %3972 = vmatprep.subr.bf16.mxu0 %v4476_v58 }
 0xa84   : > { %3973 = vmatpush3.bf16.msra.mxu0 %v4476_v58 }
 0xa85   : > { %4190 = vmatprep.subr.bf16.mxu0 %v4639_v34 }
 0xa87   : > { %3975 = vmatmul.mubr.msk.bf16.vlgmr.msra.gmra.mrb[24].mxu0 %vm947_vm1, %v2027_v19 }
 0xa88   : > { %3978 = vmatprep.mubr.msk.bf16.mxu0 %vm947_vm1, %v2028_v21 }
 0xa8f   : > { %3979 = vmatmul.mubr.msk.bf16.gmra.mrb[28].mxu0 %vm947_vm1, %v2029_v26 }
 0xa90   : > { %4010 = vmatprep.mubr.msk.f32.mxu0 %vm4631_vm0, %v4630_v0 }
 0xb0e   : > { %v1923_v27 = vpop.xlane.xlu1 %1922 }
 0xb0f   : > { %v1925_v28 = vmul.f32 0.03125, %v1923_v27 }
 0xb11   : > { %v1926_v29 = vsub.f32 %v1919_v56, %v1925_v28  ;;  %v4480_v28 = vld [vmem:[%s5453_s15 + $0x8] sm:$0xff]  }
 0xb13   : > { %v1927_v30 = vmul.f32 %v1926_v29, %v1926_v29 }
 0xb15   : > { %v1928_v31 = vsel %vm947_vm1, %v1927_v30, 0.0  ;;  %v2131_v30 = vpack.c.bf16 %v5076_v5, %v5073_v2 }
 0xb16   : > { %1929 = vadd.xlane.f32.xlu1 %v1928_v31  ;;  %v2132_v31 = vpack.c.bf16 %v5085_v10, %v5082_v9  ;;  %v3683_v9 = vld [vmem:[%s5454_s16] ss:$0 sm:$0xff] }
 0xb5a   : > { %v3976_v36 = vpop.f32.mrb[24].mxu0 }
 0xb5b   : > { %v2103_v37 = vadd.f32 %v3976_v36, %v3676_v35  ;;  %v2094_v38 = vpop.f32.mrb[25].mxu0 }
 0xb5c   : > { %v5120_v39 = vadd.f32 %v3676_v35, %v2094_v38  ;;  %v3977_v40 = vpop.f32.mrb[26].mxu0 }
 0xb5d   : > { %v2106_v41 = vadd.f32 %v3977_v40, %v3676_v35  ;;  %v2097_v42 = vpop.f32.mrb[27].mxu0 }
 0xb5e   : > { %v5122_v43 = vadd.f32 %v3676_v35, %v2097_v42 }
 0xb5f   : > { %v5130_v18 = vpack.i.bf16 %v2106_v41, %v2103_v37  ;;  %v4195_v49 = vpack.c.bf16 %v2106_v41, %v2103_v37 }
 0xb60   : > { %v4191_v45 = vpack.c.bf16 %v5122_v43, %v5120_v39  ;;  %v5223_v7 = vpack.i.bf16 %v5122_v43, %v5120_v39 }
 0xb61   : > { %4357 = vrot.lane.b32.xlu0 %v5130_v18, %s5514_s3 }
 0xb62   : > { %4193 = vmatpush3.bf16.xpose.msk.msra.mxu0 %vm5126_vm4, %v4191_v45  ;;  %v3980_v46 = vpop.f32.mrb[28].mxu0 }
 0xb63   : > { %4194 = vmatprep.subr.bf16.mxu0 %v4639_v34  ;;  %v2110_v47 = vpop.f32.mrb[29].mxu0  ;;  %v2119_v51 = vadd.f32 %v3980_v46, %v3676_v35 }
 0xb64   : > { %v3981_v48 = vpop.f32.mrb[30].mxu0  ;;  %v2111_v52 = vadd.f32 %v3676_v35, %v2110_v47 }
 0xb65   : > { %v2113_v50 = vpop.f32.mrb[31].mxu0  ;;  %v2122_v53 = vadd.f32 %v3981_v48, %v3676_v35 }
 0xb66   : > { %v2114_v54 = vadd.f32 %v3676_v35, %v2113_v50 }
 0xb67   : > { %v5145_v56 = vpack.i.bf16 %v2122_v53, %v2119_v51  ;;  %v4203_v3 = vpack.c.bf16 %v2122_v53, %v2119_v51 }
 0xb68   : > { %v5139_v55 = vpack.i.bf16 %v2114_v54, %v2111_v52  ;;  %v4199_v57 = vpack.c.bf16 %v2114_v54, %v2111_v52 }
 0xb6a   : > { %4197 = vmatpush3.bf16.xpose.msk.msra.mxu0 %vm5126_vm4, %v4195_v49  ;;  %4362 = vrot.lane.b32.xlu0 %v5139_v55, %s5514_s3 }
 0xb6b   : > { %4198 = vmatprep.subr.bf16.mxu0 %v4639_v34 }
 0xb6e   : > { %4367 = vrot.lane.b32.xlu0 %v5145_v56, %s5514_s3 }
 0xb72   : > { %4201 = vmatpush3.bf16.xpose.msk.msra.mxu0 %vm5126_vm4, %v4199_v57 }
 0xb73   : > { %4202 = vmatprep.subr.bf16.mxu0 %v4639_v34 }
 0xb7a   : > { %4205 = vmatpush3.bf16.xpose.msk.msra.mxu0 %vm5126_vm4, %v4203_v3 }
 0xb7b   : > { %4234 = vmatprep.subr.bf16.mxu0 %v4639_v34 }
 0xba3   : > { %v1930_v58 = vpop.xlane.xlu1 %1929 }
 0xba4   : > { %v1931_v61 = vmul.f32 0.03125, %v1930_v58 }
 0xba6   : > { %v1932_v63 = vadd.f32 1e-05, %v1931_v61 }
 0xba8   : > { %4503 = vrsqrt.f32 %v1932_v63 }
 0xbb2   : > { %v4504_v13 = vpop.eup %4503 }
 0xbb3   : > { %v1934_v14 = vmul.f32 %v4504_v13, %v1926_v29  ;;  %v2130_v29 = vpack.c.bf16 %v5066_v60, %v5063_v59  ;;  %v2133_v59 = vpack.c.bf16 %v5097_v22, %v5094_v20 }
 0xbb5   : > { %v1939_v16 = vmul.f32 %v1938_v11, %v1934_v14 }
 0xbb7   : > { %v5165_v17 = vadd.f32 %v1943_v15, %v1939_v16 }
 0xbb9   : > { %v1945_v19 = vadd.f32 %v5165_v17, %v4917_v4  ;;  %v4479_v4 = vld [vmem:[%s5453_s15] sm:$0xff]  }
 0xbba   : > { %3982 = vmatprep.subr.bf16.mxu1 %v4479_v4 }
 0xbbb   : > { %v1951_v21 = vpack.c.bf16 %v1945_v19, %v1945_v19 }
 0xbbd   : > { %3967 = vmatmul.mubr.msk.bf16.vlgmr.msra.gmra.mrb[20].mxu1 %vm947_vm1, %v1951_v21 }
 0xbbe   : > { %3986 = vmatprep.mubr.msk.bf16.mxu1 %vm947_vm1, %v2130_v29  ;;  %3983 = vmatpush3.bf16.msra.mxu1 %v4479_v4 }
 0xbbf   : > { %3984 = vmatprep.subr.bf16.mxu1 %v4480_v28 }
 0xbc2   : > { %3985 = vmatpush3.bf16.msra.mxu1 %v4480_v28 }
 0xbc3   : > { %4206 = vmatprep.subr.bf16.mxu1 %v4639_v34 }
 0xbc5   : > { %3987 = vmatmul.mubr.msk.bf16.vlgmr.msra.gmra.mrb[24].mxu1 %vm947_vm1, %v2131_v30 }
 0xbc6   : > { %3990 = vmatprep.mubr.msk.bf16.mxu1 %vm947_vm1, %v2132_v31 }
 0xbcd   : > { %3991 = vmatmul.mubr.msk.bf16.gmra.mrb[28].mxu1 %vm947_vm1, %v2133_v59 }
 0xbce   : > { %4029 = vmatprep.mubr.msk.f32.mxu1 %vm4631_vm0, %v4630_v0 }
 0xbd3   : > { %v4358_v11 = vpop.permute.xlu0 %4357 }
 0xbd4   : > { %v4360_v28 = vunpack.i.h.bf16 %v4358_v11  ;;  %v4359_v29 = vunpack.i.l.bf16 %v4358_v11 }
 0xbd6   : > { %v4223_v30 = vpack.c.bf16 %v4360_v28, %v4359_v29 }
 0xbdc   : > { %v4363_v13 = vpop.permute.xlu0 %4362 }
 0xbdd   : > { %v4365_v31 = vunpack.i.h.bf16 %v4363_v13  ;;  %v4364_v59 = vunpack.i.l.bf16 %v4363_v13 }
 0xbe0   : > { %v4368_v14 = vpop.permute.xlu0 %4367 }
 0xc90   : > { %v2007_v12 = vpop.f32.mrb[20].mxu1 }
 0xc91   : > { %v5173_v24 = vadd.f32 %v3672_v23, %v2007_v12  ;;  %v3968_v25 = vpop.f32.mrb[21].mxu1 }
 0xc92   : > { %v2010_v26 = vpop.f32.mrb[22].mxu1 }
 0xc93   : > { %v3969_v27 = vpop.f32.mrb[23].mxu1  ;;  %2417 = vrot.lane.b32.xlu0 %v5173_v24, %s5514_s3  ;;  %4011 = vmatmul.mubr.msk.f32.vlgmr.msra.gmra.mrb[18].mxu0 %vm1066_vm2, %v5173_v24 }
 0xc94   : > { %4067 = vmatprep.mubr.msk.f32.mxu0 %vm4631_vm0, %v4630_v0 }
 0xc98   : > { %v3988_v10 = vpop.f32.mrb[24].mxu1 }
 0xc99   : > { %v2207_v32 = vadd.f32 %v3988_v10, %v3683_v9  ;;  %v2198_v33 = vpop.f32.mrb[25].mxu1  ;;  %v2229_v10 = vld [vmem:[%s5455_s17] sm:$0xf] }
 0xc9a   : > { %v2199_v35 = vadd.f32 %v3683_v9, %v2198_v33  ;;  %v3989_v20 = vpop.f32.mrb[26].mxu1 }
 0xc9b   : > { %v2210_v22 = vadd.f32 %v3989_v20, %v3683_v9  ;;  %v2201_v36 = vpop.f32.mrb[27].mxu1 }
 0xc9c   : > { %v2202_v37 = vadd.f32 %v3683_v9, %v2201_v36 }
 0xc9d   : > { %v4210_v38 = vpack.c.bf16 %v2210_v22, %v2207_v32  ;;  %v5214_v61 = vpack.i.bf16 %v2210_v22, %v2207_v32  ;;  %v2690_v32 = vsel %vm1396_vm3, %v2229_v10, 0 }
 0xc9e   : > { %v4207_v40 = vpack.c.bf16 %v2202_v37, %v2199_v35  ;;  %v5206_v41 = vpack.i.bf16 %v2202_v37, %v2199_v35 }
 0xca0   : > { %v3992_v42 = vpop.f32.mrb[28].mxu1  ;;  %4208 = vmatpush3.bf16.msra.mxu1 %v4207_v40  ;;  %4372 = vrot.lane.b32.xlu0 %v5206_v41, %s5514_s3 }
 0xca1   : > { %v2223_v45 = vadd.f32 %v3992_v42, %v3683_v9  ;;  %v2214_v46 = vpop.f32.mrb[29].mxu1  ;;  %4209 = vmatprep.subr.bf16.mxu1 %v4639_v34 }
 0xca2   : > { %v2215_v47 = vadd.f32 %v3683_v9, %v2214_v46  ;;  %v3993_v48 = vpop.f32.mrb[30].mxu1 }
 0xca3   : > { %v2226_v49 = vadd.f32 %v3993_v48, %v3683_v9  ;;  %v2217_v50 = vpop.f32.mrb[31].mxu1 }
 0xca4   : > { %v2218_v51 = vadd.f32 %v3683_v9, %v2217_v50  ;;  %4211 = vmatpush3.bf16.msra.mxu1 %v4210_v38 }
 0xca5   : > { %4212 = vmatprep.subr.bf16.mxu1 %v4639_v34  ;;  %v4216_v62 = vpack.c.bf16 %v2226_v49, %v2223_v45  ;;  %v5218_v1 = vpack.i.bf16 %v2226_v49, %v2223_v45 }
 0xca6   : > { %v4213_v52 = vpack.c.bf16 %v2218_v51, %v2215_v47  ;;  %v5216_v63 = vpack.i.bf16 %v2218_v51, %v2215_v47 }
 0xca8   : > { %4214 = vmatpush3.bf16.msra.mxu1 %v4213_v52 }
 0xca9   : > { %4215 = vmatprep.subr.bf16.mxu1 %v4639_v34 }
 0xcac   : > { %4217 = vmatpush3.bf16.msra.mxu1 %v4216_v62 }
 0xcad   : > { %4218 = vmatprep.subr.bf16.mxu1 %v4639_v34 }
 0xd05   : > { %v2418_v15 = vpop.permute.xlu0 %2417 }
 0xd12   : > { %v4373_v16 = vpop.permute.xlu0 %4372 }
 0xd13   : > { %v4375_v19 = vunpack.i.h.bf16 %v4373_v16  ;;  %v4374_v21 = vunpack.i.l.bf16 %v4373_v16 }
 0xd15   : > { %v4235_v23 = vpack.c.bf16 %v4375_v19, %v4374_v21  ;;  %v2230_v19 = vld [vmem:[%s5455_s17 + $0x4] sm:$0xf] }
 0xd17   : > { %4236 = vmatpush3.bf16.msra.mxu0 %v4235_v23 }
 0xd18   : > { %4237 = vmatprep.subr.bf16.mxu0 %v4639_v34 }
 0xd66   : > { %v2327_v60 = vpop.f32.mrb[18].mxu0 }
 0xd67   : > { %v4012_v2 = vpop.f32.mrb[19].mxu0  ;;  %v2332_v5 = vsel %vm2331_vm5, %v2327_v60, -inf }
 0xd68   : > { %2333 = vmax.xlane.f32.xlu1 %v2332_v5  ;;  %v4370_v2 = vunpack.i.h.bf16 %v4368_v14  ;;  %v4369_v5 = vunpack.i.l.bf16 %v4368_v14 }
 0xd6a   : > { %v4231_v9 = vpack.c.bf16 %v4370_v2, %v4369_v5 }
 0xdf5   : > { %v2334_v53 = vpop.xlane.xlu1 %2333 }
 0xdf6   : > { %v2335_v54 = vsub.f32 %v2327_v60, %v2334_v53  ;;  %v4227_v60 = vpack.c.bf16 %v4365_v31, %v4364_v59 }
 0xdf8   : > { %v2336_v57 = vmul.f32 1.442695, %v2335_v54 }
 0xdfa   : > { %4505 = vpow2.f32 %v2336_v57 }
 0xe04   : > { %v4506_v3 = vpop.eup %4505 }
 0xe05   : > { %v2338_v58 = vsel %vm2331_vm5, %v4506_v3, 0.0 }
 0xe06   : > { %2339 = vadd.xlane.f32.xlu1 %v2338_v58 }
 0xe17   : > { %4352 = vrot.lane.b32.xlu1 %v5223_v7, %s5514_s3 }
 0xe93   : > { %v2340_v12 = vpop.xlane.xlu1 %2339 }
 0xe94   : > { %4507 = vrcp.f32 %v2340_v12  ;;  %v2644_v12 = vsel %vm1396_vm3, %v2230_v19, 0 }
 0xe97   : > { %v4353_v25 = vpop.permute.xlu1 %4352 }
 0xe98   : > { %v4355_v26 = vunpack.i.h.bf16 %v4353_v25  ;;  %v4354_v39 = vunpack.i.l.bf16 %v4353_v25 }
 0xe9a   : > { %v4219_v4 = vpack.c.bf16 %v4355_v26, %v4354_v39 }
 0xe9e   : > { %v4508_v43 = vpop.eup %4507 }
 0xe9f   : > { %v2342_v27 = vmul.f32 %v4508_v43, %v4506_v3 }
 0xea1   : > { %4030 = vmatmul.mubr.msk.f32.vlgmr.msra.gmra.mrb[14].mxu1 %vm2331_vm5, %v2342_v27 }
 0xea2   : > { %4221 = vmatpush3.bf16.xpose.msk.msra.mxu1 %vm5126_vm4, %v4219_v4  ;;  %4048 = vmatprep.mubr.msk.f32.mxu1 %vm4631_vm0, %v4630_v0 }
 0xea3   : > { %4222 = vmatprep.subr.bf16.mxu1 %v4639_v34 }
 0xeaa   : > { %4225 = vmatpush3.bf16.xpose.msk.msra.mxu1 %vm5126_vm4, %v4223_v30 }
 0xeab   : > { %4226 = vmatprep.subr.bf16.mxu1 %v4639_v34 }
 0xeb2   : > { %4229 = vmatpush3.bf16.xpose.msk.msra.mxu1 %vm5126_vm4, %v4227_v60 }
 0xeb3   : > { %4230 = vmatprep.subr.bf16.mxu1 %v4639_v34 }
 0xeba   : > { %4233 = vmatpush3.bf16.xpose.msk.msra.mxu1 %vm5126_vm4, %v4231_v9 }
 0xebb   : > { %4076 = vmatprep.subr.bf16.mxu1 %v4630_v0 }
 0xec1   : > { %4049 = vmatmul.mubr.msk.f32.vlgmr.msra.gmra.mrb[32].mxu1 %vm1066_vm2, %v2418_v15 }
 0xec2   : > { %4078 = vmatprep.mubr.msk.bf16.mxu1 %vm4631_vm0, %v4630_v0  ;;  %4077 = vmatpush3.bf16.msra.mxu1 %v2690_v32 }
 0xec3   : > { %4262 = vmatprep.subr.bf16.mxu1 %v4639_v34 }
 0xf74   : > { %v2412_v33 = vpop.f32.mrb[14].mxu1 }
 0xf75   : > { %v2416_v35 = vpack.c.bf16 %v2412_v33, %v2412_v33  ;;  %v4031_v20 = vpop.f32.mrb[15].mxu1 }
 0xf77   : > { %4079 = vmatmul.mubr.msk.bf16.vlgmr.msra.gmra.mrb[36].mxu1 %vm1066_vm2, %v2416_v35 }
 0xf78   : > { %4117 = vmatprep.mubr.msk.f32.mxu1 %vm4631_vm0, %v4630_v0 }
 0xf94   : > { %v2519_v22 = vpop.f32.mrb[32].mxu1 }
 0xf95   : > { %v4050_v36 = vpop.f32.mrb[33].mxu1  ;;  %v2523_v37 = vsel %vm2331_vm5, %v2519_v22, -inf }
 0xf96   : > { %2524 = vmax.xlane.f32.xlu1 %v2523_v37 }
 0xfa7   : > { %4377 = vrot.lane.b32.xlu1 %v5214_v61, %s5514_s3 }
 0xfab   : > { %4382 = vrot.lane.b32.xlu1 %v5216_v63, %s5514_s3 }
 0xfaf   : > { %4392 = vrot.lane.b32.xlu1 %v5223_v7, %s5516_s27 }
 0xfb3   : > { %4402 = vrot.lane.b32.xlu1 %v5139_v55, %s5516_s27 }
 0xfb7   : > { %2732 = vrot.lane.b32.xlu1 %v5173_v24, %s5516_s27 }
 0xfbb   : > { %4417 = vrot.lane.b32.xlu1 %v5214_v61, %s5516_s27 }
0x1023   : > { %v2525_v38 = vpop.xlane.xlu1 %2524 }
0x1024   : > { %v2526_v40 = vsub.f32 %v2519_v22, %v2525_v38 }
0x1026   : > { %v2527_v42 = vmul.f32 1.442695, %v2526_v40 }
0x1027   : > { %v4378_v45 = vpop.permute.xlu1 %4377 }
0x1028   : > { %4509 = vpow2.f32 %v2527_v42  ;;  %v4380_v46 = vunpack.i.h.bf16 %v4378_v45  ;;  %v4379_v47 = vunpack.i.l.bf16 %v4378_v45 }
0x102a   : > { %v4238_v48 = vpack.c.bf16 %v4380_v46, %v4379_v47 }
0x102b   : > { %v4383_v49 = vpop.permute.xlu1 %4382 }
0x102c   : > { %v4385_v50 = vunpack.i.h.bf16 %v4383_v49  ;;  %v4384_v51 = vunpack.i.l.bf16 %v4383_v49  ;;  %4239 = vmatpush3.bf16.msra.mxu0 %v4238_v48 }
0x102d   : > { %4240 = vmatprep.subr.bf16.mxu0 %v4639_v34 }
0x102e   : > { %v4241_v52 = vpack.c.bf16 %v4385_v50, %v4384_v51 }
0x102f   : > { %v4393_v25 = vpop.permute.xlu1 %4392 }
0x1030   : > { %4242 = vmatpush3.bf16.msra.mxu0 %v4241_v52  ;;  %v4395_v26 = vunpack.i.h.bf16 %v4393_v25  ;;  %v4394_v39 = vunpack.i.l.bf16 %v4393_v25 }
0x1031   : > { %4243 = vmatprep.subr.bf16.mxu0 %v4639_v34 }
0x1032   : > { %v4510_v53 = vpop.eup %4509  ;;  %v4247_v28 = vpack.c.bf16 %v4395_v26, %v4394_v39 }
0x1033   : > { %v2529_v54 = vsel %vm2331_vm5, %v4510_v53, 0.0  ;;  %v4403_v60 = vpop.permute.xlu1 %4402 }
0x1034   : > { %2530 = vadd.xlane.f32.xlu0 %v2529_v54  ;;  %v4405_v2 = vunpack.i.h.bf16 %v4403_v60  ;;  %v4404_v5 = vunpack.i.l.bf16 %v4403_v60 }
0x1036   : > { %v4255_v9 = vpack.c.bf16 %v4405_v2, %v4404_v5 }
0x1037   : > { %v2733_v20 = vpop.permute.xlu1 %2732 }
0x103b   : > { %v4418_v50 = vpop.permute.xlu1 %4417 }
0x103c   : > { %v4420_v54 = vunpack.i.h.bf16 %v4418_v50 }
0x104a   : > { %4387 = vrot.lane.b32.xlu0 %v5218_v1, %s5514_s3  ;;  %v2726_v57 = vpop.f32.mrb[36].mxu1  ;;  %s5517_s3 = smov 104  }
0x104b   : > { %v4080_v3 = vpop.f32.mrb[37].mxu1 }
0x104c   : > { %v2729_v58 = vpop.f32.mrb[38].mxu1 }
0x104d   : > { %v4081_v62 = vpop.f32.mrb[39].mxu1 }
0x104e   : > { %4397 = vrot.lane.b32.xlu0 %v5130_v18, %s5516_s27 }
0x1052   : > { %4407 = vrot.lane.b32.xlu0 %v5145_v56, %s5516_s27 }
0x10c1   : > { %v2531_v11 = vpop.xlane.xlu0 %2530 }
0x10c2   : > { %4511 = vrcp.f32 %v2531_v11 }
0x10c5   : > { %v4388_v13 = vpop.permute.xlu0 %4387 }
0x10c6   : > { %v4390_v14 = vunpack.i.h.bf16 %v4388_v13  ;;  %v4389_v15 = vunpack.i.l.bf16 %v4388_v13 }
0x10c8   : > { %v4244_v16 = vpack.c.bf16 %v4390_v14, %v4389_v15 }
0x10c9   : > { %v4398_v29 = vpop.permute.xlu0 %4397 }
0x10ca   : > { %4245 = vmatpush3.bf16.msra.mxu0 %v4244_v16  ;;  %v4400_v30 = vunpack.i.h.bf16 %v4398_v29  ;;  %v4399_v31 = vunpack.i.l.bf16 %v4398_v29 }
0x10cb   : > { %4070 = vmatprep.subr.bf16.mxu0 %v4630_v0 }
0x10cc   : > { %v4512_v21 = vpop.eup %4511  ;;  %v4251_v59 = vpack.c.bf16 %v4400_v30, %v4399_v31 }
0x10cd   : > { %v2533_v23 = vmul.f32 %v4512_v21, %v4510_v53  ;;  %v4408_v10 = vpop.permute.xlu0 %4407 }
0x10ce   : > { %v4410_v32 = vunpack.i.h.bf16 %v4408_v10  ;;  %v4409_v33 = vunpack.i.l.bf16 %v4408_v10 }
0x10cf   : > { %4068 = vmatmul.mubr.msk.f32.vlgmr.msra.gmra.mrb[32].mxu0 %vm2331_vm5, %v2533_v23 }
0x10d0   : > { %4071 = vmatpush3.bf16.msra.mxu0 %v2644_v12  ;;  %4072 = vmatprep.mubr.msk.bf16.mxu0 %vm4631_vm0, %v4630_v0  ;;  %v4259_v35 = vpack.c.bf16 %v4410_v32, %v4409_v33 }
0x10d1   : > { %4246 = vmatprep.subr.bf16.mxu0 %v4639_v34 }
0x11a2   : > { %v2635_v43 = vpop.f32.mrb[32].mxu0 }
0x11a3   : > { %v2639_v27 = vpack.c.bf16 %v2635_v43, %v2635_v43  ;;  %v4069_v4 = vpop.f32.mrb[33].mxu0 }
0x11a5   : > { %4073 = vmatmul.mubr.msk.bf16.vlgmr.msra.gmra.mrb[36].mxu0 %vm1066_vm2, %v2639_v27  ;;  %v2231_v27 = vld [vmem:[%s5455_s17 + $0x8] sm:$0xf] }
0x11a6   : > { %4249 = vmatpush3.bf16.xpose.msk.msra.mxu0 %vm5126_vm4, %v4247_v28  ;;  %4098 = vmatprep.mubr.msk.f32.mxu0 %vm4631_vm0, %v4630_v0 }
0x11a7   : > { %4250 = vmatprep.subr.bf16.mxu0 %v4639_v34 }
0x11ae   : > { %4253 = vmatpush3.bf16.xpose.msk.msra.mxu0 %vm5126_vm4, %v4251_v59 }
0x11af   : > { %4254 = vmatprep.subr.bf16.mxu0 %v4639_v34 }
0x11b6   : > { %4257 = vmatpush3.bf16.xpose.msk.msra.mxu0 %vm5126_vm4, %v4255_v9 }
0x11b7   : > { %4258 = vmatprep.subr.bf16.mxu0 %v4639_v34 }
0x11be   : > { %4261 = vmatpush3.bf16.xpose.msk.msra.mxu0 %vm5126_vm4, %v4259_v35 }
0x11bf   : > { %4290 = vmatprep.subr.bf16.mxu0 %v4639_v34 }
0x11c5   : > { %4099 = vmatmul.mubr.msk.f32.vlgmr.msra.gmra.mrb[34].mxu0 %vm1066_vm2, %v2733_v20 }
0x11c6   : > { %4161 = vmatprep.mubr.msk.f32.mxu0 %vm4631_vm0, %v4630_v0 }
0x1278   : > { %v2680_v22 = vpop.f32.mrb[36].mxu0 }
0x1279   : > { %v5303_v36 = vadd.f32 %v2726_v57, %v2680_v22  ;;  %v4074_v37 = vpop.f32.mrb[37].mxu0  ;;  %v4419_v57 = vunpack.i.l.bf16 %v4418_v50 }
0x127a   : > { %v2683_v38 = vpop.f32.mrb[38].mxu0 }
0x127b   : > { %v4075_v40 = vpop.f32.mrb[39].mxu0 }
0x1298   : > { %v2834_v42 = vpop.f32.mrb[34].mxu0 }
0x1299   : > { %v4100_v45 = vpop.f32.mrb[35].mxu0  ;;  %v2838_v46 = vsel %vm2331_vm5, %v2834_v42, -inf }
0x129a   : > { %2839 = vmax.xlane.f32.xlu0 %v2838_v46 }
0x12b0   : > { %4412 = vrot.lane.b32.xlu0 %v5206_v41, %s5516_s27 }
0x12b4   : > { %4422 = vrot.lane.b32.xlu0 %v5216_v63, %s5516_s27 }
0x12b8   : > { %4432 = vrot.lane.b32.xlu0 %v5223_v7, %s5517_s3 }
0x12bc   : > { %4442 = vrot.lane.b32.xlu0 %v5139_v55, %s5517_s3  ;;  %v4266_v55 = vpack.c.bf16 %v4420_v54, %v4419_v57 }
0x12c0   : > { %2994 = vrot.lane.b32.xlu0 %v5173_v24, %s5517_s3 }
0x12c4   : > { %4452 = vrot.lane.b32.xlu0 %v5206_v41, %s5517_s3 }
0x1327   : > { %v2840_v47 = vpop.xlane.xlu0 %2839 }
0x1328   : > { %v2841_v48 = vsub.f32 %v2834_v42, %v2840_v47 }
0x132a   : > { %v2842_v49 = vmul.f32 1.442695, %v2841_v48 }
0x132b   : > { %v4413_v51 = vpop.permute.xlu0 %4412 }
0x132c   : > { %4513 = vpow2.f32 %v2842_v49  ;;  %v4415_v52 = vunpack.i.h.bf16 %v4413_v51  ;;  %v4414_v53 = vunpack.i.l.bf16 %v4413_v51 }
0x132e   : > { %v4263_v7 = vpack.c.bf16 %v4415_v52, %v4414_v53 }
0x132f   : > { %v4423_v3 = vpop.permute.xlu0 %4422 }
0x1330   : > { %4264 = vmatpush3.bf16.msra.mxu1 %v4263_v7  ;;  %v4425_v24 = vunpack.i.h.bf16 %v4423_v3  ;;  %v4424_v58 = vunpack.i.l.bf16 %v4423_v3 }
0x1331   : > { %4265 = vmatprep.subr.bf16.mxu1 %v4639_v34 }
0x1332   : > { %v4269_v11 = vpack.c.bf16 %v4425_v24, %v4424_v58 }
0x1333   : > { %v4433_v62 = vpop.permute.xlu0 %4432 }
0x1334   : > { %4267 = vmatpush3.bf16.msra.mxu1 %v4266_v55  ;;  %v4434_v29 = vunpack.i.l.bf16 %v4433_v62 }
0x1335   : > { %4268 = vmatprep.subr.bf16.mxu1 %v4639_v34 }
0x1336   : > { %v4514_v41 = vpop.eup %4513 }
0x1337   : > { %v4443_v13 = vpop.permute.xlu0 %4442  ;;  %v2844_v14 = vsel %vm2331_vm5, %v4514_v41, 0.0 }
0x1338   : > { %2845 = vadd.xlane.f32.xlu1 %v2844_v14  ;;  %4270 = vmatpush3.bf16.msra.mxu1 %v4269_v11  ;;  %v4445_v32 = vunpack.i.h.bf16 %v4443_v13  ;;  %v4444_v33 = vunpack.i.l.bf16 %v4443_v13 }
0x1339   : > { %4271 = vmatprep.subr.bf16.mxu1 %v4639_v34 }
0x133a   : > { %v4283_v35 = vpack.c.bf16 %v4445_v32, %v4444_v33  ;;  %v3264_v32 = vld [vmem:[%s5457_s19] sm:$0x3] }
0x133b   : > { %v2995_v15 = vpop.permute.xlu0 %2994  ;;  %v3281_v33 = vrot.slane %v3264_v32, %v5156_v6 }
0x133f   : > { %v4453_v16 = vpop.permute.xlu0 %4452 }
0x1340   : > { %v4455_v19 = vunpack.i.h.bf16 %v4453_v16  ;;  %v4454_v21 = vunpack.i.l.bf16 %v4453_v16 }
0x1342   : > { %v4291_v23 = vpack.c.bf16 %v4455_v19, %v4454_v21 }
0x1344   : > { %4292 = vmatpush3.bf16.msra.mxu0 %v4291_v23  ;;  %v3734_v23 = vld [vmem:[#allocation2] ss:$0 sm:$0xff] }
0x1345   : > { %4293 = vmatprep.subr.bf16.mxu0 %v4639_v34 }
0x1349   : > { %4427 = vrot.lane.b32.xlu1 %v5218_v1, %s5516_s27 }
0x134d   : > { %4437 = vrot.lane.b32.xlu1 %v5130_v18, %s5517_s3  ;;  %v2951_v18 = vsel %vm1396_vm3, %v2231_v27, 0 }
0x1351   : > { %4447 = vrot.lane.b32.xlu1 %v5145_v56, %s5517_s3  ;;  %v4435_v56 = vunpack.i.h.bf16 %v4433_v62 }
0x1353   : > { %v4275_v60 = vpack.c.bf16 %v4435_v56, %v4434_v29 }
0x13c5   : > { %v2846_v12 = vpop.xlane.xlu1 %2845 }
0x13c6   : > { %4515 = vrcp.f32 %v2846_v12 }
0x13c9   : > { %v4428_v25 = vpop.permute.xlu1 %4427 }
0x13ca   : > { %v4430_v26 = vunpack.i.h.bf16 %v4428_v25  ;;  %v4429_v39 = vunpack.i.l.bf16 %v4428_v25 }
0x13cc   : > { %v4272_v43 = vpack.c.bf16 %v4430_v26, %v4429_v39 }
0x13cd   : > { %v4438_v2 = vpop.permute.xlu1 %4437 }
0x13ce   : > { %4273 = vmatpush3.bf16.msra.mxu1 %v4272_v43  ;;  %v4440_v5 = vunpack.i.h.bf16 %v4438_v2  ;;  %v4439_v9 = vunpack.i.l.bf16 %v4438_v2  ;;  %v4484_v2 = vld [vmem:[%s5460_s22 + $0x8] sm:$0xff]  }
0x13cf   : > { %4120 = vmatprep.subr.bf16.mxu1 %v4630_v0 }
0x13d0   : > { %v4516_v4 = vpop.eup %4515  ;;  %v4279_v10 = vpack.c.bf16 %v4440_v5, %v4439_v9 }
0x13d1   : > { %v2848_v28 = vmul.f32 %v4516_v4, %v4514_v41  ;;  %v4448_v20 = vpop.permute.xlu1 %4447 }
0x13d2   : > { %v4450_v22 = vunpack.i.h.bf16 %v4448_v20  ;;  %v4449_v37 = vunpack.i.l.bf16 %v4448_v20 }
0x13d3   : > { %4118 = vmatmul.mubr.msk.f32.vlgmr.msra.gmra.mrb[34].mxu1 %vm2331_vm5, %v2848_v28 }
0x13d4   : > { %4121 = vmatpush3.bf16.msra.mxu1 %v2951_v18  ;;  %4122 = vmatprep.mubr.msk.bf16.mxu1 %vm4631_vm0, %v4630_v0  ;;  %v4287_v38 = vpack.c.bf16 %v4450_v22, %v4449_v37  ;;  %v3286_v22 = vrot.slane %v3264_v32, %v5161_v8 }
0x13d5   : > { %4274 = vmatprep.subr.bf16.mxu1 %v4639_v34 }
0x14a6   : > { %v2942_v30 = vpop.f32.mrb[34].mxu1 }
0x14a7   : > { %v2946_v31 = vpack.c.bf16 %v2942_v30, %v2942_v30  ;;  %v4119_v59 = vpop.f32.mrb[35].mxu1 }
0x14a8   : > { %v4481_v59 = vld [vmem:[%s5458_s20] sm:$0xff]  }
0x14a9   : > { %4123 = vmatmul.mubr.msk.bf16.vlgmr.msra.gmra.mrb[40].mxu1 %vm1066_vm2, %v2946_v31 }
0x14aa   : > { %4277 = vmatpush3.bf16.xpose.msk.msra.mxu1 %vm5126_vm4, %v4275_v60  ;;  %4142 = vmatprep.mubr.msk.f32.mxu1 %vm4631_vm0, %v4630_v0  ;;  %v4483_v60 = vld [vmem:[%s5460_s22] sm:$0xff]  }
0x14ab   : > { %4278 = vmatprep.subr.bf16.mxu1 %v4639_v34 }
0x14b2   : > { %4281 = vmatpush3.bf16.xpose.msk.msra.mxu1 %vm5126_vm4, %v4279_v10 }
0x14b3   : > { %4282 = vmatprep.subr.bf16.mxu1 %v4639_v34 }
0x14ba   : > { %4285 = vmatpush3.bf16.xpose.msk.msra.mxu1 %vm5126_vm4, %v4283_v35 }
0x14bb   : > { %4286 = vmatprep.subr.bf16.mxu1 %v4639_v34 }
0x14c2   : > { %4289 = vmatpush3.bf16.xpose.msk.msra.mxu1 %vm5126_vm4, %v4287_v38 }
0x14c3   : > { %4178 = vmatprep.subr.bf16.mxu1 %v4630_v0 }
0x14c9   : > { %4143 = vmatmul.mubr.msk.f32.vlgmr.msra.gmra.mrb[44].mxu1 %vm1066_vm2, %v2995_v15 }
0x14ca   : > { %4186 = vmatprep.mubr.msk.bf16.mxu1 %vm4631_vm0, %v4630_v0  ;;  %4179 = vmatpush3.bf16.msra.mxu1 %v4483_v60 }
0x14cb   : > { %4180 = vmatprep.subr.bf16.mxu1 %v4630_v0 }
0x14ce   : > { %4181 = vmatpush3.bf16.msra.mxu1 %v4484_v2 }
0x14cf   : > { %4182 = vmatprep.subr.bf16.mxu1 %v4630_v0 }
0x157c   : > { %v2987_v40 = vpop.f32.mrb[40].mxu1 }
0x157d   : > { %v2993_v42 = vadd.f32 %v2987_v40, %v5303_v36  ;;  %v4124_v45 = vpop.f32.mrb[41].mxu1 }
0x157e   : > { %v2990_v46 = vpop.f32.mrb[42].mxu1  ;;  %v4486_v45 = vld [vmem:[%s5460_s22 + $0x18] sm:$0xff]  }
0x157f   : > { %v4125_v47 = vpop.f32.mrb[43].mxu1  ;;  %v3735_v46 = vld [vmem:[#allocation4] ss:$0 sm:$0xff] }
0x159c   : > { %v3096_v48 = vpop.f32.mrb[44].mxu1 }
0x159d   : > { %v4144_v49 = vpop.f32.mrb[45].mxu1  ;;  %v3100_v50 = vsel %vm2331_vm5, %v3096_v48, -inf }
0x159e   : > { %3101 = vmax.xlane.f32.xlu1 %v3100_v50 }
0x15af   : > { %4457 = vrot.lane.b32.xlu1 %v5214_v61, %s5517_s3 }
0x15b3   : > { %4462 = vrot.lane.b32.xlu1 %v5216_v63, %s5517_s3 }
0x162b   : > { %v3102_v44 = vpop.xlane.xlu1 %3101 }
0x162c   : > { %v3103_v51 = vsub.f32 %v3096_v48, %v3102_v44 }
0x162e   : > { %v3104_v52 = vmul.f32 1.442695, %v3103_v51 }
0x162f   : > { %v4458_v53 = vpop.permute.xlu1 %4457 }
0x1630   : > { %4517 = vpow2.f32 %v3104_v52  ;;  %v4460_v36 = vunpack.i.h.bf16 %v4458_v53  ;;  %v4459_v54 = vunpack.i.l.bf16 %v4458_v53  ;;  %v3739_v53 = vld [vmem:[#allocation6] ss:$0 sm:$0xff] }
0x1632   : > { %v4294_v57 = vpack.c.bf16 %v4460_v36, %v4459_v54 }
0x1633   : > { %v4463_v7 = vpop.permute.xlu1 %4462 }
0x1634   : > { %v4465_v3 = vunpack.i.h.bf16 %v4463_v7  ;;  %v4464_v55 = vunpack.i.l.bf16 %v4463_v7  ;;  %4295 = vmatpush3.bf16.msra.mxu0 %v4294_v57 }
0x1635   : > { %4296 = vmatprep.subr.bf16.mxu0 %v4639_v34 }
0x1636   : > { %v4297_v24 = vpack.c.bf16 %v4465_v3, %v4464_v55 }
0x1638   : > { %4298 = vmatpush3.bf16.msra.mxu0 %v4297_v24 }
0x1639   : > { %4299 = vmatprep.subr.bf16.mxu0 %v4639_v34  ;;  %v2232_v34 = vld [vmem:[%s5455_s17 + $0xc] sm:$0xf] }
0x163a   : > { %v4518_v61 = vpop.eup %4517 }
0x163b   : > { %v3106_v63 = vsel %vm2331_vm5, %v4518_v61, 0.0 }
0x163c   : > { %3107 = vadd.xlane.f32.xlu0 %v3106_v63 }
0x1652   : > { %4467 = vrot.lane.b32.xlu0 %v5218_v1, %s5517_s3  ;;  %v3213_v1 = vsel %vm1396_vm3, %v2232_v34, 0 }
0x16c9   : > { %v3108_v58 = vpop.xlane.xlu0 %3107 }
0x16ca   : > { %4519 = vrcp.f32 %v3108_v58 }
0x16cd   : > { %v4468_v62 = vpop.permute.xlu0 %4467 }
0x16ce   : > { %v4470_v41 = vunpack.i.h.bf16 %v4468_v62  ;;  %v4469_v11 = vunpack.i.l.bf16 %v4468_v62 }
0x16d0   : > { %v4300_v13 = vpack.c.bf16 %v4470_v41, %v4469_v11 }
0x16d2   : > { %4301 = vmatpush3.bf16.msra.mxu0 %v4300_v13 }
0x16d3   : > { %4164 = vmatprep.subr.bf16.mxu0 %v4630_v0 }
0x16d4   : > { %v4520_v14 = vpop.eup %4519 }
0x16d5   : > { %v3110_v15 = vmul.f32 %v4520_v14, %v4518_v61  ;;  %v3440_v14 = vld [vmem:[%s5462_s24] sm:$0x3] }
0x16d7   : > { %4162 = vmatmul.mubr.msk.f32.vlgmr.msra.gmra.mrb[40].mxu0 %vm2331_vm5, %v3110_v15  ;;  %v3457_v15 = vrot.slane %v3440_v14, %v5156_v6 }
0x16d8   : > { %4166 = vmatprep.mubr.msk.bf16.mxu0 %vm4631_vm0, %v4630_v0  ;;  %4165 = vmatpush3.bf16.msra.mxu0 %v3213_v1 }
0x16d9   : > { %4170 = vmatprep.subr.bf16.mxu0 %v4630_v0 }
0x17aa   : > { %v3204_v16 = vpop.f32.mrb[40].mxu0 }
0x17ab   : > { %v3208_v19 = vpack.c.bf16 %v3204_v16, %v3204_v16  ;;  %v4163_v21 = vpop.f32.mrb[41].mxu0  ;;  %v3462_v16 = vrot.slane %v3440_v14, %v5161_v8 }
0x17ad   : > { %4167 = vmatmul.mubr.msk.bf16.vlgmr.msra.gmra.mrb[44].mxu0 %vm1066_vm2, %v3208_v19 }
0x17ae   : > { %4174 = vmatprep.mubr.msk.bf16.mxu0 %vm4631_vm0, %v4630_v0  ;;  %4171 = vmatpush3.bf16.msra.mxu0 %v4481_v59 }
0x17af   : > { %4172 = vmatprep.subr.bf16.mxu0 %v4630_v0 }
0x1880   : > { %v3249_v12 = vpop.f32.mrb[44].mxu0 }
0x1881   : > { %v3255_v25 = vadd.f32 %v3249_v12, %v2993_v42  ;;  %v4168_v26 = vpop.f32.mrb[45].mxu0  ;;  %v4485_v42 = vld [vmem:[%s5460_s22 + $0x10] sm:$0xff]  }
0x1882   : > { %v3252_v39 = vpop.f32.mrb[46].mxu0  ;;  %4183 = vmatpush3.bf16.msra.mxu1 %v4485_v42 }
0x1883   : > { %v3262_v43 = vadd.f32 %v3734_v23, %v3255_v25  ;;  %v4169_v27 = vpop.f32.mrb[47].mxu0  ;;  %4184 = vmatprep.subr.bf16.mxu1 %v4630_v0 }
0x1885   : > { %v3263_v4 = vadd.f32 %v3262_v43, %v5165_v17  ;;  %v4482_v17 = vld [vmem:[%s5458_s20 + $0x8] sm:$0xff]  }
0x1886   : > { %4173 = vmatpush3.bf16.msra.mxu0 %v4482_v17  ;;  %4185 = vmatpush3.bf16.msra.mxu1 %v4486_v45 }
0x1887   : > { %v3265_v28 = vsel %vm947_vm1, %v3263_v4, 0.0 }
0x1888   : > { %3266 = vadd.xlane.f32.xlu1 %v3265_v28 }
0x1915   : > { %v3267_v18 = vpop.xlane.xlu1 %3266 }
0x1916   : > { %v3268_v56 = vmul.f32 0.03125, %v3267_v18  ;;  %v3465_v18 = vld [vmem:[%s5463_s25] sm:$0x3] }
0x1918   : > { %v3269_v29 = vsub.f32 %v3263_v4, %v3268_v56  ;;  %v3482_v56 = vrot.slane %v3465_v18, %v5156_v6 }
0x191a   : > { %v3270_v30 = vmul.f32 %v3269_v29, %v3269_v29 }
0x191c   : > { %v3271_v31 = vsel %vm947_vm1, %v3270_v30, 0.0  ;;  %v3487_v30 = vrot.slane %v3465_v18, %v5161_v8 }
0x191d   : > { %3272 = vadd.xlane.f32.xlu0 %v3271_v31 }
0x19aa   : > { %v3273_v5 = vpop.xlane.xlu0 %3272 }
0x19ab   : > { %v3274_v9 = vmul.f32 0.03125, %v3273_v5 }
0x19ad   : > { %v3275_v10 = vadd.f32 1e-05, %v3274_v9 }
0x19af   : > { %4521 = vrsqrt.f32 %v3275_v10 }
0x19b9   : > { %v4522_v35 = vpop.eup %4521 }
0x19ba   : > { %v3277_v20 = vmul.f32 %v4522_v35, %v3269_v29 }
0x19bc   : > { %v3282_v37 = vmul.f32 %v3281_v33, %v3277_v20 }
0x19be   : > { %v3287_v38 = vadd.f32 %v3286_v22, %v3282_v37 }
0x19c0   : > { %v3293_v40 = vpack.c.bf16 %v3287_v38, %v3287_v38 }
0x19c2   : > { %4175 = vmatmul.mubr.msk.bf16.vlgmr.msra.gmra.mrb[48].mxu0 %vm947_vm1, %v3293_v40 }
0x1a95   : > { %v3349_v47 = vpop.f32.mrb[48].mxu0 }
0x1a96   : > { %v3350_v48 = vadd.f32 %v3735_v46, %v3349_v47  ;;  %v4176_v49 = vpop.f32.mrb[49].mxu0 }
0x1a97   : > { %v3352_v50 = vpop.f32.mrb[50].mxu0 }
0x1a98   : > { %v3355_v44 = vmax.f32 %v3350_v48, 0.0  ;;  %v4177_v51 = vpop.f32.mrb[51].mxu0 }
0x1a9a   : > { %v3365_v52 = vpack.c.bf16 %v3355_v44, %v3355_v44 }
0x1a9c   : > { %4187 = vmatmul.mubr.msk.bf16.vlgmr.msra.gmra.mrb[48].mxu1 %vm2331_vm5, %v3365_v52 }
0x1b6f   : > { %v3433_v36 = vpop.f32.mrb[48].mxu1 }
0x1b70   : > { %v3434_v54 = vadd.f32 %v3739_v53, %v3433_v36  ;;  %v4188_v57 = vpop.f32.mrb[49].mxu1 }
0x1b71   : > { %v3436_v0 = vpop.f32.mrb[50].mxu1 }
0x1b72   : > { %v4189_v7 = vpop.f32.mrb[51].mxu1  ;;  %v3439_v3 = vadd.f32 %v3434_v54, %v3287_v38 }
0x1b74   : > { %v3441_v55 = vsel %vm947_vm1, %v3439_v3, 0.0 }
0x1b75   : > { %3442 = vadd.xlane.f32.xlu0 %v3441_v55 }
0x1c02   : > { %v3443_v24 = vpop.xlane.xlu0 %3442 }
0x1c03   : > { %v3444_v61 = vmul.f32 0.03125, %v3443_v24 }
0x1c05   : > { %v3445_v63 = vsub.f32 %v3439_v3, %v3444_v61 }
0x1c07   : > { %v3446_v58 = vmul.f32 %v3445_v63, %v3445_v63 }
0x1c09   : > { %v3447_v62 = vsel %vm947_vm1, %v3446_v58, 0.0 }
0x1c0a   : > { %3448 = vadd.xlane.f32.xlu1 %v3447_v62 }
0x1c97   : > { %v3449_v41 = vpop.xlane.xlu1 %3448 }
0x1c98   : > { %v3450_v11 = vmul.f32 0.03125, %v3449_v41 }
0x1c9a   : > { %v3451_v13 = vadd.f32 1e-05, %v3450_v11 }
0x1c9c   : > { %4523 = vrsqrt.f32 %v3451_v13 }
0x1ca6   : > { %v4524_v34 = vpop.eup %4523 }
0x1ca7   : > { %v3453_v1 = vmul.f32 %v4524_v34, %v3445_v63 }
0x1ca9   : > { %v3458_v19 = vmul.f32 %v3457_v15, %v3453_v1 }
0x1cab   : > { %v3463_v21 = vadd.f32 %v3462_v16, %v3458_v19 }
0x1cad   : > { %v3466_v23 = vsel %vm947_vm1, %v3463_v21, 0.0  ;;  %3464 = vst.msk [vmem:[%s898_s28] sm:$0xff] %vm947_vm1, %v3463_v21 }
0x1cae   : > { %3467 = vadd.xlane.f32.xlu0 %v3466_v23 }
0x1d3b   : > { %v3468_v12 = vpop.xlane.xlu0 %3467 }
0x1d3c   : > { %v3469_v25 = vmul.f32 0.03125, %v3468_v12 }
0x1d3e   : > { %v3470_v26 = vsub.f32 %v3463_v21, %v3469_v25 }
0x1d40   : > { %v3471_v39 = vmul.f32 %v3470_v26, %v3470_v26 }
0x1d42   : > { %v3472_v43 = vsel %vm947_vm1, %v3471_v39, 0.0 }
0x1d43   : > { %3473 = vadd.xlane.f32.xlu1 %v3472_v43 }
0x1dd0   : > { %v3474_v27 = vpop.xlane.xlu1 %3473 }
0x1dd1   : > { %v3475_v4 = vmul.f32 0.03125, %v3474_v27 }
0x1dd3   : > { %v3476_v28 = vadd.f32 1e-05, %v3475_v4 }
0x1dd5   : > { %4525 = vrsqrt.f32 %v3476_v28 }
0x1ddf   : > { %v4526_v29 = vpop.eup %4525 }
0x1de0   : > { %v3478_v31 = vmul.f32 %v4526_v29, %v3470_v26 }
0x1de2   : > { %v3483_v59 = vmul.f32 %v3482_v56, %v3478_v31 }
0x1de4   : > { %v3488_v17 = vadd.f32 %v3487_v30, %v3483_v59 }
0x1de6   : > { %3489 = vst.msk [vmem:[%s902_s4] sm:$0xff] %vm947_vm1, %v3488_v17 }
0x1de7 PF: > { %s5519_s27 = sld [smem:[#allocation9_spill]] }
0x1ded   : > { %s40_s7 = sadd.s32 1, %s5519_s27  }
0x1dee   : > { %p37_p5 = scmp.ge.s32.totalorder %s40_s7, 4  }
0x1df0   :  { %39 = sbr.rel (!%p37_p5) target bundleno = 16 (0x10), region = 185 }
0x1df7   :  { %3523 = vsyncpa [#allocation3], 1 }
0x1df8   :  { %3525 = vsyncpa [#allocation3 + $0x1], 1 }
0x1df9   :  { %3526 = vsyncpa [#allocation5], 1 }

// kernel: predictor_forward.10
= control target key start
LH: loop header
LB: loop body
LE: loop exit
PB: predicated region body
PF: predicated region fallthrough
CT: control target
= control target key end

     0   :  { %vm58_vm0 = vcmask 261120   ;;  %vm114_vm1 = vcmask 31744   ;;  %s364_s27 = smov 124   ;;  %vm293_vm2 = vcmask 130048   ;;  %s479_s1 = inlined_call_operand.vmem [shape: bf16[32,36], index: 1, kind: input, shape index: {}]   ;;  %s480_s0 = inlined_call_operand.vmem [shape: f32[32,32], index: 0, kind: input, shape index: {}]   ;;  %s481_s3 = inlined_call_operand.vmem [shape: bf16[32,32], index: 3, kind: input, shape index: {}]   ;;  %s482_s2 = inlined_call_operand.vmem [shape: f32[1,36], index: 2, kind: input, shape index: {}]   ;;  %s483_s7 = inlined_call_operand.vmem [shape: f32[32,4], index: 7, kind: output, shape index: {0}]   ;;  %s484_s5 = inlined_call_operand.vmem [shape: bf16[32,16], index: 5, kind: input, shape index: {}]   ;;  %s485_s4 = inlined_call_operand.vmem [shape: f32[1,32], index: 4, kind: input, shape index: {}]   ;;  %s486_s6 = inlined_call_operand.vmem [shape: f32[1,16], index: 6, kind: input, shape index: {}]   ;;  %s487_s8 = inlined_call_operand.vmem [shape: f32[32,16], index: 8, kind: output, shape index: {1}]  }
   0x1   :  { %v358_v0 = vld [vmem:[%s479_s1] sm:$0xff]   ;;  %v359_v1 = vld [vmem:[%s479_s1 + $0x8] sm:$0xff]   ;;  %v31_v5 = vld [vmem:[%s480_s0 + $0x10] sm:$0xff] }
   0x2   :  { %333 = vmatprep.subr.bf16.mxu0 %v358_v0  ;;  %v29_v2 = vld [vmem:[%s480_s0] sm:$0xff]  ;;  %v30_v3 = vld [vmem:[%s480_s0 + $0x8] sm:$0xff]  ;;  %v32_v6 = vld [vmem:[%s480_s0 + $0x18] sm:$0xff] }
   0x3   :  { %334 = vmatpush3.bf16.msra.mxu0 %v358_v0  ;;  %v38_v4 = vpack.c.bf16 %v30_v3, %v29_v2  ;;  %v39_v7 = vpack.c.bf16 %v32_v6, %v31_v5  ;;  %v360_v8 = vld [vmem:[%s481_s3] sm:$0xff]   ;;  %v361_v9 = vld [vmem:[%s481_s3 + $0x8] sm:$0xff]  }
   0x4   :  { %335 = vmatprep.subr.bf16.mxu0 %v359_v1  ;;  %341 = vmatprep.subr.bf16.mxu1 %v360_v8  ;;  %v306_v10 = vld [vmem:[%s482_s2] ss:$0 sm:$0xff]  ;;  %v363_v28 = vld [vmem:[%s484_s5 + $0x8] sm:$0xff]  }
   0x5   :  { %337 = vmatprep.mubr.msk.bf16.mxu0 %vm58_vm0, %v38_v4  ;;  %342 = vmatpush3.bf16.msra.mxu1 %v360_v8  ;;  %v362_v27 = vld [vmem:[%s484_s5] sm:$0xff]  }
   0x6   :  { %343 = vmatprep.subr.bf16.mxu1 %v361_v9  ;;  %v311_v29 = vld [vmem:[%s485_s4] ss:$0 sm:$0xff] }
   0x7   :  { %336 = vmatpush3.bf16.msra.mxu0 %v359_v1  ;;  %v316_v44 = vld [vmem:[%s486_s6] ss:$0 sm:$0xff] }
   0x8   :  { %349 = vmatprep.subr.bf16.mxu0 %v362_v27 }
   0x9   :  { %344 = vmatpush3.bf16.msra.mxu1 %v361_v9 }
   0xa   :  { %338 = vmatmul.mubr.msk.bf16.vlgmr.msra.gmra.mrb[0].mxu0 %vm58_vm0, %v39_v7 }
   0xb   :  { %350 = vmatpush3.bf16.msra.mxu0 %v362_v27 }
   0xc   :  { %351 = vmatprep.subr.bf16.mxu0 %v363_v28 }
   0xf   :  { %352 = vmatpush3.bf16.msra.mxu0 %v363_v28 }
  0xdd   :  { %v339_v11 = vpop.f32.mrb[0].mxu0 }
  0xde   :  { %v108_v12 = vadd.f32 %v339_v11, %v306_v10  ;;  %v99_v13 = vpop.f32.mrb[1].mxu0 }
  0xdf   :  { %v100_v14 = vadd.f32 %v306_v10, %v99_v13  ;;  %v340_v15 = vpop.f32.mrb[2].mxu0 }
  0xe0   :  { %117 = vst.msk [vmem:[%s483_s7 + $0x10] sm:$0xff] %vm114_vm1, %v108_v12  ;;  %v111_v16 = vadd.f32 %v340_v15, %v306_v10  ;;  %v102_v17 = vpop.f32.mrb[3].mxu0  ;;  %v121_v19 = vmax.f32 %v108_v12, 0.0 }
  0xe1   :  { %115 = vst.msk [vmem:[%s483_s7] sm:$0xff] %vm114_vm1, %v100_v14  ;;  %v103_v18 = vadd.f32 %v306_v10, %v102_v17  ;;  %v119_v21 = vmax.f32 %v100_v14, 0.0 }
  0xe2   :  { %118 = vst.msk [vmem:[%s483_s7 + $0x18] sm:$0xff] %vm114_vm1, %v111_v16  ;;  %v122_v20 = vmax.f32 %v111_v16, 0.0 }
  0xe3   :  { %116 = vst.msk [vmem:[%s483_s7 + $0x8] sm:$0xff] %vm114_vm1, %v103_v18  ;;  %v120_v22 = vmax.f32 %v103_v18, 0.0 }
  0xe4   :  { %v129_v23 = vpack.c.bf16 %v122_v20, %v121_v19 }
  0xe5   :  { %v128_v24 = vpack.c.bf16 %v120_v22, %v119_v21 }
  0xe7   :  { %138 = vrot.lane.b32.xlu0 %v128_v24, %s364_s27 }
  0xeb   :  { %140 = vrot.lane.b32.xlu0 %v129_v23, %s364_s27 }
 0x159   :  { %v139_v25 = vpop.permute.xlu0 %138 }
 0x15a   :  { %345 = vmatprep.mubr.msk.bf16.mxu1 %vm58_vm0, %v139_v25 }
 0x15d   :  { %v141_v26 = vpop.permute.xlu0 %140 }
 0x15e   :  { %346 = vmatmul.mubr.msk.bf16.vlgmr.msra.gmra.mrb[0].mxu1 %vm58_vm0, %v141_v26 }
 0x231   :  { %v347_v30 = vpop.f32.mrb[0].mxu1 }
 0x232   :  { %v203_v31 = vadd.f32 %v347_v30, %v311_v29  ;;  %v194_v32 = vpop.f32.mrb[1].mxu1 }
 0x233   :  { %v195_v33 = vadd.f32 %v311_v29, %v194_v32  ;;  %v348_v34 = vpop.f32.mrb[2].mxu1 }
 0x234   :  { %v206_v35 = vadd.f32 %v348_v34, %v311_v29  ;;  %v197_v36 = vpop.f32.mrb[3].mxu1  ;;  %v211_v38 = vmax.f32 %v203_v31, 0.0 }
 0x235   :  { %v198_v37 = vadd.f32 %v311_v29, %v197_v36  ;;  %v209_v40 = vmax.f32 %v195_v33, 0.0 }
 0x236   :  { %v212_v39 = vmax.f32 %v206_v35, 0.0 }
 0x237   :  { %v210_v41 = vmax.f32 %v198_v37, 0.0 }
 0x238   :  { %v219_v42 = vpack.c.bf16 %v212_v39, %v211_v38 }
 0x239   :  { %v218_v43 = vpack.c.bf16 %v210_v41, %v209_v40 }
 0x23b   :  { %353 = vmatprep.mubr.msk.bf16.mxu0 %vm58_vm0, %v218_v43 }
 0x23c   :  { %354 = vmatmul.mubr.msk.bf16.vlgmr.msra.gmra.mrb[4].mxu0 %vm58_vm0, %v219_v42 }
 0x30f   :  { %v355_v45 = vpop.f32.mrb[4].mxu0 }
 0x310   :  { %v287_v46 = vadd.f32 %v355_v45, %v316_v44  ;;  %v278_v47 = vpop.f32.mrb[5].mxu0 }
 0x311   :  { %v279_v48 = vadd.f32 %v316_v44, %v278_v47  ;;  %v356_v49 = vpop.f32.mrb[6].mxu0 }
 0x312   :  { %296 = vst.msk [vmem:[%s487_s8 + $0x10] sm:$0xff] %vm293_vm2, %v287_v46  ;;  %v290_v50 = vadd.f32 %v356_v49, %v316_v44  ;;  %v281_v51 = vpop.f32.mrb[7].mxu0 }
 0x313   :  { %294 = vst.msk [vmem:[%s487_s8] sm:$0xff] %vm293_vm2, %v279_v48  ;;  %v282_v52 = vadd.f32 %v316_v44, %v281_v51 }
 0x314   :  { %297 = vst.msk [vmem:[%s487_s8 + $0x18] sm:$0xff] %vm293_vm2, %v290_v50 }
 0x315   :  { %295 = vst.msk [vmem:[%s487_s8 + $0x8] sm:$0xff] %vm293_vm2, %v282_v52 }

// kernel: predictor_forward.11
= control target key start
LH: loop header
LB: loop body
LE: loop exit
PB: predicated region body
PF: predicated region fallthrough
CT: control target
= control target key end

     0   :  { %s445_s9 = smov 0   ;;  %s447_s10 = smov 0   ;;  %s481_s0 = inlined_call_operand.vmem [shape: f32[2,16,16], index: 0, kind: input, shape index: {}]   ;;  %s482_s1 = inlined_call_operand.vmem [shape: f32[2,16,256], index: 1, kind: input, shape index: {}]   ;;  %s483_s2 = inlined_call_operand.vmem [shape: f32[2,16,256], index: 2, kind: output, shape index: {}]  }
   0x1   :  { %s449_s11 = smov 0  }
   0x2 LB: > { %s24_s12 = sadd.s32 1, %s423_s10  ;;  %p367_p0 = scmp.ge.s32.totalorder %s427_s11, 1  ;;  %s427_s11 = sphi %s449_s11, %s12_s11   ;;  %s423_s10 = sphi %s447_s10, %s485_s10   ;;  %s419_s9 = sphi %s445_s9, %s484_s9  }
   0x3   : > { %p26_p1 = scmp.ge.s32.totalorder %s24_s12, 2  ;;  %p143_p2 = scmp.lt.s32.totalorder %s427_s11, 3 }
   0x5   : > { %s487_s12 = smov (%p26_p1, %s24_s12), 0  ;;  %p144_p3 = pnand %p367_p0, %p143_p2 }
   0x6   : > { %p178_p4 = scmp.lt.s32.totalorder (!%p144_p3), %s419_s9, 1  ;;  %v429_v0 = vmov (!%p144_p3), 0   ;;  %vm213_vm0 = vcmask (!%p144_p3), 130048  }
   0x7   : > { %147 = sbr.rel (%p144_p3) target bundleno = 240 (0xf0), region = 28  ;;  %249 = vmatprep.mubr.bf16.mxu0 (!%p144_p3), %v429_v0 }
   0xe   : > { %s489_s9 = smov (!%p178_p4, %s419_s9), 1 }
   0xf   : > { %s378_s13 = sshll.u32 %s489_s9, 5  ;;  %s377_s14 = sshll.u32 %s489_s9, 4 }
  0x10   : > { %s191_s17 = scalar_lea.vmem %s482_s1, %s378_s13  ;;  %s182_s20 = scalar_lea.vmem %s481_s0, %s377_s14 }
  0x11   : > { %v208_v1 = vld [vmem:[%s191_s17 + $0x8] sm:$0xff]  ;;  %v210_v2 = vld [vmem:[%s191_s17 + $0x18] sm:$0xff]  ;;  %v207_v3 = vld [vmem:[%s191_s17] sm:$0xff]  ;;  %s201_s23 = scalar_lea.vmem %s483_s2, %s378_s13 }
  0x12   : > { %v212_v4 = vpack.c.bf16 %v210_v2, %v208_v1  ;;  %v209_v5 = vld [vmem:[%s191_s17 + $0x10] sm:$0xff]  ;;  %v204_v6 = vld [vmem:[%s182_s20] sm:$0xff]  ;;  %v205_v7 = vld [vmem:[%s182_s20 + $0x8] sm:$0xff] }
  0x13   : > { %v211_v8 = vpack.c.bf16 %v209_v5, %v207_v3  ;;  %v206_v9 = vpack.c.bf16 %v205_v7, %v204_v6 }
  0x14   : > { %217 = vmatprep.subr.bf16.mxu0 %v212_v4 }
  0x15   : > { %218 = vmatpush1.bf16.msra.mxu0 %v211_v8 }
  0x18   : > { %374 = vmatmul.mubr.msk.bf16.vlgmr.msra.gmra.mrb[0].mxu0 %vm213_vm0, %v206_v9 }
  0xeb   : > { %v251_v10 = vpop.f32.mrb[0].mxu0 }
  0xec   : > { %260 = vst [vmem:[%s201_s23] sm:$0xff] %v251_v10  ;;  %v253_v11 = vpop.f32.mrb[1].mxu0 }
  0xed   : > { %261 = vst [vmem:[%s201_s23 + $0x8] sm:$0xff] %v253_v11  ;;  %v255_v12 = vpop.f32.mrb[2].mxu0 }
  0xee   : > { %262 = vst [vmem:[%s201_s23 + $0x10] sm:$0xff] %v255_v12  ;;  %v257_v13 = vpop.f32.mrb[3].mxu0 }
  0xef   : > { %263 = vst [vmem:[%s201_s23 + $0x18] sm:$0xff] %v257_v13 }
  0xf0 PF: > { %s12_s11 = sadd.s32 1, %s427_s11   ;;  %s484_s9 = smov %s423_s10 }
  0xf1   : > { %p9_p5 = scmp.ge.s32.totalorder %s12_s11, 4   ;;  %s485_s10 = smov %s487_s12 }
  0xf3   :  { %11 = sbr.rel (!%p9_p5) target bundleno = 2 (0x2), region = 61 }

</bundles_post_ra>
